<compile_context>
chip_gen: v7x
topology: tpu7x:2x2x1
jax: 0.10.0
libtpu: 0.0.40
codegen_flags: <defaults>
</compile_context>

<pallas_src>
import functools
import math

import jax
import jax.numpy as jnp
from jax import lax
from jax.experimental import pallas as pl
from jax.experimental.pallas import tpu as pltpu

EPS = 1e-12  # matches the module; note PyTorch gLN impls often use 1e-8


def _attn_block_kernel(x_ref, s_ref, wq_ref, wkv_ref, wo_ref,
                       bq_ref, bkv_ref, bo_ref, g_ref, b_ref,
                       o_ref, ctx_ref, *, num_heads, eps):
    Bblk, T, E = x_ref.shape          # query block: Bblk samples of this batch tile
    S = s_ref.shape[1]                # source length
    H = num_heads
    D = E // H
    Mq = Bblk * T
    Ms = Bblk * S

    # ---- Input projections: bf16 MXU operands, f32 accumulation --------------------
    # (Bblk, T, E) -> (Bblk*T, E): merging batch into the sublane axis keeps (8,128)
    # tiling (T % 8 == 0) and raises projection M to Bblk*T (good MXU fill).
    x_f32 = x_ref[...].astype(jnp.float32).reshape(Mq, E)   # residual kept in f32
    x_bf = x_f32.astype(jnp.bfloat16)
    s_bf = s_ref[...].astype(jnp.bfloat16).reshape(Ms, E)

    # 1/sqrt(D) is already folded into wq/bq by the wrapper.
    q = jnp.dot(x_bf, wq_ref[...], preferred_element_type=jnp.float32) + bq_ref[...]
    # Fused K/V projection: one (Ms, E) x (E, 2E) matmul.
    kv = jnp.dot(s_bf, wkv_ref[...], preferred_element_type=jnp.float32) + bkv_ref[...]

    q_bf = q.astype(jnp.bfloat16)
    k_bf = kv[:, :E].astype(jnp.bfloat16)
    v_bf = kv[:, E:].astype(jnp.bfloat16)

    # ---- Attention per (sample, head): static sublane/lane slices, no relayout ------
    # TODO(synk): for very long src sequences add a KV grid axis ("arbitrary") with
    #             online-softmax accumulation instead of materializing (T, S) logits.
    for b in range(Bblk):
        for h in range(H):
            qs = q_bf[b * T:(b + 1) * T, h * D:(h + 1) * D]        # (T, D)
            ks = k_bf[b * S:(b + 1) * S, h * D:(h + 1) * D]        # (S, D)
            vs = v_bf[b * S:(b + 1) * S, h * D:(h + 1) * D]        # (S, D)
            # QK^T contracting on D (no explicit transpose / XLU work).
            logits = lax.dot_general(qs, ks, (((1,), (1,)), ((), ())),
                                     preferred_element_type=jnp.float32)   # (T, S)
            logits = logits - jnp.max(logits, axis=-1, keepdims=True)
            p = jnp.exp(logits)
            # EUP approx reciprocal (~2e-4 rel) is below the bf16-matmul noise floor.
            p = p * pl.reciprocal(jnp.sum(p, axis=-1, keepdims=True), approx=True)
            ctx = jnp.dot(p.astype(jnp.bfloat16), vs,
                          preferred_element_type=jnp.float32)               # (T, D)
            ctx_ref[b * T:(b + 1) * T, h * D:(h + 1) * D] = ctx.astype(jnp.bfloat16)

    # ---- Output projection + residual (f32) -----------------------------------------
    y = (jnp.dot(ctx_ref[...], wo_ref[...], preferred_element_type=jnp.float32)
         + bo_ref[...] + x_f32)                                             # (Mq, E)

    # ---- gLN: per-sample stats over (T, E); two-pass centered variance in f32 -------
    y3 = y.reshape(Bblk, T, E)
    inv_n = 1.0 / float(T * E)

    def _mean_te(a):  # reduce lanes then sublanes -> (Bblk, 1, 1)
        return jnp.sum(jnp.sum(a, axis=2, keepdims=True), axis=1, keepdims=True) * inv_n

    mu = _mean_te(y3)
    yc = y3 - mu
    var = _mean_te(yc * yc)
    yn = yc * lax.rsqrt(var + eps)
    o_ref[...] = (g_ref[...] * yn + b_ref[...]).astype(o_ref.dtype)
    # TODO(synk): dropout path (p>0) omitted -- module defaults to dropout=0 (identity).


def src_mha_block(x_tbe, src_sbe, params, *, num_heads, eps=EPS, block_b=None):
    """input (T, B, E), src (S, B, E) -> output (T, B, E)  (module layout)."""
    T, B, E = x_tbe.shape
    S, Bs, Es = src_sbe.shape
    assert Bs == B and Es == E and E % num_heads == 0
    D = E // num_heads

    if block_b is None:
        # Largest divisor of B that still leaves >= 2 grid steps (v7x megacore);
        # on v5e/v6e the extra step is only ~0.35us of loop overhead.
        block_b = 1
        for cand in range(max(1, B // 2), 0, -1):
            if B % cand == 0:
                block_b = cand
                break
    assert B % block_b == 0
    grid_b = B // block_b

    # One-time layout change to (B, T, E): per-block DMAs become contiguous and the
    # output stays lane-dense (avoids sublane-strided per-sample reads from (T, B, E)).
    x_bte = jnp.transpose(x_tbe, (1, 0, 2))
    s_bse = jnp.transpose(src_sbe, (1, 0, 2))

    f32, bf16 = jnp.float32, jnp.bfloat16
    scale = 1.0 / math.sqrt(D)
    # bf16 weight storage (halves weight HBM traffic / VMEM residency); fold 1/sqrt(D)
    # into the Q projection; fuse K/V weights+biases into one (E, 2E)/(1, 2E) pair.
    wq = (params["wq"] * scale).astype(bf16)
    wkv = jnp.concatenate([params["wk"], params["wv"]], axis=1).astype(bf16)
    wo = params["wo"].astype(bf16)
    bq = (params["bq"] * scale).astype(f32)
    bkv = jnp.concatenate([params["bk"], params["bv"]], axis=1).astype(f32)
    bo = params["bo"].astype(f32)
    gamma = params["gamma"].astype(f32)
    beta = params["beta"].astype(f32)

    kernel = functools.partial(_attn_block_kernel, num_heads=num_heads, eps=eps)

    # Grid-invariant params: whole array resident in VMEM (single-buffered, no per-step DMA).
    param_spec = pl.BlockSpec(memory_space=pltpu.MemorySpace.VMEM)

    x_spec = pl.BlockSpec((block_b, T, E), lambda b: (b, 0, 0))
    s_spec = pl.BlockSpec((block_b, S, E), lambda b: (b, 0, 0))
    o_spec = pl.BlockSpec((block_b, T, E), lambda b: (b, 0, 0))

    out_bte = pl.pallas_call(
        kernel,
        out_shape=jax.ShapeDtypeStruct((B, T, E), x_tbe.dtype),
        grid_spec=pltpu.PrefetchScalarGridSpec(
            num_scalar_prefetch=0,
            grid=(grid_b,),
            in_specs=[x_spec, s_spec,
                      param_spec, param_spec, param_spec,   # wq, wkv, wo (bf16)
                      param_spec, param_spec, param_spec,   # bq, bkv, bo (f32)
                      param_spec, param_spec],              # gamma, beta (f32)
            out_specs=o_spec,
            scratch_shapes=[pltpu.VMEM((block_b * T, E), bf16)],   # assembled context
        ),
        compiler_params=pltpu.CompilerParams(
            dimension_semantics=("parallel",),        # batch-block axis (megacore on v7x)
            vmem_limit_bytes=48 * 1024 * 1024,        # explicit cap; fits v7x's 64 MiB
        ),
    )(x_bte, s_bse, wq, wkv, wo, bq, bkv, bo, gamma, beta)

    return jnp.transpose(out_bte, (1, 0, 2))


def _reference(x_tbe, src_sbe, params, *, num_heads, eps=EPS):
    """Pure-JAX f32 reference of the module math."""
    T, B, E = x_tbe.shape
    d = E // num_heads
    x = jnp.transpose(x_tbe, (1, 0, 2))
    s = jnp.transpose(src_sbe, (1, 0, 2))
    q = x @ params["wq"] + params["bq"]
    k = s @ params["wk"] + params["bk"]
    v = s @ params["wv"] + params["bv"]
    qh = q.reshape(B, T, num_heads, d).transpose(0, 2, 1, 3) / jnp.sqrt(d)
    kh = k.reshape(B, -1, num_heads, d).transpose(0, 2, 1, 3)
    vh = v.reshape(B, -1, num_heads, d).transpose(0, 2, 1, 3)
    p = jax.nn.softmax(jnp.einsum("bhtd,bhsd->bhts", qh, kh), axis=-1)
    ctx = jnp.einsum("bhts,bhsd->bhtd", p, vh).transpose(0, 2, 1, 3).reshape(B, T, E)
    y = ctx @ params["wo"] + params["bo"] + x
    mu = jnp.mean(y, axis=(1, 2), keepdims=True)
    var = jnp.mean((y - mu) ** 2, axis=(1, 2), keepdims=True)
    y = params["gamma"] * (y - mu) / jnp.sqrt(var + eps) + params["beta"]
    return jnp.transpose(y, (1, 0, 2))


def init_params(key, embed_dim):
    ks = jax.random.split(key, 8)
    E = embed_dim
    scale = 1.0 / math.sqrt(E)
    return {
        # projection weights in "right-multiply" layout: y = x @ W + b
        "wq": jax.random.normal(ks[0], (E, E), jnp.float32) * scale,
        "wk": jax.random.normal(ks[1], (E, E), jnp.float32) * scale,
        "wv": jax.random.normal(ks[2], (E, E), jnp.float32) * scale,
        "wo": jax.random.normal(ks[3], (E, E), jnp.float32) * scale,
        "bq": jax.random.normal(ks[4], (1, E), jnp.float32) * 0.02,
        "bk": jnp.zeros((1, E), jnp.float32),
        "bv": jax.random.normal(ks[5], (1, E), jnp.float32) * 0.02,
        "bo": jnp.zeros((1, E), jnp.float32),
        # gLN affine params (per embedding channel)
        "gamma": 1.0 + 0.1 * jax.random.normal(ks[6], (1, E), jnp.float32),
        "beta": 0.1 * jax.random.normal(ks[7], (1, E), jnp.float32),
    }


if __name__ == "__main__":
    # TPU-friendly small config: E=512 with head_dim=128 keeps head slices lane-aligned,
    # T=64/S=128 with Bblk=2 gives projection M of 128/256 (good MXU fill) and S=128
    # fills the softmax lanes; B=4 -> 2 parallel grid steps for v7x megacore.
    T, S, B, E, H = 64, 128, 4, 512, 4

    key = jax.random.PRNGKey(0)
    kx, ksrc, kp = jax.random.split(key, 3)
    x = jax.random.normal(kx, (T, B, E), jnp.float32)      # (T, batch, embed)
    src = jax.random.normal(ksrc, (S, B, E), jnp.float32)  # (S, batch, embed)
    params = init_params(kp, E)

    out = jax.block_until_ready(src_mha_block(x, src, params, num_heads=H))

    ref = _reference(x, src, params, num_heads=H)
    assert out.shape == (T, B, E)
    max_err = float(jnp.max(jnp.abs(out - ref)))
    # bf16 MXU operands with f32 accumulation: expect a few e-3 absolute error on the
    # unit-scale gLN output; 5e-2 leaves margin without hiding structural bugs.
    assert jnp.allclose(out, ref, atol=5e-2, rtol=5e-2), f"mismatch vs reference: {max_err}"

    print("KERNEL_OK")
</pallas_src>

<mosaic_0001>
module attributes {stable_mosaic.version = 11 : i64} {
  func.func @_attn_block_kernel(%arg0: i32, %arg1: memref<2x64x512xf32, #tpu.memory_space<vmem>>, %arg2: memref<2x128x512xf32, #tpu.memory_space<vmem>>, %arg3: memref<512x512xbf16, #tpu.memory_space<vmem>>, %arg4: memref<512x1024xbf16, #tpu.memory_space<vmem>>, %arg5: memref<512x512xbf16, #tpu.memory_space<vmem>>, %arg6: memref<1x512xf32, #tpu.memory_space<vmem>>, %arg7: memref<1x1024xf32, #tpu.memory_space<vmem>>, %arg8: memref<1x512xf32, #tpu.memory_space<vmem>>, %arg9: memref<1x512xf32, #tpu.memory_space<vmem>>, %arg10: memref<1x512xf32, #tpu.memory_space<vmem>>, %arg11: memref<2x64x512xf32, #tpu.memory_space<vmem>>, %arg12: memref<128x512xbf16, #tpu.memory_space<vmem>>) attributes {dimension_semantics = [#tpu.dimension_semantics<parallel>], iteration_bounds = array<i64: 2>, scalar_prefetch = 0 : i64, scratch_operands = 1 : i64, tpu.core_type = #tpu.core_type<tc>, window_params = [{transform_indices = @transform_0, window_bounds = array<i64: 2, 64, 512>}, {transform_indices = @transform_1, window_bounds = array<i64: 2, 128, 512>}, {pipeline_mode = #tpu.pipeline_mode<synchronous>, transform_indices = @transform_2, window_bounds = array<i64: 512, 512>}, {pipeline_mode = #tpu.pipeline_mode<synchronous>, transform_indices = @transform_3, window_bounds = array<i64: 512, 1024>}, {pipeline_mode = #tpu.pipeline_mode<synchronous>, transform_indices = @transform_4, window_bounds = array<i64: 512, 512>}, {pipeline_mode = #tpu.pipeline_mode<synchronous>, transform_indices = @transform_5, window_bounds = array<i64: 1, 512>}, {pipeline_mode = #tpu.pipeline_mode<synchronous>, transform_indices = @transform_6, window_bounds = array<i64: 1, 1024>}, {pipeline_mode = #tpu.pipeline_mode<synchronous>, transform_indices = @transform_7, window_bounds = array<i64: 1, 512>}, {pipeline_mode = #tpu.pipeline_mode<synchronous>, transform_indices = @transform_8, window_bounds = array<i64: 1, 512>}, {pipeline_mode = #tpu.pipeline_mode<synchronous>, transform_indices = @transform_9, window_bounds = array<i64: 1, 512>}, {transform_indices = @transform_10, window_bounds = array<i64: 2, 64, 512>}]} {
    %c0 = arith.constant 0 : index
    %c0_0 = arith.constant 0 : index
    %c0_1 = arith.constant 0 : index
    %0 = vector.load %arg1[%c0, %c0_0, %c0_1] : memref<2x64x512xf32, #tpu.memory_space<vmem>>, vector<2x64x512xf32>
    %1 = vector.shape_cast %0 : vector<2x64x512xf32> to vector<128x512xf32>
    %2 = arith.truncf %1 : vector<128x512xf32> to vector<128x512xbf16>
    %c0_2 = arith.constant 0 : index
    %c0_3 = arith.constant 0 : index
    %c0_4 = arith.constant 0 : index
    %3 = vector.load %arg2[%c0_2, %c0_3, %c0_4] : memref<2x128x512xf32, #tpu.memory_space<vmem>>, vector<2x128x512xf32>
    %4 = arith.truncf %3 : vector<2x128x512xf32> to vector<2x128x512xbf16>
    %5 = vector.shape_cast %4 : vector<2x128x512xbf16> to vector<256x512xbf16>
    %c0_5 = arith.constant 0 : index
    %c0_6 = arith.constant 0 : index
    %6 = vector.load %arg3[%c0_5, %c0_6] : memref<512x512xbf16, #tpu.memory_space<vmem>>, vector<512x512xbf16>
    %cst = arith.constant dense<0.000000e+00> : vector<128x512xf32>
    %7 = tpu.matmul %2, %6, %cst {dimension_numbers = #tpu.dot_dimension_numbers<[1], [0], [0], [1], [0, 0, 1, 1], [], []>} : vector<128x512xbf16>, vector<512x512xbf16>, vector<128x512xf32> -> vector<128x512xf32>
    %c0_7 = arith.constant 0 : index
    %c0_8 = arith.constant 0 : index
    %8 = vector.load %arg6[%c0_7, %c0_8] : memref<1x512xf32, #tpu.memory_space<vmem>>, vector<1x512xf32>
    %9 = vector.broadcast %8 : vector<1x512xf32> to vector<128x512xf32>
    %10 = arith.addf %7, %9 : vector<128x512xf32>
    %c0_9 = arith.constant 0 : index
    %c0_10 = arith.constant 0 : index
    %11 = vector.load %arg4[%c0_9, %c0_10] : memref<512x1024xbf16, #tpu.memory_space<vmem>>, vector<512x1024xbf16>
    %cst_11 = arith.constant dense<0.000000e+00> : vector<256x1024xf32>
    %12 = tpu.matmul %5, %11, %cst_11 {dimension_numbers = #tpu.dot_dimension_numbers<[1], [0], [0], [1], [0, 0, 1, 1], [], []>} : vector<256x512xbf16>, vector<512x1024xbf16>, vector<256x1024xf32> -> vector<256x1024xf32>
    %c0_12 = arith.constant 0 : index
    %c0_13 = arith.constant 0 : index
    %13 = vector.load %arg7[%c0_12, %c0_13] : memref<1x1024xf32, #tpu.memory_space<vmem>>, vector<1x1024xf32>
    %14 = vector.broadcast %13 : vector<1x1024xf32> to vector<256x1024xf32>
    %15 = arith.addf %12, %14 : vector<256x1024xf32>
    %16 = arith.truncf %10 : vector<128x512xf32> to vector<128x512xbf16>
    %17 = vector.extract_strided_slice %15 {offsets = [0, 0], sizes = [256, 512], strides = [1, 1]} : vector<256x1024xf32> to vector<256x512xf32>
    %18 = arith.truncf %17 : vector<256x512xf32> to vector<256x512xbf16>
    %19 = vector.extract_strided_slice %15 {offsets = [0, 512], sizes = [256, 512], strides = [1, 1]} : vector<256x1024xf32> to vector<256x512xf32>
    %20 = arith.truncf %19 : vector<256x512xf32> to vector<256x512xbf16>
    %21 = vector.extract_strided_slice %16 {offsets = [0, 0], sizes = [64, 128], strides = [1, 1]} : vector<128x512xbf16> to vector<64x128xbf16>
    %22 = vector.extract_strided_slice %18 {offsets = [0, 0], sizes = [128, 128], strides = [1, 1]} : vector<256x512xbf16> to vector<128x128xbf16>
    %23 = vector.extract_strided_slice %20 {offsets = [0, 0], sizes = [128, 128], strides = [1, 1]} : vector<256x512xbf16> to vector<128x128xbf16>
    %cst_14 = arith.constant dense<0.000000e+00> : vector<64x128xf32>
    %24 = tpu.matmul %21, %22, %cst_14 {dimension_numbers = #tpu.dot_dimension_numbers<[1], [1], [0], [0], [0, 0, 1, 0], [], []>} : vector<64x128xbf16>, vector<128x128xbf16>, vector<64x128xf32> -> vector<64x128xf32>
    %cst_15 = arith.constant dense<0xFF800000> : vector<64xf32>
    %25 = vector.multi_reduction <maximumf>, %24, %cst_15 [1] : vector<64x128xf32> to vector<64xf32>
    %26 = vector.shape_cast %25 : vector<64xf32> to vector<64x1xf32>
    %27 = vector.broadcast %26 : vector<64x1xf32> to vector<64x128xf32>
    %28 = arith.subf %24, %27 : vector<64x128xf32>
    %29 = math.exp %28 : vector<64x128xf32>
    %cst_16 = arith.constant dense<0.000000e+00> : vector<64xf32>
    %30 = vector.multi_reduction <add>, %29, %cst_16 [1] : vector<64x128xf32> to vector<64xf32>
    %31 = vector.shape_cast %30 : vector<64xf32> to vector<64x1xf32>
    %32 = tpu.reciprocal %31 {approx = true} : vector<64x1xf32> -> vector<64x1xf32>
    %33 = vector.broadcast %32 : vector<64x1xf32> to vector<64x128xf32>
    %34 = arith.mulf %29, %33 : vector<64x128xf32>
    %35 = arith.truncf %34 : vector<64x128xf32> to vector<64x128xbf16>
    %cst_17 = arith.constant dense<0.000000e+00> : vector<64x128xf32>
    %36 = tpu.matmul %35, %23, %cst_17 {dimension_numbers = #tpu.dot_dimension_numbers<[1], [0], [0], [1], [0, 0, 1, 1], [], []>} : vector<64x128xbf16>, vector<128x128xbf16>, vector<64x128xf32> -> vector<64x128xf32>
    %37 = arith.truncf %36 : vector<64x128xf32> to vector<64x128xbf16>
    %c0_18 = arith.constant 0 : index
    %c0_19 = arith.constant 0 : index
    %38 = vector.load %arg12[%c0_18, %c0_19] : memref<128x512xbf16, #tpu.memory_space<vmem>>, vector<64x128xbf16>
    tpu.vector_store %arg12[%c0_18, %c0_19], %37 {strides = array<i32>} : memref<128x512xbf16, #tpu.memory_space<vmem>>, vector<64x128xbf16>,
    %39 = vector.extract_strided_slice %16 {offsets = [0, 128], sizes = [64, 128], strides = [1, 1]} : vector<128x512xbf16> to vector<64x128xbf16>
    %40 = vector.extract_strided_slice %18 {offsets = [0, 128], sizes = [128, 128], strides = [1, 1]} : vector<256x512xbf16> to vector<128x128xbf16>
    %41 = vector.extract_strided_slice %20 {offsets = [0, 128], sizes = [128, 128], strides = [1, 1]} : vector<256x512xbf16> to vector<128x128xbf16>
    %cst_20 = arith.constant dense<0.000000e+00> : vector<64x128xf32>
    %42 = tpu.matmul %39, %40, %cst_20 {dimension_numbers = #tpu.dot_dimension_numbers<[1], [1], [0], [0], [0, 0, 1, 0], [], []>} : vector<64x128xbf16>, vector<128x128xbf16>, vector<64x128xf32> -> vector<64x128xf32>
    %cst_21 = arith.constant dense<0xFF800000> : vector<64xf32>
    %43 = vector.multi_reduction <maximumf>, %42, %cst_21 [1] : vector<64x128xf32> to vector<64xf32>
    %44 = vector.shape_cast %43 : vector<64xf32> to vector<64x1xf32>
    %45 = vector.broadcast %44 : vector<64x1xf32> to vector<64x128xf32>
    %46 = arith.subf %42, %45 : vector<64x128xf32>
    %47 = math.exp %46 : vector<64x128xf32>
    %cst_22 = arith.constant dense<0.000000e+00> : vector<64xf32>
    %48 = vector.multi_reduction <add>, %47, %cst_22 [1] : vector<64x128xf32> to vector<64xf32>
    %49 = vector.shape_cast %48 : vector<64xf32> to vector<64x1xf32>
    %50 = tpu.reciprocal %49 {approx = true} : vector<64x1xf32> -> vector<64x1xf32>
    %51 = vector.broadcast %50 : vector<64x1xf32> to vector<64x128xf32>
    %52 = arith.mulf %47, %51 : vector<64x128xf32>
    %53 = arith.truncf %52 : vector<64x128xf32> to vector<64x128xbf16>
    %cst_23 = arith.constant dense<0.000000e+00> : vector<64x128xf32>
    %54 = tpu.matmul %53, %41, %cst_23 {dimension_numbers = #tpu.dot_dimension_numbers<[1], [0], [0], [1], [0, 0, 1, 1], [], []>} : vector<64x128xbf16>, vector<128x128xbf16>, vector<64x128xf32> -> vector<64x128xf32>
    %55 = arith.truncf %54 : vector<64x128xf32> to vector<64x128xbf16>
    %c0_24 = arith.constant 0 : index
    %c128 = arith.constant 128 : index
    %56 = vector.load %arg12[%c0_24, %c128] : memref<128x512xbf16, #tpu.memory_space<vmem>>, vector<64x128xbf16>
    tpu.vector_store %arg12[%c0_24, %c128], %55 {strides = array<i32>} : memref<128x512xbf16, #tpu.memory_space<vmem>>, vector<64x128xbf16>,
    %57 = vector.extract_strided_slice %16 {offsets = [0, 256], sizes = [64, 128], strides = [1, 1]} : vector<128x512xbf16> to vector<64x128xbf16>
    %58 = vector.extract_strided_slice %18 {offsets = [0, 256], sizes = [128, 128], strides = [1, 1]} : vector<256x512xbf16> to vector<128x128xbf16>
    %59 = vector.extract_strided_slice %20 {offsets = [0, 256], sizes = [128, 128], strides = [1, 1]} : vector<256x512xbf16> to vector<128x128xbf16>
    %cst_25 = arith.constant dense<0.000000e+00> : vector<64x128xf32>
    %60 = tpu.matmul %57, %58, %cst_25 {dimension_numbers = #tpu.dot_dimension_numbers<[1], [1], [0], [0], [0, 0, 1, 0], [], []>} : vector<64x128xbf16>, vector<128x128xbf16>, vector<64x128xf32> -> vector<64x128xf32>
    %cst_26 = arith.constant dense<0xFF800000> : vector<64xf32>
    %61 = vector.multi_reduction <maximumf>, %60, %cst_26 [1] : vector<64x128xf32> to vector<64xf32>
    %62 = vector.shape_cast %61 : vector<64xf32> to vector<64x1xf32>
    %63 = vector.broadcast %62 : vector<64x1xf32> to vector<64x128xf32>
    %64 = arith.subf %60, %63 : vector<64x128xf32>
    %65 = math.exp %64 : vector<64x128xf32>
    %cst_27 = arith.constant dense<0.000000e+00> : vector<64xf32>
    %66 = vector.multi_reduction <add>, %65, %cst_27 [1] : vector<64x128xf32> to vector<64xf32>
    %67 = vector.shape_cast %66 : vector<64xf32> to vector<64x1xf32>
    %68 = tpu.reciprocal %67 {approx = true} : vector<64x1xf32> -> vector<64x1xf32>
    %69 = vector.broadcast %68 : vector<64x1xf32> to vector<64x128xf32>
    %70 = arith.mulf %65, %69 : vector<64x128xf32>
    %71 = arith.truncf %70 : vector<64x128xf32> to vector<64x128xbf16>
    %cst_28 = arith.constant dense<0.000000e+00> : vector<64x128xf32>
    %72 = tpu.matmul %71, %59, %cst_28 {dimension_numbers = #tpu.dot_dimension_numbers<[1], [0], [0], [1], [0, 0, 1, 1], [], []>} : vector<64x128xbf16>, vector<128x128xbf16>, vector<64x128xf32> -> vector<64x128xf32>
    %73 = arith.truncf %72 : vector<64x128xf32> to vector<64x128xbf16>
    %c0_29 = arith.constant 0 : index
    %c256 = arith.constant 256 : index
    %74 = vector.load %arg12[%c0_29, %c256] : memref<128x512xbf16, #tpu.memory_space<vmem>>, vector<64x128xbf16>
    tpu.vector_store %arg12[%c0_29, %c256], %73 {strides = array<i32>} : memref<128x512xbf16, #tpu.memory_space<vmem>>, vector<64x128xbf16>,
    %75 = vector.extract_strided_slice %16 {offsets = [0, 384], sizes = [64, 128], strides = [1, 1]} : vector<128x512xbf16> to vector<64x128xbf16>
    %76 = vector.extract_strided_slice %18 {offsets = [0, 384], sizes = [128, 128], strides = [1, 1]} : vector<256x512xbf16> to vector<128x128xbf16>
    %77 = vector.extract_strided_slice %20 {offsets = [0, 384], sizes = [128, 128], strides = [1, 1]} : vector<256x512xbf16> to vector<128x128xbf16>
    %cst_30 = arith.constant dense<0.000000e+00> : vector<64x128xf32>
    %78 = tpu.matmul %75, %76, %cst_30 {dimension_numbers = #tpu.dot_dimension_numbers<[1], [1], [0], [0], [0, 0, 1, 0], [], []>} : vector<64x128xbf16>, vector<128x128xbf16>, vector<64x128xf32> -> vector<64x128xf32>
    %cst_31 = arith.constant dense<0xFF800000> : vector<64xf32>
    %79 = vector.multi_reduction <maximumf>, %78, %cst_31 [1] : vector<64x128xf32> to vector<64xf32>
    %80 = vector.shape_cast %79 : vector<64xf32> to vector<64x1xf32>
    %81 = vector.broadcast %80 : vector<64x1xf32> to vector<64x128xf32>
    %82 = arith.subf %78, %81 : vector<64x128xf32>
    %83 = math.exp %82 : vector<64x128xf32>
    %cst_32 = arith.constant dense<0.000000e+00> : vector<64xf32>
    %84 = vector.multi_reduction <add>, %83, %cst_32 [1] : vector<64x128xf32> to vector<64xf32>
    %85 = vector.shape_cast %84 : vector<64xf32> to vector<64x1xf32>
    %86 = tpu.reciprocal %85 {approx = true} : vector<64x1xf32> -> vector<64x1xf32>
    %87 = vector.broadcast %86 : vector<64x1xf32> to vector<64x128xf32>
    %88 = arith.mulf %83, %87 : vector<64x128xf32>
    %89 = arith.truncf %88 : vector<64x128xf32> to vector<64x128xbf16>
    %cst_33 = arith.constant dense<0.000000e+00> : vector<64x128xf32>
    %90 = tpu.matmul %89, %77, %cst_33 {dimension_numbers = #tpu.dot_dimension_numbers<[1], [0], [0], [1], [0, 0, 1, 1], [], []>} : vector<64x128xbf16>, vector<128x128xbf16>, vector<64x128xf32> -> vector<64x128xf32>
    %91 = arith.truncf %90 : vector<64x128xf32> to vector<64x128xbf16>
    %c0_34 = arith.constant 0 : index
    %c384 = arith.constant 384 : index
    %92 = vector.load %arg12[%c0_34, %c384] : memref<128x512xbf16, #tpu.memory_space<vmem>>, vector<64x128xbf16>
    tpu.vector_store %arg12[%c0_34, %c384], %91 {strides = array<i32>} : memref<128x512xbf16, #tpu.memory_space<vmem>>, vector<64x128xbf16>,
    %93 = vector.extract_strided_slice %16 {offsets = [64, 0], sizes = [64, 128], strides = [1, 1]} : vector<128x512xbf16> to vector<64x128xbf16>
    %94 = vector.extract_strided_slice %18 {offsets = [128, 0], sizes = [128, 128], strides = [1, 1]} : vector<256x512xbf16> to vector<128x128xbf16>
    %95 = vector.extract_strided_slice %20 {offsets = [128, 0], sizes = [128, 128], strides = [1, 1]} : vector<256x512xbf16> to vector<128x128xbf16>
    %cst_35 = arith.constant dense<0.000000e+00> : vector<64x128xf32>
    %96 = tpu.matmul %93, %94, %cst_35 {dimension_numbers = #tpu.dot_dimension_numbers<[1], [1], [0], [0], [0, 0, 1, 0], [], []>} : vector<64x128xbf16>, vector<128x128xbf16>, vector<64x128xf32> -> vector<64x128xf32>
    %cst_36 = arith.constant dense<0xFF800000> : vector<64xf32>
    %97 = vector.multi_reduction <maximumf>, %96, %cst_36 [1] : vector<64x128xf32> to vector<64xf32>
    %98 = vector.shape_cast %97 : vector<64xf32> to vector<64x1xf32>
    %99 = vector.broadcast %98 : vector<64x1xf32> to vector<64x128xf32>
    %100 = arith.subf %96, %99 : vector<64x128xf32>
    %101 = math.exp %100 : vector<64x128xf32>
    %cst_37 = arith.constant dense<0.000000e+00> : vector<64xf32>
    %102 = vector.multi_reduction <add>, %101, %cst_37 [1] : vector<64x128xf32> to vector<64xf32>
    %103 = vector.shape_cast %102 : vector<64xf32> to vector<64x1xf32>
    %104 = tpu.reciprocal %103 {approx = true} : vector<64x1xf32> -> vector<64x1xf32>
    %105 = vector.broadcast %104 : vector<64x1xf32> to vector<64x128xf32>
    %106 = arith.mulf %101, %105 : vector<64x128xf32>
    %107 = arith.truncf %106 : vector<64x128xf32> to vector<64x128xbf16>
    %cst_38 = arith.constant dense<0.000000e+00> : vector<64x128xf32>
    %108 = tpu.matmul %107, %95, %cst_38 {dimension_numbers = #tpu.dot_dimension_numbers<[1], [0], [0], [1], [0, 0, 1, 1], [], []>} : vector<64x128xbf16>, vector<128x128xbf16>, vector<64x128xf32> -> vector<64x128xf32>
    %109 = arith.truncf %108 : vector<64x128xf32> to vector<64x128xbf16>
    %c64 = arith.constant 64 : index
    %c0_39 = arith.constant 0 : index
    %110 = vector.load %arg12[%c64, %c0_39] : memref<128x512xbf16, #tpu.memory_space<vmem>>, vector<64x128xbf16>
    tpu.vector_store %arg12[%c64, %c0_39], %109 {strides = array<i32>} : memref<128x512xbf16, #tpu.memory_space<vmem>>, vector<64x128xbf16>,
    %111 = vector.extract_strided_slice %16 {offsets = [64, 128], sizes = [64, 128], strides = [1, 1]} : vector<128x512xbf16> to vector<64x128xbf16>
    %112 = vector.extract_strided_slice %18 {offsets = [128, 128], sizes = [128, 128], strides = [1, 1]} : vector<256x512xbf16> to vector<128x128xbf16>
    %113 = vector.extract_strided_slice %20 {offsets = [128, 128], sizes = [128, 128], strides = [1, 1]} : vector<256x512xbf16> to vector<128x128xbf16>
    %cst_40 = arith.constant dense<0.000000e+00> : vector<64x128xf32>
    %114 = tpu.matmul %111, %112, %cst_40 {dimension_numbers = #tpu.dot_dimension_numbers<[1], [1], [0], [0], [0, 0, 1, 0], [], []>} : vector<64x128xbf16>, vector<128x128xbf16>, vector<64x128xf32> -> vector<64x128xf32>
    %cst_41 = arith.constant dense<0xFF800000> : vector<64xf32>
    %115 = vector.multi_reduction <maximumf>, %114, %cst_41 [1] : vector<64x128xf32> to vector<64xf32>
    %116 = vector.shape_cast %115 : vector<64xf32> to vector<64x1xf32>
    %117 = vector.broadcast %116 : vector<64x1xf32> to vector<64x128xf32>
    %118 = arith.subf %114, %117 : vector<64x128xf32>
    %119 = math.exp %118 : vector<64x128xf32>
    %cst_42 = arith.constant dense<0.000000e+00> : vector<64xf32>
    %120 = vector.multi_reduction <add>, %119, %cst_42 [1] : vector<64x128xf32> to vector<64xf32>
    %121 = vector.shape_cast %120 : vector<64xf32> to vector<64x1xf32>
    %122 = tpu.reciprocal %121 {approx = true} : vector<64x1xf32> -> vector<64x1xf32>
    %123 = vector.broadcast %122 : vector<64x1xf32> to vector<64x128xf32>
    %124 = arith.mulf %119, %123 : vector<64x128xf32>
    %125 = arith.truncf %124 : vector<64x128xf32> to vector<64x128xbf16>
    %cst_43 = arith.constant dense<0.000000e+00> : vector<64x128xf32>
    %126 = tpu.matmul %125, %113, %cst_43 {dimension_numbers = #tpu.dot_dimension_numbers<[1], [0], [0], [1], [0, 0, 1, 1], [], []>} : vector<64x128xbf16>, vector<128x128xbf16>, vector<64x128xf32> -> vector<64x128xf32>
    %127 = arith.truncf %126 : vector<64x128xf32> to vector<64x128xbf16>
    %c64_44 = arith.constant 64 : index
    %c128_45 = arith.constant 128 : index
    %128 = vector.load %arg12[%c64_44, %c128_45] : memref<128x512xbf16, #tpu.memory_space<vmem>>, vector<64x128xbf16>
    tpu.vector_store %arg12[%c64_44, %c128_45], %127 {strides = array<i32>} : memref<128x512xbf16, #tpu.memory_space<vmem>>, vector<64x128xbf16>,
    %129 = vector.extract_strided_slice %16 {offsets = [64, 256], sizes = [64, 128], strides = [1, 1]} : vector<128x512xbf16> to vector<64x128xbf16>
    %130 = vector.extract_strided_slice %18 {offsets = [128, 256], sizes = [128, 128], strides = [1, 1]} : vector<256x512xbf16> to vector<128x128xbf16>
    %131 = vector.extract_strided_slice %20 {offsets = [128, 256], sizes = [128, 128], strides = [1, 1]} : vector<256x512xbf16> to vector<128x128xbf16>
    %cst_46 = arith.constant dense<0.000000e+00> : vector<64x128xf32>
    %132 = tpu.matmul %129, %130, %cst_46 {dimension_numbers = #tpu.dot_dimension_numbers<[1], [1], [0], [0], [0, 0, 1, 0], [], []>} : vector<64x128xbf16>, vector<128x128xbf16>, vector<64x128xf32> -> vector<64x128xf32>
    %cst_47 = arith.constant dense<0xFF800000> : vector<64xf32>
    %133 = vector.multi_reduction <maximumf>, %132, %cst_47 [1] : vector<64x128xf32> to vector<64xf32>
    %134 = vector.shape_cast %133 : vector<64xf32> to vector<64x1xf32>
    %135 = vector.broadcast %134 : vector<64x1xf32> to vector<64x128xf32>
    %136 = arith.subf %132, %135 : vector<64x128xf32>
    %137 = math.exp %136 : vector<64x128xf32>
    %cst_48 = arith.constant dense<0.000000e+00> : vector<64xf32>
    %138 = vector.multi_reduction <add>, %137, %cst_48 [1] : vector<64x128xf32> to vector<64xf32>
    %139 = vector.shape_cast %138 : vector<64xf32> to vector<64x1xf32>
    %140 = tpu.reciprocal %139 {approx = true} : vector<64x1xf32> -> vector<64x1xf32>
    %141 = vector.broadcast %140 : vector<64x1xf32> to vector<64x128xf32>
    %142 = arith.mulf %137, %141 : vector<64x128xf32>
    %143 = arith.truncf %142 : vector<64x128xf32> to vector<64x128xbf16>
    %cst_49 = arith.constant dense<0.000000e+00> : vector<64x128xf32>
    %144 = tpu.matmul %143, %131, %cst_49 {dimension_numbers = #tpu.dot_dimension_numbers<[1], [0], [0], [1], [0, 0, 1, 1], [], []>} : vector<64x128xbf16>, vector<128x128xbf16>, vector<64x128xf32> -> vector<64x128xf32>
    %145 = arith.truncf %144 : vector<64x128xf32> to vector<64x128xbf16>
    %c64_50 = arith.constant 64 : index
    %c256_51 = arith.constant 256 : index
    %146 = vector.load %arg12[%c64_50, %c256_51] : memref<128x512xbf16, #tpu.memory_space<vmem>>, vector<64x128xbf16>
    tpu.vector_store %arg12[%c64_50, %c256_51], %145 {strides = array<i32>} : memref<128x512xbf16, #tpu.memory_space<vmem>>, vector<64x128xbf16>,
    %147 = vector.extract_strided_slice %16 {offsets = [64, 384], sizes = [64, 128], strides = [1, 1]} : vector<128x512xbf16> to vector<64x128xbf16>
    %148 = vector.extract_strided_slice %18 {offsets = [128, 384], sizes = [128, 128], strides = [1, 1]} : vector<256x512xbf16> to vector<128x128xbf16>
    %149 = vector.extract_strided_slice %20 {offsets = [128, 384], sizes = [128, 128], strides = [1, 1]} : vector<256x512xbf16> to vector<128x128xbf16>
    %cst_52 = arith.constant dense<0.000000e+00> : vector<64x128xf32>
    %150 = tpu.matmul %147, %148, %cst_52 {dimension_numbers = #tpu.dot_dimension_numbers<[1], [1], [0], [0], [0, 0, 1, 0], [], []>} : vector<64x128xbf16>, vector<128x128xbf16>, vector<64x128xf32> -> vector<64x128xf32>
    %cst_53 = arith.constant dense<0xFF800000> : vector<64xf32>
    %151 = vector.multi_reduction <maximumf>, %150, %cst_53 [1] : vector<64x128xf32> to vector<64xf32>
    %152 = vector.shape_cast %151 : vector<64xf32> to vector<64x1xf32>
    %153 = vector.broadcast %152 : vector<64x1xf32> to vector<64x128xf32>
    %154 = arith.subf %150, %153 : vector<64x128xf32>
    %155 = math.exp %154 : vector<64x128xf32>
    %cst_54 = arith.constant dense<0.000000e+00> : vector<64xf32>
    %156 = vector.multi_reduction <add>, %155, %cst_54 [1] : vector<64x128xf32> to vector<64xf32>
    %157 = vector.shape_cast %156 : vector<64xf32> to vector<64x1xf32>
    %158 = tpu.reciprocal %157 {approx = true} : vector<64x1xf32> -> vector<64x1xf32>
    %159 = vector.broadcast %158 : vector<64x1xf32> to vector<64x128xf32>
    %160 = arith.mulf %155, %159 : vector<64x128xf32>
    %161 = arith.truncf %160 : vector<64x128xf32> to vector<64x128xbf16>
    %cst_55 = arith.constant dense<0.000000e+00> : vector<64x128xf32>
    %162 = tpu.matmul %161, %149, %cst_55 {dimension_numbers = #tpu.dot_dimension_numbers<[1], [0], [0], [1], [0, 0, 1, 1], [], []>} : vector<64x128xbf16>, vector<128x128xbf16>, vector<64x128xf32> -> vector<64x128xf32>
    %163 = arith.truncf %162 : vector<64x128xf32> to vector<64x128xbf16>
    %c64_56 = arith.constant 64 : index
    %c384_57 = arith.constant 384 : index
    %164 = vector.load %arg12[%c64_56, %c384_57] : memref<128x512xbf16, #tpu.memory_space<vmem>>, vector<64x128xbf16>
    tpu.vector_store %arg12[%c64_56, %c384_57], %163 {strides = array<i32>} : memref<128x512xbf16, #tpu.memory_space<vmem>>, vector<64x128xbf16>,
    %c0_58 = arith.constant 0 : index
    %c0_59 = arith.constant 0 : index
    %165 = vector.load %arg12[%c0_58, %c0_59] : memref<128x512xbf16, #tpu.memory_space<vmem>>, vector<128x512xbf16>
    %c0_60 = arith.constant 0 : index
    %c0_61 = arith.constant 0 : index
    %166 = vector.load %arg5[%c0_60, %c0_61] : memref<512x512xbf16, #tpu.memory_space<vmem>>, vector<512x512xbf16>
    %cst_62 = arith.constant dense<0.000000e+00> : vector<128x512xf32>
    %167 = tpu.matmul %165, %166, %cst_62 {dimension_numbers = #tpu.dot_dimension_numbers<[1], [0], [0], [1], [0, 0, 1, 1], [], []>} : vector<128x512xbf16>, vector<512x512xbf16>, vector<128x512xf32> -> vector<128x512xf32>
    %c0_63 = arith.constant 0 : index
    %c0_64 = arith.constant 0 : index
    %168 = vector.load %arg8[%c0_63, %c0_64] : memref<1x512xf32, #tpu.memory_space<vmem>>, vector<1x512xf32>
    %169 = vector.broadcast %168 : vector<1x512xf32> to vector<128x512xf32>
    %170 = arith.addf %167, %169 : vector<128x512xf32>
    %171 = arith.addf %170, %1 : vector<128x512xf32>
    %172 = vector.shape_cast %171 : vector<128x512xf32> to vector<2x64x512xf32>
    %cst_65 = arith.constant dense<0.000000e+00> : vector<2x64xf32>
    %173 = vector.multi_reduction <add>, %172, %cst_65 [2] : vector<2x64x512xf32> to vector<2x64xf32>
    %174 = vector.shape_cast %173 : vector<2x64xf32> to vector<2x64x1xf32>
    %cst_66 = arith.constant dense<0.000000e+00> : vector<2x1xf32>
    %175 = vector.multi_reduction <add>, %174, %cst_66 [1] : vector<2x64x1xf32> to vector<2x1xf32>
    %176 = vector.shape_cast %175 : vector<2x1xf32> to vector<2x1x1xf32>
    %cst_67 = arith.constant 3.05175781E-5 : f32
    %177 = vector.broadcast %cst_67 : f32 to vector<2x1x1xf32>
    %178 = arith.mulf %176, %177 : vector<2x1x1xf32>
    %179 = vector.broadcast %178 : vector<2x1x1xf32> to vector<2x64x512xf32>
    %180 = arith.subf %172, %179 : vector<2x64x512xf32>
    %181 = arith.mulf %180, %180 : vector<2x64x512xf32>
    %cst_68 = arith.constant dense<0.000000e+00> : vector<2x64xf32>
    %182 = vector.multi_reduction <add>, %181, %cst_68 [2] : vector<2x64x512xf32> to vector<2x64xf32>
    %183 = vector.shape_cast %182 : vector<2x64xf32> to vector<2x64x1xf32>
    %cst_69 = arith.constant dense<0.000000e+00> : vector<2x1xf32>
    %184 = vector.multi_reduction <add>, %183, %cst_69 [1] : vector<2x64x1xf32> to vector<2x1xf32>
    %185 = vector.shape_cast %184 : vector<2x1xf32> to vector<2x1x1xf32>
    %cst_70 = arith.constant 3.05175781E-5 : f32
    %186 = vector.broadcast %cst_70 : f32 to vector<2x1x1xf32>
    %187 = arith.mulf %185, %186 : vector<2x1x1xf32>
    %cst_71 = arith.constant 9.99999996E-13 : f32
    %188 = vector.broadcast %cst_71 : f32 to vector<2x1x1xf32>
    %189 = arith.addf %187, %188 : vector<2x1x1xf32>
    %190 = math.rsqrt %189 : vector<2x1x1xf32>
    %191 = vector.broadcast %190 : vector<2x1x1xf32> to vector<2x64x512xf32>
    %192 = arith.mulf %180, %191 : vector<2x64x512xf32>
    %c0_72 = arith.constant 0 : index
    %c0_73 = arith.constant 0 : index
    %193 = vector.load %arg9[%c0_72, %c0_73] : memref<1x512xf32, #tpu.memory_space<vmem>>, vector<1x512xf32>
    %194 = vector.shape_cast %193 : vector<1x512xf32> to vector<1x1x512xf32>
    %195 = vector.broadcast %194 : vector<1x1x512xf32> to vector<2x64x512xf32>
    %196 = arith.mulf %195, %192 : vector<2x64x512xf32>
    %c0_74 = arith.constant 0 : index
    %c0_75 = arith.constant 0 : index
    %197 = vector.load %arg10[%c0_74, %c0_75] : memref<1x512xf32, #tpu.memory_space<vmem>>, vector<1x512xf32>
    %198 = vector.shape_cast %197 : vector<1x512xf32> to vector<1x1x512xf32>
    %199 = vector.broadcast %198 : vector<1x1x512xf32> to vector<2x64x512xf32>
    %200 = arith.addf %196, %199 : vector<2x64x512xf32>
    %c0_76 = arith.constant 0 : index
    %c0_77 = arith.constant 0 : index
    %c0_78 = arith.constant 0 : index
    %201 = vector.load %arg11[%c0_76, %c0_77, %c0_78] : memref<2x64x512xf32, #tpu.memory_space<vmem>>, vector<2x64x512xf32>
    tpu.vector_store %arg11[%c0_76, %c0_77, %c0_78], %200 {strides = array<i32>} : memref<2x64x512xf32, #tpu.memory_space<vmem>>, vector<2x64x512xf32>,
    return
  }
  func.func @transform_0(%arg0: i32) -> (i32, i32, i32) {
    %c0_i32 = arith.constant 0 : i32
    %c0_i32_0 = arith.constant 0 : i32
    %c0_i32_1 = arith.constant 0 : i32
    return %arg0, %c0_i32, %c0_i32_0 : i32, i32, i32
  }
  func.func @transform_1(%arg0: i32) -> (i32, i32, i32) {
    %c0_i32 = arith.constant 0 : i32
    %c0_i32_0 = arith.constant 0 : i32
    %c0_i32_1 = arith.constant 0 : i32
    return %arg0, %c0_i32, %c0_i32_0 : i32, i32, i32
  }
  func.func @transform_2(%arg0: i32) -> (i32, i32) {
    %c0_i32 = arith.constant 0 : i32
    %c0_i32_0 = arith.constant 0 : i32
    %c0_i32_1 = arith.constant 0 : i32
    return %c0_i32, %c0_i32_0 : i32, i32
  }
  func.func @transform_3(%arg0: i32) -> (i32, i32) {
    %c0_i32 = arith.constant 0 : i32
    %c0_i32_0 = arith.constant 0 : i32
    %c0_i32_1 = arith.constant 0 : i32
    return %c0_i32, %c0_i32_0 : i32, i32
  }
  func.func @transform_4(%arg0: i32) -> (i32, i32) {
    %c0_i32 = arith.constant 0 : i32
    %c0_i32_0 = arith.constant 0 : i32
    %c0_i32_1 = arith.constant 0 : i32
    return %c0_i32, %c0_i32_0 : i32, i32
  }
  func.func @transform_5(%arg0: i32) -> (i32, i32) {
    %c0_i32 = arith.constant 0 : i32
    %c0_i32_0 = arith.constant 0 : i32
    %c0_i32_1 = arith.constant 0 : i32
    return %c0_i32, %c0_i32_0 : i32, i32
  }
  func.func @transform_6(%arg0: i32) -> (i32, i32) {
    %c0_i32 = arith.constant 0 : i32
    %c0_i32_0 = arith.constant 0 : i32
    %c0_i32_1 = arith.constant 0 : i32
    return %c0_i32, %c0_i32_0 : i32, i32
  }
  func.func @transform_7(%arg0: i32) -> (i32, i32) {
    %c0_i32 = arith.constant 0 : i32
    %c0_i32_0 = arith.constant 0 : i32
    %c0_i32_1 = arith.constant 0 : i32
    return %c0_i32, %c0_i32_0 : i32, i32
  }
  func.func @transform_8(%arg0: i32) -> (i32, i32) {
    %c0_i32 = arith.constant 0 : i32
    %c0_i32_0 = arith.constant 0 : i32
    %c0_i32_1 = arith.constant 0 : i32
    return %c0_i32, %c0_i32_0 : i32, i32
  }
  func.func @transform_9(%arg0: i32) -> (i32, i32) {
    %c0_i32 = arith.constant 0 : i32
    %c0_i32_0 = arith.constant 0 : i32
    %c0_i32_1 = arith.constant 0 : i32
    return %c0_i32, %c0_i32_0 : i32, i32
  }
  func.func @transform_10(%arg0: i32) -> (i32, i32, i32) {
    %c0_i32 = arith.constant 0 : i32
    %c0_i32_0 = arith.constant 0 : i32
    %c0_i32_1 = arith.constant 0 : i32
    return %arg0, %c0_i32, %c0_i32_0 : i32, i32, i32
  }
}

</mosaic_0001>

<bundles_post_ra>
// kernel: tpu_custom_call.1
= control target key start
LH: loop header
LB: loop body
LE: loop exit
PB: predicated region body
PF: predicated region fallthrough
CT: control target
= control target key end

     0   :  { %s15726_s0 = inlined_call_operand.hbm [shape: f32[4,64,512], index: 0, kind: input, shape index: {}]   ;;  %s15727_s1 = inlined_call_operand.hbm [shape: f32[4,128,512], index: 1, kind: input, shape index: {}]   ;;  %s15728_s2 = inlined_call_operand.hbm [shape: bf16[512,512], index: 2, kind: input, shape index: {}]   ;;  %s15729_s3 = inlined_call_operand.hbm [shape: bf16[512,1024], index: 3, kind: input, shape index: {}]   ;;  %s15730_s4 = inlined_call_operand.hbm [shape: bf16[512,512], index: 4, kind: input, shape index: {}]   ;;  %s15731_s5 = inlined_call_operand.vmem [shape: f32[1,512], index: 5, kind: input, shape index: {}]   ;;  %s15732_s6 = inlined_call_operand.vmem [shape: f32[1,1024], index: 6, kind: input, shape index: {}]   ;;  %s15733_s7 = inlined_call_operand.vmem [shape: f32[1,512], index: 7, kind: input, shape index: {}]   ;;  %s15734_s8 = inlined_call_operand.vmem [shape: f32[1,512], index: 8, kind: input, shape index: {}]   ;;  %s15735_s9 = inlined_call_operand.vmem [shape: f32[1,512], index: 9, kind: input, shape index: {}]   ;;  %s15736_s10 = inlined_call_operand.hbm [shape: f32[4,64,512], index: 10, kind: output, shape index: {}]  }
   0x1   :  { %15995 = sst [smem:[#allocation131_spill]] %s15726_s0 }
   0x2   :  { %15996 = sst [smem:[#allocation132_spill]] %s15728_s2 }
   0x3   :  { %15997 = sst [smem:[#allocation133_spill]] %s15729_s3 }
   0x4   :  { %15998 = sst [smem:[#allocation134_spill]] %s15730_s4 }
   0x5   :  { %15999 = sst [smem:[#allocation135_spill]] %s15735_s9 }
   0x6   :  { %16000 = sst [smem:[#allocation136_spill]] %s15736_s10 }
   0x7   :  { %15 = vsyncpa [#allocation4], 0 }
   0x8   :  { %17 = vsyncpa [#allocation4 + $0x1], 0 }
   0x9   :  { %18 = vsyncpa [#allocation7], 0 }
   0xa   :  { %20 = vsyncpa [#allocation7 + $0x1], 0 }
   0xb   :  { %21 = vsyncpa [#allocation10], 0 }
   0xc   :  { %22 = vsyncpa [#allocation5], 0 }
   0xd   :  { %24 = vsyncpa [#allocation5 + $0x1], 0  ;;  %s12126_s13 = smov 0   ;;  %s12128_s14 = smov 0  }
   0xe   :  { %s12130_s15 = smov 0   ;;  %s12132_s16 = smov 0  }
   0xf LB: > { %16001 = sst [smem:[#allocation18_spill]] %s12045_s13  ;;  %s12147_s17 = sadd.s32 4294967295, %s12057_s16   ;;  %s12057_s16 = sphi %s12132_s16, %s16571_s16   ;;  %s12053_s15 = sphi %s12130_s15, %s16570_s15   ;;  %s12049_s14 = sphi %s12128_s14, %s16569_s14   ;;  %s12045_s13 = sphi %s12126_s13, %s16568_s13  }
  0x10   : > { %s9116_s18 = sadd.s32 4294967294, %s12057_s16   ;;  %p50_p0 = scmp.ne.s32.totalorder %s12049_s14, %s12045_s13 }
  0x11   : > { %p15737_p1 = scmp.eq.s32.totalorder %s12147_s17, 0  ;;  %p274_p3 = scmp.eq.s32.totalorder %s9116_s18, 1 }
  0x12   : > { %p9117_p5 = scmp.ge.s32.totalorder %s12057_s16, 1  ;;  %p281_p7 = scmp.lt.s32.totalorder %s12057_s16, 3 }
  0x13   : > { %p12156_p4 = por %p15737_p1, %p50_p0  ;;  %p12161_p6 = por %p274_p3, %p50_p0 }
  0x14   : > { %p12166_p8 = pnand %p9117_p5, %p281_p7  ;;  %s12059_s22 = smov [#allocation8]  }
  0x15   : > { %s16002_s19 = scalar_select %p12156_p4, 1, 0 }
  0x16   : > { %s16003_s20 = scalar_select %p12161_p6, 1, 0 }
  0x17   : > { %s16005_s21 = scalar_select %p12166_p8, 1, 0 }
  0x18   : > { %16004 = sst [smem:[#allocation19_spill]] %s16003_s20  ;;  %s293_s23 = sshll.u32 %s12059_s22, 4  ;;  %s12170_s23 = int_to_ptr.vmem [resolvable:$true] %s293_s23 }
  0x19   : > { %p11055_p9 = pneg %p12166_p8  ;;  %s12060_s25 = smov [#allocation9]  }
  0x1a   : > { %s306_s26 = sshll.u32 %s12060_s25, 4  ;;  %s16007_s2 = sld [smem:[#allocation132_spill]]  ;;  %s12181_s26 = int_to_ptr.vmem [resolvable:$true] %s306_s26 }
  0x1b   : > { %p12177_p11 = pnand %p11055_p9, %p15737_p1 }
  0x1d   : > { %p12191_p13 = pneg %p12177_p11 }
  0x20   : > { %s11835_s29 = scalar_lea.hbm %s16007_s2, 16384 }
  0x21   : > { %p11836_p12 = scmp.ne.s32.totalorder %s16007_s2, %s11835_s29  ;;  %p11842_p5 = scmp.lt.u32.totalorder %s11835_s29, %s16007_s2 }
  0x23   : > { %p11838_p0 = pnand %p12191_p13, %p11836_p12 }
  0x25   : > { %p11839_p3 = pneg %p11838_p0 }
  0x27   : > { %p11844_p7 = pnand %p11842_p5, %p11839_p3 }
  0x29   : > { %11847 = shalt.err (!%p11844_p7)
}
  0x2a   : > { %s11848_s25 = scalar_lea.vmem %s12170_s23, 16384  ;;  %p11856_p2 = scmp.lt.s32.totalorder %s12170_s23, %s12170_s23 }
  0x2b   : > { %p11849_p9 = scmp.ne.s32.totalorder %s12170_s23, %s11848_s25  ;;  %p11857_p6 = scmp.lt.s32.totalorder %s11848_s25, %s11848_s25 }
  0x2d   : > { %p11851_p10 = pnand %p11849_p9, %p12191_p13  ;;  %p11858_p12 = por %p11857_p6, %p11856_p2 }
  0x2f   : > { %p11852_p1 = pneg %p11851_p10 }
  0x31   : > { %p11859_p0 = pnand %p11858_p12, %p11852_p1 }
  0x33   : > { %11862 = shalt.err (!%p11859_p0)
}
  0x34   : > { %s15741_s27 = smov 256   ;;  %s15742_s28 = smov 16  }
  0x35   : > { %11058 = dma.hbm_to_vmem [thread:$0]  (!%p12177_p11), %s16007_s2, 16384, %s12170_s23, [#allocation7], %s15741_s27, %s15741_s27, %s15742_s28  }
  0x36   : > { %s16009_s3 = sld [smem:[#allocation133_spill]] }
  0x3c   : > { %s11863_s22 = scalar_lea.hbm %s16009_s3, 32768 }
  0x3d   : > { %p11864_p1 = scmp.ne.s32.totalorder %s16009_s3, %s11863_s22  ;;  %p11870_p10 = scmp.lt.u32.totalorder %s11863_s22, %s16009_s3 }
  0x3f   : > { %p11866_p2 = pnand %p11864_p1, %p12191_p13 }
  0x41   : > { %p11867_p6 = pneg %p11866_p2 }
  0x43   : > { %p11872_p3 = pnand %p11870_p10, %p11867_p6 }
  0x45   : > { %11875 = shalt.err (!%p11872_p3)
}
  0x46   : > { %s11876_s23 = scalar_lea.vmem %s12181_s26, 32768  ;;  %p11884_p12 = scmp.lt.s32.totalorder %s12181_s26, %s12181_s26 }
  0x47   : > { %p11877_p5 = scmp.ne.s32.totalorder %s12181_s26, %s11876_s23  ;;  %p11885_p0 = scmp.lt.s32.totalorder %s11876_s23, %s11876_s23 }
  0x49   : > { %p11879_p7 = pnand %p11877_p5, %p12191_p13  ;;  %p11886_p1 = por %p11885_p0, %p11884_p12 }
  0x4b   : > { %p11880_p9 = pneg %p11879_p7 }
  0x4d   : > { %p11887_p2 = pnand %p11886_p1, %p11880_p9 }
  0x4f   : > { %11890 = shalt.err (!%p11887_p2)
}
  0x50   : > { %s12063_s20 = smov 512   ;;  %s12064_s10 = smov 32  }
  0x51   : > { %11061 = dma.hbm_to_vmem [thread:$0]  (!%p12177_p11), %s16009_s3, 32768, %s12181_s26, [#allocation10], %s12063_s20, %s12063_s20, %s12064_s10  }
  0x52   : > { %s12065_s30 = smov [#allocation11]   ;;  %s12242_s18 = sadd.s32 1, %s12057_s16  }
  0x53   : > { %s319_s11 = sshll.u32 %s12065_s30, 4  ;;  %s16010_s4 = sld [smem:[#allocation134_spill]]  ;;  %s320_s11 = int_to_ptr.vmem [resolvable:$true] %s319_s11 }
  0x59   : > { %s11891_s23 = scalar_lea.hbm %s16010_s4, 16384 }
  0x5a   : > { %p11892_p6 = scmp.ne.s32.totalorder %s16010_s4, %s11891_s23  ;;  %p11898_p5 = scmp.lt.u32.totalorder %s11891_s23, %s16010_s4 }
  0x5c   : > { %p11894_p10 = pnand %p11892_p6, %p12191_p13 }
  0x5e   : > { %p11895_p3 = pneg %p11894_p10 }
  0x60   : > { %p11900_p7 = pnand %p11898_p5, %p11895_p3 }
  0x62   : > { %11903 = shalt.err (!%p11900_p7)
}
  0x63   : > { %s11904_s26 = scalar_lea.vmem %s320_s11, 16384  ;;  %p11912_p1 = scmp.lt.s32.totalorder %s320_s11, %s320_s11 }
  0x64   : > { %p11905_p9 = scmp.ne.s32.totalorder %s320_s11, %s11904_s26  ;;  %p11913_p2 = scmp.lt.s32.totalorder %s11904_s26, %s11904_s26 }
  0x66   : > { %p11907_p12 = pnand %p11905_p9, %p12191_p13  ;;  %p11914_p4 = por %p11913_p2, %p11912_p1 }
  0x68   : > { %p11908_p0 = pneg %p11907_p12 }
  0x6a   : > { %p11915_p8 = pnand %p11914_p4, %p11908_p0 }
  0x6c   : > { %11918 = shalt.err (!%p11915_p8)
}
  0x6d   : > { %s16011_s27 = smov 16   ;;  %s16012_s28 = smov 256  }
  0x6e   : > { %11064 = dma.hbm_to_vmem [thread:$0]  (!%p12177_p11), %s16010_s4, 16384, %s320_s11, [#allocation10], %s16012_s28, %s16012_s28, %s16011_s27  }
  0x6f   : > { %s34_s12 = ssub.s32 %s12057_s16, %s12242_s18  ;;  %s37_s24 = sadd.s32 1, %s12053_s15 }
  0x70   : > { %p35_p4 = scmp.eq.s32.totalorder %s34_s12, 0  ;;  %p44_p8 = scmp.ne.s32.totalorder %s12053_s15, %s12049_s14 }
  0x71   : > { %p45_p13 = scmp.eq.s32.totalorder %s12057_s16, 0  ;;  %p11079_p6 = scmp.lt.s32.totalorder %s12057_s16, 2 }
  0x72   : > { %s12273_s13 = scalar_select %p35_p4, %s12053_s15, %s37_s24  }
  0x73   : > { %p46_p10 = por %p45_p13, %p44_p8  ;;  %p16013_p3 = scmp.eq.s32.totalorder %s12147_s17, 1 }
  0x74   : > { %s12282_s30 = sand.u32 1, %s12053_s15   ;;  %s9656_s11 = sshll.u32 %s12057_s16, 13 }
  0x75   : > { %p12277_p5 = por %p16013_p3, %p44_p8  ;;  %s9122_s22 = sshll.u32 %s12282_s30, 9 }
  0x76   : > { %s16015_s0 = sld [smem:[#allocation131_spill]]  ;;  %s352_s27 = scalar_lea.vmem [#allocation3], %s9122_s22 }
  0x77   : > { %s360_s28 = sshll.u32 %s352_s27, 4  ;;  %p12291_p11 = pnand %p11079_p6, %p46_p10  ;;  %s12295_s28 = int_to_ptr.vmem [resolvable:$true] %s360_s28 }
  0x78   : > { %s349_s12 = scalar_lea.sflag [#allocation4], %s12282_s30 }
  0x79   : > { %p11921_p9 = pneg %p12291_p11 }
  0x7c   : > { %s12289_s26 = scalar_lea.hbm %s16015_s0, %s9656_s11  ;;  %s11924_s25 = scalar_lea.hbm %s16015_s0, 16384 }
  0x7d   : > { %s11919_s24 = scalar_lea.hbm %s12289_s26, 8192  ;;  %p11925_p1 = scmp.lt.u32.totalorder %s12289_s26, %s16015_s0 }
  0x7e   : > { %p11920_p7 = scmp.ne.s32.totalorder %s12289_s26, %s11919_s24  ;;  %p11926_p2 = scmp.lt.u32.totalorder %s11924_s25, %s11919_s24 }
  0x7f   : > { %p11928_p8 = scmp.lt.u32.totalorder %s11919_s24, %s12289_s26 }
  0x80   : > { %p11922_p12 = pnand %p11921_p9, %p11920_p7  ;;  %p11927_p4 = por %p11926_p2, %p11925_p1 }
  0x82   : > { %p11923_p0 = pneg %p11922_p12  ;;  %p11929_p13 = por %p11928_p8, %p11927_p4 }
  0x84   : > { %p11930_p6 = pnand %p11929_p13, %p11923_p0 }
  0x86   : > { %11933 = shalt.err (!%p11930_p6)
}
  0x87   : > { %s11934_s9 = scalar_lea.vmem %s12295_s28, 8192  ;;  %s12066_s11 = smov [#allocation3]  }
  0x88   : > { %p11935_p10 = scmp.ne.s32.totalorder %s12295_s28, %s11934_s9  ;;  %s11939_s22 = sshll.u32 %s12066_s11, 4  ;;  %s11940_s22 = int_to_ptr.vmem [resolvable:$false] %s11939_s22 }
  0x89   : > { %s11941_s23 = scalar_lea.vmem %s11940_s22, 16384  ;;  %p11942_p12 = scmp.lt.s32.totalorder %s12295_s28, %s11940_s22 }
  0x8a   : > { %p11937_p3 = pnand %p11935_p10, %p11921_p9  ;;  %p11943_p1 = scmp.lt.s32.totalorder %s11941_s23, %s11934_s9 }
  0x8c   : > { %p11938_p7 = pneg %p11937_p3  ;;  %p11944_p2 = por %p11943_p1, %p11942_p12 }
  0x8e   : > { %p11945_p4 = pnand %p11944_p2, %p11938_p7 }
  0x90   : > { %11948 = shalt.err (!%p11945_p4)
}
  0x91   : > { %11068 = dma.hbm_to_vmem [thread:$0]  (!%p12291_p11), %s12289_s26, 8192, %s12295_s28, %s349_s12, %s12063_s20, %s12063_s20, %s12064_s10  }
  0x92   : > { %s9126_s24 = sshll.u32 %s12282_s30, 10  ;;  %s9658_s25 = sshll.u32 %s12057_s16, 14 }
  0x93   : > { %s12334_s11 = scalar_lea.hbm %s15727_s1, %s9658_s25  ;;  %s374_s22 = scalar_lea.vmem [#allocation6], %s9126_s24 }
  0x94   : > { %s382_s23 = sshll.u32 %s374_s22, 4  ;;  %s16017_s0 = sand.u32 1, %s12057_s16   ;;  %s12336_s23 = int_to_ptr.vmem [resolvable:$true] %s382_s23 }
  0x95   : > { %s12340_s3 = scalar_lea.sflag [#allocation7], %s16017_s0  ;;  %s11949_s4 = scalar_lea.hbm %s12334_s11, 16384 }
  0x96   : > { %p11950_p0 = scmp.ne.s32.totalorder %s12334_s11, %s11949_s4  ;;  %s11954_s28 = scalar_lea.hbm %s15727_s1, 32768 }
  0x97   : > { %p11955_p6 = scmp.lt.u32.totalorder %s12334_s11, %s15727_s1  ;;  %p11956_p10 = scmp.lt.u32.totalorder %s11954_s28, %s11949_s4 }
  0x98   : > { %p11952_p8 = pnand %p11950_p0, %p11921_p9  ;;  %p11958_p7 = scmp.lt.u32.totalorder %s11949_s4, %s12334_s11 }
  0x99   : > { %p11957_p3 = por %p11956_p10, %p11955_p6 }
  0x9a   : > { %p11953_p13 = pneg %p11952_p8 }
  0x9b   : > { %p11959_p12 = por %p11958_p7, %p11957_p3 }
  0x9d   : > { %p11960_p1 = pnand %p11959_p12, %p11953_p13 }
  0x9f   : > { %11963 = shalt.err (!%p11960_p1)
}
  0xa0   : > { %s11964_s0 = scalar_lea.vmem %s12336_s23, 16384  ;;  %s12067_s24 = smov [#allocation6]  }
  0xa1   : > { %p11965_p2 = scmp.ne.s32.totalorder %s12336_s23, %s11964_s0  ;;  %s11969_s9 = sshll.u32 %s12067_s24, 4  ;;  %s11970_s9 = int_to_ptr.vmem [resolvable:$false] %s11969_s9 }
  0xa2   : > { %s11971_s27 = scalar_lea.vmem %s11970_s9, 32768  ;;  %p11972_p8 = scmp.lt.s32.totalorder %s12336_s23, %s11970_s9 }
  0xa3   : > { %p11967_p4 = pnand %p11965_p2, %p11921_p9  ;;  %p11973_p6 = scmp.lt.s32.totalorder %s11971_s27, %s11964_s0 }
  0xa5   : > { %p11968_p0 = pneg %p11967_p4  ;;  %p11974_p10 = por %p11973_p6, %p11972_p8 }
  0xa7   : > { %p11975_p3 = pnand %p11974_p10, %p11968_p0 }
  0xa9   : > { %11978 = shalt.err (!%p11975_p3)
}
  0xaa   : > { %11071 = dma.hbm_to_vmem [thread:$0]  (!%p12291_p11), %s12334_s11, 16384, %s12336_s23, %s12340_s3, %s12063_s20, %s12063_s20, %s12064_s10  }
  0xab   : > { %p16018_p9 = scmp.ne.s32.totalorder %s16005_s21, 0 }
  0xad   : > { %394 = sbr.rel (%p16018_p9) target bundleno = 6042 (0x179a), region = 60 }
  0xb4   : > { %s12372_s4 = sand.u32 1, %s12049_s14   ;;  %p16019_p13 = scmp.ne.s32.totalorder %s16002_s19, 0 }
  0xb5   : > { %s9131_s22 = sshll.u32 %s12372_s4, 9  ;;  %s397_s30 = scalar_lea.sflag [#allocation4], %s12372_s4 }
  0xb6   : > { %s12378_s2 = scalar_lea.vmem [#allocation3], %s9131_s22 }
  0xb7   : > { %12024 = dma.done.wait (%p16019_p13), %s397_s30, 8192  }
  0xb8   : > { %12026 = vsyncadd (%p16019_p13), %s397_s30, 4294959104  ;;  %s405_s3 = sand.u32 1, %s12147_s17   ;;  %s9132_s21 = sshll.u32 %s12372_s4, 10 }
  0xb9   : > { %s406_s20 = scalar_lea.sflag [#allocation7], %s405_s3  ;;  %s12386_s10 = scalar_lea.vmem [#allocation6], %s9132_s21 }
  0xba   : > { %12028 = dma.done.wait (%p16019_p13), %s406_s20, 16384  }
  0xbb   : > { %12030 = vsyncadd (%p16019_p13), %s406_s20, 4294950912  ;;  %p16020_p11 = scmp.eq.s32.totalorder %s12147_s17, 0 }
  0xbd   : > { %12032 = dma.done.wait (%p16020_p11), [#allocation7], 16384   ;;  %p16021_p7 = pmov %p16020_p11 }
  0xbf   : > { %12034 = vsyncadd (%p16021_p7), [#allocation7], 4294950912  ;;  %p16022_p12 = pmov %p16021_p7 }
  0xc0   : > { %p16023_p1 = pmov %p16021_p7 }
  0xc1   : > { %12036 = dma.done.wait (%p16022_p12), [#allocation10], 49152  }
  0xc2   : > { %12038 = vsyncadd (%p16023_p1), [#allocation10], 4294918144  ;;  %v11125_v0 = vld [vmem:[#allocation8 + $0x4] ss:$16 sps:$4 sm:$0xff]   ;;  %v11127_v1 = vld [vmem:[#allocation8] ss:$16 sps:$4 sm:$0xff]  }
  0xc3   : > { %1545 = vmatprep.subr.bf16.mxu0 %v11125_v0  ;;  %v11128_v2 = vld [vmem:[#allocation8 + $0x24] ss:$16 sps:$4 sm:$0xff]   ;;  %v11130_v3 = vld [vmem:[#allocation8 + $0x20] ss:$16 sps:$4 sm:$0xff]   ;;  %v468_v13 = vld [vmem:[%s12378_s2 + $0x8] sm:$0xff]  ;;  %s16530_s21 = sld [smem:[#allocation135_spill]] }
  0xc4   : > { %1546 = vmatpush1.bf16.msra.mxu0 %v11127_v1  ;;  %v11131_v4 = vld [vmem:[#allocation8 + $0x44] ss:$16 sps:$4 sm:$0xff]   ;;  %v11133_v5 = vld [vmem:[#allocation8 + $0x40] ss:$16 sps:$4 sm:$0xff]   ;;  %v472_v14 = vld [vmem:[%s12378_s2 + $0x28] sm:$0xff]  ;;  %s15492_s20 = scalar_lea.vmem [#allocation12], %s9131_s22 }
  0xc5   : > { %1547 = vmatprep.subr.bf16.mxu0 %v11128_v2  ;;  %v11134_v6 = vld [vmem:[#allocation8 + $0x64] ss:$16 sps:$4 sm:$0xff]   ;;  %v11136_v7 = vld [vmem:[#allocation8 + $0x60] ss:$16 sps:$4 sm:$0xff]   ;;  %v532_v15 = vpack.c.bf16 %v472_v14, %v468_v13  ;;  %v476_v38 = vld [vmem:[%s12378_s2 + $0x48] sm:$0xff]  ;;  %s9660_s22 = sshll.u32 %s12147_s17, 13 }
  0xc6   : > { %v11137_v8 = vld [vmem:[#allocation8 + $0x84] ss:$16 sps:$4 sm:$0xff]   ;;  %v11139_v9 = vld [vmem:[#allocation8 + $0x80] ss:$16 sps:$4 sm:$0xff]   ;;  %v480_v39 = vld [vmem:[%s12378_s2 + $0x68] sm:$0xff]  ;;  %s16562_s11 = sld [smem:[#allocation136_spill]] }
  0xc7   : > { %v11140_v10 = vld [vmem:[#allocation8 + $0xa4] ss:$16 sps:$4 sm:$0xff]   ;;  %v11142_v11 = vld [vmem:[#allocation8 + $0xa0] ss:$16 sps:$4 sm:$0xff]   ;;  %1577 = vmatprep.mubr.bf16.mxu0 %v532_v15  ;;  %1803 = vmatprep.mubr.bf16.mxu1 %v532_v15  ;;  %v12408_v42 = vpack.c.bf16 %v480_v39, %v476_v38  ;;  %v11221_v45 = vld [vmem:[#allocation8 + $0xc] ss:$16 sps:$4 sm:$0xff]  }
  0xc8   : > { %1548 = vmatpush1.bf16.msra.mxu0 %v11130_v3  ;;  %v11143_v12 = vld [vmem:[#allocation8 + $0xc4] ss:$16 sps:$4 sm:$0xff]   ;;  %v11145_v16 = vld [vmem:[#allocation8 + $0xc0] ss:$16 sps:$4 sm:$0xff]   ;;  %v11223_v48 = vld [vmem:[#allocation8 + $0x8] ss:$16 sps:$4 sm:$0xff]   ;;  %1771 = vmatprep.subr.bf16.mxu1 %v11221_v45 }
  0xc9   : > { %1549 = vmatprep.subr.bf16.mxu0 %v11131_v4  ;;  %v11146_v17 = vld [vmem:[#allocation8 + $0xe4] ss:$16 sps:$4 sm:$0xff]   ;;  %v11148_v18 = vld [vmem:[#allocation8 + $0xe0] ss:$16 sps:$4 sm:$0xff]   ;;  %v484_v50 = vld [vmem:[%s12378_s2 + $0x88] sm:$0xff]  ;;  %1772 = vmatpush1.bf16.msra.mxu1 %v11223_v48  ;;  %s8978_s26 = scalar_lea.sflag [#allocation5], %s12372_s4 }
  0xca   : > { %v11149_v19 = vld [vmem:[#allocation8 + $0x104] ss:$16 sps:$4 sm:$0xff]   ;;  %v11151_v20 = vld [vmem:[#allocation8 + $0x100] ss:$16 sps:$4 sm:$0xff]   ;;  %v488_v51 = vld [vmem:[%s12378_s2 + $0xa8] sm:$0xff]  ;;  %s12068_s12 = smov [#allocation12]  }
  0xcb   : > { %v11152_v21 = vld [vmem:[#allocation8 + $0x124] ss:$16 sps:$4 sm:$0xff]   ;;  %v11154_v22 = vld [vmem:[#allocation8 + $0x120] ss:$16 sps:$4 sm:$0xff]   ;;  %v11224_v54 = vld [vmem:[#allocation8 + $0x2c] ss:$16 sps:$4 sm:$0xff]   ;;  %v12418_v55 = vpack.c.bf16 %v488_v51, %v484_v50 }
  0xcc   : > { %1550 = vmatpush1.bf16.msra.mxu0 %v11133_v5  ;;  %v11155_v23 = vld [vmem:[#allocation8 + $0x144] ss:$16 sps:$4 sm:$0xff]   ;;  %v11157_v24 = vld [vmem:[#allocation8 + $0x140] ss:$16 sps:$4 sm:$0xff]   ;;  %v11226_v56 = vld [vmem:[#allocation8 + $0x28] ss:$16 sps:$4 sm:$0xff]   ;;  %1773 = vmatprep.subr.bf16.mxu1 %v11224_v54  ;;  %s15664_s23 = scalar_lea.hbm %s16562_s11, %s9660_s22 }
  0xcd   : > { %1551 = vmatprep.subr.bf16.mxu0 %v11134_v6  ;;  %v11158_v25 = vld [vmem:[#allocation8 + $0x164] ss:$16 sps:$4 sm:$0xff]   ;;  %v11160_v26 = vld [vmem:[#allocation8 + $0x160] ss:$16 sps:$4 sm:$0xff]   ;;  %v11227_v58 = vld [vmem:[#allocation8 + $0x4c] ss:$16 sps:$4 sm:$0xff]   ;;  %1774 = vmatpush1.bf16.msra.mxu1 %v11226_v56 }
  0xce   : > { %v11161_v27 = vld [vmem:[#allocation8 + $0x184] ss:$16 sps:$4 sm:$0xff]   ;;  %v11163_v28 = vld [vmem:[#allocation8 + $0x180] ss:$16 sps:$4 sm:$0xff]   ;;  %v11229_v60 = vld [vmem:[#allocation8 + $0x48] ss:$16 sps:$4 sm:$0xff]   ;;  %1775 = vmatprep.subr.bf16.mxu1 %v11227_v58 }
  0xcf   : > { %v11164_v29 = vld [vmem:[#allocation8 + $0x1a4] ss:$16 sps:$4 sm:$0xff]   ;;  %v11166_v30 = vld [vmem:[#allocation8 + $0x1a0] ss:$16 sps:$4 sm:$0xff]   ;;  %v11230_v0 = vld [vmem:[#allocation8 + $0x6c] ss:$16 sps:$4 sm:$0xff]  }
  0xd0   : > { %1552 = vmatpush1.bf16.msra.mxu0 %v11136_v7  ;;  %v11167_v31 = vld [vmem:[#allocation8 + $0x1c4] ss:$16 sps:$4 sm:$0xff]   ;;  %v11169_v32 = vld [vmem:[#allocation8 + $0x1c0] ss:$16 sps:$4 sm:$0xff]   ;;  %v492_v1 = vld [vmem:[%s12378_s2 + $0xc8] sm:$0xff]  ;;  %s11983_s25 = sshll.u32 %s12068_s12, 4  ;;  %s11984_s25 = int_to_ptr.vmem [resolvable:$false] %s11983_s25 }
  0xd1   : > { %1553 = vmatprep.subr.bf16.mxu0 %v11137_v8  ;;  %v11170_v33 = vld [vmem:[#allocation8 + $0x1e4] ss:$16 sps:$4 sm:$0xff]   ;;  %v11172_v34 = vld [vmem:[#allocation8 + $0x1e0] ss:$16 sps:$4 sm:$0xff]   ;;  %v496_v2 = vld [vmem:[%s12378_s2 + $0xe8] sm:$0xff]  ;;  %1776 = vmatpush1.bf16.msra.mxu1 %v11229_v60  ;;  %s11985_s0 = scalar_lea.vmem %s11984_s25, 16384 }
  0xd2   : > { %v467_v35 = vld [vmem:[%s12378_s2] sm:$0xff]  ;;  %v11232_v3 = vld [vmem:[#allocation8 + $0x68] ss:$16 sps:$4 sm:$0xff]   ;;  %1777 = vmatprep.subr.bf16.mxu1 %v11230_v0  ;;  %v11233_v5 = vld [vmem:[#allocation8 + $0x8c] ss:$16 sps:$4 sm:$0xff]   ;;  %v12428_v7 = vpack.c.bf16 %v496_v2, %v492_v1 }
  0xd3   : > { %v471_v36 = vld [vmem:[%s12378_s2 + $0x20] sm:$0xff]  ;;  %v500_v15 = vld [vmem:[%s12378_s2 + $0x108] sm:$0xff] }
  0xd4   : > { %1554 = vmatpush1.bf16.msra.mxu0 %v11139_v9  ;;  %v11175_v37 = vld [vmem:[#allocation8 + $0x204] ss:$16 sps:$4 sm:$0xff]   ;;  %v12406_v40 = vpack.c.bf16 %v471_v36, %v467_v35  ;;  %v11173_v41 = vld [vmem:[#allocation8 + $0x200] ss:$16 sps:$4 sm:$0xff]   ;;  %v11248_v39 = vld [vmem:[#allocation8 + $0x12c] ss:$16 sps:$4 sm:$0xff]  }
  0xd5   : > { %1555 = vmatprep.subr.bf16.mxu0 %v11140_v10  ;;  %v11178_v43 = vld [vmem:[#allocation8 + $0x224] ss:$16 sps:$4 sm:$0xff]   ;;  %v11176_v44 = vld [vmem:[#allocation8 + $0x220] ss:$16 sps:$4 sm:$0xff]   ;;  %1778 = vmatpush1.bf16.msra.mxu1 %v11232_v3  ;;  %v11235_v10 = vld [vmem:[#allocation8 + $0x88] ss:$16 sps:$4 sm:$0xff]  }
  0xd6   : > { %v475_v46 = vld [vmem:[%s12378_s2 + $0x40] sm:$0xff]  ;;  %1779 = vmatprep.subr.bf16.mxu1 %v11233_v5  ;;  %v516_v45 = vld [vmem:[%s12378_s2 + $0x188] sm:$0xff] }
  0xd7   : > { %v479_v47 = vld [vmem:[%s12378_s2 + $0x60] sm:$0xff]  ;;  %v11254_v58 = vld [vmem:[#allocation8 + $0x16c] ss:$16 sps:$4 sm:$0xff]  }
  0xd8   : > { %1556 = vmatpush1.bf16.msra.mxu0 %v11142_v11  ;;  %v11181_v49 = vld [vmem:[#allocation8 + $0x244] ss:$16 sps:$4 sm:$0xff]   ;;  %v12416_v52 = vpack.c.bf16 %v479_v47, %v475_v46  ;;  %v11179_v53 = vld [vmem:[#allocation8 + $0x240] ss:$16 sps:$4 sm:$0xff]   ;;  %v11236_v11 = vld [vmem:[#allocation8 + $0xac] ss:$16 sps:$4 sm:$0xff]  }
  0xd9   : > { %1557 = vmatprep.subr.bf16.mxu0 %v11143_v12  ;;  %v11184_v57 = vld [vmem:[#allocation8 + $0x264] ss:$16 sps:$4 sm:$0xff]   ;;  %v11182_v59 = vld [vmem:[#allocation8 + $0x260] ss:$16 sps:$4 sm:$0xff]   ;;  %1780 = vmatpush1.bf16.msra.mxu1 %v11235_v10  ;;  %v520_v46 = vld [vmem:[%s12378_s2 + $0x1a8] sm:$0xff] }
  0xda   : > { %v483_v61 = vld [vmem:[%s12378_s2 + $0x80] sm:$0xff]  ;;  %1781 = vmatprep.subr.bf16.mxu1 %v11236_v11  ;;  %v11250_v47 = vld [vmem:[#allocation8 + $0x128] ss:$16 sps:$4 sm:$0xff]   ;;  %v12458_v51 = vpack.c.bf16 %v520_v46, %v516_v45  ;;  %v11257_v1 = vld [vmem:[#allocation8 + $0x18c] ss:$16 sps:$4 sm:$0xff]  }
  0xdb   : > { %v487_v62 = vld [vmem:[%s12378_s2 + $0xa0] sm:$0xff]  ;;  %v11260_v10 = vld [vmem:[#allocation8 + $0x1ac] ss:$16 sps:$4 sm:$0xff]   ;;  %v11269_v46 = vld [vmem:[#allocation8 + $0x208] ss:$16 sps:$4 sm:$0xff]  }
  0xdc   : > { %1558 = vmatpush1.bf16.msra.mxu0 %v11145_v16  ;;  %v11187_v63 = vld [vmem:[#allocation8 + $0x284] ss:$16 sps:$4 sm:$0xff]   ;;  %v12426_v4 = vpack.c.bf16 %v487_v62, %v483_v61  ;;  %v11185_v6 = vld [vmem:[#allocation8 + $0x280] ss:$16 sps:$4 sm:$0xff]   ;;  %v504_v16 = vld [vmem:[%s12378_s2 + $0x128] sm:$0xff] }
  0xdd   : > { %1559 = vmatprep.subr.bf16.mxu0 %v11146_v17  ;;  %v11190_v8 = vld [vmem:[#allocation8 + $0x2a4] ss:$16 sps:$4 sm:$0xff]   ;;  %v11188_v9 = vld [vmem:[#allocation8 + $0x2a0] ss:$16 sps:$4 sm:$0xff]   ;;  %v11238_v17 = vld [vmem:[#allocation8 + $0xa8] ss:$16 sps:$4 sm:$0xff]  }
  0xde   : > { %v491_v12 = vld [vmem:[%s12378_s2 + $0xc0] sm:$0xff]  ;;  %1782 = vmatpush1.bf16.msra.mxu1 %v11238_v17  ;;  %v524_v61 = vld [vmem:[%s12378_s2 + $0x1c8] sm:$0xff] }
  0xdf   : > { %v495_v13 = vld [vmem:[%s12378_s2 + $0xe0] sm:$0xff]  ;;  %v528_v62 = vld [vmem:[%s12378_s2 + $0x1e8] sm:$0xff] }
  0xe0   : > { %1560 = vmatpush1.bf16.msra.mxu0 %v11148_v18  ;;  %v11193_v14 = vld [vmem:[#allocation8 + $0x2c4] ss:$16 sps:$4 sm:$0xff]   ;;  %v12436_v18 = vpack.c.bf16 %v495_v13, %v491_v12  ;;  %v11200_v38 = vld [vmem:[#allocation8 + $0x320] ss:$16 sps:$4 sm:$0xff]   ;;  %v12468_v3 = vpack.c.bf16 %v528_v62, %v524_v61  ;;  %v470_v13 = vld [vmem:[%s12378_s2 + $0x18] sm:$0xff] }
  0xe1   : > { %1561 = vmatprep.subr.bf16.mxu0 %v11149_v19  ;;  %v11239_v19 = vld [vmem:[#allocation8 + $0xcc] ss:$16 sps:$4 sm:$0xff]   ;;  %v11202_v36 = vld [vmem:[#allocation8 + $0x324] ss:$16 sps:$4 sm:$0xff]   ;;  %v11203_v50 = vld [vmem:[#allocation8 + $0x340] ss:$16 sps:$4 sm:$0xff]  }
  0xe2   : > { %1783 = vmatprep.subr.bf16.mxu1 %v11239_v19  ;;  %v11206_v54 = vld [vmem:[#allocation8 + $0x360] ss:$16 sps:$4 sm:$0xff]   ;;  %v11211_v60 = vld [vmem:[#allocation8 + $0x384] ss:$16 sps:$4 sm:$0xff]   ;;  %v11272_v61 = vld [vmem:[#allocation8 + $0x228] ss:$16 sps:$4 sm:$0xff]  }
  0xe3   : > { %v515_v56 = vld [vmem:[%s12378_s2 + $0x180] sm:$0xff]  ;;  %v11277_v62 = vld [vmem:[#allocation8 + $0x24c] ss:$16 sps:$4 sm:$0xff]  }
  0xe4   : > { %1562 = vmatpush1.bf16.msra.mxu0 %v11151_v20  ;;  %v11191_v20 = vld [vmem:[#allocation8 + $0x2c0] ss:$16 sps:$4 sm:$0xff]   ;;  %v11214_v5 = vld [vmem:[#allocation8 + $0x3a4] ss:$16 sps:$4 sm:$0xff]  }
  0xe5   : > { %1563 = vmatprep.subr.bf16.mxu0 %v11152_v21  ;;  %v12438_v21 = vpack.c.bf16 %v504_v16, %v500_v15  ;;  %v11209_v2 = vld [vmem:[#allocation8 + $0x380] ss:$16 sps:$4 sm:$0xff]   ;;  %v11217_v12 = vld [vmem:[#allocation8 + $0x3c4] ss:$16 sps:$4 sm:$0xff]   ;;  %v11262_v15 = vld [vmem:[#allocation8 + $0x1a8] ss:$16 sps:$4 sm:$0xff]  }
  0xe6   : > { %v527_v11 = vld [vmem:[%s12378_s2 + $0x1e0] sm:$0xff] }
  0xe7   : > { %v11215_v17 = vld [vmem:[#allocation8 + $0x3c0] ss:$16 sps:$4 sm:$0xff]   ;;  %v11220_v19 = vld [vmem:[#allocation8 + $0x3e4] ss:$16 sps:$4 sm:$0xff]  }
  0xe8   : > { %1564 = vmatpush1.bf16.msra.mxu0 %v11154_v22  ;;  %v11196_v22 = vld [vmem:[#allocation8 + $0x2e4] ss:$16 sps:$4 sm:$0xff]  }
  0xe9   : > { %1565 = vmatprep.subr.bf16.mxu0 %v11155_v23  ;;  %v11241_v23 = vld [vmem:[#allocation8 + $0xc8] ss:$16 sps:$4 sm:$0xff]   ;;  %v2017_v45 = vld [vmem:[#allocation9 + $0xa0] sm:$0xff] }
  0xea   : > { %1784 = vmatpush1.bf16.msra.mxu1 %v11241_v23  ;;  %v1997_v23 = vld [vmem:[#allocation9] sm:$0xff] }
  0xec   : > { %1566 = vmatpush1.bf16.msra.mxu0 %v11157_v24  ;;  %v11194_v24 = vld [vmem:[#allocation8 + $0x2e0] ss:$16 sps:$4 sm:$0xff]  }
  0xed   : > { %1567 = vmatprep.subr.bf16.mxu0 %v11158_v25  ;;  %v499_v25 = vld [vmem:[%s12378_s2 + $0x100] sm:$0xff] }
  0xf0   : > { %1568 = vmatpush1.bf16.msra.mxu0 %v11160_v26  ;;  %v11242_v26 = vld [vmem:[#allocation8 + $0xec] ss:$16 sps:$4 sm:$0xff]  }
  0xf1   : > { %1569 = vmatprep.subr.bf16.mxu0 %v11161_v27  ;;  %v503_v27 = vld [vmem:[%s12378_s2 + $0x120] sm:$0xff]  ;;  %1785 = vmatprep.subr.bf16.mxu1 %v11242_v26 }
  0xf2   : > { %v11218_v26 = vld [vmem:[#allocation8 + $0x3e0] ss:$16 sps:$4 sm:$0xff]  }
  0xf4   : > { %1570 = vmatpush1.bf16.msra.mxu0 %v11163_v28  ;;  %v11199_v28 = vld [vmem:[#allocation8 + $0x304] ss:$16 sps:$4 sm:$0xff]  }
  0xf5   : > { %1571 = vmatprep.subr.bf16.mxu0 %v11164_v29  ;;  %v508_v29 = vld [vmem:[%s12378_s2 + $0x148] sm:$0xff] }
  0xf8   : > { %1572 = vmatpush1.bf16.msra.mxu0 %v11166_v30  ;;  %v512_v30 = vld [vmem:[%s12378_s2 + $0x168] sm:$0xff] }
  0xf9   : > { %1573 = vmatprep.subr.bf16.mxu0 %v11167_v31  ;;  %v11244_v31 = vld [vmem:[#allocation8 + $0xe8] ss:$16 sps:$4 sm:$0xff]   ;;  %v12448_v35 = vpack.c.bf16 %v512_v30, %v508_v29  ;;  %v473_v29 = vld [vmem:[%s12378_s2 + $0x30] sm:$0xff]  ;;  %v2005_v30 = vld [vmem:[#allocation9 + $0x40] sm:$0xff] }
  0xfa   : > { %1786 = vmatpush1.bf16.msra.mxu1 %v11244_v31  ;;  %v2009_v31 = vld [vmem:[#allocation9 + $0x60] sm:$0xff] }
  0xfc   : > { %1574 = vmatpush1.bf16.msra.mxu0 %v11169_v32  ;;  %v12446_v32 = vpack.c.bf16 %v503_v27, %v499_v25  ;;  %v11265_v25 = vld [vmem:[#allocation8 + $0x1c8] ss:$16 sps:$4 sm:$0xff]   ;;  %v469_v27 = vld [vmem:[%s12378_s2 + $0x10] sm:$0xff] }
  0xfd   : > { %1575 = vmatprep.subr.bf16.mxu0 %v11170_v33  ;;  %v11245_v33 = vld [vmem:[#allocation8 + $0x10c] ss:$16 sps:$4 sm:$0xff]  }
  0xfe   : > { %1787 = vmatprep.subr.bf16.mxu1 %v11245_v33 }
 0x100   : > { %1576 = vmatpush1.bf16.msra.mxu0 %v11172_v34  ;;  %v11197_v34 = vld [vmem:[#allocation8 + $0x300] ss:$16 sps:$4 sm:$0xff]  }
 0x101   : > { %1658 = vmatprep.subr.bf16.mxu0 %v11175_v37  ;;  %v11247_v37 = vld [vmem:[#allocation8 + $0x108] ss:$16 sps:$4 sm:$0xff]  }
 0x102   : > { %1788 = vmatpush1.bf16.msra.mxu1 %v11247_v37  ;;  %v11268_v37 = vld [vmem:[#allocation8 + $0x1e8] ss:$16 sps:$4 sm:$0xff]  }
 0x103   : > { %1578 = vmatmul.mubr.bf16.vlgmr.msra.gmra.mrb[0].mxu0 %v12406_v40  ;;  %1789 = vmatprep.subr.bf16.mxu1 %v11248_v39  ;;  %v12486_v39 = vpack.c.bf16 %v473_v29, %v469_v27  ;;  %v2049_v27 = vld [vmem:[#allocation9 + $0x1a0] sm:$0xff]  ;;  %v11286_v29 = vld [vmem:[#allocation8 + $0x2ac] ss:$16 sps:$4 sm:$0xff]  }
 0x104   : > { %1659 = vmatpush1.bf16.msra.mxu0 %v11173_v41  ;;  %1587 = vmatprep.mubr.bf16.mxu0 %v12408_v42  ;;  %v507_v41 = vld [vmem:[%s12378_s2 + $0x140] sm:$0xff] }
 0x105   : > { %1660 = vmatprep.subr.bf16.mxu0 %v11178_v43  ;;  %v511_v43 = vld [vmem:[%s12378_s2 + $0x160] sm:$0xff] }
 0x106   : > { %v12456_v48 = vpack.c.bf16 %v511_v43, %v507_v41  ;;  %1790 = vmatpush1.bf16.msra.mxu1 %v11250_v47  ;;  %v9274_v47 = vcombine.high %v2005_v30, %v2009_v31 }
 0x108   : > { %1661 = vmatpush1.bf16.msra.mxu0 %v11176_v44  ;;  %v11205_v44 = vld [vmem:[#allocation8 + $0x344] ss:$16 sps:$4 sm:$0xff]  }
 0x109   : > { %1662 = vmatprep.subr.bf16.mxu0 %v11181_v49  ;;  %v11251_v49 = vld [vmem:[#allocation8 + $0x14c] ss:$16 sps:$4 sm:$0xff]  }
 0x10a   : > { %1791 = vmatprep.subr.bf16.mxu1 %v11251_v49  ;;  %v477_v49 = vld [vmem:[%s12378_s2 + $0x50] sm:$0xff] }
 0x10b   : > { %1588 = vmatmul.mubr.bf16.gmra.mrb[4].mxu0 %v12416_v52 }
 0x10c   : > { %1663 = vmatpush1.bf16.msra.mxu0 %v11179_v53  ;;  %1597 = vmatprep.mubr.bf16.mxu0 %v12418_v55  ;;  %v11208_v53 = vld [vmem:[#allocation8 + $0x364] ss:$16 sps:$4 sm:$0xff]  }
 0x10d   : > { %1664 = vmatprep.subr.bf16.mxu0 %v11184_v57  ;;  %v11253_v57 = vld [vmem:[#allocation8 + $0x148] ss:$16 sps:$4 sm:$0xff]  }
 0x10e   : > { %1792 = vmatpush1.bf16.msra.mxu1 %v11253_v57  ;;  %v2025_v57 = vld [vmem:[#allocation9 + $0xe0] sm:$0xff] }
 0x10f   : > { %1793 = vmatprep.subr.bf16.mxu1 %v11254_v58 }
 0x110   : > { %1665 = vmatpush1.bf16.msra.mxu0 %v11182_v59  ;;  %v519_v59 = vld [vmem:[%s12378_s2 + $0x1a0] sm:$0xff] }
 0x111   : > { %1666 = vmatprep.subr.bf16.mxu0 %v11187_v63  ;;  %v11256_v63 = vld [vmem:[#allocation8 + $0x168] ss:$16 sps:$4 sm:$0xff]   ;;  %v12466_v0 = vpack.c.bf16 %v519_v59, %v515_v56  ;;  %v2021_v56 = vld [vmem:[#allocation9 + $0xc0] sm:$0xff] }
 0x112   : > { %1794 = vmatpush1.bf16.msra.mxu1 %v11256_v63  ;;  %v486_v59 = vld [vmem:[%s12378_s2 + $0x98] sm:$0xff] }
 0x113   : > { %1598 = vmatmul.mubr.bf16.gmra.mrb[8].mxu0 %v12426_v4  ;;  %1795 = vmatprep.subr.bf16.mxu1 %v11257_v1 }
 0x114   : > { %1667 = vmatpush1.bf16.msra.mxu0 %v11185_v6  ;;  %1607 = vmatprep.mubr.bf16.mxu0 %v12428_v7  ;;  %v11259_v6 = vld [vmem:[#allocation8 + $0x188] ss:$16 sps:$4 sm:$0xff]  }
 0x115   : > { %1668 = vmatprep.subr.bf16.mxu0 %v11190_v8  ;;  %v11212_v8 = vld [vmem:[#allocation8 + $0x3a0] ss:$16 sps:$4 sm:$0xff]  }
 0x116   : > { %1796 = vmatpush1.bf16.msra.mxu1 %v11259_v6  ;;  %v2033_v6 = vld [vmem:[#allocation9 + $0x120] sm:$0xff] }
 0x117   : > { %1797 = vmatprep.subr.bf16.mxu1 %v11260_v10  ;;  %v9289_v10 = vcombine.low %v2021_v56, %v2025_v57 }
 0x118   : > { %1669 = vmatpush1.bf16.msra.mxu0 %v11188_v9  ;;  %v523_v9 = vld [vmem:[%s12378_s2 + $0x1c0] sm:$0xff] }
 0x119   : > { %1670 = vmatprep.subr.bf16.mxu0 %v11193_v14  ;;  %v474_v14 = vld [vmem:[%s12378_s2 + $0x38] sm:$0xff]  ;;  %v12476_v16 = vpack.c.bf16 %v527_v11, %v523_v9  ;;  %v489_v11 = vld [vmem:[%s12378_s2 + $0xb0] sm:$0xff] }
 0x11a   : > { %1798 = vmatpush1.bf16.msra.mxu1 %v11262_v15  ;;  %v11280_v9 = vld [vmem:[#allocation8 + $0x26c] ss:$16 sps:$4 sm:$0xff]  }
 0x11b   : > { %1608 = vmatmul.mubr.bf16.gmra.mrb[12].mxu0 %v12436_v18  ;;  %v494_v15 = vld [vmem:[%s12378_s2 + $0xd8] sm:$0xff] }
 0x11c   : > { %1671 = vmatpush1.bf16.msra.mxu0 %v11191_v20  ;;  %1617 = vmatprep.mubr.bf16.mxu0 %v12438_v21  ;;  %v11263_v20 = vld [vmem:[#allocation8 + $0x1cc] ss:$16 sps:$4 sm:$0xff]  }
 0x11d   : > { %1672 = vmatprep.subr.bf16.mxu0 %v11196_v22  ;;  %v12478_v22 = vpack.c.bf16 %v474_v14, %v470_v13  ;;  %1799 = vmatprep.subr.bf16.mxu1 %v11263_v20  ;;  %v2041_v13 = vld [vmem:[#allocation9 + $0x160] sm:$0xff]  ;;  %v11283_v20 = vld [vmem:[#allocation8 + $0x28c] ss:$16 sps:$4 sm:$0xff]  }
 0x11e   : > { %1800 = vmatpush1.bf16.msra.mxu1 %v11265_v25 }
 0x120   : > { %1673 = vmatpush1.bf16.msra.mxu0 %v11194_v24  ;;  %v2001_v24 = vld [vmem:[#allocation9 + $0x20] sm:$0xff] }
 0x121   : > { %1674 = vmatprep.subr.bf16.mxu0 %v11199_v28  ;;  %v11266_v28 = vld [vmem:[#allocation8 + $0x1ec] ss:$16 sps:$4 sm:$0xff]   ;;  %v9266_v33 = vcombine.high %v1997_v23, %v2001_v24  ;;  %v9265_v41 = vcombine.low %v1997_v23, %v2001_v24 }
 0x122   : > { %1801 = vmatprep.subr.bf16.mxu1 %v11266_v28  ;;  %v11281_v28 = vld [vmem:[#allocation8 + $0x288] ss:$16 sps:$4 sm:$0xff]  }
 0x123   : > { %1618 = vmatmul.mubr.bf16.gmra.mrb[16].mxu0 %v12446_v32  ;;  %1802 = vmatpush1.bf16.msra.mxu1 %v11268_v37  ;;  %v502_v37 = vld [vmem:[%s12378_s2 + $0x118] sm:$0xff] }
 0x124   : > { %1675 = vmatpush1.bf16.msra.mxu0 %v11197_v34  ;;  %1627 = vmatprep.mubr.bf16.mxu0 %v12448_v35  ;;  %v478_v34 = vld [vmem:[%s12378_s2 + $0x58] sm:$0xff] }
 0x125   : > { %1676 = vmatprep.subr.bf16.mxu0 %v11202_v36  ;;  %v482_v36 = vld [vmem:[%s12378_s2 + $0x78] sm:$0xff] }
 0x126   : > { %v12488_v43 = vpack.c.bf16 %v482_v36, %v478_v34  ;;  %1804 = vmatmul.mubr.bf16.vlgmr.msra.gmra.mrb[0].mxu1 %v12406_v40  ;;  %v9290_v40 = vcombine.high %v2021_v56, %v2025_v57  ;;  %v2057_v34 = vld [vmem:[#allocation9 + $0x1e0] sm:$0xff]  ;;  %v505_v57 = vld [vmem:[%s12378_s2 + $0x130] sm:$0xff] }
 0x127   : > { %1813 = vmatprep.mubr.bf16.mxu1 %v12408_v42  ;;  %v485_v42 = vld [vmem:[%s12378_s2 + $0x90] sm:$0xff] }
 0x128   : > { %1677 = vmatpush1.bf16.msra.mxu0 %v11200_v38  ;;  %v11271_v38 = vld [vmem:[#allocation8 + $0x20c] ss:$16 sps:$4 sm:$0xff]   ;;  %v12510_v23 = vpack.c.bf16 %v489_v11, %v485_v42  ;;  %v2077_v42 = vld [vmem:[#allocation9 + $0x280] sm:$0xff]  ;;  %v509_v11 = vld [vmem:[%s12378_s2 + $0x150] sm:$0xff] }
 0x129   : > { %1678 = vmatprep.subr.bf16.mxu0 %v11205_v44  ;;  %v2013_v44 = vld [vmem:[#allocation9 + $0x80] sm:$0xff]  ;;  %1884 = vmatprep.subr.bf16.mxu1 %v11271_v38  ;;  %v506_v38 = vld [vmem:[%s12378_s2 + $0x138] sm:$0xff] }
 0x12a   : > { %v9282_v58 = vcombine.high %v2013_v44, %v2017_v45  ;;  %1885 = vmatpush1.bf16.msra.mxu1 %v11269_v46  ;;  %v9281_v1 = vcombine.low %v2013_v44, %v2017_v45  ;;  %v11289_v44 = vld [vmem:[#allocation8 + $0x2cc] ss:$16 sps:$4 sm:$0xff]  }
 0x12b   : > { %1628 = vmatmul.mubr.bf16.gmra.mrb[20].mxu0 %v12456_v48 }
 0x12c   : > { %1679 = vmatpush1.bf16.msra.mxu0 %v11203_v50  ;;  %1637 = vmatprep.mubr.bf16.mxu0 %v12458_v51  ;;  %v11274_v50 = vld [vmem:[#allocation8 + $0x22c] ss:$16 sps:$4 sm:$0xff]  }
 0x12d   : > { %1680 = vmatprep.subr.bf16.mxu0 %v11208_v53  ;;  %v9273_v53 = vcombine.low %v2005_v30, %v2009_v31  ;;  %1886 = vmatprep.subr.bf16.mxu1 %v11274_v50  ;;  %v497_v31 = vld [vmem:[%s12378_s2 + $0xf0] sm:$0xff]  ;;  %v2065_v50 = vld [vmem:[#allocation9 + $0x220] sm:$0xff] }
 0x12e   : > { %1887 = vmatpush1.bf16.msra.mxu1 %v11272_v61  ;;  %v510_v61 = vld [vmem:[%s12378_s2 + $0x158] sm:$0xff] }
 0x12f   : > { %1888 = vmatprep.subr.bf16.mxu1 %v11277_v62  ;;  %1814 = vmatmul.mubr.bf16.gmra.mrb[4].mxu1 %v12416_v52  ;;  %v514_v62 = vld [vmem:[%s12378_s2 + $0x178] sm:$0xff] }
 0x130   : > { %1681 = vmatpush1.bf16.msra.mxu0 %v11206_v54  ;;  %v481_v54 = vld [vmem:[%s12378_s2 + $0x70] sm:$0xff]  ;;  %1823 = vmatprep.mubr.bf16.mxu1 %v12418_v55 }
 0x131   : > { %1682 = vmatprep.subr.bf16.mxu0 %v11211_v60  ;;  %v490_v60 = vld [vmem:[%s12378_s2 + $0xb8] sm:$0xff]  ;;  %v12498_v63 = vpack.c.bf16 %v481_v54, %v477_v49  ;;  %v493_v55 = vld [vmem:[%s12378_s2 + $0xd0] sm:$0xff]  ;;  %v2061_v49 = vld [vmem:[#allocation9 + $0x200] sm:$0xff] }
 0x132   : > { %v12522_v45 = vpack.c.bf16 %v497_v31, %v493_v55  ;;  %v11292_v54 = vld [vmem:[#allocation8 + $0x2ec] ss:$16 sps:$4 sm:$0xff]   ;;  %v2093_v55 = vld [vmem:[#allocation9 + $0x300] sm:$0xff]  ;;  %v517_v31 = vld [vmem:[%s12378_s2 + $0x190] sm:$0xff] }
 0x133   : > { %1638 = vmatmul.mubr.bf16.gmra.mrb[24].mxu0 %v12466_v0 }
 0x134   : > { %1683 = vmatpush1.bf16.msra.mxu0 %v11209_v2  ;;  %1647 = vmatprep.mubr.bf16.mxu0 %v12468_v3  ;;  %v12500_v2 = vpack.c.bf16 %v490_v60, %v486_v59  ;;  %v2073_v59 = vld [vmem:[#allocation9 + $0x260] sm:$0xff]  ;;  %v9330_v60 = vcombine.high %v2061_v49, %v2065_v50 }
 0x135   : > { %1684 = vmatprep.subr.bf16.mxu0 %v11214_v5  ;;  %v2029_v5 = vld [vmem:[#allocation9 + $0x100] sm:$0xff] }
 0x136   : > { %v9298_v14 = vcombine.high %v2029_v5, %v2033_v6  ;;  %v9297_v24 = vcombine.low %v2029_v5, %v2033_v6  ;;  %v11295_v5 = vld [vmem:[#allocation8 + $0x30c] ss:$16 sps:$4 sm:$0xff]  }
 0x137   : > { %1824 = vmatmul.mubr.bf16.gmra.mrb[8].mxu1 %v12426_v4 }
 0x138   : > { %1685 = vmatpush1.bf16.msra.mxu0 %v11212_v8  ;;  %v11275_v8 = vld [vmem:[#allocation8 + $0x248] ss:$16 sps:$4 sm:$0xff]   ;;  %1833 = vmatprep.mubr.bf16.mxu1 %v12428_v7  ;;  %v501_v7 = vld [vmem:[%s12378_s2 + $0x110] sm:$0xff] }
 0x139   : > { %1686 = vmatprep.subr.bf16.mxu0 %v11217_v12  ;;  %v2037_v12 = vld [vmem:[#allocation9 + $0x140] sm:$0xff]  ;;  %1889 = vmatpush1.bf16.msra.mxu1 %v11275_v8  ;;  %v12534_v6 = vpack.c.bf16 %v505_v57, %v501_v7  ;;  %v9329_v8 = vcombine.low %v2061_v49, %v2065_v50  ;;  %v11307_v50 = vld [vmem:[#allocation8 + $0x38c] ss:$16 sps:$4 sm:$0xff]   ;;  %v525_v57 = vld [vmem:[%s12378_s2 + $0x1d0] sm:$0xff] }
 0x13a   : > { %1890 = vmatprep.subr.bf16.mxu1 %v11280_v9  ;;  %v9306_v52 = vcombine.high %v2037_v12, %v2041_v13  ;;  %v9305_v30 = vcombine.low %v2037_v12, %v2041_v13  ;;  %v2081_v9 = vld [vmem:[#allocation9 + $0x2a0] sm:$0xff]  ;;  %v11298_v12 = vld [vmem:[#allocation8 + $0x32c] ss:$16 sps:$4 sm:$0xff]  }
 0x13b   : > { %1648 = vmatmul.mubr.bf16.gmra.mrb[28].mxu0 %v12476_v16  ;;  %v2109_v7 = vld [vmem:[#allocation9 + $0x380] sm:$0xff] }
 0x13c   : > { %1687 = vmatpush1.bf16.msra.mxu0 %v11215_v17  ;;  %1690 = vmatprep.mubr.bf16.mxu0 %v12478_v22  ;;  %v498_v17 = vld [vmem:[%s12378_s2 + $0xf8] sm:$0xff] }
 0x13d   : > { %1688 = vmatprep.subr.bf16.mxu0 %v11220_v19  ;;  %v11278_v19 = vld [vmem:[#allocation8 + $0x268] ss:$16 sps:$4 sm:$0xff]   ;;  %v12512_v25 = vpack.c.bf16 %v498_v17, %v494_v15  ;;  %v2089_v15 = vld [vmem:[#allocation9 + $0x2e0] sm:$0xff] }
 0x13e   : > { %1891 = vmatpush1.bf16.msra.mxu1 %v11278_v19  ;;  %v518_v17 = vld [vmem:[%s12378_s2 + $0x198] sm:$0xff]  ;;  %v9346_v19 = vcombine.high %v2077_v42, %v2081_v9 }
 0x13f   : > { %1892 = vmatprep.subr.bf16.mxu1 %v11283_v20  ;;  %1834 = vmatmul.mubr.bf16.gmra.mrb[12].mxu1 %v12436_v18  ;;  %v522_v20 = vld [vmem:[%s12378_s2 + $0x1b8] sm:$0xff] }
 0x140   : > { %1689 = vmatpush1.bf16.msra.mxu0 %v11218_v26  ;;  %v2045_v26 = vld [vmem:[#allocation9 + $0x180] sm:$0xff]  ;;  %1843 = vmatprep.mubr.bf16.mxu1 %v12438_v21  ;;  %v513_v21 = vld [vmem:[%s12378_s2 + $0x170] sm:$0xff] }
 0x141   : > { %3575 = vmatprep.subr.bf16.mxu0 %v9266_v33  ;;  %v2053_v33 = vld [vmem:[#allocation9 + $0x1c0] sm:$0xff]  ;;  %v9314_v36 = vcombine.high %v2045_v26, %v2049_v27  ;;  %v9313_v46 = vcombine.low %v2045_v26, %v2049_v27  ;;  %v12546_v26 = vpack.c.bf16 %v513_v21, %v509_v11  ;;  %v11301_v27 = vld [vmem:[#allocation8 + $0x34c] ss:$16 sps:$4 sm:$0xff]  }
 0x142   : > { %1893 = vmatpush1.bf16.msra.mxu1 %v11281_v28  ;;  %v9322_v4 = vcombine.high %v2053_v33, %v2057_v34  ;;  %v9321_v56 = vcombine.low %v2053_v33, %v2057_v34  ;;  %v9345_v28 = vcombine.low %v2077_v42, %v2081_v9  ;;  %v11304_v33 = vld [vmem:[#allocation8 + $0x36c] ss:$16 sps:$4 sm:$0xff]   ;;  %v2125_v11 = vld [vmem:[#allocation9 + $0x400] sm:$0xff] }
 0x143   : > { %1691 = vmatmul.mubr.bf16.vlgmr.msra.gmra.mrb[0].mxu0 %v12486_v39  ;;  %1894 = vmatprep.subr.bf16.mxu1 %v11286_v29  ;;  %v2097_v29 = vld [vmem:[#allocation9 + $0x320] sm:$0xff]  ;;  %v11313_v9 = vld [vmem:[#allocation8 + $0x3cc] ss:$16 sps:$4 sm:$0xff]  }
 0x144   : > { %3576 = vmatpush1.bf16.msra.mxu0 %v9265_v41  ;;  %1700 = vmatprep.mubr.bf16.mxu0 %v12488_v43  ;;  %v11284_v41 = vld [vmem:[#allocation8 + $0x2a8] ss:$16 sps:$4 sm:$0xff]   ;;  %v2129_v21 = vld [vmem:[#allocation9 + $0x420] sm:$0xff] }
 0x145   : > { %3577 = vmatprep.subr.bf16.mxu0 %v9274_v47  ;;  %v12524_v47 = vpack.c.bf16 %v506_v38, %v502_v37  ;;  %v2105_v37 = vld [vmem:[#allocation9 + $0x360] sm:$0xff]  ;;  %v526_v38 = vld [vmem:[%s12378_s2 + $0x1d8] sm:$0xff] }
 0x146   : > { %1895 = vmatpush1.bf16.msra.mxu1 %v11284_v41  ;;  %v9362_v41 = vcombine.high %v2093_v55, %v2097_v29 }
 0x147   : > { %1896 = vmatprep.subr.bf16.mxu1 %v11289_v44  ;;  %1844 = vmatmul.mubr.bf16.gmra.mrb[16].mxu1 %v12446_v32  ;;  %v530_v44 = vld [vmem:[%s12378_s2 + $0x1f8] sm:$0xff] }
 0x148   : > { %3578 = vmatpush1.bf16.msra.mxu0 %v9273_v53  ;;  %v11287_v53 = vld [vmem:[#allocation8 + $0x2c8] ss:$16 sps:$4 sm:$0xff]   ;;  %1853 = vmatprep.mubr.bf16.mxu1 %v12448_v35  ;;  %v521_v35 = vld [vmem:[%s12378_s2 + $0x1b0] sm:$0xff] }
 0x149   : > { %3579 = vmatprep.subr.bf16.mxu0 %v9282_v58  ;;  %v2069_v58 = vld [vmem:[#allocation9 + $0x240] sm:$0xff]  ;;  %v12558_v49 = vpack.c.bf16 %v521_v35, %v517_v31  ;;  %v2006_v31 = vld [vmem:[#allocation9 + $0x48] sm:$0xff] }
 0x14a   : > { %1897 = vmatpush1.bf16.msra.mxu1 %v11287_v53  ;;  %v9338_v18 = vcombine.high %v2069_v58, %v2073_v59  ;;  %v9337_v13 = vcombine.low %v2069_v58, %v2073_v59  ;;  %v9361_v53 = vcombine.low %v2093_v55, %v2097_v29  ;;  %v11310_v58 = vld [vmem:[#allocation8 + $0x3ac] ss:$16 sps:$4 sm:$0xff]   ;;  %v2137_v55 = vld [vmem:[#allocation9 + $0x460] sm:$0xff]  ;;  %v11314_v29 = vld [vmem:[#allocation8 + $0x3e8] ss:$16 sps:$4 sm:$0xff]  }
 0x14b   : > { %1701 = vmatmul.mubr.bf16.gmra.mrb[4].mxu0 %v12498_v63  ;;  %1898 = vmatprep.subr.bf16.mxu1 %v11292_v54  ;;  %v2113_v54 = vld [vmem:[#allocation9 + $0x3a0] sm:$0xff]  ;;  %v2010_v35 = vld [vmem:[#allocation9 + $0x68] sm:$0xff] }
 0x14c   : > { %3580 = vmatpush1.bf16.msra.mxu0 %v9281_v1  ;;  %1710 = vmatprep.mubr.bf16.mxu0 %v12500_v2  ;;  %v11290_v1 = vld [vmem:[#allocation8 + $0x2e8] ss:$16 sps:$4 sm:$0xff]  }
 0x14d   : > { %3581 = vmatprep.subr.bf16.mxu0 %v9290_v40  ;;  %v12536_v40 = vpack.c.bf16 %v514_v62, %v510_v61  ;;  %v2121_v61 = vld [vmem:[#allocation9 + $0x3e0] sm:$0xff]  ;;  %v564_v62 = vld [vmem:[%s12386_s10 + $0x8] sm:$0xff] }
 0x14e   : > { %1899 = vmatpush1.bf16.msra.mxu1 %v11290_v1  ;;  %v9378_v1 = vcombine.high %v2109_v7, %v2113_v54 }
 0x14f   : > { %1900 = vmatprep.subr.bf16.mxu1 %v11295_v5  ;;  %1854 = vmatmul.mubr.bf16.gmra.mrb[20].mxu1 %v12456_v48  ;;  %v568_v5 = vld [vmem:[%s12386_s10 + $0x28] sm:$0xff] }
 0x150   : > { %3582 = vmatpush1.bf16.msra.mxu0 %v9289_v10  ;;  %v11293_v10 = vld [vmem:[#allocation8 + $0x308] ss:$16 sps:$4 sm:$0xff]   ;;  %1863 = vmatprep.mubr.bf16.mxu1 %v12458_v51  ;;  %v529_v51 = vld [vmem:[%s12378_s2 + $0x1f0] sm:$0xff] }
 0x151   : > { %3583 = vmatprep.subr.bf16.mxu0 %v9298_v14  ;;  %v2085_v14 = vld [vmem:[#allocation9 + $0x2c0] sm:$0xff]  ;;  %v12570_v42 = vpack.c.bf16 %v529_v51, %v525_v57 }
 0x152   : > { %1901 = vmatpush1.bf16.msra.mxu1 %v11293_v10  ;;  %v9354_v32 = vcombine.high %v2085_v14, %v2089_v15  ;;  %v9353_v34 = vcombine.low %v2085_v14, %v2089_v15  ;;  %v9377_v10 = vcombine.low %v2109_v7, %v2113_v54  ;;  %v567_v14 = vld [vmem:[%s12386_s10 + $0x20] sm:$0xff]  ;;  %v576_v15 = vld [vmem:[%s12386_s10 + $0x68] sm:$0xff] }
 0x153   : > { %1711 = vmatmul.mubr.bf16.gmra.mrb[8].mxu0 %v12510_v23  ;;  %1902 = vmatprep.subr.bf16.mxu1 %v11298_v12  ;;  %v11311_v12 = vld [vmem:[#allocation8 + $0x3c8] ss:$16 sps:$4 sm:$0xff]  }
 0x154   : > { %3584 = vmatpush1.bf16.msra.mxu0 %v9297_v24  ;;  %1720 = vmatprep.mubr.bf16.mxu0 %v12512_v25  ;;  %v11296_v24 = vld [vmem:[#allocation8 + $0x328] ss:$16 sps:$4 sm:$0xff]  }
 0x155   : > { %3585 = vmatprep.subr.bf16.mxu0 %v9306_v52  ;;  %v12548_v52 = vpack.c.bf16 %v522_v20, %v518_v17  ;;  %v11316_v17 = vld [vmem:[#allocation8 + $0x3ec] ss:$16 sps:$4 sm:$0xff]   ;;  %v2133_v20 = vld [vmem:[#allocation9 + $0x440] sm:$0xff] }
 0x156   : > { %1903 = vmatpush1.bf16.msra.mxu1 %v11296_v24  ;;  %v1998_v24 = vld [vmem:[#allocation9 + $0x8] sm:$0xff]  ;;  %v9401_v7 = vcombine.low %v2133_v20, %v2137_v55 }
 0x157   : > { %1904 = vmatprep.subr.bf16.mxu1 %v11301_v27  ;;  %1864 = vmatmul.mubr.bf16.gmra.mrb[24].mxu1 %v12466_v0  ;;  %v2002_v27 = vld [vmem:[#allocation9 + $0x28] sm:$0xff] }
 0x158   : > { %3586 = vmatpush1.bf16.msra.mxu0 %v9305_v30  ;;  %v11299_v30 = vld [vmem:[#allocation8 + $0x348] ss:$16 sps:$4 sm:$0xff]   ;;  %1873 = vmatprep.mubr.bf16.mxu1 %v12468_v3 }
 0x159   : > { %3587 = vmatprep.subr.bf16.mxu0 %v9314_v36  ;;  %v2101_v36 = vld [vmem:[#allocation9 + $0x340] sm:$0xff]  ;;  %v572_v3 = vld [vmem:[%s12386_s10 + $0x48] sm:$0xff] }
 0x15a   : > { %1905 = vmatpush1.bf16.msra.mxu1 %v11299_v30  ;;  %v9370_v48 = vcombine.high %v2101_v36, %v2105_v37  ;;  %v9369_v59 = vcombine.low %v2101_v36, %v2105_v37  ;;  %v2141_v36 = vld [vmem:[#allocation9 + $0x480] sm:$0xff]  ;;  %v584_v54 = vld [vmem:[%s12386_s10 + $0xa8] sm:$0xff] }
 0x15b   : > { %1721 = vmatmul.mubr.bf16.gmra.mrb[12].mxu0 %v12522_v45  ;;  %1906 = vmatprep.subr.bf16.mxu1 %v11304_v33  ;;  %v9393_v33 = vcombine.low %v2125_v11, %v2129_v21  ;;  %v2145_v37 = vld [vmem:[#allocation9 + $0x4a0] sm:$0xff] }
 0x15c   : > { %3588 = vmatpush1.bf16.msra.mxu0 %v9313_v46  ;;  %1730 = vmatprep.mubr.bf16.mxu0 %v12524_v47  ;;  %v11302_v46 = vld [vmem:[#allocation8 + $0x368] ss:$16 sps:$4 sm:$0xff]   ;;  %v9410_v51 = vcombine.high %v2141_v36, %v2145_v37 }
 0x15d   : > { %3589 = vmatprep.subr.bf16.mxu0 %v9322_v4  ;;  %v12560_v4 = vpack.c.bf16 %v530_v44, %v526_v38  ;;  %v571_v38 = vld [vmem:[%s12386_s10 + $0x40] sm:$0xff]  ;;  %v580_v44 = vld [vmem:[%s12386_s10 + $0x88] sm:$0xff] }
 0x15e   : > { %1907 = vmatpush1.bf16.msra.mxu1 %v11302_v46  ;;  %v9276_v46 = vcombine.high %v2006_v31, %v2010_v35 }
 0x15f   : > { %1908 = vmatprep.subr.bf16.mxu1 %v11307_v50  ;;  %1874 = vmatmul.mubr.bf16.gmra.mrb[28].mxu1 %v12476_v16  ;;  %v9402_v16 = vcombine.high %v2133_v20, %v2137_v55  ;;  %v12590_v50 = vld [vmem:[#allocation9 + $0x10] sm:$0xff]  ;;  %v2165_v20 = vld [vmem:[#allocation9 + $0x540] sm:$0xff] }
 0x160   : > { %3590 = vmatpush1.bf16.msra.mxu0 %v9321_v56  ;;  %v11305_v56 = vld [vmem:[#allocation8 + $0x388] ss:$16 sps:$4 sm:$0xff]   ;;  %1916 = vmatprep.mubr.bf16.mxu1 %v12478_v22  ;;  %v9267_v22 = vcombine.low %v1998_v24, %v2002_v27 }
 0x161   : > { %3591 = vmatprep.subr.bf16.mxu0 %v9330_v60  ;;  %v2117_v60 = vld [vmem:[#allocation9 + $0x3c0] sm:$0xff] }
 0x162   : > { %1909 = vmatpush1.bf16.msra.mxu1 %v11305_v56  ;;  %v9386_v0 = vcombine.high %v2117_v60, %v2121_v61  ;;  %v2014_v56 = vld [vmem:[#allocation9 + $0x88] sm:$0xff] }
 0x163   : > { %1731 = vmatmul.mubr.bf16.gmra.mrb[16].mxu0 %v12534_v6  ;;  %1910 = vmatprep.subr.bf16.mxu1 %v11310_v58  ;;  %v2149_v58 = vld [vmem:[#allocation9 + $0x4c0] sm:$0xff] }
 0x164   : > { %3592 = vmatpush1.bf16.msra.mxu0 %v9329_v8  ;;  %1740 = vmatprep.mubr.bf16.mxu0 %v12536_v40  ;;  %v11308_v8 = vld [vmem:[#allocation8 + $0x3a8] ss:$16 sps:$4 sm:$0xff]  }
 0x165   : > { %3593 = vmatprep.subr.bf16.mxu0 %v9338_v18  ;;  %v12572_v18 = vpack.c.bf16 %v568_v5, %v564_v62  ;;  %v2026_v5 = vld [vmem:[#allocation9 + $0xe8] sm:$0xff] }
 0x166   : > { %1911 = vmatpush1.bf16.msra.mxu1 %v11308_v8  ;;  %v12602_v8 = vpack.c.bf16 %v584_v54, %v580_v44  ;;  %v2050_v44 = vld [vmem:[#allocation9 + $0x1a8] sm:$0xff] }
 0x167   : > { %1912 = vmatprep.subr.bf16.mxu1 %v11313_v9  ;;  %v9409_v9 = vcombine.low %v2141_v36, %v2145_v37  ;;  %v2177_v36 = vld [vmem:[#allocation9 + $0x5a0] sm:$0xff] }
 0x168   : > { %3594 = vmatpush1.bf16.msra.mxu0 %v9337_v13  ;;  %v563_v13 = vld [vmem:[%s12386_s10] sm:$0xff] }
 0x169   : > { %3595 = vmatprep.subr.bf16.mxu0 %v9346_v19  ;;  %v9385_v19 = vcombine.low %v2117_v60, %v2121_v61  ;;  %v12582_v30 = vpack.c.bf16 %v567_v14, %v563_v13  ;;  %v9275_v60 = vcombine.low %v2006_v31, %v2010_v35  ;;  %v2030_v14 = vld [vmem:[#allocation9 + $0x108] sm:$0xff]  ;;  %v587_v37 = vld [vmem:[%s12386_s10 + $0xc0] sm:$0xff] }
 0x16a   : > { %1913 = vmatpush1.bf16.msra.mxu1 %v11311_v12  ;;  %v2038_v31 = vld [vmem:[#allocation9 + $0x148] sm:$0xff] }
 0x16b   : > { %1741 = vmatmul.mubr.bf16.gmra.mrb[20].mxu0 %v12546_v26  ;;  %1914 = vmatprep.subr.bf16.mxu1 %v11316_v17  ;;  %v592_v17 = vld [vmem:[%s12386_s10 + $0xe8] sm:$0xff] }
 0x16c   : > { %3596 = vmatpush1.bf16.msra.mxu0 %v9345_v28  ;;  %1750 = vmatprep.mubr.bf16.mxu0 %v12548_v52  ;;  %v9394_v28 = vcombine.high %v2125_v11, %v2129_v21  ;;  %v2161_v11 = vld [vmem:[#allocation9 + $0x520] sm:$0xff]  ;;  %v2042_v35 = vld [vmem:[#allocation9 + $0x168] sm:$0xff] }
 0x16d   : > { %3597 = vmatprep.subr.bf16.mxu0 %v9354_v32  ;;  %v9268_v32 = vcombine.high %v1998_v24, %v2002_v27  ;;  %v579_v21 = vld [vmem:[%s12386_s10 + $0x80] sm:$0xff] }
 0x16e   : > { %1915 = vmatpush1.bf16.msra.mxu1 %v11314_v29  ;;  %v2169_v24 = vld [vmem:[#allocation9 + $0x560] sm:$0xff] }
 0x16f   : > { %3961 = vmatprep.subr.bf16.mxu1 %v9268_v32 }
 0x170   : > { %3598 = vmatpush1.bf16.msra.mxu0 %v9353_v34  ;;  %v12584_v34 = vpack.c.bf16 %v576_v15, %v572_v3  ;;  %v2034_v3 = vld [vmem:[#allocation9 + $0x128] sm:$0xff] }
 0x171   : > { %3599 = vmatprep.subr.bf16.mxu0 %v9362_v41  ;;  %v575_v41 = vld [vmem:[%s12386_s10 + $0x60] sm:$0xff]  ;;  %1917 = vmatmul.mubr.bf16.vlgmr.msra.gmra.mrb[0].mxu1 %v12486_v39  ;;  %v588_v15 = vld [vmem:[%s12386_s10 + $0xc8] sm:$0xff]  ;;  %v9300_v55 = vcombine.high %v2030_v14, %v2034_v3 }
 0x172   : > { %3962 = vmatpush1.bf16.msra.mxu1 %v9267_v22  ;;  %1926 = vmatprep.mubr.bf16.mxu1 %v12488_v43  ;;  %v12600_v61 = vpack.c.bf16 %v575_v41, %v571_v38  ;;  %v12614_v29 = vpack.c.bf16 %v592_v17, %v588_v15  ;;  %v591_v38 = vld [vmem:[%s12386_s10 + $0xe0] sm:$0xff]  ;;  %v9433_v41 = vcombine.low %v2165_v20, %v2169_v24  ;;  %v2046_v22 = vld [vmem:[#allocation9 + $0x188] sm:$0xff] }
 0x173   : > { %1751 = vmatmul.mubr.bf16.gmra.mrb[24].mxu0 %v12558_v49  ;;  %3963 = vmatprep.subr.bf16.mxu1 %v9276_v46  ;;  %v596_v46 = vld [vmem:[%s12386_s10 + $0x108] sm:$0xff]  ;;  %v2197_v15 = vld [vmem:[#allocation9 + $0x640] sm:$0xff] }
 0x174   : > { %3600 = vmatpush1.bf16.msra.mxu0 %v9361_v53  ;;  %1760 = vmatprep.mubr.bf16.mxu0 %v12560_v4  ;;  %v12592_v53 = vld [vmem:[#allocation9 + $0x30] sm:$0xff]  ;;  %v2201_v17 = vld [vmem:[#allocation9 + $0x660] sm:$0xff] }
 0x175   : > { %3601 = vmatprep.subr.bf16.mxu0 %v9370_v48  ;;  %v2018_v48 = vld [vmem:[#allocation9 + $0xa8] sm:$0xff]  ;;  %v9269_v57 = vcombine.low %v12590_v50, %v12592_v53 }
 0x176   : > { %v9284_v62 = vcombine.high %v2014_v56, %v2018_v48  ;;  %3964 = vmatpush1.bf16.msra.mxu1 %v9275_v60  ;;  %v9283_v43 = vcombine.low %v2014_v56, %v2018_v48  ;;  %v2181_v56 = vld [vmem:[#allocation9 + $0x5c0] sm:$0xff] }
 0x177   : > { %v2185_v48 = vld [vmem:[#allocation9 + $0x5e0] sm:$0xff] }
 0x178   : > { %3602 = vmatpush1.bf16.msra.mxu0 %v9369_v59  ;;  %v2153_v59 = vld [vmem:[#allocation9 + $0x4e0] sm:$0xff]  ;;  %3965 = vmatprep.subr.bf16.mxu1 %v9284_v62 }
 0x179   : > { %3603 = vmatprep.subr.bf16.mxu0 %v9378_v1  ;;  %v2022_v1 = vld [vmem:[#allocation9 + $0xc8] sm:$0xff]  ;;  %v9418_v39 = vcombine.high %v2149_v58, %v2153_v59  ;;  %v9417_v13 = vcombine.low %v2149_v58, %v2153_v59  ;;  %1927 = vmatmul.mubr.bf16.gmra.mrb[4].mxu1 %v12498_v63  ;;  %v9434_v63 = vcombine.high %v2165_v20, %v2169_v24 }
 0x17a   : > { %v9292_v12 = vcombine.high %v2022_v1, %v2026_v5  ;;  %3966 = vmatpush1.bf16.msra.mxu1 %v9283_v43  ;;  %v9291_v27 = vcombine.low %v2022_v1, %v2026_v5  ;;  %1936 = vmatprep.mubr.bf16.mxu1 %v12500_v2  ;;  %v9299_v2 = vcombine.low %v2030_v14, %v2034_v3  ;;  %v2054_v1 = vld [vmem:[#allocation9 + $0x1c8] sm:$0xff]  ;;  %v599_v43 = vld [vmem:[%s12386_s10 + $0x120] sm:$0xff] }
 0x17b   : > { %1761 = vmatmul.mubr.bf16.gmra.mrb[28].mxu0 %v12570_v42  ;;  %v12624_v58 = vpack.c.bf16 %v591_v38, %v587_v37  ;;  %v9316_v59 = vcombine.high %v2046_v22, %v2050_v44  ;;  %v2058_v5 = vld [vmem:[#allocation9 + $0x1e8] sm:$0xff]  ;;  %v9465_v37 = vcombine.low %v2197_v15, %v2201_v17 }
 0x17c   : > { %3604 = vmatpush1.bf16.msra.mxu0 %v9377_v10  ;;  %3607 = vmatprep.mubr.bf16.mxu0 %v12572_v18  ;;  %v2157_v10 = vld [vmem:[#allocation9 + $0x500] sm:$0xff]  ;;  %v608_v14 = vld [vmem:[%s12386_s10 + $0x168] sm:$0xff] }
 0x17d   : > { %3605 = vmatprep.subr.bf16.mxu0 %v9386_v0  ;;  %v583_v0 = vld [vmem:[%s12386_s10 + $0xa0] sm:$0xff]  ;;  %3967 = vmatprep.subr.bf16.mxu1 %v9292_v12  ;;  %v9425_v32 = vcombine.low %v2157_v10, %v2161_v11  ;;  %v2062_v12 = vld [vmem:[#allocation9 + $0x208] sm:$0xff] }
 0x17e   : > { %3968 = vmatpush1.bf16.msra.mxu1 %v9291_v27  ;;  %v2082_v38 = vld [vmem:[#allocation9 + $0x2a8] sm:$0xff] }
 0x17f   : > { %3969 = vmatprep.subr.bf16.mxu1 %v9300_v55 }
 0x180   : > { %3606 = vmatpush1.bf16.msra.mxu0 %v9385_v19  ;;  %v9426_v19 = vcombine.high %v2157_v10, %v2161_v11  ;;  %v2193_v10 = vld [vmem:[#allocation9 + $0x620] sm:$0xff] }
 0x181   : > { %3768 = vmatprep.subr.bf16.mxu0 %v9394_v28  ;;  %v12612_v28 = vpack.c.bf16 %v583_v0, %v579_v21  ;;  %1937 = vmatmul.mubr.bf16.gmra.mrb[8].mxu1 %v12510_v23  ;;  %v9450_v23 = vcombine.high %v2181_v56, %v2185_v48  ;;  %v595_v11 = vld [vmem:[%s12386_s10 + $0x100] sm:$0xff]  ;;  %v9449_v21 = vcombine.low %v2181_v56, %v2185_v48  ;;  %v2066_v0 = vld [vmem:[#allocation9 + $0x228] sm:$0xff] }
 0x182   : > { %3970 = vmatpush1.bf16.msra.mxu1 %v9299_v2  ;;  %1946 = vmatprep.mubr.bf16.mxu1 %v12512_v25  ;;  %v9315_v25 = vcombine.low %v2046_v22, %v2050_v44  ;;  %v12636_v20 = vpack.c.bf16 %v599_v43, %v595_v11  ;;  %v9332_v24 = vcombine.high %v2062_v12, %v2066_v0  ;;  %v607_v2 = vld [vmem:[%s12386_s10 + $0x160] sm:$0xff]  ;;  %v616_v22 = vld [vmem:[%s12386_s10 + $0x1a8] sm:$0xff] }
 0x183   : > { %3608 = vmatmul.mubr.bf16.vlgmr.msra.gmra.mrb[32].mxu0 %v12582_v30  ;;  %v2098_v43 = vld [vmem:[#allocation9 + $0x328] sm:$0xff] }
 0x184   : > { %3769 = vmatpush1.bf16.msra.mxu0 %v9393_v33  ;;  %3617 = vmatprep.mubr.bf16.mxu0 %v12584_v34  ;;  %v2173_v33 = vld [vmem:[#allocation9 + $0x580] sm:$0xff] }
 0x185   : > { %3770 = vmatprep.subr.bf16.mxu0 %v9402_v16  ;;  %v9308_v16 = vcombine.high %v2038_v31, %v2042_v35  ;;  %v9442_v54 = vcombine.high %v2173_v33, %v2177_v36  ;;  %v9441_v62 = vcombine.low %v2173_v33, %v2177_v36  ;;  %v603_v33 = vld [vmem:[%s12386_s10 + $0x140] sm:$0xff] }
 0x186   : > { %v12648_v56 = vpack.c.bf16 %v607_v2, %v603_v33  ;;  %v2114_v2 = vld [vmem:[#allocation9 + $0x3a8] sm:$0xff] }
 0x187   : > { %3971 = vmatprep.subr.bf16.mxu1 %v9308_v16  ;;  %v2078_v16 = vld [vmem:[#allocation9 + $0x288] sm:$0xff] }
 0x188   : > { %3771 = vmatpush1.bf16.msra.mxu0 %v9401_v7  ;;  %v600_v7 = vld [vmem:[%s12386_s10 + $0x128] sm:$0xff]  ;;  %v9348_v48 = vcombine.high %v2078_v16, %v2082_v38 }
 0x189   : > { %3772 = vmatprep.subr.bf16.mxu0 %v9410_v51  ;;  %v9307_v51 = vcombine.low %v2038_v31, %v2042_v35  ;;  %v12626_v60 = vpack.c.bf16 %v600_v7, %v596_v46  ;;  %1947 = vmatmul.mubr.bf16.gmra.mrb[12].mxu1 %v12522_v45  ;;  %v2074_v31 = vld [vmem:[#allocation9 + $0x268] sm:$0xff]  ;;  %v9466_v45 = vcombine.high %v2197_v15, %v2201_v17  ;;  %v2205_v35 = vld [vmem:[#allocation9 + $0x680] sm:$0xff] }
 0x18a   : > { %1956 = vmatprep.mubr.bf16.mxu1 %v12524_v47  ;;  %v9331_v47 = vcombine.low %v2062_v12, %v2066_v0  ;;  %v2213_v46 = vld [vmem:[#allocation9 + $0x6c0] sm:$0xff]  ;;  %v624_v12 = vld [vmem:[%s12386_s10 + $0x1e8] sm:$0xff] }
 0x18b   : > { %3618 = vmatmul.mubr.bf16.gmra.mrb[36].mxu0 %v12600_v61  ;;  %3972 = vmatpush1.bf16.msra.mxu1 %v9307_v51  ;;  %v2217_v7 = vld [vmem:[#allocation9 + $0x6e0] sm:$0xff] }
 0x18c   : > { %3627 = vmatprep.mubr.bf16.mxu0 %v12602_v8  ;;  %3773 = vmatpush1.bf16.msra.mxu0 %v9409_v9  ;;  %v2189_v9 = vld [vmem:[#allocation9 + $0x600] sm:$0xff]  ;;  %v9481_v11 = vcombine.low %v2213_v46, %v2217_v7 }
 0x18d   : > { %3774 = vmatprep.subr.bf16.mxu0 %v9418_v39  ;;  %3973 = vmatprep.subr.bf16.mxu1 %v9316_v59  ;;  %v9324_v39 = vcombine.high %v2054_v1, %v2058_v5  ;;  %v9458_v3 = vcombine.high %v2189_v9, %v2193_v10  ;;  %v9457_v55 = vcombine.low %v2189_v9, %v2193_v10  ;;  %v611_v9 = vld [vmem:[%s12386_s10 + $0x180] sm:$0xff] }
 0x18f   : > { %3974 = vmatpush1.bf16.msra.mxu1 %v9315_v25  ;;  %v615_v25 = vld [vmem:[%s12386_s10 + $0x1a0] sm:$0xff] }
 0x190   : > { %3775 = vmatpush1.bf16.msra.mxu0 %v9417_v13  ;;  %v604_v13 = vld [vmem:[%s12386_s10 + $0x148] sm:$0xff]  ;;  %3975 = vmatprep.subr.bf16.mxu1 %v9324_v39  ;;  %v12660_v15 = vpack.c.bf16 %v615_v25, %v611_v9 }
 0x191   : > { %3776 = vmatprep.subr.bf16.mxu0 %v9426_v19  ;;  %v9323_v19 = vcombine.low %v2054_v1, %v2058_v5  ;;  %v12638_v27 = vpack.c.bf16 %v608_v14, %v604_v13  ;;  %1957 = vmatmul.mubr.bf16.gmra.mrb[16].mxu1 %v12534_v6  ;;  %v2090_v1 = vld [vmem:[#allocation9 + $0x2e8] sm:$0xff]  ;;  %v9482_v6 = vcombine.high %v2213_v46, %v2217_v7  ;;  %v2221_v5 = vld [vmem:[#allocation9 + $0x700] sm:$0xff] }
 0x192   : > { %1966 = vmatprep.mubr.bf16.mxu1 %v12536_v40  ;;  %v9347_v40 = vcombine.low %v2078_v16, %v2082_v38  ;;  %v2094_v39 = vld [vmem:[#allocation9 + $0x308] sm:$0xff]  ;;  %v2229_v13 = vld [vmem:[#allocation9 + $0x740] sm:$0xff] }
 0x193   : > { %3628 = vmatmul.mubr.bf16.gmra.mrb[40].mxu0 %v12612_v28  ;;  %3976 = vmatpush1.bf16.msra.mxu1 %v9323_v19  ;;  %v2233_v14 = vld [vmem:[#allocation9 + $0x760] sm:$0xff]  ;;  %v9364_v17 = vcombine.high %v2094_v39, %v2098_v43  ;;  %v632_v16 = vld [vmem:[%s12386_s10 + $0x228] sm:$0xff] }
 0x194   : > { %3637 = vmatprep.mubr.bf16.mxu0 %v12614_v29  ;;  %3777 = vmatpush1.bf16.msra.mxu0 %v9425_v32  ;;  %v2070_v32 = vld [vmem:[#allocation9 + $0x248] sm:$0xff]  ;;  %v9497_v33 = vcombine.low %v2229_v13, %v2233_v14 }
 0x195   : > { %3778 = vmatprep.subr.bf16.mxu0 %v9434_v63  ;;  %v2209_v63 = vld [vmem:[#allocation9 + $0x6a0] sm:$0xff]  ;;  %3977 = vmatprep.subr.bf16.mxu1 %v9332_v24  ;;  %v9340_v36 = vcombine.high %v2070_v32, %v2074_v31  ;;  %v640_v9 = vld [vmem:[%s12386_s10 + $0x268] sm:$0xff] }
 0x196   : > { %v9474_v44 = vcombine.high %v2205_v35, %v2209_v63  ;;  %v9473_v59 = vcombine.low %v2205_v35, %v2209_v63  ;;  %v619_v35 = vld [vmem:[%s12386_s10 + $0x1c0] sm:$0xff] }
 0x197   : > { %3978 = vmatpush1.bf16.msra.mxu1 %v9331_v47  ;;  %v623_v47 = vld [vmem:[%s12386_s10 + $0x1e0] sm:$0xff] }
 0x198   : > { %3779 = vmatpush1.bf16.msra.mxu0 %v9433_v41  ;;  %v612_v41 = vld [vmem:[%s12386_s10 + $0x188] sm:$0xff]  ;;  %3979 = vmatprep.subr.bf16.mxu1 %v9340_v36  ;;  %v12672_v46 = vpack.c.bf16 %v623_v47, %v619_v35  ;;  %v659_v47 = vld [vmem:[%s12386_s10 + $0x300] sm:$0xff] }
 0x199   : > { %3780 = vmatprep.subr.bf16.mxu0 %v9442_v54  ;;  %v9339_v54 = vcombine.low %v2070_v32, %v2074_v31  ;;  %v12650_v51 = vpack.c.bf16 %v616_v22, %v612_v41  ;;  %1967 = vmatmul.mubr.bf16.gmra.mrb[20].mxu1 %v12546_v26  ;;  %v2106_v32 = vld [vmem:[#allocation9 + $0x368] sm:$0xff]  ;;  %v9498_v26 = vcombine.high %v2229_v13, %v2233_v14  ;;  %v2237_v31 = vld [vmem:[#allocation9 + $0x780] sm:$0xff] }
 0x19a   : > { %1976 = vmatprep.mubr.bf16.mxu1 %v12548_v52  ;;  %v9363_v52 = vcombine.low %v2094_v39, %v2098_v43  ;;  %v2110_v36 = vld [vmem:[#allocation9 + $0x388] sm:$0xff]  ;;  %v2245_v41 = vld [vmem:[#allocation9 + $0x7c0] sm:$0xff] }
 0x19b   : > { %3638 = vmatmul.mubr.bf16.gmra.mrb[44].mxu0 %v12624_v58  ;;  %3980 = vmatpush1.bf16.msra.mxu1 %v9339_v54  ;;  %v2249_v22 = vld [vmem:[#allocation9 + $0x7e0] sm:$0xff]  ;;  %v9380_v7 = vcombine.high %v2110_v36, %v2114_v2 }
 0x19c   : > { %3647 = vmatprep.mubr.bf16.mxu0 %v12626_v60  ;;  %3781 = vmatpush1.bf16.msra.mxu0 %v9441_v62  ;;  %v2086_v62 = vld [vmem:[#allocation9 + $0x2c8] sm:$0xff]  ;;  %v639_v43 = vld [vmem:[%s12386_s10 + $0x260] sm:$0xff] }
 0x19d   : > { %3782 = vmatprep.subr.bf16.mxu0 %v9450_v23  ;;  %v2225_v23 = vld [vmem:[#allocation9 + $0x720] sm:$0xff]  ;;  %3981 = vmatprep.subr.bf16.mxu1 %v9348_v48  ;;  %v9356_v10 = vcombine.high %v2086_v62, %v2090_v1 }
 0x19e   : > { %v9490_v0 = vcombine.high %v2221_v5, %v2225_v23  ;;  %v9489_v24 = vcombine.low %v2221_v5, %v2225_v23  ;;  %v631_v5 = vld [vmem:[%s12386_s10 + $0x220] sm:$0xff]  ;;  %v9513_v23 = vcombine.low %v2245_v41, %v2249_v22 }
 0x19f   : > { %3982 = vmatpush1.bf16.msra.mxu1 %v9347_v40  ;;  %v636_v40 = vld [vmem:[%s12386_s10 + $0x248] sm:$0xff]  ;;  %v643_v14 = vld [vmem:[%s12386_s10 + $0x280] sm:$0xff] }
 0x1a0   : > { %3783 = vmatpush1.bf16.msra.mxu0 %v9449_v21  ;;  %v620_v21 = vld [vmem:[%s12386_s10 + $0x1c8] sm:$0xff]  ;;  %3983 = vmatprep.subr.bf16.mxu1 %v9356_v10  ;;  %v9270_v10 = vcombine.high %v12590_v50, %v12592_v53  ;;  %v12688_v39 = vpack.c.bf16 %v640_v9, %v636_v40  ;;  %v675_v9 = vld [vmem:[%s12386_s10 + $0x380] sm:$0xff] }
 0x1a1   : > { %3784 = vmatprep.subr.bf16.mxu0 %v9458_v3  ;;  %v9355_v3 = vcombine.low %v2086_v62, %v2090_v1  ;;  %v12662_v19 = vpack.c.bf16 %v624_v12, %v620_v21  ;;  %1977 = vmatmul.mubr.bf16.gmra.mrb[24].mxu1 %v12558_v49  ;;  %v2122_v49 = vld [vmem:[#allocation9 + $0x3e8] sm:$0xff]  ;;  %v9514_v62 = vcombine.high %v2245_v41, %v2249_v22  ;;  %v667_v41 = vld [vmem:[%s12386_s10 + $0x340] sm:$0xff] }
 0x1a2   : > { %1986 = vmatprep.mubr.bf16.mxu1 %v12560_v4  ;;  %v9379_v1 = vcombine.low %v2110_v36, %v2114_v2  ;;  %16025 = vst [vmem:[#allocation21_spill] sm:$0xff] %v12688_v39  ;;  %v644_v21 = vld [vmem:[%s12386_s10 + $0x288] sm:$0xff]  ;;  %v671_v22 = vld [vmem:[%s12386_s10 + $0x360] sm:$0xff] }
 0x1a3   : > { %3648 = vmatmul.mubr.bf16.gmra.mrb[48].mxu0 %v12636_v20  ;;  %3984 = vmatpush1.bf16.msra.mxu1 %v9355_v3  ;;  %v648_v12 = vld [vmem:[%s12386_s10 + $0x2a8] sm:$0xff]  ;;  %v647_v3 = vld [vmem:[%s12386_s10 + $0x2a0] sm:$0xff] }
 0x1a4   : > { %3657 = vmatprep.mubr.bf16.mxu0 %v12638_v27  ;;  %3785 = vmatpush1.bf16.msra.mxu0 %v9457_v55  ;;  %v2102_v55 = vld [vmem:[#allocation9 + $0x348] sm:$0xff]  ;;  %v12700_v13 = vpack.c.bf16 %v648_v12, %v644_v21 }
 0x1a5   : > { %3786 = vmatprep.subr.bf16.mxu0 %v9466_v45  ;;  %v2241_v45 = vld [vmem:[#allocation9 + $0x7a0] sm:$0xff]  ;;  %3985 = vmatprep.subr.bf16.mxu1 %v9364_v17  ;;  %v9372_v63 = vcombine.high %v2102_v55, %v2106_v32  ;;  %v652_v17 = vld [vmem:[%s12386_s10 + $0x2c8] sm:$0xff] }
 0x1a6   : > { %v9506_v38 = vcombine.high %v2237_v31, %v2241_v45  ;;  %v9505_v48 = vcombine.low %v2237_v31, %v2241_v45  ;;  %16027 = vst [vmem:[#allocation23_spill] sm:$0xff] %v12700_v13  ;;  %v655_v31 = vld [vmem:[%s12386_s10 + $0x2e0] sm:$0xff]  ;;  %v660_v45 = vld [vmem:[%s12386_s10 + $0x308] sm:$0xff] }
 0x1a7   : > { %3986 = vmatpush1.bf16.msra.mxu1 %v9363_v52  ;;  %v664_v52 = vld [vmem:[%s12386_s10 + $0x328] sm:$0xff] }
 0x1a8   : > { %3787 = vmatpush1.bf16.msra.mxu0 %v9465_v37  ;;  %v628_v37 = vld [vmem:[%s12386_s10 + $0x208] sm:$0xff]  ;;  %3987 = vmatprep.subr.bf16.mxu1 %v9372_v63  ;;  %v12724_v63 = vpack.c.bf16 %v664_v52, %v660_v45  ;;  %v683_v52 = vld [vmem:[%s12386_s10 + $0x3c0] sm:$0xff] }
 0x1a9   : > { %3788 = vmatprep.subr.bf16.mxu0 %v9474_v44  ;;  %v9371_v44 = vcombine.low %v2102_v55, %v2106_v32  ;;  %v12674_v54 = vpack.c.bf16 %v632_v16, %v628_v37  ;;  %1987 = vmatmul.mubr.bf16.gmra.mrb[28].mxu1 %v12570_v42  ;;  %v635_v42 = vld [vmem:[%s12386_s10 + $0x240] sm:$0xff]  ;;  %v12710_v55 = vpack.c.bf16 %v647_v3, %v643_v14  ;;  %v668_v36 = vld [vmem:[%s12386_s10 + $0x348] sm:$0xff] }
 0x1aa   : > { %3993 = vmatprep.mubr.bf16.mxu1 %v12572_v18  ;;  %v672_v2 = vld [vmem:[%s12386_s10 + $0x368] sm:$0xff] }
 0x1ab   : > { %3658 = vmatmul.mubr.bf16.gmra.mrb[52].mxu0 %v12648_v56  ;;  %3988 = vmatpush1.bf16.msra.mxu1 %v9371_v44  ;;  %16028 = vst [vmem:[#allocation24_spill] sm:$0xff] %v12710_v55  ;;  %v12736_v16 = vpack.c.bf16 %v672_v2, %v668_v36  ;;  %v2130_v44 = vld [vmem:[#allocation9 + $0x428] sm:$0xff]  ;;  %v566_v36 = vld [vmem:[%s12386_s10 + $0x18] sm:$0xff] }
 0x1ac   : > { %3667 = vmatprep.mubr.bf16.mxu0 %v12650_v51  ;;  %3789 = vmatpush1.bf16.msra.mxu0 %v9473_v59  ;;  %v2118_v59 = vld [vmem:[#allocation9 + $0x3c8] sm:$0xff]  ;;  %v570_v2 = vld [vmem:[%s12386_s10 + $0x38] sm:$0xff] }
 0x1ad   : > { %3790 = vmatprep.subr.bf16.mxu0 %v9482_v6  ;;  %3989 = vmatprep.subr.bf16.mxu1 %v9380_v7  ;;  %v9388_v4 = vcombine.high %v2118_v59, %v2122_v49  ;;  %v627_v6 = vld [vmem:[%s12386_s10 + $0x200] sm:$0xff]  ;;  %v9387_v25 = vcombine.low %v2118_v59, %v2122_v49  ;;  %v676_v7 = vld [vmem:[%s12386_s10 + $0x388] sm:$0xff] }
 0x1ae   : > { %v2142_v40 = vld [vmem:[#allocation9 + $0x488] sm:$0xff] }
 0x1af   : > { %3990 = vmatpush1.bf16.msra.mxu1 %v9379_v1  ;;  %v2134_v1 = vld [vmem:[#allocation9 + $0x448] sm:$0xff] }
 0x1b0   : > { %3791 = vmatpush1.bf16.msra.mxu0 %v9481_v11  ;;  %v12686_v11 = vpack.c.bf16 %v631_v5, %v627_v6  ;;  %3991 = vmatprep.subr.bf16.mxu1 %v9388_v4  ;;  %v2138_v4 = vld [vmem:[#allocation9 + $0x468] sm:$0xff] }
 0x1b1   : > { %3792 = vmatprep.subr.bf16.mxu0 %v9490_v0  ;;  %v12698_v0 = vpack.c.bf16 %v639_v43, %v635_v42  ;;  %v9404_v5 = vcombine.high %v2134_v1, %v2138_v4  ;;  %v684_v42 = vld [vmem:[%s12386_s10 + $0x3c8] sm:$0xff] }
 0x1b2   : > { %16024 = vst [vmem:[#allocation20_spill] sm:$0xff] %v12686_v11  ;;  %v688_v43 = vld [vmem:[%s12386_s10 + $0x3e8] sm:$0xff] }
 0x1b3   : > { %3668 = vmatmul.mubr.bf16.gmra.mrb[56].mxu0 %v12660_v15  ;;  %3992 = vmatpush1.bf16.msra.mxu1 %v9387_v25  ;;  %16026 = vst [vmem:[#allocation22_spill] sm:$0xff] %v12698_v0  ;;  %v2146_v25 = vld [vmem:[#allocation9 + $0x4a8] sm:$0xff] }
 0x1b4   : > { %3677 = vmatprep.mubr.bf16.mxu0 %v12662_v19  ;;  %3793 = vmatpush1.bf16.msra.mxu0 %v9489_v24  ;;  %v656_v24 = vld [vmem:[%s12386_s10 + $0x2e8] sm:$0xff]  ;;  %v9411_v21 = vcombine.low %v2142_v40, %v2146_v25  ;;  %v9412_v12 = vcombine.high %v2142_v40, %v2146_v25  ;;  %v578_v25 = vld [vmem:[%s12386_s10 + $0x78] sm:$0xff] }
 0x1b5   : > { %3794 = vmatprep.subr.bf16.mxu0 %v9498_v26  ;;  %v12712_v32 = vpack.c.bf16 %v656_v24, %v652_v17  ;;  %v651_v26 = vld [vmem:[%s12386_s10 + $0x2c0] sm:$0xff]  ;;  %v2150_v3 = vld [vmem:[#allocation9 + $0x4c8] sm:$0xff]  ;;  %v12760_v24 = vpack.c.bf16 %v688_v43, %v684_v42 }
 0x1b6   : > { %3994 = vmatmul.mubr.bf16.vlgmr.msra.gmra.mrb[32].mxu1 %v12582_v30  ;;  %v12722_v35 = vpack.c.bf16 %v655_v31, %v651_v26  ;;  %v2154_v17 = vld [vmem:[#allocation9 + $0x4e8] sm:$0xff] }
 0x1b7   : > { %4003 = vmatprep.mubr.bf16.mxu1 %v12584_v34  ;;  %16029 = vst [vmem:[#allocation25_spill] sm:$0xff] %v12712_v32  ;;  %v9420_v26 = vcombine.high %v2150_v3, %v2154_v17  ;;  %v9419_v31 = vcombine.low %v2150_v3, %v2154_v17  ;;  %v2158_v45 = vld [vmem:[#allocation9 + $0x508] sm:$0xff]  ;;  %v2011_v3 = vld [vmem:[#allocation9 + $0x70] sm:$0xff] }
 0x1b8   : > { %3795 = vmatpush1.bf16.msra.mxu0 %v9497_v33  ;;  %16030 = vst [vmem:[#allocation26_spill] sm:$0xff] %v12722_v35  ;;  %v663_v33 = vld [vmem:[%s12386_s10 + $0x320] sm:$0xff]  ;;  %v2182_v40 = vld [vmem:[#allocation9 + $0x5c8] sm:$0xff] }
 0x1b9   : > { %3796 = vmatprep.subr.bf16.mxu0 %v9506_v38  ;;  %v12734_v37 = vpack.c.bf16 %v663_v33, %v659_v47  ;;  %v2126_v38 = vld [vmem:[#allocation9 + $0x408] sm:$0xff]  ;;  %v687_v47 = vld [vmem:[%s12386_s10 + $0x3e0] sm:$0xff] }
 0x1ba   : > { %v9395_v59 = vcombine.low %v2126_v38, %v2130_v44  ;;  %v9396_v49 = vcombine.high %v2126_v38, %v2130_v44  ;;  %v2162_v33 = vld [vmem:[#allocation9 + $0x528] sm:$0xff] }
 0x1bb   : > { %3678 = vmatmul.mubr.bf16.gmra.mrb[60].mxu0 %v12672_v46  ;;  %v9427_v38 = vcombine.low %v2158_v45, %v2162_v33  ;;  %v2166_v44 = vld [vmem:[#allocation9 + $0x548] sm:$0xff] }
 0x1bc   : > { %3687 = vmatprep.mubr.bf16.mxu0 %v12674_v54  ;;  %3797 = vmatpush1.bf16.msra.mxu0 %v9505_v48  ;;  %v680_v48 = vld [vmem:[%s12386_s10 + $0x3a8] sm:$0xff] }
 0x1bd   : > { %3798 = vmatprep.subr.bf16.mxu0 %v9514_v62  ;;  %v12746_v62 = vpack.c.bf16 %v671_v22, %v667_v41  ;;  %4154 = vmatprep.subr.bf16.mxu1 %v9396_v49  ;;  %v12748_v6 = vpack.c.bf16 %v680_v48, %v676_v7  ;;  %v9428_v41 = vcombine.high %v2158_v45, %v2162_v33  ;;  %v2170_v7 = vld [vmem:[#allocation9 + $0x568] sm:$0xff]  ;;  %v573_v45 = vld [vmem:[%s12386_s10 + $0x50] sm:$0xff] }
 0x1be   : > { %4004 = vmatmul.mubr.bf16.gmra.mrb[36].mxu1 %v12600_v61  ;;  %v12770_v22 = vpack.c.bf16 %v687_v47, %v683_v52  ;;  %v12772_v48 = vpack.c.bf16 %v570_v2, %v566_v36  ;;  %v9435_v49 = vcombine.low %v2166_v44, %v2170_v7  ;;  %v577_v52 = vld [vmem:[%s12386_s10 + $0x70] sm:$0xff] }
 0x1bf   : > { %4013 = vmatprep.mubr.bf16.mxu1 %v12602_v8  ;;  %4155 = vmatpush1.bf16.msra.mxu1 %v9395_v59  ;;  %v9436_v59 = vcombine.high %v2166_v44, %v2170_v7  ;;  %v2015_v47 = vld [vmem:[#allocation9 + $0x90] sm:$0xff]  ;;  %v12803_v53 = vpack.c.bf16 %v577_v52, %v573_v45  ;;  %v2206_v52 = vld [vmem:[#allocation9 + $0x688] sm:$0xff] }
 0x1c0   : > { %3799 = vmatpush1.bf16.msra.mxu0 %v9513_v23  ;;  %v9403_v23 = vcombine.low %v2134_v1, %v2138_v4  ;;  %4156 = vmatprep.subr.bf16.mxu1 %v9404_v5  ;;  %v565_v1 = vld [vmem:[%s12386_s10 + $0x10] sm:$0xff]  ;;  %v2174_v5 = vld [vmem:[#allocation9 + $0x588] sm:$0xff] }
 0x1c1   : > { %4347 = vmatprep.subr.bf16.mxu0 %v9270_v10  ;;  %v679_v10 = vld [vmem:[%s12386_s10 + $0x3a0] sm:$0xff]  ;;  %v569_v4 = vld [vmem:[%s12386_s10 + $0x30] sm:$0xff] }
 0x1c2   : > { %v12758_v14 = vpack.c.bf16 %v679_v10, %v675_v9  ;;  %v2186_v9 = vld [vmem:[#allocation9 + $0x5e8] sm:$0xff]  ;;  %v574_v10 = vld [vmem:[%s12386_s10 + $0x58] sm:$0xff]  ;;  %v12782_v17 = vpack.c.bf16 %v569_v4, %v565_v1  ;;  %v2019_v33 = vld [vmem:[#allocation9 + $0xb0] sm:$0xff] }
 0x1c3   : > { %3688 = vmatmul.mubr.bf16.gmra.mrb[64].mxu0 %v12686_v11  ;;  %4157 = vmatpush1.bf16.msra.mxu1 %v9403_v23  ;;  %v2178_v23 = vld [vmem:[#allocation9 + $0x5a8] sm:$0xff]  ;;  %v9451_v36 = vcombine.low %v2182_v40, %v2186_v9  ;;  %v12789_v2 = vld [vmem:[#allocation9 + $0x410] sm:$0xff]  ;;  %v582_v4 = vld [vmem:[%s12386_s10 + $0x98] sm:$0xff] }
 0x1c4   : > { %3697 = vmatprep.mubr.bf16.mxu0 %v12688_v39  ;;  %4158 = vmatprep.subr.bf16.mxu1 %v9412_v12  ;;  %v9443_v42 = vcombine.low %v2174_v5, %v2178_v23  ;;  %v9444_v43 = vcombine.high %v2174_v5, %v2178_v23  ;;  %v2007_v12 = vld [vmem:[#allocation9 + $0x50] sm:$0xff]  ;;  %v2202_v1 = vld [vmem:[#allocation9 + $0x668] sm:$0xff]  ;;  %v586_v5 = vld [vmem:[%s12386_s10 + $0xb8] sm:$0xff]  ;;  %v9286_v23 = vcombine.high %v2015_v47, %v2019_v33 }
 0x1c5   : > { %v9277_v44 = vcombine.low %v2007_v12, %v2011_v3  ;;  %v585_v45 = vld [vmem:[%s12386_s10 + $0xb0] sm:$0xff] }
 0x1c6   : > { %4014 = vmatmul.mubr.bf16.gmra.mrb[40].mxu1 %v12612_v28 }
 0x1c7   : > { %4023 = vmatprep.mubr.bf16.mxu1 %v12614_v29  ;;  %4159 = vmatpush1.bf16.msra.mxu1 %v9411_v21  ;;  %v9452_v21 = vcombine.high %v2182_v40, %v2186_v9  ;;  %v2023_v9 = vld [vmem:[#allocation9 + $0xd0] sm:$0xff] }
 0x1c8   : > { %4160 = vmatprep.subr.bf16.mxu1 %v9420_v26  ;;  %v12784_v26 = vpack.c.bf16 %v578_v25, %v574_v10  ;;  %v2027_v10 = vld [vmem:[#allocation9 + $0xf0] sm:$0xff]  ;;  %v12805_v25 = vpack.c.bf16 %v586_v5, %v582_v4  ;;  %v590_v4 = vld [vmem:[%s12386_s10 + $0xd8] sm:$0xff] }
 0x1c9   : > { %v594_v5 = vld [vmem:[%s12386_s10 + $0xf8] sm:$0xff] }
 0x1cb   : > { %3698 = vmatmul.mubr.bf16.gmra.mrb[68].mxu0 %v12698_v0  ;;  %4161 = vmatpush1.bf16.msra.mxu1 %v9419_v31  ;;  %v9278_v31 = vcombine.high %v2007_v12, %v2011_v3  ;;  %v2031_v12 = vld [vmem:[#allocation9 + $0x110] sm:$0xff] }
 0x1cc   : > { %3707 = vmatprep.mubr.bf16.mxu0 %v12700_v13  ;;  %4162 = vmatprep.subr.bf16.mxu1 %v9428_v41  ;;  %v2190_v41 = vld [vmem:[#allocation9 + $0x608] sm:$0xff]  ;;  %v2035_v3 = vld [vmem:[#allocation9 + $0x130] sm:$0xff] }
 0x1ce   : > { %4024 = vmatmul.mubr.bf16.gmra.mrb[44].mxu1 %v12624_v58 }
 0x1cf   : > { %4033 = vmatprep.mubr.bf16.mxu1 %v12626_v60  ;;  %4163 = vmatpush1.bf16.msra.mxu1 %v9427_v38  ;;  %v12791_v38 = vld [vmem:[#allocation9 + $0x430] sm:$0xff] }
 0x1d0   : > { %4164 = vmatprep.subr.bf16.mxu1 %v9436_v59  ;;  %v2194_v59 = vld [vmem:[#allocation9 + $0x628] sm:$0xff] }
 0x1d1   : > { %v9460_v40 = vcombine.high %v2190_v41, %v2194_v59  ;;  %v9459_v50 = vcombine.low %v2190_v41, %v2194_v59  ;;  %v9293_v41 = vcombine.low %v2023_v9, %v2027_v10 }
 0x1d3   : > { %3708 = vmatmul.mubr.bf16.gmra.mrb[72].mxu0 %v12710_v55  ;;  %4165 = vmatpush1.bf16.msra.mxu1 %v9435_v49  ;;  %v2198_v49 = vld [vmem:[#allocation9 + $0x648] sm:$0xff] }
 0x1d4   : > { %3717 = vmatprep.mubr.bf16.mxu0 %v12712_v32  ;;  %4166 = vmatprep.subr.bf16.mxu1 %v9444_v43  ;;  %v885_v43 = vlaneseq }
 0x1d6   : > { %4034 = vmatmul.mubr.bf16.gmra.mrb[48].mxu1 %v12636_v20  ;;  %v12811_v59 = vshrl.u32 %v885_v43, 7 }
 0x1d7   : > { %4043 = vmatprep.mubr.bf16.mxu1 %v12638_v27  ;;  %4167 = vmatpush1.bf16.msra.mxu1 %v9443_v42  ;;  %v9285_v42 = vcombine.low %v2015_v47, %v2019_v33  ;;  %v2210_v47 = vld [vmem:[#allocation9 + $0x6a8] sm:$0xff] }
 0x1d8   : > { %4168 = vmatprep.subr.bf16.mxu1 %v9452_v21  ;;  %v9294_v21 = vcombine.high %v2023_v9, %v2027_v10  ;;  %v2214_v33 = vld [vmem:[#allocation9 + $0x6c8] sm:$0xff]  ;;  %16031 = vst [vmem:[#allocation27_spill] sm:$0xff] %v12811_v59  ;;  %v12819_v10 = vpack.c.bf16 %v594_v5, %v590_v4  ;;  %v12822_v43 = vsub.s32 0, %v12811_v59 }
 0x1d9   : > { %v2226_v5 = vld [vmem:[#allocation9 + $0x728] sm:$0xff] }
 0x1da   : > { %16033 = vst [vmem:[#allocation29_spill] sm:$0xff] %v12819_v10  ;;  %16034 = vst [vmem:[#allocation30_spill] sm:$0xff] %v12822_v43 }
 0x1db   : > { %3718 = vmatmul.mubr.bf16.gmra.mrb[76].mxu0 %v12722_v35  ;;  %4169 = vmatpush1.bf16.msra.mxu1 %v9451_v36  ;;  %v581_v36 = vld [vmem:[%s12386_s10 + $0x90] sm:$0xff] }
 0x1dc   : > { %3727 = vmatprep.mubr.bf16.mxu0 %v12724_v63  ;;  %4170 = vmatprep.subr.bf16.mxu1 %v9460_v40  ;;  %v2043_v40 = vld [vmem:[#allocation9 + $0x170] sm:$0xff] }
 0x1de   : > { %4044 = vmatmul.mubr.bf16.gmra.mrb[52].mxu1 %v12648_v56 }
 0x1df   : > { %4053 = vmatprep.mubr.bf16.mxu1 %v12650_v51  ;;  %4171 = vmatpush1.bf16.msra.mxu1 %v9459_v50  ;;  %v9475_v50 = vcombine.low %v2206_v52, %v2210_v47 }
 0x1e3   : > { %3728 = vmatmul.mubr.bf16.gmra.mrb[80].mxu0 %v12734_v37 }
 0x1e4   : > { %3737 = vmatprep.mubr.bf16.mxu0 %v12736_v16 }
 0x1e6   : > { %4054 = vmatmul.mubr.bf16.gmra.mrb[56].mxu1 %v12660_v15 }
 0x1e7   : > { %4063 = vmatprep.mubr.bf16.mxu1 %v12662_v19 }
 0x1eb   : > { %3738 = vmatmul.mubr.bf16.gmra.mrb[84].mxu0 %v12746_v62 }
 0x1ec   : > { %3747 = vmatprep.mubr.bf16.mxu0 %v12748_v6 }
 0x1ee   : > { %4064 = vmatmul.mubr.bf16.gmra.mrb[60].mxu1 %v12672_v46 }
 0x1ef   : > { %4073 = vmatprep.mubr.bf16.mxu1 %v12674_v54 }
 0x1f3   : > { %3748 = vmatmul.mubr.bf16.gmra.mrb[88].mxu0 %v12758_v14 }
 0x1f4   : > { %3757 = vmatprep.mubr.bf16.mxu0 %v12760_v24 }
 0x1f6   : > { %4074 = vmatmul.mubr.bf16.gmra.mrb[64].mxu1 %v12686_v11 }
 0x1f7   : > { %4083 = vmatprep.mubr.bf16.mxu1 %v12688_v39 }
 0x1fb   : > { %3758 = vmatmul.mubr.bf16.gmra.mrb[92].mxu0 %v12770_v22 }
 0x1fc   : > { %3800 = vmatprep.mubr.bf16.mxu0 %v12772_v48 }
 0x1fe   : > { %4084 = vmatmul.mubr.bf16.gmra.mrb[68].mxu1 %v12698_v0  ;;  %v2055_v0 = vld [vmem:[#allocation9 + $0x1d0] sm:$0xff] }
 0x1ff   : > { %4093 = vmatprep.mubr.bf16.mxu1 %v12700_v13  ;;  %v602_v13 = vld [vmem:[%s12386_s10 + $0x138] sm:$0xff] }
 0x203   : > { %3801 = vmatmul.mubr.bf16.vlgmr.msra.gmra.mrb[32].mxu0 %v12782_v17 }
 0x204   : > { %4348 = vmatpush1.bf16.msra.mxu0 %v9269_v57  ;;  %3810 = vmatprep.mubr.bf16.mxu0 %v12784_v26  ;;  %v9468_v57 = vcombine.high %v2198_v49, %v2202_v1 }
 0x205   : > { %4349 = vmatprep.subr.bf16.mxu0 %v9278_v31  ;;  %v9467_v31 = vcombine.low %v2198_v49, %v2202_v1  ;;  %v9476_v49 = vcombine.high %v2206_v52, %v2210_v47  ;;  %v2039_v1 = vld [vmem:[#allocation9 + $0x150] sm:$0xff] }
 0x206   : > { %4172 = vmatprep.subr.bf16.mxu1 %v9468_v57  ;;  %v12817_v57 = vpack.c.bf16 %v585_v45, %v581_v36  ;;  %v12828_v36 = vsub.s32 1, %v12811_v59  ;;  %v2047_v45 = vld [vmem:[#allocation9 + $0x190] sm:$0xff]  ;;  %v9309_v4 = vcombine.low %v2039_v1, %v2043_v40  ;;  %v598_v59 = vld [vmem:[%s12386_s10 + $0x118] sm:$0xff]  ;;  %4094 = vmatmul.mubr.bf16.gmra.mrb[72].mxu1 %v12710_v55 }
 0x207   : > { %4173 = vmatpush1.bf16.msra.mxu1 %v9467_v31  ;;  %v883_v31 = vld [vmem:[%s15731_s5] sm:$0xf]  ;;  %v2051_v52 = vld [vmem:[#allocation9 + $0x1b0] sm:$0xff]  ;;  %4103 = vmatprep.mubr.bf16.mxu1 %v12712_v32  ;;  %v12846_v11 = vpack.c.bf16 %v602_v13, %v598_v59 }
 0x208   : > { %4350 = vmatpush1.bf16.msra.mxu0 %v9277_v44  ;;  %v2218_v44 = vld [vmem:[#allocation9 + $0x6e8] sm:$0xff]  ;;  %16032 = vst [vmem:[#allocation28_spill] sm:$0xff] %v12817_v57  ;;  %4174 = vmatprep.subr.bf16.mxu1 %v9476_v49  ;;  %16035 = vst [vmem:[#allocation31_spill] sm:$0xff] %v12828_v36  ;;  %v12835_v7 = vrot.slane %v883_v31, %v12822_v43  ;;  %v9317_v55 = vcombine.low %v2047_v45, %v2051_v52  ;;  %v2063_v13 = vld [vmem:[#allocation9 + $0x210] sm:$0xff] }
 0x209   : > { %4351 = vmatprep.subr.bf16.mxu0 %v9286_v23  ;;  %v9302_v23 = vcombine.high %v2031_v12, %v2035_v3  ;;  %v9484_v9 = vcombine.high %v2214_v33, %v2218_v44  ;;  %v9483_v47 = vcombine.low %v2214_v33, %v2218_v44  ;;  %v2234_v49 = vld [vmem:[#allocation9 + $0x768] sm:$0xff]  ;;  %v9318_v33 = vcombine.high %v2047_v45, %v2051_v52  ;;  %v2067_v59 = vld [vmem:[#allocation9 + $0x230] sm:$0xff] }
 0x20a   : > { %16037 = vst [vmem:[#allocation33_spill] sm:$0xff] %v12846_v11 }
 0x20b   : > { %3811 = vmatmul.mubr.bf16.gmra.mrb[36].mxu0 %v12803_v53  ;;  %4175 = vmatpush1.bf16.msra.mxu1 %v9475_v50 }
 0x20c   : > { %3820 = vmatprep.mubr.bf16.mxu0 %v12805_v25  ;;  %4352 = vmatpush1.bf16.msra.mxu0 %v9285_v42  ;;  %v9301_v42 = vcombine.low %v2031_v12, %v2035_v3  ;;  %v589_v12 = vld [vmem:[%s12386_s10 + $0xd0] sm:$0xff] }
 0x20d   : > { %4353 = vmatprep.subr.bf16.mxu0 %v9294_v21  ;;  %v9310_v21 = vcombine.high %v2039_v1, %v2043_v40  ;;  %v593_v3 = vld [vmem:[%s12386_s10 + $0xf0] sm:$0xff]  ;;  %4176 = vmatprep.subr.bf16.mxu1 %v9484_v9  ;;  %v12841_v9 = vrot.slane %v883_v31, %v12828_v36 }
 0x20e   : > { %v12844_v43 = vpack.c.bf16 %v593_v3, %v589_v12  ;;  %4104 = vmatmul.mubr.bf16.gmra.mrb[76].mxu1 %v12722_v35 }
 0x20f   : > { %4177 = vmatpush1.bf16.msra.mxu1 %v9483_v47  ;;  %4113 = vmatprep.mubr.bf16.mxu1 %v12724_v63 }
 0x210   : > { %4354 = vmatpush1.bf16.msra.mxu0 %v9293_v41  ;;  %v2222_v41 = vld [vmem:[#allocation9 + $0x708] sm:$0xff]  ;;  %16036 = vst [vmem:[#allocation32_spill] sm:$0xff] %v12844_v43 }
 0x211   : > { %4355 = vmatprep.subr.bf16.mxu0 %v9302_v23  ;;  %v2230_v23 = vld [vmem:[#allocation9 + $0x748] sm:$0xff]  ;;  %v9492_v44 = vcombine.high %v2222_v41, %v2226_v5  ;;  %v9491_v1 = vcombine.low %v2222_v41, %v2226_v5  ;;  %v601_v5 = vld [vmem:[%s12386_s10 + $0x130] sm:$0xff] }
 0x212   : > { %v9500_v39 = vcombine.high %v2230_v23, %v2234_v49  ;;  %v9499_v45 = vcombine.low %v2230_v23, %v2234_v49  ;;  %v606_v23 = vld [vmem:[%s12386_s10 + $0x158] sm:$0xff] }
 0x213   : > { %3821 = vmatmul.mubr.bf16.gmra.mrb[40].mxu0 %v12817_v57  ;;  %4178 = vmatprep.subr.bf16.mxu1 %v9492_v44  ;;  %v610_v49 = vld [vmem:[%s12386_s10 + $0x178] sm:$0xff] }
 0x214   : > { %3830 = vmatprep.mubr.bf16.mxu0 %v12819_v10  ;;  %4356 = vmatpush1.bf16.msra.mxu0 %v9301_v42  ;;  %v2059_v42 = vld [vmem:[#allocation9 + $0x1f0] sm:$0xff] }
 0x215   : > { %4357 = vmatprep.subr.bf16.mxu0 %v9310_v21  ;;  %v9326_v41 = vcombine.high %v2055_v0, %v2059_v42  ;;  %4179 = vmatpush1.bf16.msra.mxu1 %v9491_v1  ;;  %v2246_v1 = vld [vmem:[#allocation9 + $0x7c8] sm:$0xff] }
 0x216   : > { %v1692_v50 = vpop.f32.mrb[0].mxu0  ;;  %4180 = vmatprep.subr.bf16.mxu1 %v9500_v39  ;;  %v2071_v39 = vld [vmem:[#allocation9 + $0x250] sm:$0xff]  ;;  %4114 = vmatmul.mubr.bf16.gmra.mrb[80].mxu1 %v12734_v37 }
 0x217   : > { %v1694_v40 = vpop.f32.mrb[1].mxu0  ;;  %v12849_v31 = vadd.f32 %v1692_v50, %v12835_v7  ;;  %v9325_v50 = vcombine.low %v2055_v0, %v2059_v42  ;;  %4123 = vmatprep.mubr.bf16.mxu1 %v12736_v16 }
 0x218   : > { %v1696_v21 = vpop.f32.mrb[2].mxu0  ;;  %4358 = vmatpush1.bf16.msra.mxu0 %v9309_v4  ;;  %v12855_v12 = vadd.f32 %v1694_v40, %v12841_v9  ;;  %v597_v4 = vld [vmem:[%s12386_s10 + $0x110] sm:$0xff]  ;;  %v2242_v40 = vld [vmem:[#allocation9 + $0x7a8] sm:$0xff] }
 0x219   : > { %16038 = vst [vmem:[#allocation34_spill] sm:$0xff] %v12849_v31  ;;  %v12852_v36 = vadd.f32 %v1696_v21, %v12835_v7  ;;  %v1698_v47 = vpop.f32.mrb[3].mxu0  ;;  %4359 = vmatprep.subr.bf16.mxu0 %v9318_v33  ;;  %v2238_v33 = vld [vmem:[#allocation9 + $0x788] sm:$0xff]  ;;  %4181 = vmatpush1.bf16.msra.mxu1 %v9499_v45 }
 0x21a   : > { %16040 = vst [vmem:[#allocation36_spill] sm:$0xff] %v12855_v12  ;;  %v12858_v3 = vadd.f32 %v1698_v47, %v12841_v9  ;;  %v2250_v21 = vld [vmem:[#allocation9 + $0x7e8] sm:$0xff]  ;;  %v9334_v47 = vcombine.high %v2063_v13, %v2067_v59  ;;  %v9508_v52 = vcombine.high %v2238_v33, %v2242_v40  ;;  %v9507_v44 = vcombine.low %v2238_v33, %v2242_v40  ;;  %v609_v40 = vld [vmem:[%s12386_s10 + $0x170] sm:$0xff] }
 0x21b   : > { %16039 = vst [vmem:[#allocation35_spill] sm:$0xff] %v12852_v36  ;;  %3831 = vmatmul.mubr.bf16.gmra.mrb[44].mxu0 %v12844_v43  ;;  %v2075_v36 = vld [vmem:[#allocation9 + $0x270] sm:$0xff]  ;;  %v9516_v0 = vcombine.high %v2246_v1, %v2250_v21 }
 0x21c   : > { %16041 = vst [vmem:[#allocation37_spill] sm:$0xff] %v12858_v3  ;;  %3840 = vmatprep.mubr.bf16.mxu0 %v12846_v11  ;;  %4360 = vmatpush1.bf16.msra.mxu0 %v9317_v55  ;;  %v12872_v55 = vpack.c.bf16 %v601_v5, %v597_v4  ;;  %v12874_v3 = vpack.c.bf16 %v610_v49, %v606_v23  ;;  %v614_v49 = vld [vmem:[%s12386_s10 + $0x198] sm:$0xff] }
 0x21d   : > { %4361 = vmatprep.subr.bf16.mxu0 %v9326_v41  ;;  %4182 = vmatprep.subr.bf16.mxu1 %v9508_v52  ;;  %v9333_v41 = vcombine.low %v2063_v13, %v2067_v59  ;;  %v9342_v33 = vcombine.high %v2071_v39, %v2075_v36  ;;  %v2079_v13 = vld [vmem:[#allocation9 + $0x290] sm:$0xff]  ;;  %v9341_v23 = vcombine.low %v2071_v39, %v2075_v36 }
 0x21e   : > { %v1702_v31 = vpop.f32.mrb[4].mxu0  ;;  %16042 = vst [vmem:[#allocation38_spill] sm:$0xff] %v12872_v55  ;;  %16043 = vst [vmem:[#allocation39_spill] sm:$0xff] %v12874_v3  ;;  %v2083_v59 = vld [vmem:[#allocation9 + $0x2b0] sm:$0xff]  ;;  %4183 = vmatpush1.bf16.msra.mxu1 %v9507_v44 }
 0x21f   : > { %v1704_v12 = vpop.f32.mrb[5].mxu0  ;;  %v12877_v35 = vadd.f32 %v1702_v31, %v12835_v7  ;;  %v9515_v31 = vcombine.low %v2246_v1, %v2250_v21  ;;  %4184 = vmatprep.subr.bf16.mxu1 %v9516_v0  ;;  %v9350_v44 = vcombine.high %v2079_v13, %v2083_v59  ;;  %v2087_v21 = vld [vmem:[#allocation9 + $0x2d0] sm:$0xff]  ;;  %v9349_v36 = vcombine.low %v2079_v13, %v2083_v59 }
 0x220   : > { %v1706_v42 = vpop.f32.mrb[6].mxu0  ;;  %4362 = vmatpush1.bf16.msra.mxu0 %v9325_v50  ;;  %v12883_v52 = vadd.f32 %v1704_v12, %v12841_v9  ;;  %v605_v12 = vld [vmem:[%s12386_s10 + $0x150] sm:$0xff]  ;;  %4124 = vmatmul.mubr.bf16.gmra.mrb[84].mxu1 %v12746_v62 }
 0x221   : > { %16044 = vst [vmem:[#allocation40_spill] sm:$0xff] %v12877_v35  ;;  %v12880_v32 = vadd.f32 %v1706_v42, %v12835_v7  ;;  %v1708_v45 = vpop.f32.mrb[7].mxu0  ;;  %4363 = vmatprep.subr.bf16.mxu0 %v9334_v47  ;;  %v618_v47 = vld [vmem:[%s12386_s10 + $0x1b8] sm:$0xff]  ;;  %v2091_v42 = vld [vmem:[#allocation9 + $0x2f0] sm:$0xff]  ;;  %4133 = vmatprep.mubr.bf16.mxu1 %v12748_v6 }
 0x222   : > { %16046 = vst [vmem:[#allocation42_spill] sm:$0xff] %v12883_v52  ;;  %v12886_v4 = vadd.f32 %v1708_v45, %v12841_v9  ;;  %4185 = vmatpush1.bf16.msra.mxu1 %v9515_v31  ;;  %v12900_v45 = vpack.c.bf16 %v609_v40, %v605_v12  ;;  %v12902_v5 = vpack.c.bf16 %v618_v47, %v614_v49  ;;  %v2099_v49 = vld [vmem:[#allocation9 + $0x330] sm:$0xff] }
 0x223   : > { %16045 = vst [vmem:[#allocation41_spill] sm:$0xff] %v12880_v32  ;;  %3841 = vmatmul.mubr.bf16.gmra.mrb[48].mxu0 %v12872_v55  ;;  %v9358_v31 = vcombine.high %v2087_v21, %v2091_v42  ;;  %v617_v47 = vld [vmem:[%s12386_s10 + $0x1b0] sm:$0xff] }
 0x224   : > { %16047 = vst [vmem:[#allocation43_spill] sm:$0xff] %v12886_v4  ;;  %3850 = vmatprep.mubr.bf16.mxu0 %v12874_v3  ;;  %4364 = vmatpush1.bf16.msra.mxu0 %v9333_v41  ;;  %16048 = vst [vmem:[#allocation44_spill] sm:$0xff] %v12900_v45  ;;  %v2103_v4 = vld [vmem:[#allocation9 + $0x350] sm:$0xff] }
 0x225   : > { %4365 = vmatprep.subr.bf16.mxu0 %v9342_v33  ;;  %16049 = vst [vmem:[#allocation45_spill] sm:$0xff] %v12902_v5  ;;  %v2107_v13 = vld [vmem:[#allocation9 + $0x370] sm:$0xff] }
 0x226   : > { %v1712_v1 = vpop.f32.mrb[8].mxu0  ;;  %v2119_v32 = vld [vmem:[#allocation9 + $0x3d0] sm:$0xff] }
 0x227   : > { %v1714_v0 = vpop.f32.mrb[9].mxu0  ;;  %v12905_v39 = vadd.f32 %v1712_v1, %v12835_v7  ;;  %v622_v1 = vld [vmem:[%s12386_s10 + $0x1d8] sm:$0xff] }
 0x228   : > { %v1716_v50 = vpop.f32.mrb[10].mxu0  ;;  %4366 = vmatpush1.bf16.msra.mxu0 %v9341_v23  ;;  %v12911_v12 = vadd.f32 %v1714_v0, %v12841_v9  ;;  %v2095_v23 = vld [vmem:[#allocation9 + $0x310] sm:$0xff]  ;;  %v626_v0 = vld [vmem:[%s12386_s10 + $0x1f8] sm:$0xff]  ;;  %4134 = vmatmul.mubr.bf16.gmra.mrb[88].mxu1 %v12758_v14 }
 0x229   : > { %16050 = vst [vmem:[#allocation46_spill] sm:$0xff] %v12905_v39  ;;  %v12908_v41 = vadd.f32 %v1716_v50, %v12835_v7  ;;  %v1718_v33 = vpop.f32.mrb[11].mxu0  ;;  %4367 = vmatprep.subr.bf16.mxu0 %v9350_v44  ;;  %v613_v50 = vld [vmem:[%s12386_s10 + $0x190] sm:$0xff]  ;;  %v9357_v44 = vcombine.low %v2087_v21, %v2091_v42  ;;  %v12933_v21 = vpack.c.bf16 %v626_v0, %v622_v1  ;;  %v630_v0 = vld [vmem:[%s12386_s10 + $0x218] sm:$0xff] }
 0x22a   : > { %16052 = vst [vmem:[#allocation48_spill] sm:$0xff] %v12911_v12  ;;  %v12914_v40 = vadd.f32 %v1718_v33, %v12841_v9  ;;  %v9366_v33 = vcombine.high %v2095_v23, %v2099_v49  ;;  %v9365_v42 = vcombine.low %v2095_v23, %v2099_v49  ;;  %v2115_v1 = vld [vmem:[#allocation9 + $0x3b0] sm:$0xff]  ;;  %v9373_v49 = vcombine.low %v2103_v4, %v2107_v13 }
 0x22b   : > { %16051 = vst [vmem:[#allocation47_spill] sm:$0xff] %v12908_v41  ;;  %3851 = vmatmul.mubr.bf16.gmra.mrb[52].mxu0 %v12900_v45  ;;  %v12928_v41 = vpack.c.bf16 %v617_v47, %v613_v50  ;;  %16055 = vst [vmem:[#allocation51_spill] sm:$0xff] %v12933_v21  ;;  %v9374_v47 = vcombine.high %v2103_v4, %v2107_v13  ;;  %v625_v23 = vld [vmem:[%s12386_s10 + $0x1f0] sm:$0xff]  ;;  %4143 = vmatprep.mubr.bf16.mxu1 %v12760_v24 }
 0x22c   : > { %16053 = vst [vmem:[#allocation49_spill] sm:$0xff] %v12914_v40  ;;  %3860 = vmatprep.mubr.bf16.mxu0 %v12902_v5  ;;  %4368 = vmatpush1.bf16.msra.mxu0 %v9349_v36  ;;  %v2111_v40 = vld [vmem:[#allocation9 + $0x390] sm:$0xff] }
 0x22d   : > { %4369 = vmatprep.subr.bf16.mxu0 %v9358_v31 }
 0x22e   : > { %v1722_v52 = vpop.f32.mrb[12].mxu0 }
 0x22f   : > { %v1724_v39 = vpop.f32.mrb[13].mxu0  ;;  %v12936_v36 = vadd.f32 %v1722_v52, %v12835_v7 }
 0x230   : > { %v12931_v59 = vadd.f32 %v1724_v39, %v12841_v9  ;;  %v1726_v12 = vpop.f32.mrb[14].mxu0  ;;  %4370 = vmatpush1.bf16.msra.mxu0 %v9357_v44  ;;  %v2123_v44 = vld [vmem:[#allocation9 + $0x3f0] sm:$0xff]  ;;  %4144 = vmatmul.mubr.bf16.gmra.mrb[92].mxu1 %v12770_v22 }
 0x231   : > { %16056 = vst [vmem:[#allocation52_spill] sm:$0xff] %v12936_v36  ;;  %v12939_v31 = vadd.f32 %v1726_v12, %v12835_v7  ;;  %v1728_v50 = vpop.f32.mrb[15].mxu0  ;;  %4371 = vmatprep.subr.bf16.mxu0 %v9366_v33  ;;  %v621_v12 = vld [vmem:[%s12386_s10 + $0x1d0] sm:$0xff]  ;;  %v634_v33 = vld [vmem:[%s12386_s10 + $0x238] sm:$0xff]  ;;  %4186 = vmatprep.mubr.bf16.mxu1 %v12772_v48 }
 0x232   : > { %16054 = vst [vmem:[#allocation50_spill] sm:$0xff] %v12931_v59  ;;  %v12942_v39 = vadd.f32 %v1728_v50, %v12841_v9  ;;  %v9382_v50 = vcombine.high %v2111_v40, %v2115_v1  ;;  %v12959_v59 = vpack.c.bf16 %v625_v23, %v621_v12 }
 0x233   : > { %16057 = vst [vmem:[#allocation53_spill] sm:$0xff] %v12939_v31  ;;  %3861 = vmatmul.mubr.bf16.gmra.mrb[56].mxu0 %v12928_v41  ;;  %v9390_v31 = vcombine.high %v2119_v32, %v2123_v44 }
 0x234   : > { %16058 = vst [vmem:[#allocation54_spill] sm:$0xff] %v12942_v39  ;;  %3870 = vmatprep.mubr.bf16.mxu0 %v12933_v21  ;;  %4372 = vmatpush1.bf16.msra.mxu0 %v9365_v42  ;;  %16060 = vst [vmem:[#allocation56_spill] sm:$0xff] %v12959_v59  ;;  %v12964_v42 = vpack.c.bf16 %v634_v33, %v630_v0  ;;  %v638_v0 = vld [vmem:[%s12386_s10 + $0x258] sm:$0xff] }
 0x235   : > { %4373 = vmatprep.subr.bf16.mxu0 %v9374_v47  ;;  %v9381_v47 = vcombine.low %v2111_v40, %v2115_v1  ;;  %v629_v40 = vld [vmem:[%s12386_s10 + $0x210] sm:$0xff]  ;;  %v642_v33 = vld [vmem:[%s12386_s10 + $0x278] sm:$0xff] }
 0x236   : > { %v1732_v35 = vpop.f32.mrb[16].mxu0  ;;  %16062 = vst [vmem:[#allocation58_spill] sm:$0xff] %v12964_v42  ;;  %v633_v1 = vld [vmem:[%s12386_s10 + $0x230] sm:$0xff] }
 0x237   : > { %v12957_v36 = vadd.f32 %v1732_v35, %v12835_v7  ;;  %v1734_v52 = vpop.f32.mrb[17].mxu0 }
 0x238   : > { %v12962_v4 = vadd.f32 %v1734_v52, %v12841_v9  ;;  %v1736_v13 = vpop.f32.mrb[18].mxu0  ;;  %4374 = vmatpush1.bf16.msra.mxu0 %v9373_v49  ;;  %v9389_v49 = vcombine.low %v2119_v32, %v2123_v44  ;;  %v12994_v44 = vpack.c.bf16 %v642_v33, %v638_v0  ;;  %v646_v0 = vld [vmem:[%s12386_s10 + $0x298] sm:$0xff]  ;;  %4187 = vmatmul.mubr.bf16.vlgmr.msra.gmra.mrb[32].mxu1 %v12782_v17 }
 0x239   : > { %16059 = vst [vmem:[#allocation55_spill] sm:$0xff] %v12957_v36  ;;  %v12967_v39 = vadd.f32 %v1736_v13, %v12835_v7  ;;  %v1738_v35 = vpop.f32.mrb[19].mxu0  ;;  %4375 = vmatprep.subr.bf16.mxu0 %v9382_v50  ;;  %v9398_v50 = vcombine.high %v12789_v2, %v12791_v38  ;;  %v650_v33 = vld [vmem:[%s12386_s10 + $0x2b8] sm:$0xff]  ;;  %4196 = vmatprep.mubr.bf16.mxu1 %v12784_v26 }
 0x23a   : > { %16061 = vst [vmem:[#allocation57_spill] sm:$0xff] %v12962_v4  ;;  %v12970_v12 = vadd.f32 %v1738_v35, %v12841_v9  ;;  %16067 = vst [vmem:[#allocation63_spill] sm:$0xff] %v12994_v44 }
 0x23b   : > { %16063 = vst [vmem:[#allocation59_spill] sm:$0xff] %v12967_v39  ;;  %3871 = vmatmul.mubr.bf16.gmra.mrb[60].mxu0 %v12959_v59 }
 0x23c   : > { %16064 = vst [vmem:[#allocation60_spill] sm:$0xff] %v12970_v12  ;;  %3880 = vmatprep.mubr.bf16.mxu0 %v12964_v42  ;;  %4376 = vmatpush1.bf16.msra.mxu0 %v9381_v47  ;;  %v12989_v47 = vpack.c.bf16 %v633_v1, %v629_v40  ;;  %v637_v1 = vld [vmem:[%s12386_s10 + $0x250] sm:$0xff] }
 0x23d   : > { %4377 = vmatprep.subr.bf16.mxu0 %v9390_v31 }
 0x23e   : > { %v1742_v13 = vpop.f32.mrb[20].mxu0 }
 0x23f   : > { %v12987_v35 = vadd.f32 %v1742_v13, %v12835_v7  ;;  %v1744_v23 = vpop.f32.mrb[21].mxu0 }
 0x240   : > { %v12992_v32 = vadd.f32 %v1744_v23, %v12841_v9  ;;  %v1746_v31 = vpop.f32.mrb[22].mxu0  ;;  %4378 = vmatpush1.bf16.msra.mxu0 %v9389_v49  ;;  %v641_v49 = vld [vmem:[%s12386_s10 + $0x270] sm:$0xff]  ;;  %4197 = vmatmul.mubr.bf16.gmra.mrb[36].mxu1 %v12803_v53 }
 0x241   : > { %16065 = vst [vmem:[#allocation61_spill] sm:$0xff] %v12987_v35  ;;  %v12997_v52 = vadd.f32 %v1746_v31, %v12835_v7  ;;  %v1748_v4 = vpop.f32.mrb[23].mxu0  ;;  %4540 = vmatprep.subr.bf16.mxu0 %v9398_v50  ;;  %v13017_v23 = vpack.c.bf16 %v641_v49, %v637_v1  ;;  %v645_v49 = vld [vmem:[%s12386_s10 + $0x290] sm:$0xff]  ;;  %4206 = vmatprep.mubr.bf16.mxu1 %v12805_v25 }
 0x242   : > { %16066 = vst [vmem:[#allocation62_spill] sm:$0xff] %v12992_v32  ;;  %v13000_v13 = vadd.f32 %v1748_v4, %v12841_v9 }
 0x243   : > { %16068 = vst [vmem:[#allocation64_spill] sm:$0xff] %v12997_v52  ;;  %3881 = vmatmul.mubr.bf16.gmra.mrb[64].mxu0 %v12989_v47 }
 0x244   : > { %16069 = vst [vmem:[#allocation65_spill] sm:$0xff] %v13000_v13  ;;  %3890 = vmatprep.mubr.bf16.mxu0 %v12994_v44  ;;  %v13022_v13 = vpack.c.bf16 %v650_v33, %v646_v0  ;;  %v649_v0 = vld [vmem:[%s12386_s10 + $0x2b0] sm:$0xff]  ;;  %v654_v33 = vld [vmem:[%s12386_s10 + $0x2d8] sm:$0xff] }
 0x245   : > { %v13045_v1 = vpack.c.bf16 %v649_v0, %v645_v49  ;;  %v662_v49 = vld [vmem:[%s12386_s10 + $0x318] sm:$0xff] }
 0x246   : > { %v1752_v50 = vpop.f32.mrb[24].mxu0  ;;  %v666_v0 = vld [vmem:[%s12386_s10 + $0x338] sm:$0xff] }
 0x247   : > { %v13015_v4 = vadd.f32 %v1752_v50, %v12835_v7  ;;  %v1754_v31 = vpop.f32.mrb[25].mxu0 }
 0x248   : > { %v13020_v40 = vadd.f32 %v1754_v31, %v12841_v9  ;;  %v1756_v32 = vpop.f32.mrb[26].mxu0  ;;  %v658_v31 = vld [vmem:[%s12386_s10 + $0x2f8] sm:$0xff]  ;;  %4207 = vmatmul.mubr.bf16.gmra.mrb[40].mxu1 %v12817_v57 }
 0x249   : > { %16070 = vst [vmem:[#allocation66_spill] sm:$0xff] %v13015_v4  ;;  %v13025_v12 = vadd.f32 %v1756_v32, %v12835_v7  ;;  %v1758_v35 = vpop.f32.mrb[27].mxu0  ;;  %v13050_v4 = vpack.c.bf16 %v658_v31, %v654_v33  ;;  %4216 = vmatprep.mubr.bf16.mxu1 %v12819_v10  ;;  %v661_v33 = vld [vmem:[%s12386_s10 + $0x310] sm:$0xff]  ;;  %v682_v10 = vld [vmem:[%s12386_s10 + $0x3b8] sm:$0xff] }
 0x24a   : > { %16071 = vst [vmem:[#allocation67_spill] sm:$0xff] %v13020_v40  ;;  %v13028_v52 = vadd.f32 %v1758_v35, %v12841_v9  ;;  %v665_v31 = vld [vmem:[%s12386_s10 + $0x330] sm:$0xff] }
 0x24b   : > { %16072 = vst [vmem:[#allocation68_spill] sm:$0xff] %v13025_v12  ;;  %3891 = vmatmul.mubr.bf16.gmra.mrb[68].mxu0 %v13017_v23 }
 0x24c   : > { %16073 = vst [vmem:[#allocation69_spill] sm:$0xff] %v13028_v52  ;;  %3900 = vmatprep.mubr.bf16.mxu0 %v13022_v13 }
 0x24e   : > { %v1762_v32 = vpop.f32.mrb[28].mxu0 }
 0x24f   : > { %v13043_v35 = vadd.f32 %v1762_v32, %v12835_v7  ;;  %v1764_v50 = vpop.f32.mrb[29].mxu0  ;;  %v674_v32 = vld [vmem:[%s12386_s10 + $0x378] sm:$0xff] }
 0x250   : > { %v13048_v40 = vadd.f32 %v1764_v50, %v12841_v9  ;;  %v1766_v52 = vpop.f32.mrb[30].mxu0  ;;  %v670_v50 = vld [vmem:[%s12386_s10 + $0x358] sm:$0xff]  ;;  %4217 = vmatmul.mubr.bf16.gmra.mrb[44].mxu1 %v12844_v43 }
 0x251   : > { %16074 = vst [vmem:[#allocation70_spill] sm:$0xff] %v13043_v35  ;;  %v13053_v12 = vadd.f32 %v1766_v52, %v12835_v7  ;;  %v1768_v36 = vpop.f32.mrb[31].mxu0  ;;  %v653_v7 = vld [vmem:[%s12386_s10 + $0x2d0] sm:$0xff]  ;;  %4226 = vmatprep.mubr.bf16.mxu1 %v12846_v11 }
 0x252   : > { %16075 = vst [vmem:[#allocation71_spill] sm:$0xff] %v13048_v40  ;;  %v13056_v39 = vadd.f32 %v1768_v36, %v12841_v9  ;;  %v657_v52 = vld [vmem:[%s12386_s10 + $0x2f0] sm:$0xff]  ;;  %v13072_v36 = vpack.c.bf16 %v666_v0, %v662_v49  ;;  %v2000_v49 = vld [vmem:[#allocation9 + $0x18] sm:$0xff] }
 0x253   : > { %16076 = vst [vmem:[#allocation72_spill] sm:$0xff] %v13053_v12  ;;  %3901 = vmatmul.mubr.bf16.gmra.mrb[72].mxu0 %v13045_v1  ;;  %v13070_v9 = vpack.c.bf16 %v657_v52, %v653_v7  ;;  %v13082_v7 = vpack.c.bf16 %v665_v31, %v661_v33  ;;  %v13084_v52 = vpack.c.bf16 %v674_v32, %v670_v50  ;;  %v2004_v0 = vld [vmem:[#allocation9 + $0x38] sm:$0xff]  ;;  %v669_v40 = vld [vmem:[%s12386_s10 + $0x350] sm:$0xff] }
 0x254   : > { %16077 = vst [vmem:[#allocation73_spill] sm:$0xff] %v13056_v39  ;;  %3910 = vmatprep.mubr.bf16.mxu0 %v13050_v4  ;;  %v673_v39 = vld [vmem:[%s12386_s10 + $0x370] sm:$0xff]  ;;  %v9272_v35 = vcombine.high %v2000_v49, %v2004_v0  ;;  %v678_v12 = vld [vmem:[%s12386_s10 + $0x398] sm:$0xff]  ;;  %v9271_v43 = vcombine.low %v2000_v49, %v2004_v0 }
 0x255   : > { %v13094_v32 = vpack.c.bf16 %v673_v39, %v669_v40  ;;  %v2008_v50 = vld [vmem:[#allocation9 + $0x58] sm:$0xff]  ;;  %v13096_v31 = vpack.c.bf16 %v682_v10, %v678_v12  ;;  %v681_v39 = vld [vmem:[%s12386_s10 + $0x3b0] sm:$0xff] }
 0x256   : > { %4733 = vmatprep.subr.bf16.mxu1 %v9272_v35  ;;  %v2012_v33 = vld [vmem:[#allocation9 + $0x78] sm:$0xff]  ;;  %v677_v35 = vld [vmem:[%s12386_s10 + $0x390] sm:$0xff] }
 0x257   : > { %4734 = vmatpush1.bf16.msra.mxu1 %v9271_v43  ;;  %v9280_v11 = vcombine.high %v2008_v50, %v2012_v33  ;;  %v9279_v57 = vcombine.low %v2008_v50, %v2012_v33  ;;  %v2016_v49 = vld [vmem:[#allocation9 + $0x98] sm:$0xff] }
 0x258   : > { %4227 = vmatmul.mubr.bf16.gmra.mrb[48].mxu1 %v12872_v55  ;;  %v2020_v0 = vld [vmem:[#allocation9 + $0xb8] sm:$0xff] }
 0x259   : > { %4236 = vmatprep.mubr.bf16.mxu1 %v12874_v3  ;;  %4735 = vmatprep.subr.bf16.mxu1 %v9280_v11  ;;  %v9288_v40 = vcombine.high %v2016_v49, %v2020_v0  ;;  %v686_v3 = vld [vmem:[%s12386_s10 + $0x3d8] sm:$0xff]  ;;  %v9287_v55 = vcombine.low %v2016_v49, %v2020_v0  ;;  %v13106_v11 = vpack.c.bf16 %v681_v39, %v677_v35  ;;  %v685_v0 = vld [vmem:[%s12386_s10 + $0x3d0] sm:$0xff] }
 0x25a   : > { %v690_v43 = vld [vmem:[%s12386_s10 + $0x3f8] sm:$0xff] }
 0x25b   : > { %3911 = vmatmul.mubr.bf16.gmra.mrb[76].mxu0 %v13070_v9  ;;  %4736 = vmatpush1.bf16.msra.mxu1 %v9279_v57  ;;  %v2024_v57 = vld [vmem:[#allocation9 + $0xd8] sm:$0xff]  ;;  %v13108_v12 = vpack.c.bf16 %v690_v43, %v686_v3 }
 0x25c   : > { %3920 = vmatprep.mubr.bf16.mxu0 %v13072_v36  ;;  %4737 = vmatprep.subr.bf16.mxu1 %v9288_v40  ;;  %v2028_v10 = vld [vmem:[#allocation9 + $0xf8] sm:$0xff] }
 0x25d   : > { %v9296_v50 = vcombine.high %v2024_v57, %v2028_v10  ;;  %v9295_v33 = vcombine.low %v2024_v57, %v2028_v10  ;;  %v2036_v49 = vld [vmem:[#allocation9 + $0x138] sm:$0xff] }
 0x25e   : > { %v2040_v35 = vld [vmem:[#allocation9 + $0x158] sm:$0xff] }
 0x25f   : > { %4738 = vmatpush1.bf16.msra.mxu1 %v9287_v55  ;;  %v2044_v39 = vld [vmem:[#allocation9 + $0x178] sm:$0xff] }
 0x260   : > { %4237 = vmatmul.mubr.bf16.gmra.mrb[52].mxu1 %v12900_v45  ;;  %4739 = vmatprep.subr.bf16.mxu1 %v9296_v50  ;;  %v2032_v45 = vld [vmem:[#allocation9 + $0x118] sm:$0xff]  ;;  %v9312_v43 = vcombine.high %v2040_v35, %v2044_v39  ;;  %v9311_v57 = vcombine.low %v2040_v35, %v2044_v39 }
 0x261   : > { %4246 = vmatprep.mubr.bf16.mxu1 %v12902_v5  ;;  %v689_v5 = vld [vmem:[%s12386_s10 + $0x3f0] sm:$0xff]  ;;  %v9304_v40 = vcombine.high %v2032_v45, %v2036_v49  ;;  %v9303_v55 = vcombine.low %v2032_v45, %v2036_v49  ;;  %v2048_v10 = vld [vmem:[#allocation9 + $0x198] sm:$0xff]  ;;  %s8992_s10 = sshll.u32 %s15492_s20, 4  ;;  %s15666_s10 = int_to_ptr.vmem [resolvable:$true] %s8992_s10 }
 0x262   : > { %v13116_v3 = vpack.c.bf16 %v689_v5, %v685_v0  ;;  %v2052_v50 = vld [vmem:[#allocation9 + $0x1b8] sm:$0xff]  ;;  %v2135_v49 = vld [vmem:[#allocation9 + $0x450] sm:$0xff]  ;;  %s11979_s28 = scalar_lea.vmem %s15666_s10, 8192  ;;  %p11986_p8 = scmp.lt.s32.totalorder %s15666_s10, %s11984_s25 }
 0x263   : > { %3921 = vmatmul.mubr.bf16.gmra.mrb[80].mxu0 %v13082_v7  ;;  %4740 = vmatpush1.bf16.msra.mxu1 %v9295_v33  ;;  %v9320_v33 = vcombine.high %v2048_v10, %v2052_v50  ;;  %v9319_v45 = vcombine.low %v2048_v10, %v2052_v50  ;;  %v2139_v5 = vld [vmem:[#allocation9 + $0x470] sm:$0xff]  ;;  %v2056_v0 = vld [vmem:[#allocation9 + $0x1d8] sm:$0xff]  ;;  %v16078_v10 = vcombine.low %v12789_v2, %v12791_v38  ;;  %p11980_p2 = scmp.ne.s32.totalorder %s15666_s10, %s11979_s28  ;;  %p11987_p6 = scmp.lt.s32.totalorder %s11985_s0, %s11979_s28 }
 0x264   : > { %3930 = vmatprep.mubr.bf16.mxu0 %v13084_v52  ;;  %4741 = vmatprep.subr.bf16.mxu1 %v9304_v40  ;;  %v2060_v40 = vld [vmem:[#allocation9 + $0x1f8] sm:$0xff]  ;;  %v9406_v35 = vcombine.high %v2135_v49, %v2139_v5  ;;  %v9405_v50 = vcombine.low %v2135_v49, %v2139_v5 }
 0x265   : > { %v9327_v39 = vcombine.low %v2056_v0, %v2060_v40  ;;  %v2072_v2 = vld [vmem:[#allocation9 + $0x258] sm:$0xff]  ;;  %p11981_p4 = pnand %p11980_p2, %p12277_p5  ;;  %p11988_p10 = por %p11987_p6, %p11986_p8 }
 0x266   : > { %v2076_v38 = vld [vmem:[#allocation9 + $0x278] sm:$0xff] }
 0x267   : > { %4742 = vmatpush1.bf16.msra.mxu1 %v9303_v55  ;;  %v9328_v55 = vcombine.high %v2056_v0, %v2060_v40  ;;  %v2151_v40 = vld [vmem:[#allocation9 + $0x4d0] sm:$0xff]  ;;  %v9344_v5 = vcombine.high %v2072_v2, %v2076_v38  ;;  %p11982_p0 = pneg %p11981_p4 }
 0x268   : > { %4247 = vmatmul.mubr.bf16.gmra.mrb[56].mxu1 %v12928_v41  ;;  %4743 = vmatprep.subr.bf16.mxu1 %v9312_v43  ;;  %v2143_v43 = vld [vmem:[#allocation9 + $0x490] sm:$0xff] }
 0x269   : > { %4256 = vmatprep.mubr.bf16.mxu1 %v12933_v21  ;;  %v9343_v21 = vcombine.low %v2072_v2, %v2076_v38  ;;  %v2088_v2 = vld [vmem:[#allocation9 + $0x2d8] sm:$0xff]  ;;  %p11989_p3 = pnand %p11988_p10, %p11982_p0 }
 0x26a   : > { %v2092_v38 = vld [vmem:[#allocation9 + $0x2f8] sm:$0xff] }
 0x26b   : > { %3931 = vmatmul.mubr.bf16.gmra.mrb[84].mxu0 %v13094_v32  ;;  %4744 = vmatpush1.bf16.msra.mxu1 %v9311_v57  ;;  %v2147_v57 = vld [vmem:[#allocation9 + $0x4b0] sm:$0xff] }
 0x26c   : > { %3940 = vmatprep.mubr.bf16.mxu0 %v13096_v31  ;;  %4745 = vmatprep.subr.bf16.mxu1 %v9320_v33  ;;  %v2064_v33 = vld [vmem:[#allocation9 + $0x218] sm:$0xff] }
 0x26f   : > { %4746 = vmatpush1.bf16.msra.mxu1 %v9319_v45  ;;  %v2068_v45 = vld [vmem:[#allocation9 + $0x238] sm:$0xff] }
 0x270   : > { %4257 = vmatmul.mubr.bf16.gmra.mrb[60].mxu1 %v12959_v59  ;;  %4747 = vmatprep.subr.bf16.mxu1 %v9328_v55  ;;  %v9336_v0 = vcombine.high %v2064_v33, %v2068_v45  ;;  %v2155_v59 = vld [vmem:[#allocation9 + $0x4f0] sm:$0xff]  ;;  %v9335_v55 = vcombine.low %v2064_v33, %v2068_v45  ;;  %v2080_v33 = vld [vmem:[#allocation9 + $0x298] sm:$0xff] }
 0x271   : > { %4266 = vmatprep.mubr.bf16.mxu1 %v12964_v42  ;;  %v9414_v42 = vcombine.high %v2143_v43, %v2147_v57  ;;  %v9422_v49 = vcombine.high %v2151_v40, %v2155_v59  ;;  %v2084_v45 = vld [vmem:[#allocation9 + $0x2b8] sm:$0xff] }
 0x273   : > { %3941 = vmatmul.mubr.bf16.gmra.mrb[88].mxu0 %v13106_v11  ;;  %4748 = vmatpush1.bf16.msra.mxu1 %v9327_v39  ;;  %v9413_v39 = vcombine.low %v2143_v43, %v2147_v57  ;;  %v9352_v57 = vcombine.high %v2080_v33, %v2084_v45 }
 0x274   : > { %3950 = vmatprep.mubr.bf16.mxu0 %v13108_v12  ;;  %4749 = vmatprep.subr.bf16.mxu1 %v9336_v0  ;;  %v9351_v0 = vcombine.low %v2080_v33, %v2084_v45  ;;  %v2096_v33 = vld [vmem:[#allocation9 + $0x318] sm:$0xff] }
 0x275   : > { %v2100_v45 = vld [vmem:[#allocation9 + $0x338] sm:$0xff] }
 0x277   : > { %4750 = vmatpush1.bf16.msra.mxu1 %v9335_v55 }
 0x278   : > { %4267 = vmatmul.mubr.bf16.gmra.mrb[64].mxu1 %v12989_v47  ;;  %4751 = vmatprep.subr.bf16.mxu1 %v9344_v5  ;;  %v9359_v5 = vcombine.low %v2088_v2, %v2092_v38 }
 0x279   : > { %4276 = vmatprep.mubr.bf16.mxu1 %v12994_v44  ;;  %v9421_v44 = vcombine.low %v2151_v40, %v2155_v59  ;;  %v9360_v40 = vcombine.high %v2088_v2, %v2092_v38  ;;  %v2104_v2 = vld [vmem:[#allocation9 + $0x358] sm:$0xff] }
 0x27a   : > { %v2108_v38 = vld [vmem:[#allocation9 + $0x378] sm:$0xff] }
 0x27b   : > { %3951 = vmatmul.mubr.bf16.gmra.mrb[92].mxu0 %v13116_v3  ;;  %4752 = vmatpush1.bf16.msra.mxu1 %v9343_v21 }
 0x27c   : > { %4379 = vmatprep.mubr.bf16.mxu0 %v12572_v18  ;;  %4753 = vmatprep.subr.bf16.mxu1 %v9352_v57  ;;  %v9367_v57 = vcombine.low %v2096_v33, %v2100_v45 }
 0x27f   : > { %4754 = vmatpush1.bf16.msra.mxu1 %v9351_v0 }
 0x280   : > { %4277 = vmatmul.mubr.bf16.gmra.mrb[68].mxu1 %v13017_v23  ;;  %4755 = vmatprep.subr.bf16.mxu1 %v9360_v40  ;;  %v9375_v40 = vcombine.low %v2104_v2, %v2108_v38 }
 0x281   : > { %4286 = vmatprep.mubr.bf16.mxu1 %v13022_v13 }
 0x283   : > { %4380 = vmatmul.mubr.bf16.vlgmr.msra.gmra.mrb[96].mxu0 %v12582_v30  ;;  %4756 = vmatpush1.bf16.msra.mxu1 %v9359_v5 }
 0x284   : > { %4541 = vmatpush1.bf16.msra.mxu0 %v16078_v10  ;;  %4389 = vmatprep.mubr.bf16.mxu0 %v12584_v34  ;;  %v2159_v10 = vld [vmem:[#allocation9 + $0x510] sm:$0xff] }
 0x285   : > { %4542 = vmatprep.subr.bf16.mxu0 %v9406_v35  ;;  %v2163_v35 = vld [vmem:[#allocation9 + $0x530] sm:$0xff] }
 0x286   : > { %v9430_v43 = vcombine.high %v2159_v10, %v2163_v35  ;;  %v9429_v55 = vcombine.low %v2159_v10, %v2163_v35  ;;  %v9368_v10 = vcombine.high %v2096_v33, %v2100_v45  ;;  %v2183_v35 = vld [vmem:[#allocation9 + $0x5d0] sm:$0xff]  ;;  %v2112_v33 = vld [vmem:[#allocation9 + $0x398] sm:$0xff] }
 0x287   : > { %v2116_v45 = vld [vmem:[#allocation9 + $0x3b8] sm:$0xff] }
 0x288   : > { %4543 = vmatpush1.bf16.msra.mxu0 %v9405_v50  ;;  %v2171_v50 = vld [vmem:[#allocation9 + $0x570] sm:$0xff]  ;;  %4287 = vmatmul.mubr.bf16.gmra.mrb[72].mxu1 %v13045_v1 }
 0x289   : > { %4544 = vmatprep.subr.bf16.mxu0 %v9414_v42  ;;  %v2167_v42 = vld [vmem:[#allocation9 + $0x550] sm:$0xff]  ;;  %4296 = vmatprep.mubr.bf16.mxu1 %v13050_v4 }
 0x28a   : > { %v9438_v59 = vcombine.high %v2167_v42, %v2171_v50  ;;  %v9437_v21 = vcombine.low %v2167_v42, %v2171_v50  ;;  %4757 = vmatprep.subr.bf16.mxu1 %v9368_v10  ;;  %v9376_v50 = vcombine.high %v2104_v2, %v2108_v38  ;;  %v9383_v10 = vcombine.low %v2112_v33, %v2116_v45  ;;  %v2120_v2 = vld [vmem:[#allocation9 + $0x3d8] sm:$0xff] }
 0x28b   : > { %4390 = vmatmul.mubr.bf16.gmra.mrb[100].mxu0 %v12600_v61  ;;  %4758 = vmatpush1.bf16.msra.mxu1 %v9367_v57  ;;  %v2124_v38 = vld [vmem:[#allocation9 + $0x3f8] sm:$0xff] }
 0x28c   : > { %4399 = vmatprep.mubr.bf16.mxu0 %v12602_v8  ;;  %4545 = vmatpush1.bf16.msra.mxu0 %v9413_v39  ;;  %v2175_v39 = vld [vmem:[#allocation9 + $0x590] sm:$0xff] }
 0x28d   : > { %4546 = vmatprep.subr.bf16.mxu0 %v9422_v49  ;;  %v2179_v49 = vld [vmem:[#allocation9 + $0x5b0] sm:$0xff]  ;;  %4759 = vmatprep.subr.bf16.mxu1 %v9376_v50  ;;  %v9391_v50 = vcombine.low %v2120_v2, %v2124_v38 }
 0x28e   : > { %v9445_v0 = vcombine.low %v2175_v39, %v2179_v49 }
 0x28f   : > { %4760 = vmatpush1.bf16.msra.mxu1 %v9375_v40 }
 0x290   : > { %4547 = vmatpush1.bf16.msra.mxu0 %v9421_v44  ;;  %v9446_v44 = vcombine.high %v2175_v39, %v2179_v49  ;;  %4297 = vmatmul.mubr.bf16.gmra.mrb[76].mxu1 %v13070_v9  ;;  %v9384_v49 = vcombine.high %v2112_v33, %v2116_v45 }
 0x291   : > { %4548 = vmatprep.subr.bf16.mxu0 %v9430_v43  ;;  %v2187_v43 = vld [vmem:[#allocation9 + $0x5f0] sm:$0xff]  ;;  %4306 = vmatprep.mubr.bf16.mxu1 %v13072_v36 }
 0x292   : > { %v9454_v42 = vcombine.high %v2183_v35, %v2187_v43  ;;  %v9453_v5 = vcombine.low %v2183_v35, %v2187_v43  ;;  %4761 = vmatprep.subr.bf16.mxu1 %v9384_v49  ;;  %v9392_v43 = vcombine.high %v2120_v2, %v2124_v38  ;;  %v2227_v49 = vld [vmem:[#allocation9 + $0x730] sm:$0xff] }
 0x293   : > { %4400 = vmatmul.mubr.bf16.gmra.mrb[104].mxu0 %v12612_v28  ;;  %4762 = vmatpush1.bf16.msra.mxu1 %v9383_v10  ;;  %v2231_v10 = vld [vmem:[#allocation9 + $0x750] sm:$0xff] }
 0x294   : > { %4409 = vmatprep.mubr.bf16.mxu0 %v12614_v29  ;;  %4549 = vmatpush1.bf16.msra.mxu0 %v9429_v55  ;;  %v2191_v55 = vld [vmem:[#allocation9 + $0x610] sm:$0xff] }
 0x295   : > { %4550 = vmatprep.subr.bf16.mxu0 %v9438_v59  ;;  %v2195_v59 = vld [vmem:[#allocation9 + $0x630] sm:$0xff]  ;;  %4763 = vmatprep.subr.bf16.mxu1 %v9392_v43 }
 0x296   : > { %v9462_v39 = vcombine.high %v2191_v55, %v2195_v59  ;;  %v9461_v57 = vcombine.low %v2191_v55, %v2195_v59  ;;  %v2215_v55 = vld [vmem:[#allocation9 + $0x6d0] sm:$0xff] }
 0x297   : > { %v2219_v59 = vld [vmem:[#allocation9 + $0x6f0] sm:$0xff]  ;;  %4764 = vmatpush1.bf16.msra.mxu1 %v9391_v50 }
 0x298   : > { %4551 = vmatpush1.bf16.msra.mxu0 %v9437_v21  ;;  %v2199_v21 = vld [vmem:[#allocation9 + $0x650] sm:$0xff]  ;;  %4307 = vmatmul.mubr.bf16.gmra.mrb[80].mxu1 %v13082_v7  ;;  %v9486_v45 = vcombine.high %v2215_v55, %v2219_v59 }
 0x299   : > { %4552 = vmatprep.subr.bf16.mxu0 %v9446_v44  ;;  %v2203_v44 = vld [vmem:[#allocation9 + $0x670] sm:$0xff]  ;;  %4316 = vmatprep.mubr.bf16.mxu1 %v13084_v52 }
 0x29a   : > { %v9470_v35 = vcombine.high %v2199_v21, %v2203_v44  ;;  %v9469_v40 = vcombine.low %v2199_v21, %v2203_v44  ;;  %v9485_v21 = vcombine.low %v2215_v55, %v2219_v59  ;;  %v2243_v43 = vld [vmem:[#allocation9 + $0x7b0] sm:$0xff] }
 0x29b   : > { %4410 = vmatmul.mubr.bf16.gmra.mrb[108].mxu0 %v12624_v58  ;;  %v2247_v50 = vld [vmem:[#allocation9 + $0x7d0] sm:$0xff] }
 0x29c   : > { %4419 = vmatprep.mubr.bf16.mxu0 %v12626_v60  ;;  %4553 = vmatpush1.bf16.msra.mxu0 %v9445_v0  ;;  %v2207_v0 = vld [vmem:[#allocation9 + $0x690] sm:$0xff] }
 0x29d   : > { %4554 = vmatprep.subr.bf16.mxu0 %v9454_v42  ;;  %v2211_v42 = vld [vmem:[#allocation9 + $0x6b0] sm:$0xff] }
 0x29e   : > { %v9478_v33 = vcombine.high %v2207_v0, %v2211_v42 }
 0x2a0   : > { %4555 = vmatpush1.bf16.msra.mxu0 %v9453_v5  ;;  %v9477_v5 = vcombine.low %v2207_v0, %v2211_v42  ;;  %4317 = vmatmul.mubr.bf16.gmra.mrb[84].mxu1 %v13094_v32 }
 0x2a1   : > { %4556 = vmatprep.subr.bf16.mxu0 %v9462_v39  ;;  %v2223_v39 = vld [vmem:[#allocation9 + $0x710] sm:$0xff]  ;;  %4326 = vmatprep.mubr.bf16.mxu1 %v13096_v31 }
 0x2a2   : > { %v9494_v44 = vcombine.high %v2223_v39, %v2227_v49  ;;  %v9493_v2 = vcombine.low %v2223_v39, %v2227_v49  ;;  %v16081_v39 = vld [vmem:[#allocation22_spill] sm:$0xff]  ;;  %v16082_v49 = vld [vmem:[#allocation23_spill] sm:$0xff] }
 0x2a3   : > { %4420 = vmatmul.mubr.bf16.gmra.mrb[112].mxu0 %v12636_v20 }
 0x2a4   : > { %4429 = vmatprep.mubr.bf16.mxu0 %v12638_v27  ;;  %4557 = vmatpush1.bf16.msra.mxu0 %v9461_v57  ;;  %v2235_v57 = vld [vmem:[#allocation9 + $0x770] sm:$0xff] }
 0x2a5   : > { %4558 = vmatprep.subr.bf16.mxu0 %v9470_v35  ;;  %v9502_v38 = vcombine.high %v2231_v10, %v2235_v57  ;;  %v2239_v35 = vld [vmem:[#allocation9 + $0x790] sm:$0xff]  ;;  %v9501_v0 = vcombine.low %v2231_v10, %v2235_v57  ;;  %v16087_v57 = vld [vmem:[#allocation31_spill] sm:$0xff] }
 0x2a6   : > { %v9510_v42 = vcombine.high %v2239_v35, %v2243_v43 }
 0x2a8   : > { %4559 = vmatpush1.bf16.msra.mxu0 %v9469_v40  ;;  %4327 = vmatmul.mubr.bf16.gmra.mrb[88].mxu1 %v13106_v11  ;;  %v2251_v40 = vld [vmem:[#allocation9 + $0x7f0] sm:$0xff] }
 0x2a9   : > { %4560 = vmatprep.subr.bf16.mxu0 %v9478_v33  ;;  %4336 = vmatprep.mubr.bf16.mxu1 %v13108_v12  ;;  %v9509_v33 = vcombine.low %v2239_v35, %v2243_v43  ;;  %v9518_v55 = vcombine.high %v2247_v50, %v2251_v40  ;;  %v9517_v59 = vcombine.low %v2247_v50, %v2251_v40 }
 0x2ab   : > { %4430 = vmatmul.mubr.bf16.gmra.mrb[116].mxu0 %v12648_v56 }
 0x2ac   : > { %4439 = vmatprep.mubr.bf16.mxu0 %v12650_v51  ;;  %4561 = vmatpush1.bf16.msra.mxu0 %v9477_v5  ;;  %v16079_v5 = vld [vmem:[#allocation20_spill] sm:$0xff] }
 0x2ad   : > { %4562 = vmatprep.subr.bf16.mxu0 %v9486_v45  ;;  %v16080_v45 = vld [vmem:[#allocation21_spill] sm:$0xff] }
 0x2b0   : > { %4563 = vmatpush1.bf16.msra.mxu0 %v9485_v21  ;;  %4337 = vmatmul.mubr.bf16.gmra.mrb[92].mxu1 %v13116_v3  ;;  %v16084_v21 = vld [vmem:[#allocation24_spill] sm:$0xff] }
 0x2b1   : > { %4564 = vmatprep.subr.bf16.mxu0 %v9494_v44  ;;  %4765 = vmatprep.mubr.bf16.mxu1 %v12572_v18  ;;  %v13168_v18 = vld [vmem:[%s15732_s6] sm:$0xff]  ;;  %v16085_v44 = vld [vmem:[#allocation25_spill] sm:$0xff] }
 0x2b2   : > { %16083 = vst [vmem:[#allocation20_spill] sm:$0xff] %v13168_v18 }
 0x2b3   : > { %4440 = vmatmul.mubr.bf16.gmra.mrb[120].mxu0 %v12660_v15 }
 0x2b4   : > { %4449 = vmatprep.mubr.bf16.mxu0 %v12662_v19  ;;  %4565 = vmatpush1.bf16.msra.mxu0 %v9493_v2 }
 0x2b5   : > { %4566 = vmatprep.subr.bf16.mxu0 %v9502_v38 }
 0x2b8   : > { %4567 = vmatpush1.bf16.msra.mxu0 %v9501_v0  ;;  %4766 = vmatmul.mubr.bf16.vlgmr.msra.gmra.mrb[96].mxu1 %v12582_v30  ;;  %v16086_v30 = vld [vmem:[#allocation30_spill] sm:$0xff] }
 0x2b9   : > { %4568 = vmatprep.subr.bf16.mxu0 %v9510_v42  ;;  %4775 = vmatprep.mubr.bf16.mxu1 %v12584_v34  ;;  %v13174_v34 = vrot.slane %v13168_v18, %v16086_v30 }
 0x2bb   : > { %4450 = vmatmul.mubr.bf16.gmra.mrb[124].mxu0 %v12672_v46 }
 0x2bc   : > { %4459 = vmatprep.mubr.bf16.mxu0 %v12674_v54  ;;  %4569 = vmatpush1.bf16.msra.mxu0 %v9509_v33 }
 0x2bd   : > { %4570 = vmatprep.subr.bf16.mxu0 %v9518_v55 }
 0x2c0   : > { %4571 = vmatpush1.bf16.msra.mxu0 %v9517_v59  ;;  %4776 = vmatmul.mubr.bf16.gmra.mrb[100].mxu1 %v12600_v61  ;;  %v13179_v61 = vrot.slane %v13168_v18, %v16087_v57  ;;  %v2188_v18 = vld [vmem:[#allocation9 + $0x5f8] sm:$0xff] }
 0x2c1   : > { %4785 = vmatprep.mubr.bf16.mxu1 %v12602_v8 }
 0x2c3   : > { %4460 = vmatmul.mubr.bf16.gmra.mrb[128].mxu0 %v16079_v5 }
 0x2c4   : > { %4469 = vmatprep.mubr.bf16.mxu0 %v16080_v45 }
 0x2c8   : > { %4786 = vmatmul.mubr.bf16.gmra.mrb[104].mxu1 %v12612_v28  ;;  %v16088_v28 = vld [vmem:[#allocation26_spill] sm:$0xff] }
 0x2c9   : > { %4795 = vmatprep.mubr.bf16.mxu1 %v12614_v29 }
 0x2cb   : > { %4470 = vmatmul.mubr.bf16.gmra.mrb[132].mxu0 %v16081_v39 }
 0x2cc   : > { %4479 = vmatprep.mubr.bf16.mxu0 %v16082_v49 }
 0x2d0   : > { %4796 = vmatmul.mubr.bf16.gmra.mrb[108].mxu1 %v12624_v58  ;;  %v2132_v58 = vld [vmem:[#allocation9 + $0x438] sm:$0xff] }
 0x2d1   : > { %4805 = vmatprep.mubr.bf16.mxu1 %v12626_v60 }
 0x2d3   : > { %4480 = vmatmul.mubr.bf16.gmra.mrb[136].mxu0 %v16084_v21 }
 0x2d4   : > { %4489 = vmatprep.mubr.bf16.mxu0 %v16085_v44 }
 0x2d6   : > { %v3802_v10 = vpop.f32.mrb[32].mxu0 }
 0x2d7   : > { %v3804_v8 = vpop.f32.mrb[33].mxu0  ;;  %v10333_v38 = vadd.f32 %v3802_v10, %v13174_v34 }
 0x2d8   : > { %v3806_v2 = vpop.f32.mrb[34].mxu0  ;;  %v10334_v0 = vadd.f32 %v3804_v8, %v13179_v61  ;;  %4806 = vmatmul.mubr.bf16.gmra.mrb[112].mxu1 %v12636_v20 }
 0x2d9   : > { %v10335_v35 = vadd.f32 %v3806_v2, %v13174_v34  ;;  %v3808_v43 = vpop.f32.mrb[35].mxu0  ;;  %4815 = vmatprep.mubr.bf16.mxu1 %v12638_v27  ;;  %v2144_v27 = vld [vmem:[#allocation9 + $0x498] sm:$0xff] }
 0x2da   : > { %v10336_v42 = vadd.f32 %v3808_v43, %v13179_v61  ;;  %v2128_v43 = vld [vmem:[#allocation9 + $0x418] sm:$0xff] }
 0x2db   : > { %v13186_v50 = vpack.c.bf16 %v10335_v35, %v10333_v38  ;;  %4490 = vmatmul.mubr.bf16.gmra.mrb[140].mxu0 %v16088_v28  ;;  %v9399_v60 = vcombine.low %v2128_v43, %v2132_v58 }
 0x2dc   : > { %v13189_v40 = vpack.c.bf16 %v10336_v42, %v10334_v0  ;;  %4499 = vmatprep.mubr.bf16.mxu0 %v12724_v63  ;;  %v9400_v42 = vcombine.high %v2128_v43, %v2132_v58 }
 0x2dd   : > { %9853 = vmatprep.subr.bf16.mxu0 %v13186_v50 }
 0x2de   : > { %v3812_v29 = vpop.f32.mrb[36].mxu0  ;;  %4926 = vmatprep.subr.bf16.mxu1 %v9400_v42 }
 0x2df   : > { %v3814_v33 = vpop.f32.mrb[37].mxu0  ;;  %v10337_v59 = vadd.f32 %v3812_v29, %v13174_v34  ;;  %4927 = vmatpush1.bf16.msra.mxu1 %v9399_v60  ;;  %v2148_v60 = vld [vmem:[#allocation9 + $0x4b8] sm:$0xff] }
 0x2e0   : > { %v3816_v55 = vpop.f32.mrb[38].mxu0  ;;  %v10338_v2 = vadd.f32 %v3814_v33, %v13179_v61  ;;  %4816 = vmatmul.mubr.bf16.gmra.mrb[116].mxu1 %v12648_v56 }
 0x2e1   : > { %v10339_v10 = vadd.f32 %v3816_v55, %v13174_v34  ;;  %v3818_v8 = vpop.f32.mrb[39].mxu0  ;;  %4825 = vmatprep.mubr.bf16.mxu1 %v12650_v51  ;;  %v2160_v51 = vld [vmem:[#allocation9 + $0x518] sm:$0xff] }
 0x2e2   : > { %v10340_v38 = vadd.f32 %v3818_v8, %v13179_v61 }
 0x2e3   : > { %v13199_v35 = vpack.c.bf16 %v10339_v10, %v10337_v59  ;;  %4500 = vmatmul.mubr.bf16.gmra.mrb[144].mxu0 %v12734_v37  ;;  %v2136_v59 = vld [vmem:[#allocation9 + $0x458] sm:$0xff] }
 0x2e4   : > { %v13202_v0 = vpack.c.bf16 %v10340_v38, %v10338_v2  ;;  %4509 = vmatprep.mubr.bf16.mxu0 %v12736_v16  ;;  %v2140_v10 = vld [vmem:[#allocation9 + $0x478] sm:$0xff] }
 0x2e5   : > { %v9408_v57 = vcombine.high %v2136_v59, %v2140_v10  ;;  %v9407_v20 = vcombine.low %v2136_v59, %v2140_v10 }
 0x2e6   : > { %v3822_v29 = vpop.f32.mrb[40].mxu0 }
 0x2e7   : > { %v3824_v33 = vpop.f32.mrb[41].mxu0  ;;  %v10341_v8 = vadd.f32 %v3822_v29, %v13174_v34  ;;  %4928 = vmatprep.subr.bf16.mxu1 %v9408_v57  ;;  %v9415_v29 = vcombine.low %v2144_v27, %v2148_v60  ;;  %v2156_v57 = vld [vmem:[#allocation9 + $0x4f8] sm:$0xff] }
 0x2e8   : > { %v3826_v55 = vpop.f32.mrb[42].mxu0  ;;  %v10342_v30 = vadd.f32 %v3824_v33, %v13179_v61  ;;  %4929 = vmatpush1.bf16.msra.mxu1 %v9407_v20 }
 0x2e9   : > { %v10343_v2 = vadd.f32 %v3826_v55, %v13174_v34  ;;  %v3828_v38 = vpop.f32.mrb[43].mxu0  ;;  %v9416_v55 = vcombine.high %v2144_v27, %v2148_v60  ;;  %4826 = vmatmul.mubr.bf16.gmra.mrb[120].mxu1 %v12660_v15 }
 0x2ea   : > { %v10344_v43 = vadd.f32 %v3828_v38, %v13179_v61  ;;  %4835 = vmatprep.mubr.bf16.mxu1 %v12662_v19 }
 0x2eb   : > { %v13211_v58 = vpack.c.bf16 %v10343_v2, %v10341_v8  ;;  %4510 = vmatmul.mubr.bf16.gmra.mrb[148].mxu0 %v12746_v62  ;;  %4930 = vmatprep.subr.bf16.mxu1 %v9416_v55  ;;  %v2152_v8 = vld [vmem:[#allocation9 + $0x4d8] sm:$0xff] }
 0x2ec   : > { %v13214_v42 = vpack.c.bf16 %v10344_v43, %v10342_v30  ;;  %4519 = vmatprep.mubr.bf16.mxu0 %v12748_v6  ;;  %4931 = vmatpush1.bf16.msra.mxu1 %v9415_v29  ;;  %v9424_v43 = vcombine.high %v2152_v8, %v2156_v57  ;;  %v9423_v56 = vcombine.low %v2152_v8, %v2156_v57  ;;  %v2164_v29 = vld [vmem:[#allocation9 + $0x538] sm:$0xff] }
 0x2ee   : > { %v3832_v33 = vpop.f32.mrb[44].mxu0  ;;  %4932 = vmatprep.subr.bf16.mxu1 %v9424_v43 }
 0x2ef   : > { %v3834_v59 = vpop.f32.mrb[45].mxu0  ;;  %v10345_v2 = vadd.f32 %v3832_v33, %v13174_v34  ;;  %v9431_v33 = vcombine.low %v2160_v51, %v2164_v29 }
 0x2f0   : > { %v3836_v10 = vpop.f32.mrb[46].mxu0  ;;  %v10346_v20 = vadd.f32 %v3834_v59, %v13179_v61  ;;  %4933 = vmatpush1.bf16.msra.mxu1 %v9423_v56 }
 0x2f1   : > { %v10347_v30 = vadd.f32 %v3836_v10, %v13174_v34  ;;  %v3838_v38 = vpop.f32.mrb[47].mxu0  ;;  %v9432_v10 = vcombine.high %v2160_v51, %v2164_v29  ;;  %4836 = vmatmul.mubr.bf16.gmra.mrb[124].mxu1 %v12672_v46 }
 0x2f2   : > { %v10348_v27 = vadd.f32 %v3838_v38, %v13179_v61  ;;  %4845 = vmatprep.mubr.bf16.mxu1 %v12674_v54 }
 0x2f3   : > { %v13223_v60 = vpack.c.bf16 %v10347_v30, %v10345_v2  ;;  %4520 = vmatmul.mubr.bf16.gmra.mrb[152].mxu0 %v12758_v14  ;;  %4934 = vmatprep.subr.bf16.mxu1 %v9432_v10  ;;  %v2168_v2 = vld [vmem:[#allocation9 + $0x558] sm:$0xff] }
 0x2f4   : > { %v13226_v55 = vpack.c.bf16 %v10348_v27, %v10346_v20  ;;  %4529 = vmatprep.mubr.bf16.mxu0 %v12760_v24  ;;  %4935 = vmatpush1.bf16.msra.mxu1 %v9431_v33  ;;  %v2172_v30 = vld [vmem:[#allocation9 + $0x578] sm:$0xff] }
 0x2f5   : > { %v9440_v27 = vcombine.high %v2168_v2, %v2172_v30  ;;  %v9439_v15 = vcombine.low %v2168_v2, %v2172_v30  ;;  %v2176_v33 = vld [vmem:[#allocation9 + $0x598] sm:$0xff] }
 0x2f6   : > { %v3842_v59 = vpop.f32.mrb[48].mxu0  ;;  %v2180_v10 = vld [vmem:[#allocation9 + $0x5b8] sm:$0xff] }
 0x2f7   : > { %v3844_v8 = vpop.f32.mrb[49].mxu0  ;;  %v10349_v38 = vadd.f32 %v3842_v59, %v13174_v34  ;;  %4936 = vmatprep.subr.bf16.mxu1 %v9440_v27  ;;  %v2184_v59 = vld [vmem:[#allocation9 + $0x5d8] sm:$0xff] }
 0x2f8   : > { %v3846_v57 = vpop.f32.mrb[50].mxu0  ;;  %v10350_v56 = vadd.f32 %v3844_v8, %v13179_v61  ;;  %4937 = vmatpush1.bf16.msra.mxu1 %v9439_v15  ;;  %v9448_v8 = vcombine.high %v2176_v33, %v2180_v10  ;;  %v9456_v2 = vcombine.high %v2184_v59, %v2188_v18  ;;  %v9455_v15 = vcombine.low %v2184_v59, %v2188_v18 }
 0x2f9   : > { %v10351_v43 = vadd.f32 %v3846_v57, %v13174_v34  ;;  %v3848_v20 = vpop.f32.mrb[51].mxu0  ;;  %v9447_v57 = vcombine.low %v2176_v33, %v2180_v10  ;;  %v2192_v10 = vld [vmem:[#allocation9 + $0x618] sm:$0xff]  ;;  %4846 = vmatmul.mubr.bf16.gmra.mrb[128].mxu1 %v16079_v5 }
 0x2fa   : > { %v10352_v51 = vadd.f32 %v3848_v20, %v13179_v61  ;;  %4938 = vmatprep.subr.bf16.mxu1 %v9448_v8  ;;  %4855 = vmatprep.mubr.bf16.mxu1 %v16080_v45 }
 0x2fb   : > { %v13235_v29 = vpack.c.bf16 %v10351_v43, %v10349_v38  ;;  %4530 = vmatmul.mubr.bf16.gmra.mrb[156].mxu0 %v12770_v22 }
 0x2fc   : > { %v13238_v19 = vpack.c.bf16 %v10352_v51, %v10350_v56  ;;  %4572 = vmatprep.mubr.bf16.mxu0 %v12772_v48  ;;  %4939 = vmatpush1.bf16.msra.mxu1 %v9447_v57  ;;  %v2196_v57 = vld [vmem:[#allocation9 + $0x638] sm:$0xff] }
 0x2fd   : > { %4940 = vmatprep.subr.bf16.mxu1 %v9456_v2  ;;  %v9464_v8 = vcombine.high %v2192_v10, %v2196_v57  ;;  %v2204_v2 = vld [vmem:[#allocation9 + $0x678] sm:$0xff]  ;;  %v9463_v59 = vcombine.low %v2192_v10, %v2196_v57 }
 0x2fe   : > { %v3852_v20 = vpop.f32.mrb[52].mxu0  ;;  %v2212_v10 = vld [vmem:[#allocation9 + $0x6b8] sm:$0xff] }
 0x2ff   : > { %v3854_v30 = vpop.f32.mrb[53].mxu0  ;;  %v10353_v43 = vadd.f32 %v3852_v20, %v13174_v34  ;;  %v2200_v20 = vld [vmem:[#allocation9 + $0x658] sm:$0xff] }
 0x300   : > { %v3856_v38 = vpop.f32.mrb[54].mxu0  ;;  %v10354_v51 = vadd.f32 %v3854_v30, %v13179_v61  ;;  %4941 = vmatpush1.bf16.msra.mxu1 %v9455_v15  ;;  %v2208_v15 = vld [vmem:[#allocation9 + $0x698] sm:$0xff] }
 0x301   : > { %v10355_v27 = vadd.f32 %v3856_v38, %v13174_v34  ;;  %v3858_v56 = vpop.f32.mrb[55].mxu0  ;;  %4942 = vmatprep.subr.bf16.mxu1 %v9464_v8  ;;  %v9472_v38 = vcombine.high %v2200_v20, %v2204_v2  ;;  %4856 = vmatmul.mubr.bf16.gmra.mrb[132].mxu1 %v16081_v39  ;;  %v9480_v57 = vcombine.high %v2208_v15, %v2212_v10  ;;  %v2216_v8 = vld [vmem:[#allocation9 + $0x6d8] sm:$0xff] }
 0x302   : > { %v10356_v46 = vadd.f32 %v3858_v56, %v13179_v61  ;;  %4865 = vmatprep.mubr.bf16.mxu1 %v16082_v49  ;;  %v16090_v49 = vld [vmem:[#allocation28_spill] sm:$0xff] }
 0x303   : > { %v13247_v33 = vpack.c.bf16 %v10355_v27, %v10353_v43  ;;  %4573 = vmatmul.mubr.bf16.vlgmr.msra.gmra.mrb[96].mxu0 %v12782_v17 }
 0x304   : > { %v13250_v54 = vpack.c.bf16 %v10356_v46, %v10354_v51  ;;  %9854 = vmatpush3.bf16.xpose.msra.mxu0 %v13186_v50  ;;  %4582 = vmatprep.mubr.bf16.mxu0 %v12784_v26  ;;  %v9471_v46 = vcombine.low %v2200_v20, %v2204_v2  ;;  %v2220_v20 = vld [vmem:[#allocation9 + $0x6f8] sm:$0xff] }
 0x305   : > { %9855 = vmatprep.subr.bf16.mxu0 %v13199_v35  ;;  %4943 = vmatpush1.bf16.msra.mxu1 %v9463_v59 }
 0x306   : > { %16089 = vst [vmem:[#allocation21_spill] sm:$0xff] %v13250_v54  ;;  %v3862_v18 = vpop.f32.mrb[56].mxu0  ;;  %4944 = vmatprep.subr.bf16.mxu1 %v9472_v38 }
 0x307   : > { %v3864_v30 = vpop.f32.mrb[57].mxu0  ;;  %v10357_v43 = vadd.f32 %v3862_v18, %v13174_v34  ;;  %v9479_v18 = vcombine.low %v2208_v15, %v2212_v10  ;;  %v2224_v15 = vld [vmem:[#allocation9 + $0x718] sm:$0xff] }
 0x308   : > { %v3866_v50 = vpop.f32.mrb[58].mxu0  ;;  %v10358_v51 = vadd.f32 %v3864_v30, %v13179_v61  ;;  %v9488_v30 = vcombine.high %v2216_v8, %v2220_v20  ;;  %v2228_v10 = vld [vmem:[#allocation9 + $0x738] sm:$0xff] }
 0x309   : > { %v10359_v27 = vadd.f32 %v3866_v50, %v13174_v34  ;;  %v3868_v56 = vpop.f32.mrb[59].mxu0  ;;  %4945 = vmatpush1.bf16.msra.mxu1 %v9471_v46  ;;  %v16091_v46 = vld [vmem:[#allocation29_spill] sm:$0xff] }
 0x30a   : > { %v10360_v5 = vadd.f32 %v3868_v56, %v13179_v61  ;;  %4946 = vmatprep.subr.bf16.mxu1 %v9480_v57  ;;  %v9487_v56 = vcombine.low %v2216_v8, %v2220_v20  ;;  %4866 = vmatmul.mubr.bf16.gmra.mrb[136].mxu1 %v16084_v21  ;;  %v9496_v57 = vcombine.high %v2224_v15, %v2228_v10  ;;  %v2236_v8 = vld [vmem:[#allocation9 + $0x778] sm:$0xff] }
 0x30b   : > { %v13261_v54 = vpack.c.bf16 %v10359_v27, %v10357_v43  ;;  %4583 = vmatmul.mubr.bf16.gmra.mrb[100].mxu0 %v12803_v53  ;;  %4875 = vmatprep.mubr.bf16.mxu1 %v16085_v44  ;;  %v16093_v44 = vld [vmem:[#allocation32_spill] sm:$0xff] }
 0x30c   : > { %v13264_v45 = vpack.c.bf16 %v10360_v5, %v10358_v51  ;;  %9856 = vmatpush3.bf16.xpose.msra.mxu0 %v13199_v35  ;;  %4592 = vmatprep.mubr.bf16.mxu0 %v12805_v25 }
 0x30d   : > { %9857 = vmatprep.subr.bf16.mxu0 %v13211_v58  ;;  %4947 = vmatpush1.bf16.msra.mxu1 %v9479_v18  ;;  %v9495_v18 = vcombine.low %v2224_v15, %v2228_v10  ;;  %v16095_v15 = vld [vmem:[#allocation33_spill] sm:$0xff]  ;;  %v2240_v10 = vld [vmem:[#allocation9 + $0x798] sm:$0xff] }
 0x30e   : > { %v3872_v2 = vpop.f32.mrb[60].mxu0  ;;  %4948 = vmatprep.subr.bf16.mxu1 %v9488_v30 }
 0x30f   : > { %v3874_v59 = vpop.f32.mrb[61].mxu0  ;;  %v10361_v38 = vadd.f32 %v3872_v2, %v13174_v34  ;;  %v2232_v2 = vld [vmem:[#allocation9 + $0x758] sm:$0xff] }
 0x310   : > { %v3876_v35 = vpop.f32.mrb[62].mxu0  ;;  %v10362_v27 = vadd.f32 %v3874_v59, %v13179_v61  ;;  %v9504_v30 = vcombine.high %v2232_v2, %v2236_v8 }
 0x311   : > { %v10363_v50 = vadd.f32 %v3876_v35, %v13174_v34  ;;  %v3878_v43 = vpop.f32.mrb[63].mxu0  ;;  %4949 = vmatpush1.bf16.msra.mxu1 %v9487_v56 }
 0x312   : > { %v10364_v39 = vadd.f32 %v3878_v43, %v13179_v61  ;;  %4950 = vmatprep.subr.bf16.mxu1 %v9496_v57  ;;  %v2244_v57 = vld [vmem:[#allocation9 + $0x7b8] sm:$0xff]  ;;  %4876 = vmatmul.mubr.bf16.gmra.mrb[140].mxu1 %v16088_v28 }
 0x313   : > { %v13275_v51 = vpack.c.bf16 %v10363_v50, %v10361_v38  ;;  %4593 = vmatmul.mubr.bf16.gmra.mrb[104].mxu0 %v16090_v49  ;;  %4885 = vmatprep.mubr.bf16.mxu1 %v12724_v63  ;;  %v16097_v63 = vld [vmem:[#allocation38_spill] sm:$0xff] }
 0x314   : > { %v13278_v5 = vpack.c.bf16 %v10364_v39, %v10362_v27  ;;  %9858 = vmatpush3.bf16.xpose.msra.mxu0 %v13211_v58  ;;  %4602 = vmatprep.mubr.bf16.mxu0 %v16091_v46  ;;  %v9503_v27 = vcombine.low %v2232_v2, %v2236_v8  ;;  %v2252_v2 = vld [vmem:[#allocation9 + $0x7f8] sm:$0xff] }
 0x315   : > { %9859 = vmatprep.subr.bf16.mxu0 %v13223_v60  ;;  %4951 = vmatpush1.bf16.msra.mxu1 %v9495_v18  ;;  %v2248_v18 = vld [vmem:[#allocation9 + $0x7d8] sm:$0xff] }
 0x316   : > { %v3882_v20 = vpop.f32.mrb[64].mxu0  ;;  %4952 = vmatprep.subr.bf16.mxu1 %v9504_v30 }
 0x317   : > { %v3884_v59 = vpop.f32.mrb[65].mxu0  ;;  %v10365_v35 = vadd.f32 %v3882_v20, %v13174_v34  ;;  %v9512_v20 = vcombine.high %v2240_v10, %v2244_v57 }
 0x318   : > { %v3886_v58 = vpop.f32.mrb[66].mxu0  ;;  %v10366_v43 = vadd.f32 %v3884_v59, %v13179_v61  ;;  %v9511_v59 = vcombine.low %v2240_v10, %v2244_v57  ;;  %v16099_v10 = vld [vmem:[#allocation39_spill] sm:$0xff] }
 0x319   : > { %v10367_v38 = vadd.f32 %v3886_v58, %v13174_v34  ;;  %v3888_v50 = vpop.f32.mrb[67].mxu0  ;;  %4953 = vmatpush1.bf16.msra.mxu1 %v9503_v27  ;;  %v9520_v58 = vcombine.high %v2248_v18, %v2252_v2 }
 0x31a   : > { %v10368_v21 = vadd.f32 %v3888_v50, %v13179_v61  ;;  %4954 = vmatprep.subr.bf16.mxu1 %v9512_v20  ;;  %4886 = vmatmul.mubr.bf16.gmra.mrb[144].mxu1 %v12734_v37 }
 0x31b   : > { %v13289_v39 = vpack.c.bf16 %v10367_v38, %v10365_v35  ;;  %4603 = vmatmul.mubr.bf16.gmra.mrb[108].mxu0 %v16093_v44  ;;  %4895 = vmatprep.mubr.bf16.mxu1 %v12736_v16  ;;  %v16103_v16 = vld [vmem:[#allocation45_spill] sm:$0xff] }
 0x31c   : > { %v13292_v56 = vpack.c.bf16 %v10368_v21, %v10366_v43  ;;  %9860 = vmatpush3.bf16.xpose.msra.mxu0 %v13223_v60  ;;  %4612 = vmatprep.mubr.bf16.mxu0 %v16095_v15  ;;  %v9519_v21 = vcombine.low %v2248_v18, %v2252_v2 }
 0x31d   : > { %16092 = vst [vmem:[#allocation22_spill] sm:$0xff] %v13289_v39  ;;  %9861 = vmatprep.subr.bf16.mxu0 %v13235_v29  ;;  %4955 = vmatpush1.bf16.msra.mxu1 %v9511_v59 }
 0x31e   : > { %16094 = vst [vmem:[#allocation23_spill] sm:$0xff] %v13292_v56  ;;  %v3892_v8 = vpop.f32.mrb[68].mxu0  ;;  %4956 = vmatprep.subr.bf16.mxu1 %v9520_v58 }
 0x31f   : > { %v3894_v30 = vpop.f32.mrb[69].mxu0  ;;  %v10369_v35 = vadd.f32 %v3892_v8, %v13174_v34 }
 0x320   : > { %v3896_v60 = vpop.f32.mrb[70].mxu0  ;;  %v10370_v43 = vadd.f32 %v3894_v30, %v13179_v61 }
 0x321   : > { %v10371_v38 = vadd.f32 %v3896_v60, %v13174_v34  ;;  %v3898_v50 = vpop.f32.mrb[71].mxu0  ;;  %4957 = vmatpush1.bf16.msra.mxu1 %v9519_v21  ;;  %v16101_v60 = vld [vmem:[#allocation44_spill] sm:$0xff] }
 0x322   : > { %v10372_v28 = vadd.f32 %v3898_v50, %v13179_v61  ;;  %4896 = vmatmul.mubr.bf16.gmra.mrb[148].mxu1 %v12746_v62  ;;  %v16106_v62 = vld [vmem:[#allocation51_spill] sm:$0xff] }
 0x323   : > { %v13303_v56 = vpack.c.bf16 %v10371_v38, %v10369_v35  ;;  %4613 = vmatmul.mubr.bf16.gmra.mrb[112].mxu0 %v16097_v63  ;;  %4905 = vmatprep.mubr.bf16.mxu1 %v12748_v6 }
 0x324   : > { %v13306_v27 = vpack.c.bf16 %v10372_v28, %v10370_v43  ;;  %9862 = vmatpush3.bf16.xpose.msra.mxu0 %v13235_v29  ;;  %4622 = vmatprep.mubr.bf16.mxu0 %v16099_v10 }
 0x325   : > { %16096 = vst [vmem:[#allocation24_spill] sm:$0xff] %v13303_v56  ;;  %9863 = vmatprep.subr.bf16.mxu0 %v13247_v33 }
 0x326   : > { %16098 = vst [vmem:[#allocation25_spill] sm:$0xff] %v13306_v27  ;;  %v3902_v57 = vpop.f32.mrb[72].mxu0 }
 0x327   : > { %v3904_v20 = vpop.f32.mrb[73].mxu0  ;;  %v10373_v2 = vadd.f32 %v3902_v57, %v13174_v34 }
 0x328   : > { %v3906_v18 = vpop.f32.mrb[74].mxu0  ;;  %v10374_v30 = vadd.f32 %v3904_v20, %v13179_v61 }
 0x329   : > { %v10375_v8 = vadd.f32 %v3906_v18, %v13174_v34  ;;  %v3908_v59 = vpop.f32.mrb[75].mxu0 }
 0x32a   : > { %v10376_v29 = vadd.f32 %v3908_v59, %v13179_v61  ;;  %4906 = vmatmul.mubr.bf16.gmra.mrb[152].mxu1 %v12758_v14  ;;  %v16110_v14 = vld [vmem:[#allocation58_spill] sm:$0xff] }
 0x32b   : > { %v13317_v58 = vpack.c.bf16 %v10375_v8, %v10373_v2  ;;  %4623 = vmatmul.mubr.bf16.gmra.mrb[116].mxu0 %v16101_v60  ;;  %4915 = vmatprep.mubr.bf16.mxu1 %v12760_v24 }
 0x32c   : > { %v13320_v37 = vpack.c.bf16 %v10376_v29, %v10374_v30  ;;  %9864 = vmatpush3.bf16.xpose.msra.mxu0 %v13247_v33  ;;  %4632 = vmatprep.mubr.bf16.mxu0 %v16103_v16 }
 0x32d   : > { %16100 = vst [vmem:[#allocation26_spill] sm:$0xff] %v13317_v58  ;;  %9865 = vmatprep.subr.bf16.mxu0 %v13261_v54 }
 0x32e   : > { %16102 = vst [vmem:[#allocation28_spill] sm:$0xff] %v13320_v37  ;;  %v3912_v35 = vpop.f32.mrb[76].mxu0 }
 0x32f   : > { %v3914_v38 = vpop.f32.mrb[77].mxu0  ;;  %v10377_v43 = vadd.f32 %v3912_v35, %v13174_v34 }
 0x330   : > { %v3916_v50 = vpop.f32.mrb[78].mxu0  ;;  %v10378_v57 = vadd.f32 %v3914_v38, %v13179_v61 }
 0x331   : > { %v10379_v28 = vadd.f32 %v3916_v50, %v13174_v34  ;;  %v3918_v21 = vpop.f32.mrb[79].mxu0  ;;  %v16108_v50 = vld [vmem:[#allocation56_spill] sm:$0xff] }
 0x332   : > { %v10380_v33 = vadd.f32 %v3918_v21, %v13179_v61  ;;  %4916 = vmatmul.mubr.bf16.gmra.mrb[156].mxu1 %v12770_v22  ;;  %v16113_v22 = vld [vmem:[#allocation63_spill] sm:$0xff] }
 0x333   : > { %v13331_v20 = vpack.c.bf16 %v10379_v28, %v10377_v43  ;;  %4633 = vmatmul.mubr.bf16.gmra.mrb[120].mxu0 %v12928_v41  ;;  %4958 = vmatprep.mubr.bf16.mxu1 %v12772_v48 }
 0x334   : > { %v13334_v18 = vpack.c.bf16 %v10380_v33, %v10378_v57  ;;  %9866 = vmatpush3.bf16.xpose.msra.mxu0 %v13261_v54  ;;  %4642 = vmatprep.mubr.bf16.mxu0 %v16106_v62 }
 0x335   : > { %16104 = vst [vmem:[#allocation29_spill] sm:$0xff] %v13331_v20  ;;  %9867 = vmatprep.subr.bf16.mxu0 %v13275_v51 }
 0x336   : > { %16105 = vst [vmem:[#allocation32_spill] sm:$0xff] %v13334_v18  ;;  %v3922_v6 = vpop.f32.mrb[80].mxu0 }
 0x337   : > { %v3924_v2 = vpop.f32.mrb[81].mxu0  ;;  %v10381_v59 = vadd.f32 %v3922_v6, %v13174_v34 }
 0x338   : > { %v3926_v8 = vpop.f32.mrb[82].mxu0  ;;  %v10382_v35 = vadd.f32 %v3924_v2, %v13179_v61 }
 0x339   : > { %v10383_v30 = vadd.f32 %v3926_v8, %v13174_v34  ;;  %v3928_v29 = vpop.f32.mrb[83].mxu0 }
 0x33a   : > { %v10384_v54 = vadd.f32 %v3928_v29, %v13179_v61  ;;  %4959 = vmatmul.mubr.bf16.vlgmr.msra.gmra.mrb[96].mxu1 %v12782_v17 }
 0x33b   : > { %v13345_v38 = vpack.c.bf16 %v10383_v30, %v10381_v59  ;;  %4643 = vmatmul.mubr.bf16.gmra.mrb[124].mxu0 %v16108_v50  ;;  %4968 = vmatprep.mubr.bf16.mxu1 %v12784_v26 }
 0x33c   : > { %v13348_v43 = vpack.c.bf16 %v10384_v54, %v10382_v35  ;;  %9868 = vmatpush3.bf16.xpose.msra.mxu0 %v13275_v51  ;;  %4652 = vmatprep.mubr.bf16.mxu0 %v16110_v14 }
 0x33d   : > { %16107 = vst [vmem:[#allocation33_spill] sm:$0xff] %v13345_v38  ;;  %9901 = vmatprep.subr.bf16.mxu0 %v13189_v40 }
 0x33e   : > { %16109 = vst [vmem:[#allocation38_spill] sm:$0xff] %v13348_v43  ;;  %v3932_v24 = vpop.f32.mrb[84].mxu0 }
 0x33f   : > { %v3934_v28 = vpop.f32.mrb[85].mxu0  ;;  %v10385_v57 = vadd.f32 %v3932_v24, %v13174_v34 }
 0x340   : > { %v3936_v21 = vpop.f32.mrb[86].mxu0  ;;  %v10386_v2 = vadd.f32 %v3934_v28, %v13179_v61 }
 0x341   : > { %v10387_v33 = vadd.f32 %v3936_v21, %v13174_v34  ;;  %v3938_v6 = vpop.f32.mrb[87].mxu0 }
 0x342   : > { %v10388_v51 = vadd.f32 %v3938_v6, %v13179_v61  ;;  %4969 = vmatmul.mubr.bf16.gmra.mrb[100].mxu1 %v12803_v53  ;;  %v16118_v53 = vld [vmem:[#allocation35_spill] sm:$0xff] }
 0x343   : > { %v13359_v8 = vpack.c.bf16 %v10387_v33, %v10385_v57  ;;  %4653 = vmatmul.mubr.bf16.gmra.mrb[128].mxu0 %v12989_v47  ;;  %4978 = vmatprep.mubr.bf16.mxu1 %v12805_v25  ;;  %v16119_v25 = vld [vmem:[#allocation34_spill] sm:$0xff] }
 0x344   : > { %v13362_v59 = vpack.c.bf16 %v10388_v51, %v10386_v2  ;;  %4662 = vmatprep.mubr.bf16.mxu0 %v16113_v22 }
 0x345   : > { %16111 = vst [vmem:[#allocation39_spill] sm:$0xff] %v13359_v8 }
 0x346   : > { %16112 = vst [vmem:[#allocation44_spill] sm:$0xff] %v13362_v59  ;;  %v3942_v48 = vpop.f32.mrb[88].mxu0 }
 0x347   : > { %v3944_v30 = vpop.f32.mrb[89].mxu0  ;;  %v10389_v35 = vadd.f32 %v3942_v48, %v13174_v34 }
 0x348   : > { %v3946_v29 = vpop.f32.mrb[90].mxu0  ;;  %v10390_v28 = vadd.f32 %v3944_v30, %v13179_v61 }
 0x349   : > { %v10391_v54 = vadd.f32 %v3946_v29, %v13174_v34  ;;  %v3948_v24 = vpop.f32.mrb[91].mxu0 }
 0x34a   : > { %v10392_v21 = vadd.f32 %v3948_v24, %v13179_v61  ;;  %4979 = vmatmul.mubr.bf16.gmra.mrb[104].mxu1 %v16090_v49  ;;  %v16122_v49 = vld [vmem:[#allocation40_spill] sm:$0xff] }
 0x34b   : > { %v13371_v57 = vpack.c.bf16 %v10391_v54, %v10389_v35  ;;  %4663 = vmatmul.mubr.bf16.gmra.mrb[132].mxu0 %v13017_v23  ;;  %4988 = vmatprep.mubr.bf16.mxu1 %v16091_v46 }
 0x34c   : > { %v13374_v33 = vpack.c.bf16 %v10392_v21, %v10390_v28  ;;  %4672 = vmatprep.mubr.bf16.mxu0 %v13022_v13 }
 0x34d   : > { %16114 = vst [vmem:[#allocation45_spill] sm:$0xff] %v13371_v57 }
 0x34e   : > { %16115 = vst [vmem:[#allocation51_spill] sm:$0xff] %v13374_v33  ;;  %v3952_v17 = vpop.f32.mrb[92].mxu0 }
 0x34f   : > { %v3954_v26 = vpop.f32.mrb[93].mxu0  ;;  %v10393_v2 = vadd.f32 %v3952_v17, %v13174_v34 }
 0x350   : > { %v3956_v6 = vpop.f32.mrb[94].mxu0  ;;  %v10394_v30 = vadd.f32 %v3954_v26, %v13179_v61 }
 0x351   : > { %v10395_v51 = vadd.f32 %v3956_v6, %v13174_v34  ;;  %v3958_v48 = vpop.f32.mrb[95].mxu0  ;;  %v16120_v34 = vpack.c.bf16 %v16118_v53, %v16119_v25  ;;  %v16142_v25 = vld [vmem:[#allocation43_spill] sm:$0xff] }
 0x352   : > { %v10396_v29 = vadd.f32 %v3958_v48, %v13179_v61  ;;  %4989 = vmatmul.mubr.bf16.gmra.mrb[108].mxu1 %v16093_v44  ;;  %v16121_v61 = vld [vmem:[#allocation41_spill] sm:$0xff]  ;;  %v16124_v44 = vld [vmem:[#allocation47_spill] sm:$0xff] }
 0x353   : > { %v13383_v35 = vpack.c.bf16 %v10395_v51, %v10393_v2  ;;  %4673 = vmatmul.mubr.bf16.gmra.mrb[136].mxu0 %v13045_v1  ;;  %4998 = vmatprep.mubr.bf16.mxu1 %v16095_v15  ;;  %v16123_v46 = vpack.c.bf16 %v16121_v61, %v16122_v49 }
 0x354   : > { %v13386_v54 = vpack.c.bf16 %v10396_v29, %v10394_v30  ;;  %4682 = vmatprep.mubr.bf16.mxu0 %v13050_v4 }
 0x355   : > { %16116 = vst [vmem:[#allocation56_spill] sm:$0xff] %v13383_v35 }
 0x356   : > { %16117 = vst [vmem:[#allocation58_spill] sm:$0xff] %v13386_v54 }
 0x35a   : > { %4999 = vmatmul.mubr.bf16.gmra.mrb[112].mxu1 %v16097_v63  ;;  %v16127_v63 = vld [vmem:[#allocation53_spill] sm:$0xff] }
 0x35b   : > { %4683 = vmatmul.mubr.bf16.gmra.mrb[140].mxu0 %v13070_v9  ;;  %5008 = vmatprep.mubr.bf16.mxu1 %v16099_v10  ;;  %v16128_v10 = vld [vmem:[#allocation52_spill] sm:$0xff] }
 0x35c   : > { %4692 = vmatprep.mubr.bf16.mxu0 %v13072_v36 }
 0x362   : > { %5009 = vmatmul.mubr.bf16.gmra.mrb[116].mxu1 %v16101_v60  ;;  %v16129_v60 = vpack.c.bf16 %v16127_v63, %v16128_v10 }
 0x363   : > { %4693 = vmatmul.mubr.bf16.gmra.mrb[144].mxu0 %v13082_v7  ;;  %5018 = vmatprep.mubr.bf16.mxu1 %v16103_v16  ;;  %v16130_v16 = vld [vmem:[#allocation37_spill] sm:$0xff] }
 0x364   : > { %4702 = vmatprep.mubr.bf16.mxu0 %v13084_v52 }
 0x36a   : > { %5019 = vmatmul.mubr.bf16.gmra.mrb[120].mxu1 %v12928_v41  ;;  %v16125_v41 = vld [vmem:[#allocation46_spill] sm:$0xff] }
 0x36b   : > { %4703 = vmatmul.mubr.bf16.gmra.mrb[148].mxu0 %v13094_v32  ;;  %5028 = vmatprep.mubr.bf16.mxu1 %v16106_v62  ;;  %v16126_v15 = vpack.c.bf16 %v16124_v44, %v16125_v41  ;;  %v16131_v62 = vld [vmem:[#allocation36_spill] sm:$0xff]  ;;  %v16146_v41 = vld [vmem:[#allocation49_spill] sm:$0xff] }
 0x36c   : > { %4712 = vmatprep.mubr.bf16.mxu0 %v13096_v31 }
 0x372   : > { %5029 = vmatmul.mubr.bf16.gmra.mrb[124].mxu1 %v16108_v50  ;;  %v16132_v50 = vpack.c.bf16 %v16130_v16, %v16131_v62 }
 0x373   : > { %4713 = vmatmul.mubr.bf16.gmra.mrb[152].mxu0 %v13106_v11  ;;  %5038 = vmatprep.mubr.bf16.mxu1 %v16110_v14 }
 0x374   : > { %4722 = vmatprep.mubr.bf16.mxu0 %v13108_v12 }
 0x37a   : > { %5039 = vmatmul.mubr.bf16.gmra.mrb[128].mxu1 %v12989_v47  ;;  %v16133_v47 = vld [vmem:[#allocation21_spill] sm:$0xff] }
 0x37b   : > { %4723 = vmatmul.mubr.bf16.gmra.mrb[156].mxu0 %v13116_v3  ;;  %5048 = vmatprep.mubr.bf16.mxu1 %v16113_v22 }
 0x37c   : > { %9869 = vmatprep.mubr.bf16.mxu0 %v16120_v34  ;;  %v16143_v34 = vld [vmem:[#allocation42_spill] sm:$0xff] }
 0x37d   : > { %v16144_v61 = vpack.c.bf16 %v16142_v25, %v16143_v34 }
 0x382   : > { %5049 = vmatmul.mubr.bf16.gmra.mrb[132].mxu1 %v13017_v23 }
 0x383   : > { %9870 = vmatmul.mubr.bf16.vlgmr.msra.gmra.mrb[160].mxu0 %v16123_v46  ;;  %5058 = vmatprep.mubr.bf16.mxu1 %v13022_v13  ;;  %v16134_v13 = vld [vmem:[#allocation27_spill] sm:$0xff] }
 0x384   : > { %9902 = vmatpush3.bf16.xpose.msra.mxu0 %v13189_v40  ;;  %9873 = vmatprep.mubr.bf16.mxu0 %v16126_v15  ;;  %v13450_v23 = vsub.s32 2, %v16134_v13  ;;  %v16147_v15 = vld [vmem:[#allocation48_spill] sm:$0xff] }
 0x385   : > { %9903 = vmatprep.subr.bf16.mxu0 %v13202_v0  ;;  %v16148_v63 = vpack.c.bf16 %v16146_v41, %v16147_v15 }
 0x386   : > { %16135 = vst [vmem:[#allocation63_spill] sm:$0xff] %v13450_v23 }
 0x38a   : > { %5059 = vmatmul.mubr.bf16.gmra.mrb[136].mxu1 %v13045_v1  ;;  %v13453_v1 = vsub.s32 3, %v16134_v13 }
 0x38b   : > { %9874 = vmatmul.mubr.bf16.gmra.mrb[164].mxu0 %v16129_v60  ;;  %5068 = vmatprep.mubr.bf16.mxu1 %v13050_v4  ;;  %v1918_v4 = vpop.f32.mrb[0].mxu1 }
 0x38c   : > { %9904 = vmatpush3.bf16.xpose.msra.mxu0 %v13202_v0  ;;  %9917 = vmatprep.mubr.bf16.mxu0 %v16132_v50  ;;  %16136 = vst [vmem:[#allocation35_spill] sm:$0xff] %v13453_v1 }
 0x38d   : > { %9905 = vmatprep.subr.bf16.mxu0 %v13214_v42 }
 0x392   : > { %5069 = vmatmul.mubr.bf16.gmra.mrb[140].mxu1 %v13070_v9  ;;  %v1920_v9 = vpop.f32.mrb[1].mxu1 }
 0x393   : > { %5078 = vmatprep.mubr.bf16.mxu1 %v13072_v36  ;;  %v11769_v36 = vld [vmem:[%s15731_s5] sm:$0xf] }
 0x394   : > { %9906 = vmatpush3.bf16.xpose.msra.mxu0 %v13214_v42 }
 0x395   : > { %9907 = vmatprep.subr.bf16.mxu0 %v13226_v55 }
 0x39a   : > { %5079 = vmatmul.mubr.bf16.gmra.mrb[144].mxu1 %v13082_v7  ;;  %v13461_v7 = vrot.slane %v11769_v36, %v13450_v23 }
 0x39b   : > { %5088 = vmatprep.mubr.bf16.mxu1 %v13084_v52  ;;  %v13464_v52 = vrot.slane %v11769_v36, %v13453_v1 }
 0x39c   : > { %9908 = vmatpush3.bf16.xpose.msra.mxu0 %v13226_v55  ;;  %v13469_v40 = vadd.f32 %v1918_v4, %v13461_v7 }
 0x39d   : > { %9909 = vmatprep.subr.bf16.mxu0 %v13238_v19  ;;  %v13472_v0 = vadd.f32 %v1920_v9, %v13464_v52 }
 0x39f   : > { %16137 = vst [vmem:[#allocation34_spill] sm:$0xff] %v13472_v0 }
 0x3a2   : > { %5089 = vmatmul.mubr.bf16.gmra.mrb[148].mxu1 %v13094_v32  ;;  %v1922_v32 = vpop.f32.mrb[2].mxu1 }
 0x3a3   : > { %5098 = vmatprep.mubr.bf16.mxu1 %v13096_v31  ;;  %v1924_v31 = vpop.f32.mrb[3].mxu1  ;;  %v13475_v42 = vadd.f32 %v1922_v32, %v13461_v7 }
 0x3a4   : > { %9910 = vmatpush3.bf16.xpose.msra.mxu0 %v13238_v19  ;;  %v13478_v55 = vadd.f32 %v1924_v31, %v13464_v52  ;;  %v1928_v19 = vpop.f32.mrb[4].mxu1 }
 0x3a5   : > { %9911 = vmatprep.subr.bf16.mxu0 %v16133_v47  ;;  %v13486_v14 = vadd.f32 %v1928_v19, %v13461_v7 }
 0x3a6   : > { %16138 = vst [vmem:[#allocation41_spill] sm:$0xff] %v13478_v55 }
 0x3aa   : > { %5099 = vmatmul.mubr.bf16.gmra.mrb[152].mxu1 %v13106_v11 }
 0x3ab   : > { %5108 = vmatprep.mubr.bf16.mxu1 %v13108_v12  ;;  %v1930_v12 = vpop.f32.mrb[5].mxu1 }
 0x3ac   : > { %9912 = vmatpush3.bf16.xpose.msra.mxu0 %v16133_v47  ;;  %v13489_v22 = vadd.f32 %v1930_v12, %v13464_v52  ;;  %v1932_v24 = vpop.f32.mrb[6].mxu1 }
 0x3ad   : > { %9913 = vmatprep.subr.bf16.mxu0 %v13264_v45  ;;  %v13492_v28 = vadd.f32 %v1932_v24, %v13461_v7  ;;  %v1934_v21 = vpop.f32.mrb[7].mxu1 }
 0x3ae   : > { %16139 = vst [vmem:[#allocation40_spill] sm:$0xff] %v13489_v22  ;;  %v13496_v17 = vadd.f32 %v1934_v21, %v13464_v52  ;;  %v1938_v26 = vpop.f32.mrb[8].mxu1 }
 0x3af   : > { %v13501_v6 = vadd.f32 %v1938_v26, %v13461_v7  ;;  %v1940_v2 = vpop.f32.mrb[9].mxu1 }
 0x3b0   : > { %16140 = vst [vmem:[#allocation47_spill] sm:$0xff] %v13496_v17  ;;  %v1942_v48 = vpop.f32.mrb[10].mxu1  ;;  %v13506_v30 = vadd.f32 %v1940_v2, %v13464_v52 }
 0x3b1   : > { %v1944_v29 = vpop.f32.mrb[11].mxu1 }
 0x3b2   : > { %5109 = vmatmul.mubr.bf16.gmra.mrb[156].mxu1 %v13116_v3  ;;  %16141 = vst [vmem:[#allocation46_spill] sm:$0xff] %v13506_v30  ;;  %v13509_v3 = vadd.f32 %v1942_v48, %v13461_v7  ;;  %v1948_v53 = vpop.f32.mrb[12].mxu1  ;;  %v13517_v46 = vadd.f32 %v1944_v29, %v13464_v52  ;;  %v16154_v48 = vld [vmem:[#allocation54_spill] sm:$0xff] }
 0x3b3   : > { %v1950_v44 = vpop.f32.mrb[13].mxu1  ;;  %v13523_v10 = vadd.f32 %v1948_v53, %v13461_v7  ;;  %v16155_v29 = vld [vmem:[#allocation50_spill] sm:$0xff] }
 0x3b4   : > { %9914 = vmatpush3.bf16.xpose.msra.mxu0 %v13264_v45  ;;  %16145 = vst [vmem:[#allocation53_spill] sm:$0xff] %v13517_v46  ;;  %v13526_v60 = vadd.f32 %v1950_v44, %v13464_v52  ;;  %v1952_v16 = vpop.f32.mrb[14].mxu1  ;;  %v16156_v53 = vpack.c.bf16 %v16154_v48, %v16155_v29 }
 0x3b5   : > { %9915 = vmatprep.subr.bf16.mxu0 %v13278_v5  ;;  %v13531_v50 = vadd.f32 %v1952_v16, %v13461_v7  ;;  %v1954_v47 = vpop.f32.mrb[15].mxu1 }
 0x3b6   : > { %16149 = vst [vmem:[#allocation52_spill] sm:$0xff] %v13526_v60  ;;  %v13534_v4 = vadd.f32 %v1954_v47, %v13464_v52  ;;  %v1958_v9 = vpop.f32.mrb[16].mxu1 }
 0x3b7   : > { %v13539_v32 = vadd.f32 %v1958_v9, %v13461_v7  ;;  %v1960_v31 = vpop.f32.mrb[17].mxu1 }
 0x3b8   : > { %16150 = vst [vmem:[#allocation37_spill] sm:$0xff] %v13534_v4  ;;  %v13544_v12 = vadd.f32 %v1960_v31, %v13464_v52  ;;  %v1962_v24 = vpop.f32.mrb[18].mxu1 }
 0x3b9   : > { %16151 = vst [vmem:[#allocation36_spill] sm:$0xff] %v13539_v32  ;;  %v13547_v21 = vadd.f32 %v1962_v24, %v13461_v7  ;;  %v1964_v26 = vpop.f32.mrb[19].mxu1 }
 0x3ba   : > { %16152 = vst [vmem:[#allocation21_spill] sm:$0xff] %v13544_v12  ;;  %v1968_v2 = vpop.f32.mrb[20].mxu1  ;;  %v13555_v34 = vadd.f32 %v1964_v26, %v13464_v52 }
 0x3bb   : > { %16153 = vst [vmem:[#allocation27_spill] sm:$0xff] %v13547_v21  ;;  %v13558_v44 = vadd.f32 %v1968_v2, %v13461_v7 }
 0x3bc   : > { %9916 = vmatpush3.bf16.xpose.msra.mxu0 %v13278_v5  ;;  %16157 = vst [vmem:[#allocation43_spill] sm:$0xff] %v13555_v34 }
 0x3bd   : > { %16158 = vst [vmem:[#allocation42_spill] sm:$0xff] %v13558_v44 }
 0x3c3   : > { %9918 = vmatmul.mubr.bf16.vlgmr.msra.gmra.mrb[168].mxu0 %v16144_v61  ;;  %v1970_v61 = vpop.f32.mrb[21].mxu1 }
 0x3c4   : > { %9921 = vmatprep.mubr.bf16.mxu0 %v16148_v63  ;;  %v13561_v41 = vadd.f32 %v1970_v61, %v13464_v52  ;;  %v1972_v15 = vpop.f32.mrb[22].mxu1  ;;  %v2273_v61 = vsub.s32 4, %v16134_v13  ;;  %v2277_v63 = vsub.s32 5, %v16134_v13 }
 0x3c5   : > { %v13566_v16 = vadd.f32 %v1972_v15, %v13461_v7  ;;  %v1974_v47 = vpop.f32.mrb[23].mxu1 }
 0x3c6   : > { %16159 = vst [vmem:[#allocation49_spill] sm:$0xff] %v13561_v41  ;;  %v13569_v9 = vadd.f32 %v1974_v47, %v13464_v52  ;;  %v1978_v31 = vpop.f32.mrb[24].mxu1 }
 0x3c7   : > { %16160 = vst [vmem:[#allocation48_spill] sm:$0xff] %v13566_v16  ;;  %v13574_v26 = vadd.f32 %v1978_v31, %v13461_v7  ;;  %v1980_v2 = vpop.f32.mrb[25].mxu1 }
 0x3c8   : > { %16161 = vst [vmem:[#allocation54_spill] sm:$0xff] %v13569_v9  ;;  %v13579_v29 = vadd.f32 %v1980_v2, %v13464_v52 }
 0x3c9   : > { %16162 = vst [vmem:[#allocation50_spill] sm:$0xff] %v13574_v26 }
 0x3ca   : > { %16163 = vst [vmem:[#allocation74_spill] sm:$0xff] %v13579_v29 }
 0x3cb   : > { %9922 = vmatmul.mubr.bf16.gmra.mrb[172].mxu0 %v16156_v53  ;;  %v1982_v53 = vpop.f32.mrb[26].mxu1 }
 0x3cc   : > { %v13583_v15 = vadd.f32 %v1982_v53, %v13461_v7  ;;  %v1984_v47 = vpop.f32.mrb[27].mxu1  ;;  %v16168_v53 = vld [vmem:[#allocation20_spill] sm:$0xff] }
 0x3cd   : > { %v1988_v24 = vpop.f32.mrb[28].mxu1  ;;  %v13589_v25 = vadd.f32 %v1984_v47, %v13464_v52  ;;  %v13599_v51 = vrot.slane %v16168_v53, %v13450_v23  ;;  %v13602_v11 = vrot.slane %v16168_v53, %v2273_v61  ;;  %v13610_v49 = vrot.slane %v16168_v53, %v2277_v63 }
 0x3ce   : > { %16164 = vst [vmem:[#allocation75_spill] sm:$0xff] %v13583_v15  ;;  %v1990_v48 = vpop.f32.mrb[29].mxu1  ;;  %v13592_v2 = vadd.f32 %v1988_v24, %v13461_v7  ;;  %v13617_v45 = vrot.slane %v16168_v53, %v13453_v1 }
 0x3cf   : > { %16165 = vst [vmem:[#allocation76_spill] sm:$0xff] %v13589_v25  ;;  %v13595_v19 = vadd.f32 %v1990_v48, %v13464_v52  ;;  %v1992_v62 = vpop.f32.mrb[30].mxu1 }
 0x3d0   : > { %16166 = vst [vmem:[#allocation77_spill] sm:$0xff] %v13592_v2  ;;  %v13607_v47 = vadd.f32 %v1992_v62, %v13461_v7  ;;  %v1994_v36 = vpop.f32.mrb[31].mxu1 }
 0x3d1   : > { %16167 = vst [vmem:[#allocation78_spill] sm:$0xff] %v13595_v19  ;;  %v13613_v48 = vadd.f32 %v1994_v36, %v13464_v52  ;;  %v4188_v5 = vpop.f32.mrb[32].mxu1 }
 0x3d2   : > { %16169 = vst [vmem:[#allocation20_spill] sm:$0xff] %v13607_v47  ;;  %v10397_v7 = vadd.f32 %v4188_v5, %v13599_v51  ;;  %v4190_v62 = vpop.f32.mrb[33].mxu1 }
 0x3d3   : > { %16170 = vst [vmem:[#allocation79_spill] sm:$0xff] %v13613_v48  ;;  %v10398_v29 = vadd.f32 %v4190_v62, %v13617_v45  ;;  %v4192_v52 = vpop.f32.mrb[34].mxu1 }
 0x3d4   : > { %v10399_v1 = vadd.f32 %v4192_v52, %v13599_v51  ;;  %v4194_v41 = vpop.f32.mrb[35].mxu1 }
 0x3d5   : > { %v10400_v9 = vadd.f32 %v4194_v41, %v13617_v45  ;;  %v4198_v12 = vpop.f32.mrb[36].mxu1 }
 0x3d6   : > { %v4574_v24 = vpop.f32.mrb[96].mxu0  ;;  %v13631_v63 = vpack.c.bf16 %v10399_v1, %v10397_v7  ;;  %v10401_v62 = vadd.f32 %v4198_v12, %v13599_v51  ;;  %v4200_v19 = vpop.f32.mrb[37].mxu1 }
 0x3d7   : > { %v4576_v61 = vpop.f32.mrb[97].mxu0  ;;  %v10461_v36 = vadd.f32 %v4574_v24, %v13602_v11  ;;  %v10402_v52 = vadd.f32 %v4200_v19, %v13617_v45  ;;  %v4202_v48 = vpop.f32.mrb[38].mxu1 }
 0x3d8   : > { %v4578_v23 = vpop.f32.mrb[98].mxu0  ;;  %v10462_v31 = vadd.f32 %v4576_v61, %v13610_v49  ;;  %v10403_v61 = vadd.f32 %v4202_v48, %v13599_v51 }
 0x3d9   : > { %v10463_v25 = vadd.f32 %v4578_v23, %v13602_v11  ;;  %v4580_v53 = vpop.f32.mrb[99].mxu0  ;;  %v13636_v23 = vpack.c.bf16 %v10400_v9, %v10398_v29 }
 0x3da   : > { %v10464_v5 = vadd.f32 %v4580_v53, %v13610_v49  ;;  %v4204_v53 = vpop.f32.mrb[39].mxu1  ;;  %v13641_v7 = vpack.c.bf16 %v10403_v61, %v10401_v62 }
 0x3db   : > { %v5215_v34 = vpack.c.bf16 %v10463_v25, %v10461_v36  ;;  %16171 = vst [vmem:[#allocation80_spill] sm:$0xff] %v13636_v23  ;;  %v10404_v25 = vadd.f32 %v4204_v53, %v13617_v45  ;;  %v4208_v1 = vpop.f32.mrb[40].mxu1 }
 0x3dc   : > { %v13634_v24 = vpack.c.bf16 %v10464_v5, %v10462_v31  ;;  %v10405_v12 = vadd.f32 %v4208_v1, %v13599_v51  ;;  %v4210_v31 = vpop.f32.mrb[41].mxu1 }
 0x3dd   : > { %9877 = vmatprep.subr.bf16.mxu1 %v5215_v34  ;;  %v13644_v29 = vpack.c.bf16 %v10404_v25, %v10402_v52  ;;  %v10406_v19 = vadd.f32 %v4210_v31, %v13617_v45  ;;  %v4212_v36 = vpop.f32.mrb[42].mxu1 }
 0x3de   : > { %v4584_v2 = vpop.f32.mrb[100].mxu0  ;;  %9878 = vmatpush3.bf16.msra.mxu1 %v5215_v34  ;;  %v10407_v53 = vadd.f32 %v4212_v36, %v13599_v51  ;;  %v4214_v47 = vpop.f32.mrb[43].mxu1 }
 0x3df   : > { %v4586_v41 = vpop.f32.mrb[101].mxu0  ;;  %16172 = vst [vmem:[#allocation81_spill] sm:$0xff] %v13644_v29  ;;  %v10465_v48 = vadd.f32 %v4584_v2, %v13602_v11  ;;  %v10408_v1 = vadd.f32 %v4214_v47, %v13617_v45  ;;  %v4218_v26 = vpop.f32.mrb[44].mxu1 }
 0x3e0   : > { %v4588_v9 = vpop.f32.mrb[102].mxu0  ;;  %v10466_v62 = vadd.f32 %v4586_v41, %v13610_v49  ;;  %v13653_v25 = vpack.c.bf16 %v10407_v53, %v10405_v12  ;;  %v10409_v31 = vadd.f32 %v4218_v26, %v13599_v51  ;;  %v4220_v15 = vpop.f32.mrb[45].mxu1 }
 0x3e1   : > { %v10467_v5 = vadd.f32 %v4588_v9, %v13602_v11  ;;  %v4590_v34 = vpop.f32.mrb[103].mxu0  ;;  %v13658_v9 = vpack.c.bf16 %v10408_v1, %v10406_v19  ;;  %v10410_v36 = vadd.f32 %v4220_v15, %v13617_v45  ;;  %v4222_v44 = vpop.f32.mrb[46].mxu1 }
 0x3e2   : > { %v10468_v61 = vadd.f32 %v4590_v34, %v13610_v49  ;;  %v10411_v41 = vadd.f32 %v4222_v44, %v13599_v51  ;;  %v4224_v34 = vpop.f32.mrb[47].mxu1 }
 0x3e3   : > { %v5219_v52 = vpack.c.bf16 %v10467_v5, %v10465_v48  ;;  %16173 = vst [vmem:[#allocation82_spill] sm:$0xff] %v13658_v9  ;;  %v10412_v47 = vadd.f32 %v4224_v34, %v13617_v45  ;;  %v4228_v12 = vpop.f32.mrb[48].mxu1 }
 0x3e4   : > { %v13656_v2 = vpack.c.bf16 %v10468_v61, %v10466_v62  ;;  %v13663_v5 = vpack.c.bf16 %v10411_v41, %v10409_v31  ;;  %v10413_v26 = vadd.f32 %v4228_v12, %v13599_v51  ;;  %v4230_v53 = vpop.f32.mrb[49].mxu1 }
 0x3e5   : > { %9879 = vmatprep.subr.bf16.mxu1 %v5219_v52  ;;  %v13666_v62 = vpack.c.bf16 %v10412_v47, %v10410_v36  ;;  %v10414_v15 = vadd.f32 %v4230_v53, %v13617_v45  ;;  %v4232_v61 = vpop.f32.mrb[50].mxu1 }
 0x3e6   : > { %v4594_v16 = vpop.f32.mrb[104].mxu0  ;;  %9880 = vmatpush3.bf16.msra.mxu1 %v5219_v52  ;;  %v10415_v34 = vadd.f32 %v4232_v61, %v13599_v51  ;;  %v4234_v32 = vpop.f32.mrb[51].mxu1 }
 0x3e7   : > { %v4596_v48 = vpop.f32.mrb[105].mxu0  ;;  %16174 = vst [vmem:[#allocation83_spill] sm:$0xff] %v13666_v62  ;;  %v10469_v44 = vadd.f32 %v4594_v16, %v13602_v11  ;;  %v10416_v12 = vadd.f32 %v4234_v32, %v13617_v45  ;;  %v4238_v21 = vpop.f32.mrb[52].mxu1 }
 0x3e8   : > { %v4598_v19 = vpop.f32.mrb[106].mxu0  ;;  %v10470_v31 = vadd.f32 %v4596_v48, %v13610_v49  ;;  %v13675_v47 = vpack.c.bf16 %v10415_v34, %v10413_v26  ;;  %v10417_v53 = vadd.f32 %v4238_v21, %v13599_v51  ;;  %v4240_v54 = vpop.f32.mrb[53].mxu1 }
 0x3e9   : > { %v10471_v1 = vadd.f32 %v4598_v19, %v13602_v11  ;;  %v4600_v52 = vpop.f32.mrb[107].mxu0  ;;  %v13680_v19 = vpack.c.bf16 %v10416_v12, %v10414_v15  ;;  %v10418_v61 = vadd.f32 %v4240_v54, %v13617_v45  ;;  %v4242_v33 = vpop.f32.mrb[54].mxu1 }
 0x3ea   : > { %v10472_v41 = vadd.f32 %v4600_v52, %v13610_v49  ;;  %v10419_v48 = vadd.f32 %v4242_v33, %v13599_v51  ;;  %v4244_v52 = vpop.f32.mrb[55].mxu1 }
 0x3eb   : > { %v5223_v36 = vpack.c.bf16 %v10471_v1, %v10469_v44  ;;  %16175 = vst [vmem:[#allocation84_spill] sm:$0xff] %v13680_v19  ;;  %v10420_v32 = vadd.f32 %v4244_v52, %v13617_v45  ;;  %v4248_v26 = vpop.f32.mrb[56].mxu1 }
 0x3ec   : > { %v13678_v16 = vpack.c.bf16 %v10472_v41, %v10470_v31  ;;  %v13685_v1 = vpack.c.bf16 %v10419_v48, %v10417_v53  ;;  %v10421_v21 = vadd.f32 %v4248_v26, %v13599_v51  ;;  %v4250_v34 = vpop.f32.mrb[57].mxu1 }
 0x3ed   : > { %9881 = vmatprep.subr.bf16.mxu1 %v5223_v36  ;;  %v13688_v31 = vpack.c.bf16 %v10420_v32, %v10418_v61  ;;  %v10422_v54 = vadd.f32 %v4250_v34, %v13617_v45  ;;  %v4252_v41 = vpop.f32.mrb[58].mxu1 }
 0x3ee   : > { %v4604_v59 = vpop.f32.mrb[108].mxu0  ;;  %9882 = vmatpush3.bf16.msra.mxu1 %v5223_v36  ;;  %v10423_v52 = vadd.f32 %v4252_v41, %v13599_v51  ;;  %v4254_v43 = vpop.f32.mrb[59].mxu1 }
 0x3ef   : > { %v4606_v44 = vpop.f32.mrb[109].mxu0  ;;  %16176 = vst [vmem:[#allocation85_spill] sm:$0xff] %v13688_v31  ;;  %v10473_v33 = vadd.f32 %v4604_v59, %v13602_v11  ;;  %v10424_v26 = vadd.f32 %v4254_v43, %v13617_v45  ;;  %v4258_v18 = vpop.f32.mrb[60].mxu1 }
 0x3f0   : > { %v4608_v15 = vpop.f32.mrb[110].mxu0  ;;  %v10474_v53 = vadd.f32 %v4606_v44, %v13610_v49  ;;  %v13697_v32 = vpack.c.bf16 %v10423_v52, %v10421_v21  ;;  %v10425_v34 = vadd.f32 %v4258_v18, %v13599_v51  ;;  %v4260_v37 = vpop.f32.mrb[61].mxu1 }
 0x3f1   : > { %v10475_v12 = vadd.f32 %v4608_v15, %v13602_v11  ;;  %v4610_v36 = vpop.f32.mrb[111].mxu0  ;;  %v13702_v15 = vpack.c.bf16 %v10424_v26, %v10422_v54  ;;  %v10426_v41 = vadd.f32 %v4260_v37, %v13617_v45  ;;  %v4262_v27 = vpop.f32.mrb[62].mxu1 }
 0x3f2   : > { %v10476_v48 = vadd.f32 %v4610_v36, %v13610_v49  ;;  %v10427_v44 = vadd.f32 %v4262_v27, %v13599_v51  ;;  %v4264_v36 = vpop.f32.mrb[63].mxu1 }
 0x3f3   : > { %v5227_v61 = vpack.c.bf16 %v10475_v12, %v10473_v33  ;;  %16177 = vst [vmem:[#allocation86_spill] sm:$0xff] %v13702_v15  ;;  %v10428_v43 = vadd.f32 %v4264_v36, %v13617_v45  ;;  %v4268_v21 = vpop.f32.mrb[64].mxu1 }
 0x3f4   : > { %v13700_v59 = vpack.c.bf16 %v10476_v48, %v10474_v53  ;;  %v13707_v12 = vpack.c.bf16 %v10427_v44, %v10425_v34  ;;  %v10429_v18 = vadd.f32 %v4268_v21, %v13599_v51  ;;  %v4270_v52 = vpop.f32.mrb[65].mxu1 }
 0x3f5   : > { %9883 = vmatprep.subr.bf16.mxu1 %v5227_v61  ;;  %v13710_v53 = vpack.c.bf16 %v10428_v43, %v10426_v41  ;;  %v10430_v37 = vadd.f32 %v4270_v52, %v13617_v45  ;;  %v4272_v48 = vpop.f32.mrb[66].mxu1 }
 0x3f6   : > { %v4614_v35 = vpop.f32.mrb[112].mxu0  ;;  %9884 = vmatpush3.bf16.msra.mxu1 %v5227_v61  ;;  %v10431_v36 = vadd.f32 %v4272_v48, %v13599_v51  ;;  %v4274_v57 = vpop.f32.mrb[67].mxu1 }
 0x3f7   : > { %v4616_v33 = vpop.f32.mrb[113].mxu0  ;;  %16178 = vst [vmem:[#allocation87_spill] sm:$0xff] %v13710_v53  ;;  %v10477_v27 = vadd.f32 %v4614_v35, %v13602_v11  ;;  %v10432_v21 = vadd.f32 %v4274_v57, %v13617_v45  ;;  %v4278_v8 = vpop.f32.mrb[68].mxu1 }
 0x3f8   : > { %v4618_v54 = vpop.f32.mrb[114].mxu0  ;;  %v10478_v34 = vadd.f32 %v4616_v33, %v13610_v49  ;;  %v13719_v43 = vpack.c.bf16 %v10431_v36, %v10429_v18  ;;  %v10433_v52 = vadd.f32 %v4278_v8, %v13599_v51  ;;  %v4280_v38 = vpop.f32.mrb[69].mxu1 }
 0x3f9   : > { %v10479_v26 = vadd.f32 %v4618_v54, %v13602_v11  ;;  %v4620_v61 = vpop.f32.mrb[115].mxu0  ;;  %v13724_v54 = vpack.c.bf16 %v10432_v21, %v10430_v37  ;;  %v10434_v48 = vadd.f32 %v4280_v38, %v13617_v45  ;;  %v4282_v20 = vpop.f32.mrb[70].mxu1 }
 0x3fa   : > { %v10480_v44 = vadd.f32 %v4620_v61, %v13610_v49  ;;  %16179 = vst [vmem:[#allocation88_spill] sm:$0xff] %v13719_v43  ;;  %v10435_v33 = vadd.f32 %v4282_v20, %v13599_v51  ;;  %v4284_v61 = vpop.f32.mrb[71].mxu1 }
 0x3fb   : > { %v5231_v41 = vpack.c.bf16 %v10479_v26, %v10477_v27  ;;  %16180 = vst [vmem:[#allocation89_spill] sm:$0xff] %v13724_v54  ;;  %v10436_v57 = vadd.f32 %v4284_v61, %v13617_v45  ;;  %v4288_v18 = vpop.f32.mrb[72].mxu1 }
 0x3fc   : > { %v13722_v35 = vpack.c.bf16 %v10480_v44, %v10478_v34  ;;  %v13729_v26 = vpack.c.bf16 %v10435_v33, %v10433_v52  ;;  %v10437_v8 = vadd.f32 %v4288_v18, %v13599_v51  ;;  %v4290_v36 = vpop.f32.mrb[73].mxu1 }
 0x3fd   : > { %9885 = vmatprep.subr.bf16.mxu1 %v5231_v41  ;;  %v13732_v34 = vpack.c.bf16 %v10436_v57, %v10434_v48  ;;  %v10438_v38 = vadd.f32 %v4290_v36, %v13617_v45  ;;  %v4292_v44 = vpop.f32.mrb[74].mxu1 }
 0x3fe   : > { %v4624_v58 = vpop.f32.mrb[116].mxu0  ;;  %9886 = vmatpush3.bf16.msra.mxu1 %v5231_v41  ;;  %16181 = vst [vmem:[#allocation90_spill] sm:$0xff] %v13729_v26  ;;  %v10439_v61 = vadd.f32 %v4292_v44, %v13599_v51  ;;  %v4294_v54 = vpop.f32.mrb[75].mxu1 }
 0x3ff   : > { %v4626_v27 = vpop.f32.mrb[117].mxu0  ;;  %16182 = vst [vmem:[#allocation91_spill] sm:$0xff] %v13732_v34  ;;  %v10481_v20 = vadd.f32 %v4624_v58, %v13602_v11  ;;  %v10440_v18 = vadd.f32 %v4294_v54, %v13617_v45  ;;  %v4298_v26 = vpop.f32.mrb[76].mxu1 }
 0x400   : > { %v4628_v37 = vpop.f32.mrb[118].mxu0  ;;  %v10482_v52 = vadd.f32 %v4626_v27, %v13610_v49  ;;  %v13741_v57 = vpack.c.bf16 %v10439_v61, %v10437_v8  ;;  %v10441_v36 = vadd.f32 %v4298_v26, %v13599_v51  ;;  %v4300_v34 = vpop.f32.mrb[77].mxu1 }
 0x401   : > { %v10483_v21 = vadd.f32 %v4628_v37, %v13602_v11  ;;  %v4630_v41 = vpop.f32.mrb[119].mxu0  ;;  %v13746_v37 = vpack.c.bf16 %v10440_v18, %v10438_v38  ;;  %v10442_v44 = vadd.f32 %v4300_v34, %v13617_v45  ;;  %v4302_v43 = vpop.f32.mrb[78].mxu1 }
 0x402   : > { %v10484_v33 = vadd.f32 %v4630_v41, %v13610_v49  ;;  %16183 = vst [vmem:[#allocation92_spill] sm:$0xff] %v13741_v57  ;;  %v10443_v27 = vadd.f32 %v4302_v43, %v13599_v51  ;;  %v4304_v41 = vpop.f32.mrb[79].mxu1 }
 0x403   : > { %v5235_v48 = vpack.c.bf16 %v10483_v21, %v10481_v20  ;;  %16184 = vst [vmem:[#allocation93_spill] sm:$0xff] %v13746_v37  ;;  %v10444_v54 = vadd.f32 %v4304_v41, %v13617_v45  ;;  %v4308_v8 = vpop.f32.mrb[80].mxu1 }
 0x404   : > { %v13744_v58 = vpack.c.bf16 %v10484_v33, %v10482_v52  ;;  %v13751_v21 = vpack.c.bf16 %v10443_v27, %v10441_v36  ;;  %v10445_v26 = vadd.f32 %v4308_v8, %v13599_v51  ;;  %v4310_v61 = vpop.f32.mrb[81].mxu1 }
 0x405   : > { %9887 = vmatprep.subr.bf16.mxu1 %v5235_v48  ;;  %v13754_v52 = vpack.c.bf16 %v10444_v54, %v10442_v44  ;;  %v10446_v34 = vadd.f32 %v4310_v61, %v13617_v45  ;;  %v4312_v33 = vpop.f32.mrb[82].mxu1 }
 0x406   : > { %v4634_v56 = vpop.f32.mrb[120].mxu0  ;;  %9888 = vmatpush3.bf16.msra.mxu1 %v5235_v48  ;;  %16185 = vst [vmem:[#allocation94_spill] sm:$0xff] %v13751_v21  ;;  %v10447_v41 = vadd.f32 %v4312_v33, %v13599_v51  ;;  %v4314_v37 = vpop.f32.mrb[83].mxu1 }
 0x407   : > { %v4636_v20 = vpop.f32.mrb[121].mxu0  ;;  %16186 = vst [vmem:[#allocation95_spill] sm:$0xff] %v13754_v52  ;;  %v10485_v43 = vadd.f32 %v4634_v56, %v13602_v11  ;;  %v10448_v8 = vadd.f32 %v4314_v37, %v13617_v45  ;;  %v4318_v21 = vpop.f32.mrb[84].mxu1 }
 0x408   : > { %v4638_v38 = vpop.f32.mrb[122].mxu0  ;;  %v10486_v36 = vadd.f32 %v4636_v20, %v13610_v49  ;;  %v13763_v54 = vpack.c.bf16 %v10447_v41, %v10445_v26  ;;  %v10449_v61 = vadd.f32 %v4318_v21, %v13599_v51  ;;  %v4320_v52 = vpop.f32.mrb[85].mxu1 }
 0x409   : > { %v10487_v18 = vadd.f32 %v4638_v38, %v13602_v11  ;;  %v4640_v48 = vpop.f32.mrb[123].mxu0  ;;  %v13768_v38 = vpack.c.bf16 %v10448_v8, %v10446_v34  ;;  %v10450_v33 = vadd.f32 %v4320_v52, %v13617_v45  ;;  %v4322_v57 = vpop.f32.mrb[86].mxu1 }
 0x40a   : > { %v10488_v27 = vadd.f32 %v4640_v48, %v13610_v49  ;;  %16187 = vst [vmem:[#allocation96_spill] sm:$0xff] %v13763_v54  ;;  %v10451_v20 = vadd.f32 %v4322_v57, %v13599_v51  ;;  %v4324_v48 = vpop.f32.mrb[87].mxu1 }
 0x40b   : > { %v5239_v44 = vpack.c.bf16 %v10487_v18, %v10485_v43  ;;  %16188 = vst [vmem:[#allocation97_spill] sm:$0xff] %v13768_v38  ;;  %v10452_v37 = vadd.f32 %v4324_v48, %v13617_v45  ;;  %v4328_v26 = vpop.f32.mrb[88].mxu1 }
 0x40c   : > { %v13766_v56 = vpack.c.bf16 %v10488_v27, %v10486_v36  ;;  %v13773_v18 = vpack.c.bf16 %v10451_v20, %v10449_v61  ;;  %v10453_v21 = vadd.f32 %v4328_v26, %v13599_v51  ;;  %v4330_v41 = vpop.f32.mrb[89].mxu1 }
 0x40d   : > { %9889 = vmatprep.subr.bf16.mxu1 %v5239_v44  ;;  %v13776_v36 = vpack.c.bf16 %v10452_v37, %v10450_v33  ;;  %v10454_v52 = vadd.f32 %v4330_v41, %v13617_v45  ;;  %v4332_v27 = vpop.f32.mrb[90].mxu1 }
 0x40e   : > { %v4644_v60 = vpop.f32.mrb[124].mxu0  ;;  %9890 = vmatpush3.bf16.msra.mxu1 %v5239_v44  ;;  %16189 = vst [vmem:[#allocation98_spill] sm:$0xff] %v13773_v18  ;;  %v10455_v48 = vadd.f32 %v4332_v27, %v13599_v51  ;;  %v4334_v38 = vpop.f32.mrb[91].mxu1 }
 0x40f   : > { %v4646_v43 = vpop.f32.mrb[125].mxu0  ;;  %16190 = vst [vmem:[#allocation99_spill] sm:$0xff] %v13776_v36  ;;  %v10489_v57 = vadd.f32 %v4644_v60, %v13602_v11  ;;  %v10456_v26 = vadd.f32 %v4334_v38, %v13617_v45  ;;  %v4338_v18 = vpop.f32.mrb[92].mxu1  ;;  %v2281_v38 = vsub.s32 6, %v16134_v13 }
 0x410   : > { %v4648_v34 = vpop.f32.mrb[126].mxu0  ;;  %v10490_v61 = vadd.f32 %v4646_v43, %v13610_v49  ;;  %v13785_v37 = vpack.c.bf16 %v10455_v48, %v10453_v21  ;;  %v10457_v41 = vadd.f32 %v4338_v18, %v13599_v51  ;;  %v4340_v36 = vpop.f32.mrb[93].mxu1 }
 0x411   : > { %v10491_v8 = vadd.f32 %v4648_v34, %v13602_v11  ;;  %v4650_v44 = vpop.f32.mrb[127].mxu0  ;;  %v13790_v34 = vpack.c.bf16 %v10456_v26, %v10454_v52  ;;  %v10458_v27 = vadd.f32 %v4340_v36, %v13617_v45  ;;  %v4342_v54 = vpop.f32.mrb[94].mxu1  ;;  %v11770_v36 = vld [vmem:[%s15732_s6] sm:$0xff] }
 0x412   : > { %v10492_v20 = vadd.f32 %v4650_v44, %v13610_v49  ;;  %16191 = vst [vmem:[#allocation100_spill] sm:$0xff] %v13785_v37  ;;  %v10459_v43 = vadd.f32 %v4342_v54, %v13599_v51  ;;  %v4344_v44 = vpop.f32.mrb[95].mxu1  ;;  %v13802_v52 = vrot.slane %v11770_v36, %v2281_v38  ;;  %v2285_v51 = vsub.s32 7, %v16134_v13 }
 0x413   : > { %v5243_v33 = vpack.c.bf16 %v10491_v8, %v10489_v57  ;;  %16192 = vst [vmem:[#allocation101_spill] sm:$0xff] %v13790_v34  ;;  %v10460_v21 = vadd.f32 %v4344_v44, %v13617_v45  ;;  %v4960_v48 = vpop.f32.mrb[96].mxu1 }
 0x414   : > { %v13788_v60 = vpack.c.bf16 %v10492_v20, %v10490_v61  ;;  %v13797_v18 = vpack.c.bf16 %v10459_v43, %v10457_v41  ;;  %v10525_v26 = vadd.f32 %v4960_v48, %v13802_v52  ;;  %v4962_v41 = vpop.f32.mrb[97].mxu1 }
 0x415   : > { %9891 = vmatprep.subr.bf16.mxu1 %v5243_v33  ;;  %v13805_v8 = vpack.c.bf16 %v10460_v21, %v10458_v27  ;;  %v4964_v38 = vpop.f32.mrb[98].mxu1 }
 0x416   : > { %v4654_v4 = vpop.f32.mrb[128].mxu0  ;;  %9892 = vmatpush3.bf16.msra.mxu1 %v5243_v33  ;;  %16193 = vst [vmem:[#allocation102_spill] sm:$0xff] %v13797_v18  ;;  %v13810_v33 = vrot.slane %v11770_v36, %v2285_v51  ;;  %v10527_v21 = vadd.f32 %v4964_v38, %v13802_v52 }
 0x417   : > { %v4656_v57 = vpop.f32.mrb[129].mxu0  ;;  %9925 = vmatprep.subr.bf16.mxu1 %v13634_v24  ;;  %16194 = vst [vmem:[#allocation103_spill] sm:$0xff] %v13805_v8  ;;  %v10493_v61 = vadd.f32 %v4654_v4, %v13602_v11  ;;  %v4966_v4 = vpop.f32.mrb[99].mxu1 }
 0x418   : > { %v4658_v54 = vpop.f32.mrb[130].mxu0  ;;  %v10494_v43 = vadd.f32 %v4656_v57, %v13610_v49  ;;  %v10526_v27 = vadd.f32 %v4962_v41, %v13810_v33  ;;  %v5217_v48 = vpack.c.bf16 %v10527_v21, %v10525_v26 }
 0x419   : > { %v10495_v45 = vadd.f32 %v4658_v54, %v13602_v11  ;;  %v4660_v20 = vpop.f32.mrb[131].mxu0  ;;  %v10528_v54 = vadd.f32 %v4966_v4, %v13810_v33 }
 0x41a   : > { %v10496_v44 = vadd.f32 %v4660_v20, %v13610_v49  ;;  %9973 = vmatprep.subr.bf16.mxu0 %v5217_v48  ;;  %v4970_v20 = vpop.f32.mrb[100].mxu1 }
 0x41b   : > { %v13814_v13 = vpack.c.bf16 %v10495_v45, %v10493_v61  ;;  %v13821_v51 = vpack.c.bf16 %v10528_v54, %v10526_v27  ;;  %9974 = vmatpush3.bf16.msra.mxu0 %v5217_v48  ;;  %v10529_v38 = vadd.f32 %v4970_v20, %v13802_v52 }
 0x41c   : > { %v13818_v8 = vpack.c.bf16 %v10496_v44, %v10494_v43  ;;  %v4972_v43 = vpop.f32.mrb[101].mxu1 }
 0x41d   : > { %16195 = vst [vmem:[#allocation104_spill] sm:$0xff] %v13814_v13  ;;  %v10530_v27 = vadd.f32 %v4972_v43, %v13810_v33  ;;  %v4974_v21 = vpop.f32.mrb[102].mxu1 }
 0x41e   : > { %16196 = vst [vmem:[#allocation105_spill] sm:$0xff] %v13818_v8  ;;  %v4664_v36 = vpop.f32.mrb[132].mxu0  ;;  %v10531_v54 = vadd.f32 %v4974_v21, %v13802_v52  ;;  %v4976_v48 = vpop.f32.mrb[103].mxu1 }
 0x41f   : > { %v4666_v34 = vpop.f32.mrb[133].mxu0  ;;  %v10497_v61 = vadd.f32 %v4664_v36, %v13602_v11  ;;  %v10532_v36 = vadd.f32 %v4976_v48, %v13810_v33 }
 0x420   : > { %v4668_v57 = vpop.f32.mrb[134].mxu0  ;;  %v10498_v44 = vadd.f32 %v4666_v34, %v13610_v49 }
 0x421   : > { %v10499_v45 = vadd.f32 %v4668_v57, %v13602_v11  ;;  %v4670_v41 = vpop.f32.mrb[135].mxu0  ;;  %v5221_v57 = vpack.c.bf16 %v10531_v54, %v10529_v38  ;;  %v13835_v20 = vpack.c.bf16 %v10532_v36, %v10530_v27 }
 0x422   : > { %v10500_v26 = vadd.f32 %v4670_v41, %v13610_v49  ;;  %v4980_v41 = vpop.f32.mrb[104].mxu1 }
 0x423   : > { %v13829_v4 = vpack.c.bf16 %v10499_v45, %v10497_v61  ;;  %9975 = vmatprep.subr.bf16.mxu0 %v5221_v57  ;;  %v10533_v21 = vadd.f32 %v4980_v41, %v13802_v52 }
 0x424   : > { %v13832_v18 = vpack.c.bf16 %v10500_v26, %v10498_v44  ;;  %9976 = vmatpush3.bf16.msra.mxu0 %v5221_v57  ;;  %v4982_v44 = vpop.f32.mrb[105].mxu1 }
 0x425   : > { %16197 = vst [vmem:[#allocation106_spill] sm:$0xff] %v13829_v4  ;;  %v10534_v27 = vadd.f32 %v4982_v44, %v13810_v33  ;;  %v4984_v54 = vpop.f32.mrb[106].mxu1 }
 0x426   : > { %16198 = vst [vmem:[#allocation107_spill] sm:$0xff] %v13832_v18  ;;  %v4674_v37 = vpop.f32.mrb[136].mxu0  ;;  %v10535_v36 = vadd.f32 %v4984_v54, %v13802_v52  ;;  %v4986_v57 = vpop.f32.mrb[107].mxu1 }
 0x427   : > { %v4676_v8 = vpop.f32.mrb[137].mxu0  ;;  %v10501_v43 = vadd.f32 %v4674_v37, %v13602_v11  ;;  %v10536_v37 = vadd.f32 %v4986_v57, %v13810_v33 }
 0x428   : > { %v4678_v34 = vpop.f32.mrb[138].mxu0  ;;  %v10502_v26 = vadd.f32 %v4676_v8, %v13610_v49 }
 0x429   : > { %v10503_v61 = vadd.f32 %v4678_v34, %v13602_v11  ;;  %v4680_v45 = vpop.f32.mrb[139].mxu0  ;;  %v5225_v34 = vpack.c.bf16 %v10535_v36, %v10533_v21  ;;  %v13849_v41 = vpack.c.bf16 %v10536_v37, %v10534_v27 }
 0x42a   : > { %v10504_v38 = vadd.f32 %v4680_v45, %v13610_v49  ;;  %v4990_v45 = vpop.f32.mrb[108].mxu1 }
 0x42b   : > { %v13843_v48 = vpack.c.bf16 %v10503_v61, %v10501_v43  ;;  %9977 = vmatprep.subr.bf16.mxu0 %v5225_v34  ;;  %v10537_v54 = vadd.f32 %v4990_v45, %v13802_v52 }
 0x42c   : > { %v13846_v18 = vpack.c.bf16 %v10504_v38, %v10502_v26  ;;  %9978 = vmatpush3.bf16.msra.mxu0 %v5225_v34  ;;  %v4992_v26 = vpop.f32.mrb[109].mxu1 }
 0x42d   : > { %16199 = vst [vmem:[#allocation108_spill] sm:$0xff] %v13843_v48  ;;  %v10538_v27 = vadd.f32 %v4992_v26, %v13810_v33  ;;  %v4994_v36 = vpop.f32.mrb[110].mxu1 }
 0x42e   : > { %16200 = vst [vmem:[#allocation109_spill] sm:$0xff] %v13846_v18  ;;  %v4684_v4 = vpop.f32.mrb[140].mxu0  ;;  %v10539_v37 = vadd.f32 %v4994_v36, %v13802_v52  ;;  %v4996_v34 = vpop.f32.mrb[111].mxu1 }
 0x42f   : > { %v4686_v30 = vpop.f32.mrb[141].mxu0  ;;  %v10505_v44 = vadd.f32 %v4684_v4, %v13602_v11  ;;  %v10540_v4 = vadd.f32 %v4996_v34, %v13810_v33 }
 0x430   : > { %v4688_v8 = vpop.f32.mrb[142].mxu0  ;;  %v10506_v38 = vadd.f32 %v4686_v30, %v13610_v49 }
 0x431   : > { %v10507_v43 = vadd.f32 %v4688_v8, %v13602_v11  ;;  %v4690_v61 = vpop.f32.mrb[143].mxu0  ;;  %v5229_v8 = vpack.c.bf16 %v10539_v37, %v10537_v54  ;;  %v13863_v45 = vpack.c.bf16 %v10540_v4, %v10538_v27 }
 0x432   : > { %v10508_v21 = vadd.f32 %v4690_v61, %v13610_v49  ;;  %v5000_v61 = vpop.f32.mrb[112].mxu1 }
 0x433   : > { %v13857_v57 = vpack.c.bf16 %v10507_v43, %v10505_v44  ;;  %16203 = vst [vmem:[#allocation112_spill] sm:$0xff] %v13863_v45  ;;  %9979 = vmatprep.subr.bf16.mxu0 %v5229_v8  ;;  %v10541_v36 = vadd.f32 %v5000_v61, %v13802_v52 }
 0x434   : > { %v13860_v18 = vpack.c.bf16 %v10508_v21, %v10506_v38  ;;  %9980 = vmatpush3.bf16.msra.mxu0 %v5229_v8  ;;  %v5002_v38 = vpop.f32.mrb[113].mxu1 }
 0x435   : > { %16201 = vst [vmem:[#allocation110_spill] sm:$0xff] %v13857_v57  ;;  %v10542_v27 = vadd.f32 %v5002_v38, %v13810_v33  ;;  %v5004_v37 = vpop.f32.mrb[114].mxu1 }
 0x436   : > { %16202 = vst [vmem:[#allocation111_spill] sm:$0xff] %v13860_v18  ;;  %v4694_v48 = vpop.f32.mrb[144].mxu0  ;;  %v10543_v4 = vadd.f32 %v5004_v37, %v13802_v52  ;;  %v5006_v8 = vpop.f32.mrb[115].mxu1 }
 0x437   : > { %v4696_v46 = vpop.f32.mrb[145].mxu0  ;;  %v10509_v26 = vadd.f32 %v4694_v48, %v13602_v11  ;;  %v10544_v48 = vadd.f32 %v5006_v8, %v13810_v33 }
 0x438   : > { %v4698_v30 = vpop.f32.mrb[146].mxu0  ;;  %v10510_v21 = vadd.f32 %v4696_v46, %v13610_v49 }
 0x439   : > { %v10511_v44 = vadd.f32 %v4698_v30, %v13602_v11  ;;  %v4700_v43 = vpop.f32.mrb[147].mxu0  ;;  %v5233_v30 = vpack.c.bf16 %v10543_v4, %v10541_v36  ;;  %v13877_v61 = vpack.c.bf16 %v10544_v48, %v10542_v27 }
 0x43a   : > { %v10512_v54 = vadd.f32 %v4700_v43, %v13610_v49  ;;  %v5010_v43 = vpop.f32.mrb[116].mxu1 }
 0x43b   : > { %v13871_v34 = vpack.c.bf16 %v10511_v44, %v10509_v26  ;;  %16206 = vst [vmem:[#allocation115_spill] sm:$0xff] %v13877_v61  ;;  %9981 = vmatprep.subr.bf16.mxu0 %v5233_v30  ;;  %v10545_v37 = vadd.f32 %v5010_v43, %v13802_v52 }
 0x43c   : > { %v13874_v18 = vpack.c.bf16 %v10512_v54, %v10510_v21  ;;  %9982 = vmatpush3.bf16.msra.mxu0 %v5233_v30  ;;  %v5012_v21 = vpop.f32.mrb[117].mxu1 }
 0x43d   : > { %16204 = vst [vmem:[#allocation113_spill] sm:$0xff] %v13871_v34  ;;  %v10546_v27 = vadd.f32 %v5012_v21, %v13810_v33  ;;  %v5014_v4 = vpop.f32.mrb[118].mxu1 }
 0x43e   : > { %16205 = vst [vmem:[#allocation114_spill] sm:$0xff] %v13874_v18  ;;  %v4704_v57 = vpop.f32.mrb[148].mxu0  ;;  %v10547_v48 = vadd.f32 %v5014_v4, %v13802_v52  ;;  %v5016_v30 = vpop.f32.mrb[119].mxu1 }
 0x43f   : > { %v4706_v22 = vpop.f32.mrb[149].mxu0  ;;  %v10513_v38 = vadd.f32 %v4704_v57, %v13602_v11  ;;  %v10548_v57 = vadd.f32 %v5016_v30, %v13810_v33 }
 0x440   : > { %v4708_v46 = vpop.f32.mrb[150].mxu0  ;;  %v10514_v54 = vadd.f32 %v4706_v22, %v13610_v49 }
 0x441   : > { %v10515_v26 = vadd.f32 %v4708_v46, %v13602_v11  ;;  %v4710_v44 = vpop.f32.mrb[151].mxu0  ;;  %v5237_v46 = vpack.c.bf16 %v10547_v48, %v10545_v37  ;;  %v13891_v43 = vpack.c.bf16 %v10548_v57, %v10546_v27 }
 0x442   : > { %v10516_v36 = vadd.f32 %v4710_v44, %v13610_v49  ;;  %v5020_v44 = vpop.f32.mrb[120].mxu1 }
 0x443   : > { %v13885_v8 = vpack.c.bf16 %v10515_v26, %v10513_v38  ;;  %16209 = vst [vmem:[#allocation118_spill] sm:$0xff] %v13891_v43  ;;  %9983 = vmatprep.subr.bf16.mxu0 %v5237_v46  ;;  %v10549_v4 = vadd.f32 %v5020_v44, %v13802_v52 }
 0x444   : > { %v13888_v18 = vpack.c.bf16 %v10516_v36, %v10514_v54  ;;  %9984 = vmatpush3.bf16.msra.mxu0 %v5237_v46  ;;  %v5022_v54 = vpop.f32.mrb[121].mxu1 }
 0x445   : > { %16207 = vst [vmem:[#allocation116_spill] sm:$0xff] %v13885_v8  ;;  %v10550_v27 = vadd.f32 %v5022_v54, %v13810_v33  ;;  %v5024_v48 = vpop.f32.mrb[122].mxu1 }
 0x446   : > { %16208 = vst [vmem:[#allocation117_spill] sm:$0xff] %v13888_v18  ;;  %v4714_v34 = vpop.f32.mrb[152].mxu0  ;;  %v10551_v57 = vadd.f32 %v5024_v48, %v13802_v52  ;;  %v5026_v46 = vpop.f32.mrb[123].mxu1 }
 0x447   : > { %v4716_v17 = vpop.f32.mrb[153].mxu0  ;;  %v10517_v21 = vadd.f32 %v4714_v34, %v13602_v11  ;;  %v10552_v34 = vadd.f32 %v5026_v46, %v13810_v33 }
 0x448   : > { %v4718_v22 = vpop.f32.mrb[154].mxu0  ;;  %v10518_v36 = vadd.f32 %v4716_v17, %v13610_v49 }
 0x449   : > { %v10519_v38 = vadd.f32 %v4718_v22, %v13602_v11  ;;  %v4720_v26 = vpop.f32.mrb[155].mxu0  ;;  %v5241_v22 = vpack.c.bf16 %v10551_v57, %v10549_v4  ;;  %v13905_v44 = vpack.c.bf16 %v10552_v34, %v10550_v27 }
 0x44a   : > { %v10520_v37 = vadd.f32 %v4720_v26, %v13610_v49  ;;  %v5030_v26 = vpop.f32.mrb[124].mxu1 }
 0x44b   : > { %v13899_v30 = vpack.c.bf16 %v10519_v38, %v10517_v21  ;;  %16212 = vst [vmem:[#allocation121_spill] sm:$0xff] %v13905_v44  ;;  %9985 = vmatprep.subr.bf16.mxu0 %v5241_v22  ;;  %v10553_v48 = vadd.f32 %v5030_v26, %v13802_v52 }
 0x44c   : > { %v13902_v18 = vpack.c.bf16 %v10520_v37, %v10518_v36  ;;  %9986 = vmatpush3.bf16.msra.mxu0 %v5241_v22  ;;  %v13910_v36 = vpop.f32.mrb[125].mxu1 }
 0x44d   : > { %16210 = vst [vmem:[#allocation119_spill] sm:$0xff] %v13899_v30  ;;  %v5034_v27 = vpop.f32.mrb[126].mxu1 }
 0x44e   : > { %16211 = vst [vmem:[#allocation120_spill] sm:$0xff] %v13902_v18  ;;  %v4724_v8 = vpop.f32.mrb[156].mxu0  ;;  %v10555_v46 = vadd.f32 %v5034_v27, %v13802_v52 }
 0x44f   : > { %v4726_v13 = vpop.f32.mrb[157].mxu0  ;;  %v10521_v54 = vadd.f32 %v4724_v8, %v13602_v11 }
 0x450   : > { %v4728_v17 = vpop.f32.mrb[158].mxu0  ;;  %v10522_v37 = vadd.f32 %v4726_v13, %v13610_v49  ;;  %v5245_v22 = vpack.c.bf16 %v10555_v46, %v10553_v48 }
 0x451   : > { %v10523_v21 = vadd.f32 %v4728_v17, %v13602_v11  ;;  %v4730_v38 = vpop.f32.mrb[159].mxu0 }
 0x452   : > { %v10524_v4 = vadd.f32 %v4730_v38, %v13610_v49  ;;  %9987 = vmatprep.subr.bf16.mxu0 %v5245_v22 }
 0x453   : > { %v13914_v57 = vpack.c.bf16 %v10523_v21, %v10521_v54  ;;  %9988 = vmatpush3.bf16.msra.mxu0 %v5245_v22 }
 0x454   : > { %v13917_v34 = vpack.c.bf16 %v10524_v4, %v10522_v37  ;;  %9997 = vmatprep.subr.bf16.mxu0 %v13636_v23 }
 0x455   : > { %16213 = vst [vmem:[#allocation122_spill] sm:$0xff] %v13914_v57 }
 0x456   : > { %16214 = vst [vmem:[#allocation123_spill] sm:$0xff] %v13917_v34  ;;  %v9871_v8 = vpop.f32.mrb[160].mxu0 }
 0x457   : > { %5348 = vmax.xlane.f32.xlu1 %v9871_v8  ;;  %v5313_v11 = vpop.f32.mrb[161].mxu0 }
 0x458   : > { %5344 = vmax.xlane.f32.xlu0 %v5313_v11  ;;  %v9872_v17 = vpop.f32.mrb[162].mxu0 }
 0x459   : > { %v5316_v26 = vpop.f32.mrb[163].mxu0 }
 0x45b   : > { %5350 = vmax.xlane.f32.xlu1 %v9872_v17 }
 0x45c   : > { %5346 = vmax.xlane.f32.xlu0 %v5316_v26 }
 0x45e   : > { %v9875_v49 = vpop.f32.mrb[164].mxu0 }
 0x45f   : > { %v5329_v13 = vpop.f32.mrb[165].mxu0 }
 0x460   : > { %5352 = vmax.xlane.f32.xlu0 %v5329_v13  ;;  %v9876_v54 = vpop.f32.mrb[166].mxu0 }
 0x461   : > { %v5332_v21 = vpop.f32.mrb[167].mxu0 }
 0x462   : > { %5354 = vmax.xlane.f32.xlu1 %v5332_v21 }
 0x464   : > { %5356 = vmax.xlane.f32.xlu0 %v9875_v49 }
 0x466   : > { %5358 = vmax.xlane.f32.xlu1 %v9876_v54 }
 0x496   : > { %v13920_v38 = vpop.f32.mrb[168].mxu0 }
 0x497   : > { %v13922_v48 = vpop.f32.mrb[169].mxu0 }
 0x498   : > { %5558 = vmax.xlane.f32.xlu0 %v13922_v48  ;;  %v13925_v37 = vpop.f32.mrb[170].mxu0 }
 0x499   : > { %v13927_v4 = vpop.f32.mrb[171].mxu0 }
 0x49a   : > { %5560 = vmax.xlane.f32.xlu1 %v13927_v4 }
 0x49c   : > { %5562 = vmax.xlane.f32.xlu0 %v13920_v38 }
 0x49e   : > { %5564 = vmax.xlane.f32.xlu1 %v13925_v37  ;;  %v13932_v27 = vpop.f32.mrb[172].mxu0 }
 0x49f   : > { %v13934_v46 = vpop.f32.mrb[173].mxu0 }
 0x4a0   : > { %v13936_v22 = vpop.f32.mrb[174].mxu0 }
 0x4a1   : > { %v13938_v34 = vpop.f32.mrb[175].mxu0 }
 0x4e4   : > { %v5349_v18 = vpop.xlane.xlu1 %5348 }
 0x4e5   : > { %v5362_v57 = vsub.f32 %v9871_v8, %v5349_v18  ;;  %v5345_v30 = vpop.xlane.xlu0 %5344 }
 0x4e6   : > { %v5360_v53 = vsub.f32 %v5313_v11, %v5345_v30 }
 0x4e7   : > { %v5372_v15 = vmul.f32 1.442695, %v5362_v57 }
 0x4e8   : > { %v5368_v31 = vmul.f32 1.442695, %v5360_v53  ;;  %v5351_v19 = vpop.xlane.xlu1 %5350 }
 0x4e9   : > { %11509 = vpow2.f32 %v5372_v15  ;;  %v5363_v62 = vsub.f32 %v9872_v17, %v5351_v19  ;;  %v5347_v9 = vpop.xlane.xlu0 %5346 }
 0x4ea   : > { %v5361_v0 = vsub.f32 %v5316_v26, %v5347_v9  ;;  %11511 = vpow2.f32 %v5368_v31 }
 0x4eb   : > { %v5374_v55 = vmul.f32 1.442695, %v5363_v62 }
 0x4ec   : > { %v5370_v29 = vmul.f32 1.442695, %v5361_v0 }
 0x4ed   : > { %11513 = vpow2.f32 %v5374_v55  ;;  %v5353_v23 = vpop.xlane.xlu0 %5352 }
 0x4ee   : > { %11515 = vpow2.f32 %v5370_v29  ;;  %v5364_v44 = vsub.f32 %v5329_v13, %v5353_v23 }
 0x4ef   : > { %v5355_v39 = vpop.xlane.xlu1 %5354 }
 0x4f0   : > { %v5365_v18 = vsub.f32 %v5332_v21, %v5355_v39  ;;  %v5376_v53 = vmul.f32 1.442695, %v5364_v44 }
 0x4f1   : > { %v5357_v43 = vpop.xlane.xlu0 %5356 }
 0x4f2   : > { %v5366_v30 = vsub.f32 %v9875_v49, %v5357_v43  ;;  %v5378_v62 = vmul.f32 1.442695, %v5365_v18  ;;  %11517 = vpow2.f32 %v5376_v53 }
 0x4f3   : > { %v13940_v61 = vpop.eup %11509  ;;  %v5359_v19 = vpop.xlane.xlu1 %5358 }
 0x4f4   : > { %5388 = vadd.xlane.f32.xlu0 %v13940_v61  ;;  %v13943_v15 = vpop.eup %11511  ;;  %v5380_v0 = vmul.f32 1.442695, %v5366_v30  ;;  %v5367_v55 = vsub.f32 %v9876_v54, %v5359_v19  ;;  %11519 = vpow2.f32 %v5378_v62  ;;  %v5036_v62 = vpop.f32.mrb[127].mxu1 }
 0x4f6   : > { %11521 = vpow2.f32 %v5380_v0  ;;  %v5382_v39 = vmul.f32 1.442695, %v5367_v55  ;;  %v10556_v0 = vadd.f32 %v5036_v62, %v13810_v33 }
 0x4f7   : > { %v13945_v9 = vpop.eup %11513 }
 0x4f8   : > { %5384 = vadd.xlane.f32.xlu0 %v13943_v15  ;;  %5390 = vadd.xlane.f32.xlu1 %v13945_v9  ;;  %v13949_v23 = vpop.eup %11515  ;;  %11523 = vpow2.f32 %v5382_v39  ;;  %v5040_v39 = vpop.f32.mrb[128].mxu1 }
 0x4fc   : > { %5386 = vadd.xlane.f32.xlu1 %v13949_v23  ;;  %5566 = vmax.xlane.f32.xlu0 %v13934_v46  ;;  %v13955_v29 = vpop.eup %11517 }
 0x4fe   : > { %v13959_v31 = vpop.eup %11519 }
 0x500   : > { %5570 = vmax.xlane.f32.xlu0 %v13932_v27  ;;  %5568 = vmax.xlane.f32.xlu1 %v13938_v34  ;;  %v13961_v43 = vpop.eup %11521 }
 0x502   : > { %v13965_v44 = vpop.eup %11523 }
 0x504   : > { %5392 = vadd.xlane.f32.xlu0 %v13955_v29  ;;  %5572 = vmax.xlane.f32.xlu1 %v13936_v22 }
 0x508   : > { %5396 = vadd.xlane.f32.xlu0 %v13961_v43  ;;  %5394 = vadd.xlane.f32.xlu1 %v13959_v31 }
 0x50c   : > { %5398 = vadd.xlane.f32.xlu1 %v13965_v44 }
 0x525   : > { %v5559_v57 = vpop.xlane.xlu0 %5558 }
 0x526   : > { %v5574_v8 = vsub.f32 %v13922_v48, %v5559_v57  ;;  %v10557_v57 = vadd.f32 %v5040_v39, %v13802_v52 }
 0x527   : > { %v5561_v11 = vpop.xlane.xlu1 %5560 }
 0x528   : > { %v5582_v17 = vmul.f32 1.442695, %v5574_v8  ;;  %v5575_v26 = vsub.f32 %v13927_v4, %v5561_v11  ;;  %v5042_v8 = vpop.f32.mrb[129].mxu1 }
 0x529   : > { %v5563_v49 = vpop.xlane.xlu0 %5562  ;;  %v10558_v11 = vadd.f32 %v5042_v8, %v13810_v33 }
 0x52a   : > { %11525 = vpow2.f32 %v5582_v17  ;;  %v5584_v13 = vmul.f32 1.442695, %v5575_v26  ;;  %v5576_v54 = vsub.f32 %v13920_v38, %v5563_v49  ;;  %v5044_v17 = vpop.f32.mrb[130].mxu1 }
 0x52b   : > { %v5565_v21 = vpop.xlane.xlu1 %5564  ;;  %v10559_v26 = vadd.f32 %v5044_v17, %v13802_v52  ;;  %v5046_v49 = vpop.f32.mrb[131].mxu1 }
 0x52c   : > { %11527 = vpow2.f32 %v5584_v13  ;;  %v5586_v18 = vmul.f32 1.442695, %v5576_v54  ;;  %v5577_v53 = vsub.f32 %v13925_v37, %v5565_v21  ;;  %v10554_v37 = vadd.f32 %v13910_v36, %v13810_v33  ;;  %v5050_v21 = vpop.f32.mrb[132].mxu1 }
 0x52d   : > { %v10560_v13 = vadd.f32 %v5046_v49, %v13810_v33  ;;  %v13993_v54 = vpack.c.bf16 %v10559_v26, %v10557_v57 }
 0x52e   : > { %11529 = vpow2.f32 %v5586_v18  ;;  %v5588_v30 = vmul.f32 1.442695, %v5577_v53  ;;  %v13987_v55 = vpack.c.bf16 %v10556_v0, %v10554_v37  ;;  %v10561_v18 = vadd.f32 %v5050_v21, %v13802_v52  ;;  %v5052_v53 = vpop.f32.mrb[133].mxu1 }
 0x52f   : > { %16216 = vst [vmem:[#allocation125_spill] sm:$0xff] %v13993_v54  ;;  %v13995_v36 = vpack.c.bf16 %v10560_v13, %v10558_v11  ;;  %v5054_v37 = vpop.f32.mrb[134].mxu1 }
 0x530   : > { %11531 = vpow2.f32 %v5588_v30  ;;  %16215 = vst [vmem:[#allocation124_spill] sm:$0xff] %v13987_v55  ;;  %v10562_v30 = vadd.f32 %v5052_v53, %v13810_v33  ;;  %v10563_v62 = vadd.f32 %v5054_v37, %v13802_v52  ;;  %v5056_v0 = vpop.f32.mrb[135].mxu1 }
 0x531   : > { %16217 = vst [vmem:[#allocation126_spill] sm:$0xff] %v13995_v36  ;;  %v10564_v39 = vadd.f32 %v5056_v0, %v13810_v33  ;;  %v5060_v26 = vpop.f32.mrb[136].mxu1 }
 0x532   : > { %v14001_v8 = vpack.c.bf16 %v10563_v62, %v10561_v18  ;;  %v10565_v11 = vadd.f32 %v5060_v26, %v13802_v52  ;;  %v5062_v49 = vpop.f32.mrb[137].mxu1 }
 0x533   : > { %v14003_v17 = vpack.c.bf16 %v10564_v39, %v10562_v30  ;;  %v5064_v13 = vpop.f32.mrb[138].mxu1  ;;  %v10566_v53 = vadd.f32 %v5062_v49, %v13810_v33 }
 0x534   : > { %v13972_v19 = vpop.eup %11525  ;;  %16218 = vst [vmem:[#allocation127_spill] sm:$0xff] %v14001_v8  ;;  %v10567_v54 = vadd.f32 %v5064_v13, %v13802_v52  ;;  %v5066_v37 = vpop.f32.mrb[139].mxu1 }
 0x535   : > { %5598 = vadd.xlane.f32.xlu0 %v13972_v19  ;;  %16219 = vst [vmem:[#allocation128_spill] sm:$0xff] %v14003_v17  ;;  %v10568_v18 = vadd.f32 %v5066_v37, %v13810_v33  ;;  %v5070_v17 = vpop.f32.mrb[140].mxu1 }
 0x536   : > { %v13975_v48 = vpop.eup %11527  ;;  %v14008_v0 = vpack.c.bf16 %v10567_v54, %v10565_v11  ;;  %v10569_v49 = vadd.f32 %v5070_v17, %v13802_v52  ;;  %v5072_v8 = vpop.f32.mrb[141].mxu1 }
 0x537   : > { %5600 = vadd.xlane.f32.xlu1 %v13975_v48  ;;  %v14011_v39 = vpack.c.bf16 %v10568_v18, %v10566_v53  ;;  %v10570_v54 = vadd.f32 %v5072_v8, %v13810_v33 }
 0x538   : > { %v13978_v4 = vpop.eup %11529  ;;  %16220 = vst [vmem:[#allocation129_spill] sm:$0xff] %v14008_v0 }
 0x539   : > { %5602 = vadd.xlane.f32.xlu0 %v13978_v4  ;;  %16221 = vst [vmem:[#allocation130_spill] sm:$0xff] %v14011_v39 }
 0x53a   : > { %v13981_v38 = vpop.eup %11531 }
 0x53b   : > { %5604 = vadd.xlane.f32.xlu1 %v13981_v38 }
 0x581   : > { %v5389_v57 = vpop.xlane.xlu0 %5388 }
 0x585   : > { %v5385_v21 = vpop.xlane.xlu0 %5384  ;;  %v5391_v36 = vpop.xlane.xlu1 %5390 }
 0x586   : > { %11533 = vrcp.f32 %v5385_v21  ;;  %v5074_v21 = vpop.f32.mrb[142].mxu1 }
 0x587   : > { %11535 = vrcp.f32 %v5391_v36  ;;  %v10571_v11 = vadd.f32 %v5074_v21, %v13802_v52  ;;  %v5076_v37 = vpop.f32.mrb[143].mxu1 }
 0x588   : > { %11537 = vrcp.f32 %v5389_v57 }
 0x589   : > { %v5387_v30 = vpop.xlane.xlu1 %5386  ;;  %v5567_v62 = vpop.xlane.xlu0 %5566  ;;  %v14019_v18 = vpack.c.bf16 %v10571_v11, %v10569_v49 }
 0x58a   : > { %11539 = vrcp.f32 %v5387_v30  ;;  %v5578_v26 = vsub.f32 %v13934_v46, %v5567_v62  ;;  %v10572_v46 = vadd.f32 %v5076_v37, %v13810_v33 }
 0x58c   : > { %v5590_v13 = vmul.f32 1.442695, %v5578_v26  ;;  %v14022_v45 = vpack.c.bf16 %v10572_v46, %v10570_v54 }
 0x58d   : > { %v5571_v55 = vpop.xlane.xlu0 %5570  ;;  %v5569_v36 = vpop.xlane.xlu1 %5568 }
 0x58e   : > { %11541 = vpow2.f32 %v5590_v13  ;;  %v5580_v57 = vsub.f32 %v13932_v27, %v5571_v55  ;;  %v5579_v53 = vsub.f32 %v13938_v34, %v5569_v36  ;;  %v5080_v13 = vpop.f32.mrb[144].mxu1 }
 0x58f   : > { %v10573_v34 = vadd.f32 %v5080_v13, %v13802_v52  ;;  %v5082_v55 = vpop.f32.mrb[145].mxu1 }
 0x590   : > { %v11534_v17 = vpop.eup %11533  ;;  %v5594_v30 = vmul.f32 1.442695, %v5580_v57  ;;  %v5592_v62 = vmul.f32 1.442695, %v5579_v53  ;;  %v5084_v57 = vpop.f32.mrb[146].mxu1 }
 0x591   : > { %v11536_v26 = vpop.eup %11535  ;;  %v5393_v39 = vpop.xlane.xlu0 %5392  ;;  %v5408_v11 = vmul.f32 %v11534_v17, %v13943_v15 }
 0x592   : > { %v5573_v0 = vpop.xlane.xlu1 %5572  ;;  %11543 = vpow2.f32 %v5594_v30  ;;  %v11538_v27 = vpop.eup %11537  ;;  %v5411_v21 = vmul.f32 %v11536_v26, %v13945_v9 }
 0x593   : > { %v5581_v8 = vsub.f32 %v13936_v22, %v5573_v0  ;;  %11545 = vpow2.f32 %v5592_v62  ;;  %v10574_v22 = vadd.f32 %v5082_v55, %v13810_v33  ;;  %v10575_v0 = vadd.f32 %v5084_v57, %v13802_v52  ;;  %v5086_v30 = vpop.f32.mrb[147].mxu1 }
 0x594   : > { %v11540_v49 = vpop.eup %11539  ;;  %11547 = vrcp.f32 %v5393_v39  ;;  %v5410_v46 = vmul.f32 %v11538_v27, %v13940_v61  ;;  %v10576_v15 = vadd.f32 %v5086_v30, %v13810_v33  ;;  %v5090_v17 = vpop.f32.mrb[148].mxu1 }
 0x595   : > { %v5596_v36 = vmul.f32 1.442695, %v5581_v8  ;;  %v5397_v53 = vpop.xlane.xlu0 %5396  ;;  %v5409_v37 = vmul.f32 %v11540_v49, %v13949_v23  ;;  %v14032_v9 = vpack.c.bf16 %v10575_v0, %v10573_v34  ;;  %v10577_v23 = vadd.f32 %v5090_v17, %v13802_v52  ;;  %v5092_v8 = vpop.f32.mrb[149].mxu1 }
 0x596   : > { %v5395_v54 = vpop.xlane.xlu1 %5394  ;;  %v5417_v26 = vpack.c.bf16 %v5411_v21, %v5410_v46  ;;  %v14039_v13 = vpack.c.bf16 %v10576_v15, %v10574_v22  ;;  %v10578_v27 = vadd.f32 %v5092_v8, %v13810_v33  ;;  %v5094_v34 = vpop.f32.mrb[150].mxu1 }
 0x597   : > { %11549 = vpow2.f32 %v5596_v36  ;;  %v5416_v62 = vpack.c.bf16 %v5409_v37, %v5408_v11  ;;  %v10579_v55 = vadd.f32 %v5094_v34, %v13802_v52  ;;  %v5096_v49 = vpop.f32.mrb[151].mxu1 }
 0x598   : > { %11551 = vrcp.f32 %v5397_v53  ;;  %v14035_v39 = vpop.eup %11541  ;;  %v10580_v21 = vadd.f32 %v5096_v49, %v13810_v33  ;;  %v5100_v36 = vpop.f32.mrb[152].mxu1 }
 0x599   : > { %11553 = vrcp.f32 %v5395_v54  ;;  %9893 = vmatprep.mubr.bf16.mxu1 %v5416_v62  ;;  %5606 = vadd.xlane.f32.xlu0 %v14035_v39  ;;  %v14048_v57 = vpack.c.bf16 %v10579_v55, %v10577_v23  ;;  %v10581_v53 = vadd.f32 %v5100_v36, %v13802_v52  ;;  %v5102_v54 = vpop.f32.mrb[153].mxu1 }
 0x59a   : > { %v5399_v61 = vpop.xlane.xlu1 %5398  ;;  %9894 = vmatmul.mubr.bf16.vlgmr.msra.gmra.mrb[160].mxu1 %v5417_v26  ;;  %v14054_v22 = vpack.c.bf16 %v10580_v21, %v10578_v27  ;;  %v5104_v0 = vpop.f32.mrb[154].mxu1 }
 0x59b   : > { %11555 = vrcp.f32 %v5399_v61  ;;  %9926 = vmatpush3.bf16.msra.mxu1 %v13634_v24  ;;  %v10582_v24 = vadd.f32 %v5102_v54, %v13810_v33  ;;  %v10583_v46 = vadd.f32 %v5104_v0, %v13802_v52  ;;  %v5106_v30 = vpop.f32.mrb[155].mxu1 }
 0x59c   : > { %v14045_v11 = vpop.eup %11543  ;;  %9927 = vmatprep.subr.bf16.mxu1 %v13656_v2  ;;  %v10584_v15 = vadd.f32 %v5106_v30, %v13810_v33 }
 0x59d   : > { %v14051_v37 = vpop.eup %11545  ;;  %5610 = vadd.xlane.f32.xlu0 %v14045_v11  ;;  %v14064_v26 = vpack.c.bf16 %v10583_v46, %v10581_v53 }
 0x59e   : > { %5608 = vadd.xlane.f32.xlu1 %v14051_v37  ;;  %v11548_v62 = vpop.eup %11547  ;;  %v14066_v8 = vpack.c.bf16 %v10584_v15, %v10582_v24 }
 0x59f   : > { %9928 = vmatpush3.bf16.msra.mxu1 %v13656_v2  ;;  %v5412_v27 = vmul.f32 %v11548_v62, %v13955_v29 }
 0x5a0   : > { %9929 = vmatprep.subr.bf16.mxu1 %v13678_v16 }
 0x5a1   : > { %v14061_v17 = vpop.eup %11549 }
 0x5a2   : > { %v11552_v23 = vpop.eup %11551  ;;  %5612 = vadd.xlane.f32.xlu1 %v14061_v17 }
 0x5a3   : > { %v11554_v61 = vpop.eup %11553  ;;  %9930 = vmatpush3.bf16.msra.mxu1 %v13678_v16  ;;  %v5414_v49 = vmul.f32 %v11552_v23, %v13961_v43  ;;  %v5110_v16 = vpop.f32.mrb[156].mxu1 }
 0x5a4   : > { %v5413_v2 = vmul.f32 %v11554_v61, %v13959_v31  ;;  %9931 = vmatprep.subr.bf16.mxu1 %v13700_v59  ;;  %v10585_v29 = vadd.f32 %v5110_v16, %v13802_v52  ;;  %v5112_v31 = vpop.f32.mrb[157].mxu1 }
 0x5a5   : > { %v11556_v34 = vpop.eup %11555  ;;  %v10586_v53 = vadd.f32 %v5112_v31, %v13810_v33  ;;  %v5114_v43 = vpop.f32.mrb[158].mxu1 }
 0x5a6   : > { %v5418_v55 = vpack.c.bf16 %v5413_v2, %v5412_v27  ;;  %v5415_v21 = vmul.f32 %v11556_v34, %v13965_v44  ;;  %v10587_v44 = vadd.f32 %v5114_v43, %v13802_v52 }
 0x5a7   : > { %9932 = vmatpush3.bf16.msra.mxu1 %v13700_v59  ;;  %v5116_v59 = vpop.f32.mrb[159].mxu1 }
 0x5a8   : > { %9897 = vmatprep.mubr.bf16.mxu1 %v5418_v55  ;;  %v5419_v36 = vpack.c.bf16 %v5415_v21, %v5414_v49  ;;  %9933 = vmatprep.subr.bf16.mxu1 %v13722_v35  ;;  %v10588_v54 = vadd.f32 %v5116_v59, %v13810_v33  ;;  %v14085_v24 = vpack.c.bf16 %v10587_v44, %v10585_v29 }
 0x5a9   : > { %v16222_v49 = vpack.c.bf16 %v13475_v42, %v13469_v40  ;;  %v16223_v21 = vpack.c.bf16 %v13492_v28, %v13486_v14  ;;  %v16225_v40 = vpack.c.bf16 %v13531_v50, %v13523_v10  ;;  %v16226_v42 = vld [vmem:[#allocation112_spill] sm:$0xff]  ;;  %v16227_v14 = vld [vmem:[#allocation115_spill] sm:$0xff]  ;;  %v16228_v28 = vld [vmem:[#allocation118_spill] sm:$0xff] }
 0x5aa   : > { %9898 = vmatmul.mubr.bf16.gmra.mrb[164].mxu1 %v5419_v36  ;;  %v16231_v10 = vld [vmem:[#allocation22_spill] sm:$0xff] }
 0x5ab   : > { %9934 = vmatpush3.bf16.msra.mxu1 %v13722_v35  ;;  %v14087_v35 = vpack.c.bf16 %v10588_v54, %v10586_v53 }
 0x5ac   : > { %9935 = vmatprep.subr.bf16.mxu1 %v13744_v58 }
 0x5af   : > { %9936 = vmatpush3.bf16.msra.mxu1 %v13744_v58 }
 0x5b0   : > { %9937 = vmatprep.subr.bf16.mxu1 %v13766_v56 }
 0x5b3   : > { %9938 = vmatpush3.bf16.msra.mxu1 %v13766_v56 }
 0x5b4   : > { %9939 = vmatprep.subr.bf16.mxu1 %v13788_v60 }
 0x5b7   : > { %9940 = vmatpush3.bf16.msra.mxu1 %v13788_v60 }
 0x5b8   : > { %9949 = vmatprep.subr.bf16.mxu1 %v13631_v63 }
 0x5c2   : > { %v5599_v58 = vpop.xlane.xlu0 %5598 }
 0x5c3   : > { %11557 = vrcp.f32 %v5599_v58 }
 0x5c4   : > { %v5601_v52 = vpop.xlane.xlu1 %5600 }
 0x5c5   : > { %11559 = vrcp.f32 %v5601_v52 }
 0x5c6   : > { %v5603_v0 = vpop.xlane.xlu0 %5602 }
 0x5c7   : > { %11561 = vrcp.f32 %v5603_v0 }
 0x5c8   : > { %v5605_v46 = vpop.xlane.xlu1 %5604 }
 0x5c9   : > { %11563 = vrcp.f32 %v5605_v46 }
 0x5cd   : > { %v11558_v33 = vpop.eup %11557 }
 0x5ce   : > { %v5622_v62 = vmul.f32 %v11558_v33, %v13972_v19 }
 0x5cf   : > { %v11560_v30 = vpop.eup %11559 }
 0x5d0   : > { %v5623_v56 = vmul.f32 %v11560_v30, %v13975_v48 }
 0x5d1   : > { %v11562_v15 = vpop.eup %11561 }
 0x5d2   : > { %v5630_v23 = vpack.c.bf16 %v5623_v56, %v5622_v62  ;;  %v5624_v60 = vmul.f32 %v11562_v15, %v13978_v4 }
 0x5d3   : > { %v11564_v61 = vpop.eup %11563 }
 0x5d4   : > { %v5625_v27 = vmul.f32 %v11564_v61, %v13981_v38  ;;  %9941 = vmatprep.mubr.bf16.mxu1 %v5630_v23 }
 0x5d6   : > { %v5631_v2 = vpack.c.bf16 %v5625_v27, %v5624_v60 }
 0x5d8   : > { %9942 = vmatmul.mubr.bf16.vlgmr.msra.gmra.mrb[168].mxu1 %v5631_v2 }
 0x5d9   : > { %9950 = vmatpush3.bf16.xpose.msra.mxu1 %v13631_v63 }
 0x5da   : > { %9951 = vmatprep.subr.bf16.mxu1 %v13641_v7 }
 0x5e1   : > { %9952 = vmatpush3.bf16.xpose.msra.mxu1 %v13641_v7 }
 0x5e2   : > { %9953 = vmatprep.subr.bf16.mxu1 %v13653_v25 }
 0x5e9   : > { %9954 = vmatpush3.bf16.xpose.msra.mxu1 %v13653_v25 }
 0x5ea   : > { %9955 = vmatprep.subr.bf16.mxu1 %v13663_v5 }
 0x5f1   : > { %9956 = vmatpush3.bf16.xpose.msra.mxu1 %v13663_v5 }
 0x5f2   : > { %9957 = vmatprep.subr.bf16.mxu1 %v13675_v47 }
 0x5f9   : > { %9958 = vmatpush3.bf16.xpose.msra.mxu1 %v13675_v47 }
 0x5fa   : > { %9959 = vmatprep.subr.bf16.mxu1 %v13685_v1 }
 0x601   : > { %9960 = vmatpush3.bf16.xpose.msra.mxu1 %v13685_v1 }
 0x602   : > { %9961 = vmatprep.subr.bf16.mxu1 %v13697_v32 }
 0x609   : > { %9962 = vmatpush3.bf16.xpose.msra.mxu1 %v13697_v32 }
 0x60a   : > { %9963 = vmatprep.subr.bf16.mxu1 %v13707_v12 }
 0x611   : > { %9964 = vmatpush3.bf16.xpose.msra.mxu1 %v13707_v12 }
 0x612   : > { %10021 = vmatprep.subr.bf16.mxu1 %v13821_v51 }
 0x626   : > { %v5607_v63 = vpop.xlane.xlu0 %5606 }
 0x627   : > { %11565 = vrcp.f32 %v5607_v63 }
 0x62a   : > { %v5611_v7 = vpop.xlane.xlu0 %5610 }
 0x62b   : > { %v5609_v25 = vpop.xlane.xlu1 %5608 }
 0x62c   : > { %11567 = vrcp.f32 %v5609_v25 }
 0x62d   : > { %11569 = vrcp.f32 %v5611_v7 }
 0x62f   : > { %v5613_v5 = vpop.xlane.xlu1 %5612 }
 0x630   : > { %11571 = vrcp.f32 %v5613_v5 }
 0x631   : > { %v11566_v47 = vpop.eup %11565 }
 0x632   : > { %v5626_v19 = vmul.f32 %v11566_v47, %v14035_v39  ;;  %v16224_v39 = vpack.c.bf16 %v13509_v3, %v13501_v6  ;;  %v16229_v6 = vld [vmem:[#allocation121_spill] sm:$0xff]  ;;  %v16230_v3 = vld [vmem:[#allocation124_spill] sm:$0xff] }
 0x636   : > { %v11568_v1 = vpop.eup %11567 }
 0x637   : > { %v5627_v32 = vmul.f32 %v11568_v1, %v14051_v37  ;;  %v11570_v48 = vpop.eup %11569 }
 0x638   : > { %v5628_v12 = vmul.f32 %v11570_v48, %v14045_v11 }
 0x639   : > { %v5632_v4 = vpack.c.bf16 %v5627_v32, %v5626_v19 }
 0x63a   : > { %v11572_v38 = vpop.eup %11571 }
 0x63b   : > { %9945 = vmatprep.mubr.bf16.mxu1 %v5632_v4  ;;  %v5629_v34 = vmul.f32 %v11572_v38, %v14061_v17 }
 0x63d   : > { %v5633_v55 = vpack.c.bf16 %v5629_v34, %v5628_v12 }
 0x63f   : > { %9946 = vmatmul.mubr.bf16.gmra.mrb[172].mxu1 %v5633_v55 }
 0x640   : > { %9965 = vmatprep.mubr.bf16.mxu1 %v16222_v49 }
 0x647   : > { %9966 = vmatmul.mubr.bf16.vlgmr.msra.gmra.mrb[176].mxu1 %v16223_v21 }
 0x648   : > { %10022 = vmatpush3.bf16.msra.mxu1 %v13821_v51  ;;  %9969 = vmatprep.mubr.bf16.mxu1 %v16224_v39 }
 0x649   : > { %10023 = vmatprep.subr.bf16.mxu1 %v13835_v20 }
 0x64c   : > { %10024 = vmatpush3.bf16.msra.mxu1 %v13835_v20 }
 0x64d   : > { %10025 = vmatprep.subr.bf16.mxu1 %v13849_v41 }
 0x64f   : > { %9970 = vmatmul.mubr.bf16.gmra.mrb[180].mxu1 %v16225_v40 }
 0x650   : > { %10026 = vmatpush3.bf16.msra.mxu1 %v13849_v41 }
 0x651   : > { %10027 = vmatprep.subr.bf16.mxu1 %v16226_v42 }
 0x654   : > { %10028 = vmatpush3.bf16.msra.mxu1 %v16226_v42 }
 0x655   : > { %10029 = vmatprep.subr.bf16.mxu1 %v16227_v14 }
 0x658   : > { %10030 = vmatpush3.bf16.msra.mxu1 %v16227_v14 }
 0x659   : > { %10031 = vmatprep.subr.bf16.mxu1 %v16228_v28 }
 0x65c   : > { %10032 = vmatpush3.bf16.msra.mxu1 %v16228_v28 }
 0x65d   : > { %10033 = vmatprep.subr.bf16.mxu1 %v16229_v6 }
 0x660   : > { %10034 = vmatpush3.bf16.msra.mxu1 %v16229_v6 }
 0x661   : > { %10035 = vmatprep.subr.bf16.mxu1 %v16230_v3 }
 0x664   : > { %10036 = vmatpush3.bf16.msra.mxu1 %v16230_v3 }
 0x665   : > { %10045 = vmatprep.subr.bf16.mxu1 %v16231_v10 }
 0x66d   : > { %v9895_v50 = vpop.f32.mrb[160].mxu1 }
 0x66e   : > { %v5454_v51 = vpop.f32.mrb[161].mxu1 }
 0x66f   : > { %v9896_v20 = vpop.f32.mrb[162].mxu1 }
 0x670   : > { %v14145_v41 = vpack.c.bf16 %v9896_v20, %v9895_v50  ;;  %v5457_v11 = vpop.f32.mrb[163].mxu1 }
 0x671   : > { %v14147_v37 = vpack.c.bf16 %v5457_v11, %v5454_v51 }
 0x67d   : > { %v9899_v17 = vpop.f32.mrb[164].mxu1 }
 0x67e   : > { %v5470_v36 = vpop.f32.mrb[165].mxu1 }
 0x67f   : > { %v9900_v16 = vpop.f32.mrb[166].mxu1 }
 0x680   : > { %v14149_v29 = vpack.c.bf16 %v9900_v16, %v9899_v17  ;;  %v5473_v31 = vpop.f32.mrb[167].mxu1 }
 0x681   : > { %v14151_v53 = vpack.c.bf16 %v5473_v31, %v5470_v36 }
 0x6ab   : > { %v9943_v43 = vpop.f32.mrb[168].mxu1 }
 0x6ac   : > { %v5668_v44 = vpop.f32.mrb[169].mxu1 }
 0x6ad   : > { %v9944_v59 = vpop.f32.mrb[170].mxu1 }
 0x6ae   : > { %v14153_v54 = vpack.c.bf16 %v9944_v59, %v9943_v43  ;;  %v5671_v58 = vpop.f32.mrb[171].mxu1 }
 0x6af   : > { %v14155_v52 = vpack.c.bf16 %v5671_v58, %v5668_v44 }
 0x712   : > { %v9947_v0 = vpop.f32.mrb[172].mxu1 }
 0x713   : > { %v5684_v46 = vpop.f32.mrb[173].mxu1 }
 0x714   : > { %v9948_v33 = vpop.f32.mrb[174].mxu1 }
 0x715   : > { %v14157_v30 = vpack.c.bf16 %v9948_v33, %v9947_v0  ;;  %v5687_v62 = vpop.f32.mrb[175].mxu1 }
 0x716   : > { %v14159_v56 = vpack.c.bf16 %v5687_v62, %v5684_v46 }
 0x71a   : > { %v9967_v15 = vpop.f32.mrb[176].mxu1 }
 0x71b   : > { %v5741_v23 = vpop.f32.mrb[177].mxu1 }
 0x71c   : > { %5772 = vmax.xlane.f32.xlu0 %v5741_v23  ;;  %v9968_v61 = vpop.f32.mrb[178].mxu1 }
 0x71d   : > { %v5744_v60 = vpop.f32.mrb[179].mxu1 }
 0x71e   : > { %5774 = vmax.xlane.f32.xlu1 %v5744_v60 }
 0x720   : > { %5776 = vmax.xlane.f32.xlu0 %v9967_v15 }
 0x722   : > { %5778 = vmax.xlane.f32.xlu1 %v9968_v61  ;;  %v9971_v27 = vpop.f32.mrb[180].mxu1 }
 0x723   : > { %v5757_v2 = vpop.f32.mrb[181].mxu1 }
 0x724   : > { %5780 = vmax.xlane.f32.xlu0 %v5757_v2  ;;  %v9972_v63 = vpop.f32.mrb[182].mxu1 }
 0x725   : > { %v5760_v7 = vpop.f32.mrb[183].mxu1 }
 0x726   : > { %5782 = vmax.xlane.f32.xlu1 %v5760_v7 }
 0x728   : > { %5784 = vmax.xlane.f32.xlu0 %v9971_v27 }
 0x72a   : > { %5786 = vmax.xlane.f32.xlu1 %v9972_v63 }
 0x7a9   : > { %v5773_v25 = vpop.xlane.xlu0 %5772 }
 0x7aa   : > { %v5788_v5 = vsub.f32 %v5741_v23, %v5773_v25 }
 0x7ab   : > { %v5775_v47 = vpop.xlane.xlu1 %5774 }
 0x7ac   : > { %v5796_v1 = vmul.f32 1.442695, %v5788_v5  ;;  %v5789_v19 = vsub.f32 %v5744_v60, %v5775_v47 }
 0x7ad   : > { %v5777_v32 = vpop.xlane.xlu0 %5776 }
 0x7ae   : > { %11573 = vpow2.f32 %v5796_v1  ;;  %v5798_v48 = vmul.f32 1.442695, %v5789_v19  ;;  %v5790_v4 = vsub.f32 %v9967_v15, %v5777_v32 }
 0x7af   : > { %v5779_v38 = vpop.xlane.xlu1 %5778 }
 0x7b0   : > { %11575 = vpow2.f32 %v5798_v48  ;;  %v5800_v12 = vmul.f32 1.442695, %v5790_v4  ;;  %v5791_v34 = vsub.f32 %v9968_v61, %v5779_v38 }
 0x7b1   : > { %v5781_v55 = vpop.xlane.xlu0 %5780 }
 0x7b2   : > { %11577 = vpow2.f32 %v5800_v12  ;;  %v5802_v49 = vmul.f32 1.442695, %v5791_v34  ;;  %v5792_v21 = vsub.f32 %v5757_v2, %v5781_v55  ;;  %v16232_v34 = vld [vmem:[#allocation80_spill] sm:$0xff]  ;;  %v16233_v55 = vld [vmem:[#allocation81_spill] sm:$0xff] }
 0x7b3   : > { %v5783_v39 = vpop.xlane.xlu1 %5782 }
 0x7b4   : > { %11579 = vpow2.f32 %v5802_v49  ;;  %v5804_v40 = vmul.f32 1.442695, %v5792_v21  ;;  %v5793_v42 = vsub.f32 %v5760_v7, %v5783_v39 }
 0x7b5   : > { %v5785_v14 = vpop.xlane.xlu0 %5784 }
 0x7b6   : > { %11581 = vpow2.f32 %v5804_v40  ;;  %v5806_v28 = vmul.f32 1.442695, %v5793_v42  ;;  %v5794_v6 = vsub.f32 %v9971_v27, %v5785_v14  ;;  %v16234_v14 = vld [vmem:[#allocation41_spill] sm:$0xff] }
 0x7b7   : > { %v5787_v3 = vpop.xlane.xlu1 %5786 }
 0x7b8   : > { %v11574_v50 = vpop.eup %11573  ;;  %11583 = vpow2.f32 %v5806_v28  ;;  %v5808_v51 = vmul.f32 1.442695, %v5794_v6  ;;  %v5795_v20 = vsub.f32 %v9972_v63, %v5787_v3  ;;  %v16235_v28 = vld [vmem:[#allocation34_spill] sm:$0xff] }
 0x7b9   : > { %5812 = vadd.xlane.f32.xlu0 %v11574_v50  ;;  %v16236_v6 = vpack.c.bf16 %v16234_v14, %v16235_v28  ;;  %v16237_v3 = vld [vmem:[#allocation82_spill] sm:$0xff] }
 0x7ba   : > { %v11576_v11 = vpop.eup %11575  ;;  %11585 = vpow2.f32 %v5808_v51  ;;  %v5810_v17 = vmul.f32 1.442695, %v5795_v20  ;;  %v16239_v51 = vld [vmem:[#allocation84_spill] sm:$0xff]  ;;  %v16240_v20 = vld [vmem:[#allocation85_spill] sm:$0xff] }
 0x7bb   : > { %5814 = vadd.xlane.f32.xlu1 %v11576_v11 }
 0x7bc   : > { %v11578_v36 = vpop.eup %11577  ;;  %11587 = vpow2.f32 %v5810_v17  ;;  %v16242_v17 = vld [vmem:[#allocation87_spill] sm:$0xff] }
 0x7bd   : > { %5816 = vadd.xlane.f32.xlu0 %v11578_v36 }
 0x7be   : > { %v11580_v16 = vpop.eup %11579 }
 0x7bf   : > { %5818 = vadd.xlane.f32.xlu1 %v11580_v16 }
 0x7c0   : > { %v11582_v31 = vpop.eup %11581 }
 0x7c1   : > { %5820 = vadd.xlane.f32.xlu0 %v11582_v31 }
 0x7c2   : > { %v11584_v43 = vpop.eup %11583 }
 0x7c3   : > { %5822 = vadd.xlane.f32.xlu1 %v11584_v43 }
 0x7c4   : > { %v11586_v44 = vpop.eup %11585 }
 0x7c5   : > { %5824 = vadd.xlane.f32.xlu0 %v11586_v44 }
 0x7c6   : > { %v11588_v59 = vpop.eup %11587 }
 0x7c7   : > { %5826 = vadd.xlane.f32.xlu1 %v11588_v59 }
 0x846   : > { %v5813_v58 = vpop.xlane.xlu0 %5812 }
 0x847   : > { %11589 = vrcp.f32 %v5813_v58 }
 0x848   : > { %v5815_v0 = vpop.xlane.xlu1 %5814 }
 0x849   : > { %11591 = vrcp.f32 %v5815_v0  ;;  %v16250_v0 = vld [vmem:[#allocation106_spill] sm:$0xff] }
 0x84a   : > { %v5817_v46 = vpop.xlane.xlu0 %5816 }
 0x84b   : > { %11593 = vrcp.f32 %v5817_v46  ;;  %v16251_v46 = vld [vmem:[#allocation108_spill] sm:$0xff] }
 0x84c   : > { %v5819_v33 = vpop.xlane.xlu1 %5818 }
 0x84d   : > { %11595 = vrcp.f32 %v5819_v33  ;;  %v16252_v33 = vld [vmem:[#allocation37_spill] sm:$0xff] }
 0x84e   : > { %v5821_v62 = vpop.xlane.xlu0 %5820 }
 0x84f   : > { %11597 = vrcp.f32 %v5821_v62  ;;  %v16253_v62 = vld [vmem:[#allocation52_spill] sm:$0xff] }
 0x850   : > { %v5823_v15 = vpop.xlane.xlu1 %5822 }
 0x851   : > { %v11590_v23 = vpop.eup %11589  ;;  %11599 = vrcp.f32 %v5823_v15  ;;  %v16254_v15 = vpack.c.bf16 %v16252_v33, %v16253_v62 }
 0x852   : > { %v5825_v61 = vpop.xlane.xlu0 %5824  ;;  %v5836_v2 = vmul.f32 %v11590_v23, %v11574_v50  ;;  %v16238_v50 = vld [vmem:[#allocation83_spill] sm:$0xff]  ;;  %v16255_v23 = vld [vmem:[#allocation110_spill] sm:$0xff] }
 0x853   : > { %v11592_v60 = vpop.eup %11591  ;;  %11601 = vrcp.f32 %v5825_v61  ;;  %v16256_v61 = vld [vmem:[#allocation113_spill] sm:$0xff] }
 0x854   : > { %v5827_v27 = vpop.xlane.xlu1 %5826  ;;  %v5837_v63 = vmul.f32 %v11592_v60, %v11576_v11  ;;  %v16241_v11 = vld [vmem:[#allocation86_spill] sm:$0xff]  ;;  %v16257_v60 = vld [vmem:[#allocation116_spill] sm:$0xff] }
 0x855   : > { %v11594_v7 = vpop.eup %11593  ;;  %11603 = vrcp.f32 %v5827_v27  ;;  %v16258_v27 = vld [vmem:[#allocation119_spill] sm:$0xff] }
 0x856   : > { %v5844_v25 = vpack.c.bf16 %v5837_v63, %v5836_v2  ;;  %v5838_v47 = vmul.f32 %v11594_v7, %v11578_v36  ;;  %v16243_v36 = vld [vmem:[#allocation104_spill] sm:$0xff]  ;;  %v16259_v2 = vld [vmem:[#allocation122_spill] sm:$0xff]  ;;  %v16260_v63 = vld [vmem:[#allocation23_spill] sm:$0xff] }
 0x857   : > { %v11596_v5 = vpop.eup %11595 }
 0x858   : > { %v5839_v1 = vmul.f32 %v11596_v5, %v11580_v16  ;;  %9989 = vmatprep.mubr.bf16.mxu0 %v5844_v25  ;;  %v16244_v16 = vld [vmem:[#allocation47_spill] sm:$0xff] }
 0x859   : > { %v11598_v19 = vpop.eup %11597 }
 0x85a   : > { %v5845_v32 = vpack.c.bf16 %v5839_v1, %v5838_v47  ;;  %v5840_v4 = vmul.f32 %v11598_v19, %v11582_v31  ;;  %v16245_v31 = vld [vmem:[#allocation40_spill] sm:$0xff] }
 0x85b   : > { %v11600_v48 = vpop.eup %11599 }
 0x85c   : > { %9990 = vmatmul.mubr.bf16.vlgmr.msra.gmra.mrb[176].mxu0 %v5845_v32  ;;  %v5841_v38 = vmul.f32 %v11600_v48, %v11584_v43  ;;  %v16246_v43 = vpack.c.bf16 %v16244_v16, %v16245_v31 }
 0x85d   : > { %v11602_v12 = vpop.eup %11601  ;;  %9998 = vmatpush3.bf16.xpose.msra.mxu0 %v16232_v34 }
 0x85e   : > { %9999 = vmatprep.subr.bf16.mxu0 %v16233_v55  ;;  %v5846_v49 = vpack.c.bf16 %v5841_v38, %v5840_v4  ;;  %v5842_v39 = vmul.f32 %v11602_v12, %v11586_v44  ;;  %v16247_v44 = vld [vmem:[#allocation53_spill] sm:$0xff] }
 0x85f   : > { %v11604_v21 = vpop.eup %11603 }
 0x860   : > { %9993 = vmatprep.mubr.bf16.mxu0 %v5846_v49  ;;  %v5843_v40 = vmul.f32 %v11604_v21, %v11588_v59  ;;  %v16248_v59 = vld [vmem:[#allocation46_spill] sm:$0xff] }
 0x861   : > { %v16249_v58 = vpack.c.bf16 %v16247_v44, %v16248_v59 }
 0x862   : > { %v5847_v42 = vpack.c.bf16 %v5843_v40, %v5842_v39 }
 0x864   : > { %9994 = vmatmul.mubr.bf16.gmra.mrb[180].mxu0 %v5847_v42 }
 0x865   : > { %10000 = vmatpush3.bf16.xpose.msra.mxu0 %v16233_v55  ;;  %10013 = vmatprep.mubr.bf16.mxu0 %v16236_v6 }
 0x866   : > { %10001 = vmatprep.subr.bf16.mxu0 %v16237_v3 }
 0x86d   : > { %10002 = vmatpush3.bf16.xpose.msra.mxu0 %v16237_v3 }
 0x86e   : > { %10003 = vmatprep.subr.bf16.mxu0 %v16238_v50 }
 0x875   : > { %10004 = vmatpush3.bf16.xpose.msra.mxu0 %v16238_v50 }
 0x876   : > { %10005 = vmatprep.subr.bf16.mxu0 %v16239_v51 }
 0x87d   : > { %10006 = vmatpush3.bf16.xpose.msra.mxu0 %v16239_v51 }
 0x87e   : > { %10007 = vmatprep.subr.bf16.mxu0 %v16240_v20 }
 0x885   : > { %10008 = vmatpush3.bf16.xpose.msra.mxu0 %v16240_v20 }
 0x886   : > { %10009 = vmatprep.subr.bf16.mxu0 %v16241_v11 }
 0x88d   : > { %10010 = vmatpush3.bf16.xpose.msra.mxu0 %v16241_v11 }
 0x88e   : > { %10011 = vmatprep.subr.bf16.mxu0 %v16242_v17 }
 0x895   : > { %10012 = vmatpush3.bf16.xpose.msra.mxu0 %v16242_v17 }
 0x896   : > { %10069 = vmatprep.subr.bf16.mxu0 %v16243_v36 }
 0x89c   : > { %10014 = vmatmul.mubr.bf16.vlgmr.msra.gmra.mrb[184].mxu0 %v16246_v43 }
 0x89d   : > { %10017 = vmatprep.mubr.bf16.mxu0 %v16249_v58  ;;  %10070 = vmatpush3.bf16.msra.mxu0 %v16243_v36 }
 0x89e   : > { %10071 = vmatprep.subr.bf16.mxu0 %v16250_v0 }
 0x8a1   : > { %10072 = vmatpush3.bf16.msra.mxu0 %v16250_v0 }
 0x8a2   : > { %10073 = vmatprep.subr.bf16.mxu0 %v16251_v46 }
 0x8a4   : > { %10018 = vmatmul.mubr.bf16.gmra.mrb[188].mxu0 %v16254_v15 }
 0x8a5   : > { %10074 = vmatpush3.bf16.msra.mxu0 %v16251_v46 }
 0x8a6   : > { %10075 = vmatprep.subr.bf16.mxu0 %v16255_v23 }
 0x8a9   : > { %10076 = vmatpush3.bf16.msra.mxu0 %v16255_v23 }
 0x8aa   : > { %10077 = vmatprep.subr.bf16.mxu0 %v16256_v61 }
 0x8ad   : > { %10078 = vmatpush3.bf16.msra.mxu0 %v16256_v61 }
 0x8ae   : > { %10079 = vmatprep.subr.bf16.mxu0 %v16257_v60 }
 0x8b1   : > { %10080 = vmatpush3.bf16.msra.mxu0 %v16257_v60 }
 0x8b2   : > { %10081 = vmatprep.subr.bf16.mxu0 %v16258_v27 }
 0x8b5   : > { %10082 = vmatpush3.bf16.msra.mxu0 %v16258_v27 }
 0x8b6   : > { %10083 = vmatprep.subr.bf16.mxu0 %v16259_v2 }
 0x8b9   : > { %10084 = vmatpush3.bf16.msra.mxu0 %v16259_v2 }
 0x8ba   : > { %10093 = vmatprep.subr.bf16.mxu0 %v16260_v63 }
 0x92f   : > { %v9991_v7 = vpop.f32.mrb[176].mxu0 }
 0x930   : > { %v5882_v25 = vpop.f32.mrb[177].mxu0 }
 0x931   : > { %v9992_v5 = vpop.f32.mrb[178].mxu0 }
 0x932   : > { %v14205_v47 = vpack.c.bf16 %v9992_v5, %v9991_v7  ;;  %v5885_v1 = vpop.f32.mrb[179].mxu0 }
 0x933   : > { %v14207_v19 = vpack.c.bf16 %v5885_v1, %v5882_v25 }
 0x937   : > { %v9995_v32 = vpop.f32.mrb[180].mxu0 }
 0x938   : > { %v5898_v48 = vpop.f32.mrb[181].mxu0 }
 0x939   : > { %v9996_v4 = vpop.f32.mrb[182].mxu0 }
 0x93a   : > { %v14209_v38 = vpack.c.bf16 %v9996_v4, %v9995_v32  ;;  %v5901_v12 = vpop.f32.mrb[183].mxu0 }
 0x93b   : > { %v14211_v34 = vpack.c.bf16 %v5901_v12, %v5898_v48 }
 0x96f   : > { %v10015_v55 = vpop.f32.mrb[184].mxu0 }
 0x970   : > { %v5955_v49 = vpop.f32.mrb[185].mxu0 }
 0x971   : > { %5986 = vmax.xlane.f32.xlu0 %v5955_v49  ;;  %v10016_v21 = vpop.f32.mrb[186].mxu0 }
 0x972   : > { %v5958_v39 = vpop.f32.mrb[187].mxu0 }
 0x973   : > { %5988 = vmax.xlane.f32.xlu1 %v5958_v39 }
 0x975   : > { %5990 = vmax.xlane.f32.xlu0 %v10015_v55 }
 0x977   : > { %5992 = vmax.xlane.f32.xlu1 %v10016_v21  ;;  %v10019_v40 = vpop.f32.mrb[188].mxu0 }
 0x978   : > { %v5971_v42 = vpop.f32.mrb[189].mxu0 }
 0x979   : > { %5994 = vmax.xlane.f32.xlu0 %v5971_v42  ;;  %v10020_v14 = vpop.f32.mrb[190].mxu0 }
 0x97a   : > { %v5974_v28 = vpop.f32.mrb[191].mxu0 }
 0x97b   : > { %5996 = vmax.xlane.f32.xlu1 %v5974_v28 }
 0x97d   : > { %5998 = vmax.xlane.f32.xlu0 %v10019_v40 }
 0x97f   : > { %6000 = vmax.xlane.f32.xlu1 %v10020_v14 }
 0x9fe   : > { %v5987_v6 = vpop.xlane.xlu0 %5986 }
 0x9ff   : > { %v6002_v3 = vsub.f32 %v5955_v49, %v5987_v6 }
 0xa00   : > { %v5989_v50 = vpop.xlane.xlu1 %5988 }
 0xa01   : > { %v6010_v51 = vmul.f32 1.442695, %v6002_v3  ;;  %v6003_v20 = vsub.f32 %v5958_v39, %v5989_v50 }
 0xa02   : > { %v5991_v11 = vpop.xlane.xlu0 %5990 }
 0xa03   : > { %11605 = vpow2.f32 %v6010_v51  ;;  %v6012_v17 = vmul.f32 1.442695, %v6003_v20  ;;  %v6004_v36 = vsub.f32 %v10015_v55, %v5991_v11 }
 0xa04   : > { %v5993_v16 = vpop.xlane.xlu1 %5992 }
 0xa05   : > { %11607 = vpow2.f32 %v6012_v17  ;;  %v6014_v31 = vmul.f32 1.442695, %v6004_v36  ;;  %v6005_v43 = vsub.f32 %v10016_v21, %v5993_v16 }
 0xa06   : > { %v5995_v44 = vpop.xlane.xlu0 %5994 }
 0xa07   : > { %11609 = vpow2.f32 %v6014_v31  ;;  %v6016_v59 = vmul.f32 1.442695, %v6005_v43  ;;  %v6006_v58 = vsub.f32 %v5971_v42, %v5995_v44 }
 0xa08   : > { %v5997_v0 = vpop.xlane.xlu1 %5996 }
 0xa09   : > { %11611 = vpow2.f32 %v6016_v59  ;;  %v6018_v46 = vmul.f32 1.442695, %v6006_v58  ;;  %v6007_v33 = vsub.f32 %v5974_v28, %v5997_v0 }
 0xa0a   : > { %v5999_v62 = vpop.xlane.xlu0 %5998 }
 0xa0b   : > { %11613 = vpow2.f32 %v6018_v46  ;;  %v6020_v15 = vmul.f32 1.442695, %v6007_v33  ;;  %v6008_v23 = vsub.f32 %v10019_v40, %v5999_v62  ;;  %v16261_v46 = vld [vmem:[#allocation24_spill] sm:$0xff] }
 0xa0c   : > { %v6001_v61 = vpop.xlane.xlu1 %6000 }
 0xa0d   : > { %v11606_v60 = vpop.eup %11605  ;;  %11615 = vpow2.f32 %v6020_v15  ;;  %v6022_v27 = vmul.f32 1.442695, %v6008_v23  ;;  %v6009_v2 = vsub.f32 %v10020_v14, %v6001_v61 }
 0xa0e   : > { %6026 = vadd.xlane.f32.xlu0 %v11606_v60 }
 0xa0f   : > { %v11608_v7 = vpop.eup %11607  ;;  %11617 = vpow2.f32 %v6022_v27  ;;  %v6024_v25 = vmul.f32 1.442695, %v6009_v2  ;;  %v16263_v27 = vld [vmem:[#allocation55_spill] sm:$0xff] }
 0xa10   : > { %6028 = vadd.xlane.f32.xlu1 %v11608_v7 }
 0xa11   : > { %v11610_v5 = vpop.eup %11609  ;;  %11619 = vpow2.f32 %v6024_v25  ;;  %v16267_v25 = vld [vmem:[#allocation33_spill] sm:$0xff] }
 0xa12   : > { %6030 = vadd.xlane.f32.xlu0 %v11610_v5 }
 0xa13   : > { %v11612_v1 = vpop.eup %11611 }
 0xa14   : > { %6032 = vadd.xlane.f32.xlu1 %v11612_v1 }
 0xa15   : > { %v11614_v32 = vpop.eup %11613 }
 0xa16   : > { %6034 = vadd.xlane.f32.xlu0 %v11614_v32 }
 0xa17   : > { %v11616_v48 = vpop.eup %11615 }
 0xa18   : > { %6036 = vadd.xlane.f32.xlu1 %v11616_v48 }
 0xa19   : > { %v11618_v4 = vpop.eup %11617 }
 0xa1a   : > { %6038 = vadd.xlane.f32.xlu0 %v11618_v4 }
 0xa1b   : > { %v11620_v12 = vpop.eup %11619 }
 0xa1c   : > { %6040 = vadd.xlane.f32.xlu1 %v11620_v12 }
 0xa9b   : > { %v6027_v55 = vpop.xlane.xlu0 %6026 }
 0xa9c   : > { %11621 = vrcp.f32 %v6027_v55 }
 0xa9d   : > { %v6029_v49 = vpop.xlane.xlu1 %6028 }
 0xa9e   : > { %11623 = vrcp.f32 %v6029_v49  ;;  %v16275_v49 = vld [vmem:[#allocation68_spill] sm:$0xff] }
 0xa9f   : > { %v6031_v21 = vpop.xlane.xlu0 %6030 }
 0xaa0   : > { %11625 = vrcp.f32 %v6031_v21  ;;  %v16276_v21 = vld [vmem:[#allocation66_spill] sm:$0xff] }
 0xaa1   : > { %v6033_v39 = vpop.xlane.xlu1 %6032 }
 0xaa2   : > { %11627 = vrcp.f32 %v6033_v39  ;;  %v16277_v39 = vpack.c.bf16 %v16275_v49, %v16276_v21 }
 0xaa3   : > { %v6035_v40 = vpop.xlane.xlu0 %6034 }
 0xaa4   : > { %11629 = vrcp.f32 %v6035_v40  ;;  %v16278_v40 = vld [vmem:[#allocation107_spill] sm:$0xff] }
 0xaa5   : > { %v6037_v42 = vpop.xlane.xlu1 %6036 }
 0xaa6   : > { %v11622_v14 = vpop.eup %11621  ;;  %11631 = vrcp.f32 %v6037_v42  ;;  %v16279_v42 = vld [vmem:[#allocation109_spill] sm:$0xff] }
 0xaa7   : > { %v6039_v28 = vpop.xlane.xlu0 %6038  ;;  %v6050_v50 = vmul.f32 %v11622_v14, %v11606_v60  ;;  %v16262_v60 = vld [vmem:[#allocation59_spill] sm:$0xff]  ;;  %v16280_v14 = vld [vmem:[#allocation72_spill] sm:$0xff] }
 0xaa8   : > { %v11624_v6 = vpop.eup %11623  ;;  %11633 = vrcp.f32 %v6039_v28  ;;  %v16264_v2 = vpack.c.bf16 %v16262_v60, %v16263_v27  ;;  %v16281_v28 = vld [vmem:[#allocation70_spill] sm:$0xff] }
 0xaa9   : > { %v6041_v3 = vpop.xlane.xlu1 %6040  ;;  %v6051_v51 = vmul.f32 %v11624_v6, %v11608_v7  ;;  %v16265_v7 = vld [vmem:[#allocation26_spill] sm:$0xff]  ;;  %v16282_v6 = vpack.c.bf16 %v16280_v14, %v16281_v28 }
 0xaaa   : > { %v11626_v20 = vpop.eup %11625  ;;  %11635 = vrcp.f32 %v6041_v3  ;;  %v16283_v3 = vld [vmem:[#allocation111_spill] sm:$0xff] }
 0xaab   : > { %v6058_v11 = vpack.c.bf16 %v6051_v51, %v6050_v50  ;;  %v6052_v36 = vmul.f32 %v11626_v20, %v11610_v5  ;;  %v16268_v5 = vld [vmem:[#allocation39_spill] sm:$0xff]  ;;  %v16284_v50 = vld [vmem:[#allocation114_spill] sm:$0xff]  ;;  %v16285_v51 = vld [vmem:[#allocation117_spill] sm:$0xff] }
 0xaac   : > { %v11628_v17 = vpop.eup %11627  ;;  %v16286_v20 = vld [vmem:[#allocation120_spill] sm:$0xff] }
 0xaad   : > { %v6053_v16 = vmul.f32 %v11628_v17, %v11612_v1  ;;  %10037 = vmatprep.mubr.bf16.mxu1 %v6058_v11  ;;  %v16269_v1 = vld [vmem:[#allocation45_spill] sm:$0xff]  ;;  %v16287_v11 = vld [vmem:[#allocation123_spill] sm:$0xff]  ;;  %v16288_v17 = vld [vmem:[#allocation88_spill] sm:$0xff] }
 0xaae   : > { %v11630_v31 = vpop.eup %11629 }
 0xaaf   : > { %v6059_v43 = vpack.c.bf16 %v6053_v16, %v6052_v36  ;;  %v6054_v59 = vmul.f32 %v11630_v31, %v11614_v32  ;;  %v16270_v32 = vld [vmem:[#allocation56_spill] sm:$0xff] }
 0xab0   : > { %v11632_v44 = vpop.eup %11631 }
 0xab1   : > { %10038 = vmatmul.mubr.bf16.vlgmr.msra.gmra.mrb[184].mxu1 %v6059_v43  ;;  %v6055_v58 = vmul.f32 %v11632_v44, %v11616_v48  ;;  %v16271_v48 = vld [vmem:[#allocation105_spill] sm:$0xff] }
 0xab2   : > { %v11634_v0 = vpop.eup %11633  ;;  %10046 = vmatpush3.bf16.xpose.msra.mxu1 %v16231_v10  ;;  %v16266_v10 = vld [vmem:[#allocation29_spill] sm:$0xff] }
 0xab3   : > { %10047 = vmatprep.subr.bf16.mxu1 %v16261_v46  ;;  %v6060_v33 = vpack.c.bf16 %v6055_v58, %v6054_v59  ;;  %v6056_v15 = vmul.f32 %v11634_v0, %v11618_v4  ;;  %v16272_v4 = vld [vmem:[#allocation64_spill] sm:$0xff] }
 0xab4   : > { %v11636_v62 = vpop.eup %11635 }
 0xab5   : > { %10041 = vmatprep.mubr.bf16.mxu1 %v6060_v33  ;;  %v6057_v23 = vmul.f32 %v11636_v62, %v11620_v12  ;;  %v16273_v12 = vld [vmem:[#allocation61_spill] sm:$0xff] }
 0xab6   : > { %v16274_v55 = vpack.c.bf16 %v16272_v4, %v16273_v12 }
 0xab7   : > { %v6061_v61 = vpack.c.bf16 %v6057_v23, %v6056_v15 }
 0xab9   : > { %10042 = vmatmul.mubr.bf16.gmra.mrb[188].mxu1 %v6061_v61 }
 0xaba   : > { %10048 = vmatpush3.bf16.xpose.msra.mxu1 %v16261_v46  ;;  %10061 = vmatprep.mubr.bf16.mxu1 %v16264_v2 }
 0xabb   : > { %10049 = vmatprep.subr.bf16.mxu1 %v16265_v7 }
 0xac2   : > { %10050 = vmatpush3.bf16.xpose.msra.mxu1 %v16265_v7 }
 0xac3   : > { %10051 = vmatprep.subr.bf16.mxu1 %v16266_v10 }
 0xaca   : > { %10052 = vmatpush3.bf16.xpose.msra.mxu1 %v16266_v10 }
 0xacb   : > { %10053 = vmatprep.subr.bf16.mxu1 %v16267_v25 }
 0xad2   : > { %10054 = vmatpush3.bf16.xpose.msra.mxu1 %v16267_v25 }
 0xad3   : > { %10055 = vmatprep.subr.bf16.mxu1 %v16268_v5 }
 0xada   : > { %10056 = vmatpush3.bf16.xpose.msra.mxu1 %v16268_v5 }
 0xadb   : > { %10057 = vmatprep.subr.bf16.mxu1 %v16269_v1 }
 0xae2   : > { %10058 = vmatpush3.bf16.xpose.msra.mxu1 %v16269_v1 }
 0xae3   : > { %10059 = vmatprep.subr.bf16.mxu1 %v16270_v32 }
 0xaea   : > { %10060 = vmatpush3.bf16.xpose.msra.mxu1 %v16270_v32 }
 0xaeb   : > { %10117 = vmatprep.subr.bf16.mxu1 %v16271_v48 }
 0xaf1   : > { %10062 = vmatmul.mubr.bf16.vlgmr.msra.gmra.mrb[192].mxu1 %v16274_v55 }
 0xaf2   : > { %10065 = vmatprep.mubr.bf16.mxu1 %v16277_v39  ;;  %10118 = vmatpush3.bf16.msra.mxu1 %v16271_v48 }
 0xaf3   : > { %10119 = vmatprep.subr.bf16.mxu1 %v16278_v40 }
 0xaf6   : > { %10120 = vmatpush3.bf16.msra.mxu1 %v16278_v40 }
 0xaf7   : > { %10121 = vmatprep.subr.bf16.mxu1 %v16279_v42 }
 0xaf9   : > { %10066 = vmatmul.mubr.bf16.gmra.mrb[196].mxu1 %v16282_v6 }
 0xafa   : > { %10122 = vmatpush3.bf16.msra.mxu1 %v16279_v42 }
 0xafb   : > { %10123 = vmatprep.subr.bf16.mxu1 %v16283_v3 }
 0xafe   : > { %10124 = vmatpush3.bf16.msra.mxu1 %v16283_v3 }
 0xaff   : > { %10125 = vmatprep.subr.bf16.mxu1 %v16284_v50 }
 0xb02   : > { %10126 = vmatpush3.bf16.msra.mxu1 %v16284_v50 }
 0xb03   : > { %10127 = vmatprep.subr.bf16.mxu1 %v16285_v51 }
 0xb06   : > { %10128 = vmatpush3.bf16.msra.mxu1 %v16285_v51 }
 0xb07   : > { %10129 = vmatprep.subr.bf16.mxu1 %v16286_v20 }
 0xb0a   : > { %10130 = vmatpush3.bf16.msra.mxu1 %v16286_v20 }
 0xb0b   : > { %10131 = vmatprep.subr.bf16.mxu1 %v16287_v11 }
 0xb0e   : > { %10132 = vmatpush3.bf16.msra.mxu1 %v16287_v11 }
 0xb0f   : > { %10141 = vmatprep.subr.bf16.mxu1 %v16288_v17 }
 0xb84   : > { %v10039_v36 = vpop.f32.mrb[184].mxu1 }
 0xb85   : > { %v6096_v16 = vpop.f32.mrb[185].mxu1 }
 0xb86   : > { %v10040_v31 = vpop.f32.mrb[186].mxu1 }
 0xb87   : > { %v14257_v43 = vpack.c.bf16 %v10040_v31, %v10039_v36  ;;  %v6099_v44 = vpop.f32.mrb[187].mxu1 }
 0xb88   : > { %v14259_v59 = vpack.c.bf16 %v6099_v44, %v6096_v16 }
 0xb8c   : > { %v10043_v58 = vpop.f32.mrb[188].mxu1 }
 0xb8d   : > { %v6112_v0 = vpop.f32.mrb[189].mxu1 }
 0xb8e   : > { %v10044_v46 = vpop.f32.mrb[190].mxu1 }
 0xb8f   : > { %v14261_v33 = vpack.c.bf16 %v10044_v46, %v10043_v58  ;;  %v6115_v62 = vpop.f32.mrb[191].mxu1 }
 0xb90   : > { %v14263_v15 = vpack.c.bf16 %v6115_v62, %v6112_v0 }
 0xbc4   : > { %v10063_v23 = vpop.f32.mrb[192].mxu1 }
 0xbc5   : > { %v6169_v61 = vpop.f32.mrb[193].mxu1 }
 0xbc6   : > { %6200 = vmax.xlane.f32.xlu0 %v6169_v61  ;;  %v10064_v60 = vpop.f32.mrb[194].mxu1 }
 0xbc7   : > { %v6172_v27 = vpop.f32.mrb[195].mxu1 }
 0xbc8   : > { %6202 = vmax.xlane.f32.xlu1 %v6172_v27 }
 0xbca   : > { %6204 = vmax.xlane.f32.xlu0 %v10063_v23 }
 0xbcc   : > { %6206 = vmax.xlane.f32.xlu1 %v10064_v60  ;;  %v10067_v2 = vpop.f32.mrb[196].mxu1 }
 0xbcd   : > { %v6185_v7 = vpop.f32.mrb[197].mxu1 }
 0xbce   : > { %6208 = vmax.xlane.f32.xlu0 %v6185_v7  ;;  %v10068_v10 = vpop.f32.mrb[198].mxu1 }
 0xbcf   : > { %v6188_v25 = vpop.f32.mrb[199].mxu1 }
 0xbd0   : > { %6210 = vmax.xlane.f32.xlu1 %v6188_v25 }
 0xbd2   : > { %6212 = vmax.xlane.f32.xlu0 %v10067_v2 }
 0xbd4   : > { %6214 = vmax.xlane.f32.xlu1 %v10068_v10 }
 0xc53   : > { %v6201_v5 = vpop.xlane.xlu0 %6200 }
 0xc54   : > { %v6216_v1 = vsub.f32 %v6169_v61, %v6201_v5 }
 0xc55   : > { %v6203_v32 = vpop.xlane.xlu1 %6202 }
 0xc56   : > { %v6224_v48 = vmul.f32 1.442695, %v6216_v1  ;;  %v6217_v4 = vsub.f32 %v6172_v27, %v6203_v32 }
 0xc57   : > { %v6205_v12 = vpop.xlane.xlu0 %6204 }
 0xc58   : > { %11637 = vpow2.f32 %v6224_v48  ;;  %v6226_v55 = vmul.f32 1.442695, %v6217_v4  ;;  %v6218_v49 = vsub.f32 %v10063_v23, %v6205_v12 }
 0xc59   : > { %v6207_v21 = vpop.xlane.xlu1 %6206 }
 0xc5a   : > { %11639 = vpow2.f32 %v6226_v55  ;;  %v6228_v39 = vmul.f32 1.442695, %v6218_v49  ;;  %v6219_v40 = vsub.f32 %v10064_v60, %v6207_v21 }
 0xc5b   : > { %v6209_v42 = vpop.xlane.xlu0 %6208 }
 0xc5c   : > { %11641 = vpow2.f32 %v6228_v39  ;;  %v6230_v14 = vmul.f32 1.442695, %v6219_v40  ;;  %v6220_v28 = vsub.f32 %v6185_v7, %v6209_v42 }
 0xc5d   : > { %v6211_v6 = vpop.xlane.xlu1 %6210 }
 0xc5e   : > { %11643 = vpow2.f32 %v6230_v14  ;;  %v6232_v3 = vmul.f32 1.442695, %v6220_v28  ;;  %v6221_v50 = vsub.f32 %v6188_v25, %v6211_v6 }
 0xc5f   : > { %v6213_v51 = vpop.xlane.xlu0 %6212 }
 0xc60   : > { %11645 = vpow2.f32 %v6232_v3  ;;  %v6234_v20 = vmul.f32 1.442695, %v6221_v50  ;;  %v6222_v11 = vsub.f32 %v10067_v2, %v6213_v51 }
 0xc61   : > { %v6215_v36 = vpop.xlane.xlu1 %6214 }
 0xc62   : > { %v11638_v16 = vpop.eup %11637  ;;  %11647 = vpow2.f32 %v6234_v20  ;;  %v6236_v31 = vmul.f32 1.442695, %v6222_v11  ;;  %v6223_v44 = vsub.f32 %v10068_v10, %v6215_v36  ;;  %v16289_v11 = vld [vmem:[#allocation25_spill] sm:$0xff] }
 0xc63   : > { %6240 = vadd.xlane.f32.xlu0 %v11638_v16 }
 0xc64   : > { %v11640_v58 = vpop.eup %11639  ;;  %11649 = vpow2.f32 %v6236_v31  ;;  %v6238_v0 = vmul.f32 1.442695, %v6223_v44 }
 0xc65   : > { %6242 = vadd.xlane.f32.xlu1 %v11640_v58 }
 0xc66   : > { %v11642_v46 = vpop.eup %11641  ;;  %11651 = vpow2.f32 %v6238_v0  ;;  %v16290_v0 = vld [vmem:[#allocation60_spill] sm:$0xff] }
 0xc67   : > { %6244 = vadd.xlane.f32.xlu0 %v11642_v46 }
 0xc68   : > { %v11644_v62 = vpop.eup %11643 }
 0xc69   : > { %6246 = vadd.xlane.f32.xlu1 %v11644_v62 }
 0xc6a   : > { %v11646_v23 = vpop.eup %11645 }
 0xc6b   : > { %6248 = vadd.xlane.f32.xlu0 %v11646_v23 }
 0xc6c   : > { %v11648_v61 = vpop.eup %11647 }
 0xc6d   : > { %6250 = vadd.xlane.f32.xlu1 %v11648_v61 }
 0xc6e   : > { %v11650_v60 = vpop.eup %11649 }
 0xc6f   : > { %6252 = vadd.xlane.f32.xlu0 %v11650_v60 }
 0xc70   : > { %v11652_v27 = vpop.eup %11651 }
 0xc71   : > { %6254 = vadd.xlane.f32.xlu1 %v11652_v27 }
 0xcf0   : > { %v6241_v2 = vpop.xlane.xlu0 %6240 }
 0xcf1   : > { %11653 = vrcp.f32 %v6241_v2  ;;  %v16298_v2 = vld [vmem:[#allocation58_spill] sm:$0xff] }
 0xcf2   : > { %v6243_v7 = vpop.xlane.xlu1 %6242 }
 0xcf3   : > { %11655 = vrcp.f32 %v6243_v7  ;;  %v16299_v7 = vld [vmem:[#allocation125_spill] sm:$0xff] }
 0xcf4   : > { %v6245_v10 = vpop.xlane.xlu0 %6244 }
 0xcf5   : > { %11657 = vrcp.f32 %v6245_v10  ;;  %v16300_v10 = vld [vmem:[#allocation65_spill] sm:$0xff] }
 0xcf6   : > { %v6247_v25 = vpop.xlane.xlu1 %6246 }
 0xcf7   : > { %11659 = vrcp.f32 %v6247_v25  ;;  %v16301_v25 = vld [vmem:[#allocation62_spill] sm:$0xff] }
 0xcf8   : > { %v6249_v5 = vpop.xlane.xlu0 %6248 }
 0xcf9   : > { %11661 = vrcp.f32 %v6249_v5  ;;  %v16302_v5 = vpack.c.bf16 %v16300_v10, %v16301_v25 }
 0xcfa   : > { %v6251_v1 = vpop.xlane.xlu1 %6250 }
 0xcfb   : > { %v11654_v32 = vpop.eup %11653  ;;  %11663 = vrcp.f32 %v6251_v1  ;;  %v16303_v1 = vld [vmem:[#allocation69_spill] sm:$0xff] }
 0xcfc   : > { %v6253_v48 = vpop.xlane.xlu0 %6252  ;;  %v6264_v55 = vmul.f32 %v11654_v32, %v11638_v16  ;;  %v16304_v32 = vld [vmem:[#allocation67_spill] sm:$0xff] }
 0xcfd   : > { %v11656_v4 = vpop.eup %11655  ;;  %11665 = vrcp.f32 %v6253_v48  ;;  %v16305_v48 = vpack.c.bf16 %v16303_v1, %v16304_v32 }
 0xcfe   : > { %v6255_v12 = vpop.xlane.xlu1 %6254  ;;  %v6265_v49 = vmul.f32 %v11656_v4, %v11640_v58  ;;  %v16306_v4 = vld [vmem:[#allocation127_spill] sm:$0xff] }
 0xcff   : > { %v11658_v21 = vpop.eup %11657  ;;  %11667 = vrcp.f32 %v6255_v12  ;;  %v16307_v12 = vld [vmem:[#allocation129_spill] sm:$0xff] }
 0xd00   : > { %v6272_v39 = vpack.c.bf16 %v6265_v49, %v6264_v55  ;;  %v6266_v42 = vmul.f32 %v11658_v21, %v11642_v46  ;;  %v16291_v46 = vld [vmem:[#allocation57_spill] sm:$0xff]  ;;  %v16309_v49 = vld [vmem:[#allocation71_spill] sm:$0xff] }
 0xd01   : > { %v11660_v40 = vpop.eup %11659  ;;  %v16308_v55 = vld [vmem:[#allocation73_spill] sm:$0xff] }
 0xd02   : > { %v6267_v14 = vmul.f32 %v11660_v40, %v11644_v62  ;;  %10085 = vmatprep.mubr.bf16.mxu0 %v6272_v39  ;;  %v16292_v62 = vpack.c.bf16 %v16290_v0, %v16291_v46  ;;  %v16310_v21 = vpack.c.bf16 %v16308_v55, %v16309_v49  ;;  %v16311_v39 = vld [vmem:[#allocation89_spill] sm:$0xff] }
 0xd03   : > { %v11662_v28 = vpop.eup %11661 }
 0xd04   : > { %v6273_v6 = vpack.c.bf16 %v6267_v14, %v6266_v42  ;;  %v6268_v50 = vmul.f32 %v11662_v28, %v11646_v23  ;;  %v16293_v23 = vld [vmem:[#allocation28_spill] sm:$0xff] }
 0xd05   : > { %v11664_v3 = vpop.eup %11663 }
 0xd06   : > { %10086 = vmatmul.mubr.bf16.vlgmr.msra.gmra.mrb[192].mxu0 %v6273_v6  ;;  %v6269_v51 = vmul.f32 %v11664_v3, %v11648_v61  ;;  %v16295_v61 = vld [vmem:[#allocation38_spill] sm:$0xff] }
 0xd07   : > { %v11666_v20 = vpop.eup %11665  ;;  %10094 = vmatpush3.bf16.xpose.msra.mxu0 %v16260_v63  ;;  %v16294_v63 = vld [vmem:[#allocation32_spill] sm:$0xff] }
 0xd08   : > { %10095 = vmatprep.subr.bf16.mxu0 %v16289_v11  ;;  %v6274_v36 = vpack.c.bf16 %v6269_v51, %v6268_v50  ;;  %v6270_v31 = vmul.f32 %v11666_v20, %v11650_v60  ;;  %v16296_v60 = vld [vmem:[#allocation44_spill] sm:$0xff] }
 0xd09   : > { %v11668_v16 = vpop.eup %11667 }
 0xd0a   : > { %10089 = vmatprep.mubr.bf16.mxu0 %v6274_v36  ;;  %v6271_v44 = vmul.f32 %v11668_v16, %v11652_v27  ;;  %v16297_v27 = vld [vmem:[#allocation51_spill] sm:$0xff] }
 0xd0c   : > { %v6275_v58 = vpack.c.bf16 %v6271_v44, %v6270_v31 }
 0xd0e   : > { %10090 = vmatmul.mubr.bf16.gmra.mrb[196].mxu0 %v6275_v58 }
 0xd0f   : > { %10096 = vmatpush3.bf16.xpose.msra.mxu0 %v16289_v11  ;;  %10109 = vmatprep.mubr.bf16.mxu0 %v16292_v62 }
 0xd10   : > { %10097 = vmatprep.subr.bf16.mxu0 %v16293_v23 }
 0xd17   : > { %10098 = vmatpush3.bf16.xpose.msra.mxu0 %v16293_v23 }
 0xd18   : > { %10099 = vmatprep.subr.bf16.mxu0 %v16294_v63 }
 0xd1f   : > { %10100 = vmatpush3.bf16.xpose.msra.mxu0 %v16294_v63 }
 0xd20   : > { %10101 = vmatprep.subr.bf16.mxu0 %v16295_v61 }
 0xd27   : > { %10102 = vmatpush3.bf16.xpose.msra.mxu0 %v16295_v61 }
 0xd28   : > { %10103 = vmatprep.subr.bf16.mxu0 %v16296_v60 }
 0xd2f   : > { %10104 = vmatpush3.bf16.xpose.msra.mxu0 %v16296_v60 }
 0xd30   : > { %10105 = vmatprep.subr.bf16.mxu0 %v16297_v27 }
 0xd37   : > { %10106 = vmatpush3.bf16.xpose.msra.mxu0 %v16297_v27 }
 0xd38   : > { %10107 = vmatprep.subr.bf16.mxu0 %v16298_v2 }
 0xd3f   : > { %10108 = vmatpush3.bf16.xpose.msra.mxu0 %v16298_v2 }
 0xd40   : > { %10165 = vmatprep.subr.bf16.mxu0 %v16299_v7 }
 0xd46   : > { %10110 = vmatmul.mubr.bf16.vlgmr.msra.gmra.mrb[200].mxu0 %v16302_v5 }
 0xd47   : > { %10113 = vmatprep.mubr.bf16.mxu0 %v16305_v48  ;;  %10166 = vmatpush3.bf16.msra.mxu0 %v16299_v7 }
 0xd48   : > { %10167 = vmatprep.subr.bf16.mxu0 %v16306_v4 }
 0xd4b   : > { %10168 = vmatpush3.bf16.msra.mxu0 %v16306_v4 }
 0xd4c   : > { %10169 = vmatprep.subr.bf16.mxu0 %v16307_v12 }
 0xd4e   : > { %10114 = vmatmul.mubr.bf16.gmra.mrb[204].mxu0 %v16310_v21 }
 0xd4f   : > { %10170 = vmatpush3.bf16.msra.mxu0 %v16307_v12 }
 0xd50   : > { %10171 = vmatprep.subr.bf16.mxu0 %v14019_v18 }
 0xd53   : > { %10172 = vmatpush3.bf16.msra.mxu0 %v14019_v18 }
 0xd54   : > { %10173 = vmatprep.subr.bf16.mxu0 %v14032_v9 }
 0xd57   : > { %10174 = vmatpush3.bf16.msra.mxu0 %v14032_v9 }
 0xd58   : > { %10175 = vmatprep.subr.bf16.mxu0 %v14048_v57 }
 0xd5b   : > { %10176 = vmatpush3.bf16.msra.mxu0 %v14048_v57 }
 0xd5c   : > { %10177 = vmatprep.subr.bf16.mxu0 %v14064_v26 }
 0xd5f   : > { %10178 = vmatpush3.bf16.msra.mxu0 %v14064_v26 }
 0xd60   : > { %10179 = vmatprep.subr.bf16.mxu0 %v14085_v24 }
 0xd63   : > { %10180 = vmatpush3.bf16.msra.mxu0 %v14085_v24 }
 0xd64   : > { %10189 = vmatprep.subr.bf16.mxu0 %v16311_v39 }
 0xdd9   : > { %v10087_v40 = vpop.f32.mrb[192].mxu0 }
 0xdda   : > { %v6310_v18 = vpop.f32.mrb[193].mxu0 }
 0xddb   : > { %v10088_v42 = vpop.f32.mrb[194].mxu0 }
 0xddc   : > { %v14309_v14 = vpack.c.bf16 %v10088_v42, %v10087_v40  ;;  %v6313_v9 = vpop.f32.mrb[195].mxu0 }
 0xddd   : > { %v14311_v28 = vpack.c.bf16 %v6313_v9, %v6310_v18 }
 0xde1   : > { %v10091_v6 = vpop.f32.mrb[196].mxu0 }
 0xde2   : > { %v6326_v57 = vpop.f32.mrb[197].mxu0 }
 0xde3   : > { %v10092_v3 = vpop.f32.mrb[198].mxu0 }
 0xde4   : > { %v14313_v50 = vpack.c.bf16 %v10092_v3, %v10091_v6  ;;  %v6329_v26 = vpop.f32.mrb[199].mxu0 }
 0xde5   : > { %v14315_v51 = vpack.c.bf16 %v6329_v26, %v6326_v57 }
 0xe19   : > { %v10111_v20 = vpop.f32.mrb[200].mxu0 }
 0xe1a   : > { %v6383_v24 = vpop.f32.mrb[201].mxu0 }
 0xe1b   : > { %6414 = vmax.xlane.f32.xlu0 %v6383_v24  ;;  %v10112_v11 = vpop.f32.mrb[202].mxu0 }
 0xe1c   : > { %v6386_v36 = vpop.f32.mrb[203].mxu0 }
 0xe1d   : > { %6416 = vmax.xlane.f32.xlu1 %v6386_v36 }
 0xe1f   : > { %6418 = vmax.xlane.f32.xlu0 %v10111_v20 }
 0xe21   : > { %6420 = vmax.xlane.f32.xlu1 %v10112_v11  ;;  %v10115_v16 = vpop.f32.mrb[204].mxu0 }
 0xe22   : > { %v6399_v31 = vpop.f32.mrb[205].mxu0 }
 0xe23   : > { %6422 = vmax.xlane.f32.xlu0 %v6399_v31  ;;  %v10116_v44 = vpop.f32.mrb[206].mxu0 }
 0xe24   : > { %v6402_v58 = vpop.f32.mrb[207].mxu0 }
 0xe25   : > { %6424 = vmax.xlane.f32.xlu1 %v6402_v58 }
 0xe27   : > { %6426 = vmax.xlane.f32.xlu0 %v10115_v16 }
 0xe29   : > { %6428 = vmax.xlane.f32.xlu1 %v10116_v44 }
 0xea8   : > { %v6415_v0 = vpop.xlane.xlu0 %6414 }
 0xea9   : > { %v6430_v46 = vsub.f32 %v6383_v24, %v6415_v0 }
 0xeaa   : > { %v6417_v62 = vpop.xlane.xlu1 %6416 }
 0xeab   : > { %v6438_v23 = vmul.f32 1.442695, %v6430_v46  ;;  %v6431_v63 = vsub.f32 %v6386_v36, %v6417_v62 }
 0xeac   : > { %v6419_v61 = vpop.xlane.xlu0 %6418 }
 0xead   : > { %11669 = vpow2.f32 %v6438_v23  ;;  %v6440_v60 = vmul.f32 1.442695, %v6431_v63  ;;  %v6432_v27 = vsub.f32 %v10111_v20, %v6419_v61 }
 0xeae   : > { %v6421_v2 = vpop.xlane.xlu1 %6420 }
 0xeaf   : > { %11671 = vpow2.f32 %v6440_v60  ;;  %v6442_v7 = vmul.f32 1.442695, %v6432_v27  ;;  %v6433_v10 = vsub.f32 %v10112_v11, %v6421_v2 }
 0xeb0   : > { %v6423_v25 = vpop.xlane.xlu0 %6422 }
 0xeb1   : > { %11673 = vpow2.f32 %v6442_v7  ;;  %v6444_v5 = vmul.f32 1.442695, %v6433_v10  ;;  %v6434_v1 = vsub.f32 %v6399_v31, %v6423_v25 }
 0xeb2   : > { %v6425_v32 = vpop.xlane.xlu1 %6424 }
 0xeb3   : > { %11675 = vpow2.f32 %v6444_v5  ;;  %v6446_v48 = vmul.f32 1.442695, %v6434_v1  ;;  %v6435_v4 = vsub.f32 %v6402_v58, %v6425_v32 }
 0xeb4   : > { %v6427_v12 = vpop.xlane.xlu0 %6426 }
 0xeb5   : > { %11677 = vpow2.f32 %v6446_v48  ;;  %v6448_v55 = vmul.f32 1.442695, %v6435_v4  ;;  %v6436_v49 = vsub.f32 %v10115_v16, %v6427_v12 }
 0xeb6   : > { %v6429_v21 = vpop.xlane.xlu1 %6428 }
 0xeb7   : > { %v11670_v40 = vpop.eup %11669  ;;  %11679 = vpow2.f32 %v6448_v55  ;;  %v6450_v18 = vmul.f32 1.442695, %v6436_v49  ;;  %v6437_v42 = vsub.f32 %v10116_v44, %v6429_v21  ;;  %v16312_v55 = vld [vmem:[#allocation90_spill] sm:$0xff] }
 0xeb8   : > { %6454 = vadd.xlane.f32.xlu0 %v11670_v40 }
 0xeb9   : > { %v11672_v9 = vpop.eup %11671  ;;  %11681 = vpow2.f32 %v6450_v18  ;;  %v6452_v6 = vmul.f32 1.442695, %v6437_v42 }
 0xeba   : > { %6456 = vadd.xlane.f32.xlu1 %v11672_v9 }
 0xebb   : > { %v11674_v57 = vpop.eup %11673  ;;  %11683 = vpow2.f32 %v6452_v6  ;;  %v16314_v6 = vld [vmem:[#allocation36_spill] sm:$0xff] }
 0xebc   : > { %6458 = vadd.xlane.f32.xlu0 %v11674_v57 }
 0xebd   : > { %v11676_v3 = vpop.eup %11675 }
 0xebe   : > { %6460 = vadd.xlane.f32.xlu1 %v11676_v3 }
 0xebf   : > { %v11678_v26 = vpop.eup %11677 }
 0xec0   : > { %6462 = vadd.xlane.f32.xlu0 %v11678_v26 }
 0xec1   : > { %v11680_v20 = vpop.eup %11679 }
 0xec2   : > { %6464 = vadd.xlane.f32.xlu1 %v11680_v20 }
 0xec3   : > { %v11682_v24 = vpop.eup %11681 }
 0xec4   : > { %6466 = vadd.xlane.f32.xlu0 %v11682_v24 }
 0xec5   : > { %v11684_v11 = vpop.eup %11683 }
 0xec6   : > { %6468 = vadd.xlane.f32.xlu1 %v11684_v11 }
 0xf45   : > { %v6455_v36 = vpop.xlane.xlu0 %6454 }
 0xf46   : > { %11685 = vrcp.f32 %v6455_v36  ;;  %v16322_v36 = vld [vmem:[#allocation126_spill] sm:$0xff] }
 0xf47   : > { %v6457_v16 = vpop.xlane.xlu1 %6456 }
 0xf48   : > { %11687 = vrcp.f32 %v6457_v16  ;;  %v16323_v16 = vld [vmem:[#allocation48_spill] sm:$0xff] }
 0xf49   : > { %v6459_v31 = vpop.xlane.xlu0 %6458 }
 0xf4a   : > { %11689 = vrcp.f32 %v6459_v31  ;;  %v16324_v31 = vld [vmem:[#allocation42_spill] sm:$0xff] }
 0xf4b   : > { %v6461_v44 = vpop.xlane.xlu1 %6460 }
 0xf4c   : > { %11691 = vrcp.f32 %v6461_v44  ;;  %v16325_v44 = vpack.c.bf16 %v16323_v16, %v16324_v31 }
 0xf4d   : > { %v6463_v58 = vpop.xlane.xlu0 %6462 }
 0xf4e   : > { %11693 = vrcp.f32 %v6463_v58  ;;  %v16326_v58 = vld [vmem:[#allocation75_spill] sm:$0xff] }
 0xf4f   : > { %v6465_v0 = vpop.xlane.xlu1 %6464 }
 0xf50   : > { %v11686_v46 = vpop.eup %11685  ;;  %11695 = vrcp.f32 %v6465_v0  ;;  %v16327_v0 = vld [vmem:[#allocation50_spill] sm:$0xff] }
 0xf51   : > { %v6467_v62 = vpop.xlane.xlu0 %6466  ;;  %v6478_v61 = vmul.f32 %v11686_v46, %v11670_v40  ;;  %v16328_v46 = vpack.c.bf16 %v16326_v58, %v16327_v0 }
 0xf52   : > { %v11688_v23 = vpop.eup %11687  ;;  %11697 = vrcp.f32 %v6467_v62  ;;  %v16329_v62 = vld [vmem:[#allocation128_spill] sm:$0xff] }
 0xf53   : > { %v6469_v63 = vpop.xlane.xlu1 %6468  ;;  %v6479_v60 = vmul.f32 %v11688_v23, %v11672_v9  ;;  %v16313_v9 = vld [vmem:[#allocation27_spill] sm:$0xff]  ;;  %v16330_v23 = vld [vmem:[#allocation130_spill] sm:$0xff] }
 0xf54   : > { %v11690_v27 = vpop.eup %11689  ;;  %11699 = vrcp.f32 %v6469_v63  ;;  %v16331_v63 = vld [vmem:[#allocation20_spill] sm:$0xff] }
 0xf55   : > { %v6486_v2 = vpack.c.bf16 %v6479_v60, %v6478_v61  ;;  %v6480_v10 = vmul.f32 %v11690_v27, %v11674_v57  ;;  %v16315_v57 = vpack.c.bf16 %v16313_v9, %v16314_v6  ;;  %v16332_v61 = vld [vmem:[#allocation77_spill] sm:$0xff] }
 0xf56   : > { %v11692_v7 = vpop.eup %11691  ;;  %v16333_v60 = vpack.c.bf16 %v16331_v63, %v16332_v61 }
 0xf57   : > { %v6481_v25 = vmul.f32 %v11692_v7, %v11676_v3  ;;  %10133 = vmatprep.mubr.bf16.mxu1 %v6486_v2  ;;  %v16316_v3 = vld [vmem:[#allocation92_spill] sm:$0xff] }
 0xf58   : > { %v11694_v5 = vpop.eup %11693 }
 0xf59   : > { %v6487_v1 = vpack.c.bf16 %v6481_v25, %v6480_v10  ;;  %v6482_v48 = vmul.f32 %v11694_v5, %v11678_v26  ;;  %v16318_v26 = vld [vmem:[#allocation96_spill] sm:$0xff] }
 0xf5a   : > { %v11696_v32 = vpop.eup %11695 }
 0xf5b   : > { %10134 = vmatmul.mubr.bf16.vlgmr.msra.gmra.mrb[200].mxu1 %v6487_v1  ;;  %v6483_v4 = vmul.f32 %v11696_v32, %v11680_v20  ;;  %v16319_v20 = vld [vmem:[#allocation98_spill] sm:$0xff] }
 0xf5c   : > { %v11698_v12 = vpop.eup %11697  ;;  %10142 = vmatpush3.bf16.xpose.msra.mxu1 %v16288_v17  ;;  %v16317_v17 = vld [vmem:[#allocation94_spill] sm:$0xff] }
 0xf5d   : > { %10143 = vmatprep.subr.bf16.mxu1 %v16312_v55  ;;  %v6488_v49 = vpack.c.bf16 %v6483_v4, %v6482_v48  ;;  %v6484_v40 = vmul.f32 %v11698_v12, %v11682_v24  ;;  %v16320_v24 = vld [vmem:[#allocation100_spill] sm:$0xff] }
 0xf5e   : > { %v11700_v21 = vpop.eup %11699 }
 0xf5f   : > { %10137 = vmatprep.mubr.bf16.mxu1 %v6488_v49  ;;  %v6485_v18 = vmul.f32 %v11700_v21, %v11684_v11  ;;  %v16321_v11 = vld [vmem:[#allocation102_spill] sm:$0xff] }
 0xf61   : > { %v6489_v42 = vpack.c.bf16 %v6485_v18, %v6484_v40 }
 0xf63   : > { %10138 = vmatmul.mubr.bf16.gmra.mrb[204].mxu1 %v6489_v42 }
 0xf64   : > { %10144 = vmatpush3.bf16.xpose.msra.mxu1 %v16312_v55  ;;  %10157 = vmatprep.mubr.bf16.mxu1 %v16315_v57 }
 0xf65   : > { %10145 = vmatprep.subr.bf16.mxu1 %v16316_v3 }
 0xf6c   : > { %10146 = vmatpush3.bf16.xpose.msra.mxu1 %v16316_v3 }
 0xf6d   : > { %10147 = vmatprep.subr.bf16.mxu1 %v16317_v17 }
 0xf74   : > { %10148 = vmatpush3.bf16.xpose.msra.mxu1 %v16317_v17 }
 0xf75   : > { %10149 = vmatprep.subr.bf16.mxu1 %v16318_v26 }
 0xf7c   : > { %10150 = vmatpush3.bf16.xpose.msra.mxu1 %v16318_v26 }
 0xf7d   : > { %10151 = vmatprep.subr.bf16.mxu1 %v16319_v20 }
 0xf84   : > { %10152 = vmatpush3.bf16.xpose.msra.mxu1 %v16319_v20 }
 0xf85   : > { %10153 = vmatprep.subr.bf16.mxu1 %v16320_v24 }
 0xf8c   : > { %10154 = vmatpush3.bf16.xpose.msra.mxu1 %v16320_v24 }
 0xf8d   : > { %10155 = vmatprep.subr.bf16.mxu1 %v16321_v11 }
 0xf94   : > { %10156 = vmatpush3.bf16.xpose.msra.mxu1 %v16321_v11 }
 0xf95   : > { %10213 = vmatprep.subr.bf16.mxu1 %v16322_v36 }
 0xf9b   : > { %10158 = vmatmul.mubr.bf16.vlgmr.msra.gmra.mrb[208].mxu1 %v16325_v44 }
 0xf9c   : > { %10161 = vmatprep.mubr.bf16.mxu1 %v16328_v46  ;;  %10214 = vmatpush3.bf16.msra.mxu1 %v16322_v36 }
 0xf9d   : > { %10215 = vmatprep.subr.bf16.mxu1 %v16329_v62 }
 0xfa0   : > { %10216 = vmatpush3.bf16.msra.mxu1 %v16329_v62 }
 0xfa1   : > { %10217 = vmatprep.subr.bf16.mxu1 %v16330_v23 }
 0xfa3   : > { %10162 = vmatmul.mubr.bf16.gmra.mrb[212].mxu1 %v16333_v60 }
 0xfa4   : > { %10218 = vmatpush3.bf16.msra.mxu1 %v16330_v23 }
 0xfa5   : > { %10219 = vmatprep.subr.bf16.mxu1 %v14022_v45 }
 0xfa8   : > { %10220 = vmatpush3.bf16.msra.mxu1 %v14022_v45 }
 0xfa9   : > { %10221 = vmatprep.subr.bf16.mxu1 %v14039_v13 }
 0xfac   : > { %10222 = vmatpush3.bf16.msra.mxu1 %v14039_v13 }
 0xfad   : > { %10223 = vmatprep.subr.bf16.mxu1 %v14054_v22 }
 0xfb0   : > { %10224 = vmatpush3.bf16.msra.mxu1 %v14054_v22 }
 0xfb1   : > { %10225 = vmatprep.subr.bf16.mxu1 %v14066_v8 }
 0xfb4   : > { %10226 = vmatpush3.bf16.msra.mxu1 %v14066_v8 }
 0xfb5   : > { %10227 = vmatprep.subr.bf16.mxu1 %v14087_v35 }
 0xfb8   : > { %10228 = vmatpush3.bf16.msra.mxu1 %v14087_v35 }
0x102e   : > { %v10135_v27 = vpop.f32.mrb[200].mxu1 }
0x102f   : > { %v6524_v2 = vpop.f32.mrb[201].mxu1 }
0x1030   : > { %v10136_v7 = vpop.f32.mrb[202].mxu1 }
0x1031   : > { %v14360_v45 = vpack.c.bf16 %v10136_v7, %v10135_v27  ;;  %v6527_v10 = vpop.f32.mrb[203].mxu1 }
0x1032   : > { %v14362_v25 = vpack.c.bf16 %v6527_v10, %v6524_v2 }
0x1036   : > { %v10139_v13 = vpop.f32.mrb[204].mxu1 }
0x1037   : > { %v6540_v5 = vpop.f32.mrb[205].mxu1 }
0x1038   : > { %v10140_v1 = vpop.f32.mrb[206].mxu1 }
0x1039   : > { %v14364_v22 = vpack.c.bf16 %v10140_v1, %v10139_v13  ;;  %v6543_v32 = vpop.f32.mrb[207].mxu1 }
0x103a   : > { %v14366_v48 = vpack.c.bf16 %v6543_v32, %v6540_v5 }
0x106e   : > { %v10159_v8 = vpop.f32.mrb[208].mxu1 }
0x106f   : > { %v6597_v4 = vpop.f32.mrb[209].mxu1 }
0x1070   : > { %6628 = vmax.xlane.f32.xlu0 %v6597_v4  ;;  %v10160_v35 = vpop.f32.mrb[210].mxu1 }
0x1071   : > { %v6600_v12 = vpop.f32.mrb[211].mxu1 }
0x1072   : > { %6630 = vmax.xlane.f32.xlu1 %v6600_v12 }
0x1074   : > { %6632 = vmax.xlane.f32.xlu0 %v10159_v8 }
0x1076   : > { %6634 = vmax.xlane.f32.xlu1 %v10160_v35  ;;  %v10163_v55 = vpop.f32.mrb[212].mxu1 }
0x1077   : > { %v6613_v49 = vpop.f32.mrb[213].mxu1 }
0x1078   : > { %6636 = vmax.xlane.f32.xlu0 %v6613_v49  ;;  %v10164_v21 = vpop.f32.mrb[214].mxu1 }
0x1079   : > { %v6616_v40 = vpop.f32.mrb[215].mxu1 }
0x107a   : > { %6638 = vmax.xlane.f32.xlu1 %v6616_v40 }
0x107c   : > { %6640 = vmax.xlane.f32.xlu0 %v10163_v55 }
0x107e   : > { %6642 = vmax.xlane.f32.xlu1 %v10164_v21 }
0x10fd   : > { %v6629_v18 = vpop.xlane.xlu0 %6628 }
0x10fe   : > { %v6644_v42 = vsub.f32 %v6597_v4, %v6629_v18 }
0x10ff   : > { %v6631_v9 = vpop.xlane.xlu1 %6630 }
0x1100   : > { %v6652_v6 = vmul.f32 1.442695, %v6644_v42  ;;  %v6645_v57 = vsub.f32 %v6600_v12, %v6631_v9 }
0x1101   : > { %v6633_v3 = vpop.xlane.xlu0 %6632 }
0x1102   : > { %11701 = vpow2.f32 %v6652_v6  ;;  %v6654_v17 = vmul.f32 1.442695, %v6645_v57  ;;  %v6646_v26 = vsub.f32 %v10159_v8, %v6633_v3 }
0x1103   : > { %v6635_v20 = vpop.xlane.xlu1 %6634 }
0x1104   : > { %11703 = vpow2.f32 %v6654_v17  ;;  %v6656_v24 = vmul.f32 1.442695, %v6646_v26  ;;  %v6647_v11 = vsub.f32 %v10160_v35, %v6635_v20 }
0x1105   : > { %v6637_v36 = vpop.xlane.xlu0 %6636 }
0x1106   : > { %11705 = vpow2.f32 %v6656_v24  ;;  %v6658_v16 = vmul.f32 1.442695, %v6647_v11  ;;  %v6648_v31 = vsub.f32 %v6613_v49, %v6637_v36 }
0x1107   : > { %v6639_v44 = vpop.xlane.xlu1 %6638 }
0x1108   : > { %11707 = vpow2.f32 %v6658_v16  ;;  %v6660_v58 = vmul.f32 1.442695, %v6648_v31  ;;  %v6649_v0 = vsub.f32 %v6616_v40, %v6639_v44 }
0x1109   : > { %v6641_v46 = vpop.xlane.xlu0 %6640 }
0x110a   : > { %11709 = vpow2.f32 %v6660_v58  ;;  %v6662_v62 = vmul.f32 1.442695, %v6649_v0  ;;  %v6650_v23 = vsub.f32 %v10163_v55, %v6641_v46  ;;  %v16334_v0 = vld [vmem:[#allocation91_spill] sm:$0xff] }
0x110b   : > { %v6643_v63 = vpop.xlane.xlu1 %6642 }
0x110c   : > { %v11702_v61 = vpop.eup %11701  ;;  %11711 = vpow2.f32 %v6662_v62  ;;  %v6664_v60 = vmul.f32 1.442695, %v6650_v23  ;;  %v6651_v27 = vsub.f32 %v10164_v21, %v6643_v63 }
0x110d   : > { %6668 = vadd.xlane.f32.xlu0 %v11702_v61 }
0x110e   : > { %v11704_v2 = vpop.eup %11703  ;;  %11713 = vpow2.f32 %v6664_v60  ;;  %v6666_v7 = vmul.f32 1.442695, %v6651_v27  ;;  %v16335_v60 = vld [vmem:[#allocation43_spill] sm:$0xff]  ;;  %v16336_v27 = vld [vmem:[#allocation21_spill] sm:$0xff] }
0x110f   : > { %6670 = vadd.xlane.f32.xlu1 %v11704_v2 }
0x1110   : > { %v11706_v10 = vpop.eup %11705  ;;  %11715 = vpow2.f32 %v6666_v7  ;;  %v16338_v7 = vld [vmem:[#allocation93_spill] sm:$0xff] }
0x1111   : > { %6672 = vadd.xlane.f32.xlu0 %v11706_v10 }
0x1112   : > { %v11708_v13 = vpop.eup %11707 }
0x1113   : > { %6674 = vadd.xlane.f32.xlu1 %v11708_v13 }
0x1114   : > { %v11710_v5 = vpop.eup %11709 }
0x1115   : > { %6676 = vadd.xlane.f32.xlu0 %v11710_v5 }
0x1116   : > { %v11712_v1 = vpop.eup %11711 }
0x1117   : > { %6678 = vadd.xlane.f32.xlu1 %v11712_v1 }
0x1118   : > { %v11714_v32 = vpop.eup %11713 }
0x1119   : > { %6680 = vadd.xlane.f32.xlu0 %v11714_v32 }
0x111a   : > { %v11716_v8 = vpop.eup %11715 }
0x111b   : > { %6682 = vadd.xlane.f32.xlu1 %v11716_v8 }
0x119a   : > { %v6669_v4 = vpop.xlane.xlu0 %6668 }
0x119b   : > { %11717 = vrcp.f32 %v6669_v4  ;;  %v11322_v4 = vld [vmem:[#allocation11 + $0x2c] ss:$16 sps:$4 sm:$0xff]  }
0x119c   : > { %v6671_v35 = vpop.xlane.xlu1 %6670 }
0x119d   : > { %11719 = vrcp.f32 %v6671_v35  ;;  %v16344_v35 = vld [vmem:[#allocation54_spill] sm:$0xff] }
0x119e   : > { %v6673_v12 = vpop.xlane.xlu0 %6672 }
0x119f   : > { %11721 = vrcp.f32 %v6673_v12  ;;  %v16345_v12 = vld [vmem:[#allocation49_spill] sm:$0xff] }
0x11a0   : > { %v6675_v55 = vpop.xlane.xlu1 %6674 }
0x11a1   : > { %11723 = vrcp.f32 %v6675_v55  ;;  %v16346_v55 = vpack.c.bf16 %v16344_v35, %v16345_v12  ;;  %v14401_v35 = vld [vmem:[#allocation11 + $0x22c] ss:$16 sps:$4 sm:$0xff]   ;;  %v14406_v12 = vld [vmem:[#allocation11 + $0x228] ss:$16 sps:$4 sm:$0xff]  }
0x11a2   : > { %v6677_v49 = vpop.xlane.xlu0 %6676 }
0x11a3   : > { %11725 = vrcp.f32 %v6677_v49  ;;  %v16347_v49 = vld [vmem:[#allocation76_spill] sm:$0xff] }
0x11a4   : > { %v6679_v21 = vpop.xlane.xlu1 %6678 }
0x11a5   : > { %v11718_v40 = vpop.eup %11717  ;;  %11727 = vrcp.f32 %v6679_v21  ;;  %v16348_v21 = vld [vmem:[#allocation74_spill] sm:$0xff] }
0x11a6   : > { %v6681_v18 = vpop.xlane.xlu0 %6680  ;;  %v6692_v6 = vmul.f32 %v11718_v40, %v11702_v61  ;;  %v16349_v40 = vpack.c.bf16 %v16347_v49, %v16348_v21  ;;  %v14412_v49 = vld [vmem:[#allocation11 + $0x248] ss:$16 sps:$4 sm:$0xff]   ;;  %v14415_v21 = vld [vmem:[#allocation11 + $0x26c] ss:$16 sps:$4 sm:$0xff]  }
0x11a7   : > { %v11720_v42 = vpop.eup %11719  ;;  %11729 = vrcp.f32 %v6681_v18  ;;  %v11320_v18 = vld [vmem:[#allocation11 + $0x28] ss:$16 sps:$4 sm:$0xff]  }
0x11a8   : > { %v6683_v9 = vpop.xlane.xlu1 %6682  ;;  %v6693_v57 = vmul.f32 %v11720_v42, %v11704_v2  ;;  %v16337_v2 = vpack.c.bf16 %v16335_v60, %v16336_v27  ;;  %v11325_v42 = vld [vmem:[#allocation11 + $0x4c] ss:$16 sps:$4 sm:$0xff]   ;;  %v11350_v27 = vld [vmem:[#allocation11 + $0x168] ss:$16 sps:$4 sm:$0xff]  }
0x11a9   : > { %v11722_v3 = vpop.eup %11721  ;;  %11731 = vrcp.f32 %v6683_v9  ;;  %v11323_v9 = vld [vmem:[#allocation11 + $0x48] ss:$16 sps:$4 sm:$0xff]   ;;  %v11352_v60 = vld [vmem:[#allocation11 + $0x16c] ss:$16 sps:$4 sm:$0xff]  }
0x11aa   : > { %v6700_v17 = vpack.c.bf16 %v6693_v57, %v6692_v6  ;;  %v6694_v20 = vmul.f32 %v11722_v3, %v11706_v10  ;;  %v16340_v10 = vld [vmem:[#allocation97_spill] sm:$0xff]  ;;  %v16350_v57 = vld [vmem:[#allocation79_spill] sm:$0xff]  ;;  %v16351_v3 = vld [vmem:[#allocation78_spill] sm:$0xff] }
0x11ab   : > { %v11724_v26 = vpop.eup %11723  ;;  %v11328_v6 = vld [vmem:[#allocation11 + $0x6c] ss:$16 sps:$4 sm:$0xff]  }
0x11ac   : > { %v6695_v24 = vmul.f32 %v11724_v26, %v11708_v13  ;;  %10181 = vmatprep.mubr.bf16.mxu0 %v6700_v17  ;;  %v16341_v13 = vld [vmem:[#allocation99_spill] sm:$0xff]  ;;  %v16352_v17 = vpack.c.bf16 %v16350_v57, %v16351_v3 }
0x11ad   : > { %v11726_v11 = vpop.eup %11725  ;;  %v11326_v26 = vld [vmem:[#allocation11 + $0x68] ss:$16 sps:$4 sm:$0xff]   ;;  %v14437_v57 = vld [vmem:[#allocation11 + $0x2cc] ss:$16 sps:$4 sm:$0xff]  }
0x11ae   : > { %v6701_v36 = vpack.c.bf16 %v6695_v24, %v6694_v20  ;;  %v6696_v31 = vmul.f32 %v11726_v11, %v11710_v5  ;;  %v16342_v5 = vld [vmem:[#allocation101_spill] sm:$0xff] }
0x11af   : > { %v11728_v16 = vpop.eup %11727  ;;  %v11331_v20 = vld [vmem:[#allocation11 + $0x8c] ss:$16 sps:$4 sm:$0xff]   ;;  %v11329_v24 = vld [vmem:[#allocation11 + $0x88] ss:$16 sps:$4 sm:$0xff]  }
0x11b0   : > { %10182 = vmatmul.mubr.bf16.vlgmr.msra.gmra.mrb[208].mxu0 %v6701_v36  ;;  %v6697_v44 = vmul.f32 %v11728_v16, %v11712_v1  ;;  %v16343_v1 = vld [vmem:[#allocation103_spill] sm:$0xff] }
0x11b1   : > { %v11730_v58 = vpop.eup %11729  ;;  %10190 = vmatpush3.bf16.xpose.msra.mxu0 %v16311_v39  ;;  %v16339_v39 = vld [vmem:[#allocation95_spill] sm:$0xff] }
0x11b2   : > { %10191 = vmatprep.subr.bf16.mxu0 %v16334_v0  ;;  %v6702_v46 = vpack.c.bf16 %v6697_v44, %v6696_v31  ;;  %v6698_v23 = vmul.f32 %v11730_v58, %v11714_v32  ;;  %v11319_v32 = vld [vmem:[#allocation11 + $0xc] ss:$16 sps:$4 sm:$0xff]   ;;  %v11332_v36 = vld [vmem:[#allocation11 + $0xa8] ss:$16 sps:$4 sm:$0xff]  }
0x11b3   : > { %v11732_v62 = vpop.eup %11731  ;;  %v11334_v11 = vld [vmem:[#allocation11 + $0xac] ss:$16 sps:$4 sm:$0xff]   ;;  %v11335_v31 = vld [vmem:[#allocation11 + $0xc8] ss:$16 sps:$4 sm:$0xff]  }
0x11b4   : > { %10185 = vmatprep.mubr.bf16.mxu0 %v6702_v46  ;;  %v6699_v63 = vmul.f32 %v11732_v62, %v11716_v8  ;;  %v11317_v8 = vld [vmem:[#allocation11 + $0x8] ss:$16 sps:$4 sm:$0xff]   ;;  %v11337_v16 = vld [vmem:[#allocation11 + $0xcc] ss:$16 sps:$4 sm:$0xff]  }
0x11b5   : > { %v11340_v44 = vld [vmem:[#allocation11 + $0xec] ss:$16 sps:$4 sm:$0xff]   ;;  %v11338_v58 = vld [vmem:[#allocation11 + $0xe8] ss:$16 sps:$4 sm:$0xff]  }
0x11b6   : > { %v6703_v61 = vpack.c.bf16 %v6699_v63, %v6698_v23  ;;  %v11341_v46 = vld [vmem:[#allocation11 + $0x108] ss:$16 sps:$4 sm:$0xff]   ;;  %v11346_v62 = vld [vmem:[#allocation11 + $0x12c] ss:$16 sps:$4 sm:$0xff]  }
0x11b7   : > { %v11344_v23 = vld [vmem:[#allocation11 + $0x128] ss:$16 sps:$4 sm:$0xff]   ;;  %v11349_v63 = vld [vmem:[#allocation11 + $0x14c] ss:$16 sps:$4 sm:$0xff]  }
0x11b8   : > { %10186 = vmatmul.mubr.bf16.gmra.mrb[212].mxu0 %v6703_v61  ;;  %v11347_v61 = vld [vmem:[#allocation11 + $0x148] ss:$16 sps:$4 sm:$0xff]  }
0x11b9   : > { %10192 = vmatpush3.bf16.xpose.msra.mxu0 %v16334_v0  ;;  %10205 = vmatprep.mubr.bf16.mxu0 %v16337_v2  ;;  %v11343_v0 = vld [vmem:[#allocation11 + $0x10c] ss:$16 sps:$4 sm:$0xff]   ;;  %v14440_v3 = vld [vmem:[#allocation11 + $0x2c8] ss:$16 sps:$4 sm:$0xff]  }
0x11ba   : > { %10193 = vmatprep.subr.bf16.mxu0 %v16338_v7  ;;  %v11355_v2 = vld [vmem:[#allocation11 + $0x18c] ss:$16 sps:$4 sm:$0xff]   ;;  %16353 = vst [vmem:[#allocation112_spill] sm:$0xff] %v14440_v3 }
0x11c1   : > { %10194 = vmatpush3.bf16.xpose.msra.mxu0 %v16338_v7  ;;  %v11353_v7 = vld [vmem:[#allocation11 + $0x188] ss:$16 sps:$4 sm:$0xff]  }
0x11c2   : > { %10195 = vmatprep.subr.bf16.mxu0 %v16339_v39 }
0x11c9   : > { %10196 = vmatpush3.bf16.xpose.msra.mxu0 %v16339_v39  ;;  %v11358_v39 = vld [vmem:[#allocation11 + $0x1ac] ss:$16 sps:$4 sm:$0xff]  }
0x11ca   : > { %10197 = vmatprep.subr.bf16.mxu0 %v16340_v10 }
0x11d1   : > { %10198 = vmatpush3.bf16.xpose.msra.mxu0 %v16340_v10  ;;  %v11356_v10 = vld [vmem:[#allocation11 + $0x1a8] ss:$16 sps:$4 sm:$0xff]  }
0x11d2   : > { %10199 = vmatprep.subr.bf16.mxu0 %v16341_v13 }
0x11d9   : > { %10200 = vmatpush3.bf16.xpose.msra.mxu0 %v16341_v13  ;;  %v11361_v13 = vld [vmem:[#allocation11 + $0x1cc] ss:$16 sps:$4 sm:$0xff]  }
0x11da   : > { %10201 = vmatprep.subr.bf16.mxu0 %v16342_v5 }
0x11e1   : > { %10202 = vmatpush3.bf16.xpose.msra.mxu0 %v16342_v5  ;;  %v11359_v5 = vld [vmem:[#allocation11 + $0x1c8] ss:$16 sps:$4 sm:$0xff]  }
0x11e2   : > { %10203 = vmatprep.subr.bf16.mxu0 %v16343_v1 }
0x11e9   : > { %10204 = vmatpush3.bf16.xpose.msra.mxu0 %v16343_v1  ;;  %v11364_v1 = vld [vmem:[#allocation11 + $0x1ec] ss:$16 sps:$4 sm:$0xff]  }
0x11ea   : > { %8039 = vmatprep.subr.bf16.mxu0 %v11319_v32  ;;  %v11362_v32 = vld [vmem:[#allocation11 + $0x1e8] ss:$16 sps:$4 sm:$0xff]  }
0x11f0   : > { %10206 = vmatmul.mubr.bf16.vlgmr.msra.gmra.mrb[216].mxu0 %v16346_v55  ;;  %v14409_v55 = vld [vmem:[#allocation11 + $0x24c] ss:$16 sps:$4 sm:$0xff]  }
0x11f1   : > { %10209 = vmatprep.mubr.bf16.mxu0 %v16349_v40  ;;  %8040 = vmatpush1.bf16.msra.mxu0 %v11317_v8  ;;  %v14396_v8 = vld [vmem:[#allocation11 + $0x20c] ss:$16 sps:$4 sm:$0xff]   ;;  %v14420_v40 = vld [vmem:[#allocation11 + $0x268] ss:$16 sps:$4 sm:$0xff]  }
0x11f2   : > { %8041 = vmatprep.subr.bf16.mxu0 %v11322_v4  ;;  %v14398_v4 = vld [vmem:[#allocation11 + $0x208] ss:$16 sps:$4 sm:$0xff]  }
0x11f5   : > { %8042 = vmatpush1.bf16.msra.mxu0 %v11320_v18  ;;  %v14423_v18 = vld [vmem:[#allocation11 + $0x28c] ss:$16 sps:$4 sm:$0xff]  }
0x11f6   : > { %8043 = vmatprep.subr.bf16.mxu0 %v11325_v42  ;;  %v14426_v42 = vld [vmem:[#allocation11 + $0x288] ss:$16 sps:$4 sm:$0xff]  }
0x11f8   : > { %10210 = vmatmul.mubr.bf16.gmra.mrb[220].mxu0 %v16352_v17  ;;  %v14443_v17 = vld [vmem:[#allocation11 + $0x2ec] ss:$16 sps:$4 sm:$0xff]  }
0x11f9   : > { %8044 = vmatpush1.bf16.msra.mxu0 %v11323_v9  ;;  %8071 = vmatprep.mubr.bf16.mxu0 %v14155_v52  ;;  %v14429_v9 = vld [vmem:[#allocation11 + $0x2ac] ss:$16 sps:$4 sm:$0xff]   ;;  %16354 = vst [vmem:[#allocation115_spill] sm:$0xff] %v14443_v17 }
0x11fa   : > { %8045 = vmatprep.subr.bf16.mxu0 %v11328_v6  ;;  %v14434_v6 = vld [vmem:[#allocation11 + $0x2a8] ss:$16 sps:$4 sm:$0xff]  }
0x11fd   : > { %8046 = vmatpush1.bf16.msra.mxu0 %v11326_v26  ;;  %v14448_v26 = vld [vmem:[#allocation11 + $0x2e8] ss:$16 sps:$4 sm:$0xff]  }
0x11fe   : > { %8047 = vmatprep.subr.bf16.mxu0 %v11331_v20  ;;  %16355 = vst [vmem:[#allocation118_spill] sm:$0xff] %v14448_v26  ;;  %v14451_v20 = vld [vmem:[#allocation11 + $0x30c] ss:$16 sps:$4 sm:$0xff]  }
0x11ff   : > { %16356 = vst [vmem:[#allocation121_spill] sm:$0xff] %v14451_v20 }
0x1201   : > { %8048 = vmatpush1.bf16.msra.mxu0 %v11329_v24  ;;  %v14454_v24 = vld [vmem:[#allocation11 + $0x308] ss:$16 sps:$4 sm:$0xff]  }
0x1202   : > { %8049 = vmatprep.subr.bf16.mxu0 %v11334_v11  ;;  %16357 = vst [vmem:[#allocation124_spill] sm:$0xff] %v14454_v24  ;;  %v14457_v11 = vld [vmem:[#allocation11 + $0x32c] ss:$16 sps:$4 sm:$0xff]  }
0x1203   : > { %16358 = vst [vmem:[#allocation22_spill] sm:$0xff] %v14457_v11 }
0x1205   : > { %8050 = vmatpush1.bf16.msra.mxu0 %v11332_v36  ;;  %v14462_v36 = vld [vmem:[#allocation11 + $0x328] ss:$16 sps:$4 sm:$0xff]  }
0x1206   : > { %8051 = vmatprep.subr.bf16.mxu0 %v11337_v16  ;;  %16359 = vst [vmem:[#allocation80_spill] sm:$0xff] %v14462_v36  ;;  %v14465_v16 = vld [vmem:[#allocation11 + $0x34c] ss:$16 sps:$4 sm:$0xff]  }
0x1207   : > { %16360 = vst [vmem:[#allocation81_spill] sm:$0xff] %v14465_v16 }
0x1209   : > { %8052 = vmatpush1.bf16.msra.mxu0 %v11335_v31  ;;  %v14468_v31 = vld [vmem:[#allocation11 + $0x348] ss:$16 sps:$4 sm:$0xff]  }
0x120a   : > { %8053 = vmatprep.subr.bf16.mxu0 %v11340_v44  ;;  %16361 = vst [vmem:[#allocation41_spill] sm:$0xff] %v14468_v31  ;;  %v14471_v44 = vld [vmem:[#allocation11 + $0x36c] ss:$16 sps:$4 sm:$0xff]  }
0x120b   : > { %16362 = vst [vmem:[#allocation34_spill] sm:$0xff] %v14471_v44 }
0x120d   : > { %8054 = vmatpush1.bf16.msra.mxu0 %v11338_v58  ;;  %v14476_v58 = vld [vmem:[#allocation11 + $0x368] ss:$16 sps:$4 sm:$0xff]  }
0x120e   : > { %8055 = vmatprep.subr.bf16.mxu0 %v11343_v0  ;;  %16363 = vst [vmem:[#allocation82_spill] sm:$0xff] %v14476_v58  ;;  %v14479_v0 = vld [vmem:[#allocation11 + $0x38c] ss:$16 sps:$4 sm:$0xff]  }
0x120f   : > { %16364 = vst [vmem:[#allocation83_spill] sm:$0xff] %v14479_v0 }
0x1211   : > { %8056 = vmatpush1.bf16.msra.mxu0 %v11341_v46  ;;  %v14482_v46 = vld [vmem:[#allocation11 + $0x388] ss:$16 sps:$4 sm:$0xff]  }
0x1212   : > { %8057 = vmatprep.subr.bf16.mxu0 %v11346_v62  ;;  %16365 = vst [vmem:[#allocation84_spill] sm:$0xff] %v14482_v46  ;;  %v14485_v62 = vld [vmem:[#allocation11 + $0x3ac] ss:$16 sps:$4 sm:$0xff]  }
0x1213   : > { %16366 = vst [vmem:[#allocation85_spill] sm:$0xff] %v14485_v62 }
0x1215   : > { %8058 = vmatpush1.bf16.msra.mxu0 %v11344_v23  ;;  %v14490_v23 = vld [vmem:[#allocation11 + $0x3a8] ss:$16 sps:$4 sm:$0xff]  }
0x1216   : > { %8059 = vmatprep.subr.bf16.mxu0 %v11349_v63  ;;  %16367 = vst [vmem:[#allocation86_spill] sm:$0xff] %v14490_v23  ;;  %v14493_v63 = vld [vmem:[#allocation11 + $0x3cc] ss:$16 sps:$4 sm:$0xff]  }
0x1217   : > { %16368 = vst [vmem:[#allocation87_spill] sm:$0xff] %v14493_v63 }
0x1219   : > { %8060 = vmatpush1.bf16.msra.mxu0 %v11347_v61  ;;  %v14496_v61 = vld [vmem:[#allocation11 + $0x3c8] ss:$16 sps:$4 sm:$0xff]  }
0x121a   : > { %8061 = vmatprep.subr.bf16.mxu0 %v11352_v60  ;;  %16369 = vst [vmem:[#allocation104_spill] sm:$0xff] %v14496_v61  ;;  %v14499_v60 = vld [vmem:[#allocation11 + $0x3ec] ss:$16 sps:$4 sm:$0xff]  }
0x121b   : > { %16370 = vst [vmem:[#allocation47_spill] sm:$0xff] %v14499_v60 }
0x121d   : > { %8062 = vmatpush1.bf16.msra.mxu0 %v11350_v27  ;;  %v14504_v27 = vld [vmem:[#allocation11 + $0x3e8] ss:$16 sps:$4 sm:$0xff]  }
0x121e   : > { %8063 = vmatprep.subr.bf16.mxu0 %v11355_v2  ;;  %16371 = vst [vmem:[#allocation40_spill] sm:$0xff] %v14504_v27 }
0x1221   : > { %8064 = vmatpush1.bf16.msra.mxu0 %v11353_v7 }
0x1222   : > { %8065 = vmatprep.subr.bf16.mxu0 %v11358_v39 }
0x1225   : > { %8066 = vmatpush1.bf16.msra.mxu0 %v11356_v10 }
0x1226   : > { %8067 = vmatprep.subr.bf16.mxu0 %v11361_v13 }
0x1229   : > { %8068 = vmatpush1.bf16.msra.mxu0 %v11359_v5 }
0x122a   : > { %8069 = vmatprep.subr.bf16.mxu0 %v11364_v1 }
0x122d   : > { %8070 = vmatpush1.bf16.msra.mxu0 %v11362_v32 }
0x122e   : > { %8152 = vmatprep.subr.bf16.mxu0 %v14396_v8 }
0x1230   : > { %8072 = vmatmul.mubr.bf16.vlgmr.msra.gmra.mrb[224].mxu0 %v14147_v37 }
0x1231   : > { %8081 = vmatprep.mubr.bf16.mxu0 %v14153_v54  ;;  %8153 = vmatpush1.bf16.msra.mxu0 %v14398_v4 }
0x1232   : > { %8154 = vmatprep.subr.bf16.mxu0 %v14401_v35 }
0x1235   : > { %8155 = vmatpush1.bf16.msra.mxu0 %v14406_v12 }
0x1236   : > { %8156 = vmatprep.subr.bf16.mxu0 %v14409_v55 }
0x1238   : > { %8082 = vmatmul.mubr.bf16.gmra.mrb[228].mxu0 %v14145_v41 }
0x1239   : > { %8091 = vmatprep.mubr.bf16.mxu0 %v14159_v56  ;;  %8157 = vmatpush1.bf16.msra.mxu0 %v14412_v49 }
0x123a   : > { %8158 = vmatprep.subr.bf16.mxu0 %v14415_v21 }
0x123d   : > { %8159 = vmatpush1.bf16.msra.mxu0 %v14420_v40 }
0x123e   : > { %8160 = vmatprep.subr.bf16.mxu0 %v14423_v18 }
0x1240   : > { %8092 = vmatmul.mubr.bf16.gmra.mrb[232].mxu0 %v14151_v53 }
0x1241   : > { %8101 = vmatprep.mubr.bf16.mxu0 %v14157_v30  ;;  %8161 = vmatpush1.bf16.msra.mxu0 %v14426_v42 }
0x1242   : > { %8162 = vmatprep.subr.bf16.mxu0 %v14429_v9 }
0x1245   : > { %8163 = vmatpush1.bf16.msra.mxu0 %v14434_v6 }
0x1246   : > { %8164 = vmatprep.subr.bf16.mxu0 %v14437_v57 }
0x1248   : > { %8102 = vmatmul.mubr.bf16.gmra.mrb[236].mxu0 %v14149_v29 }
0x1249   : > { %8111 = vmatprep.mubr.bf16.mxu0 %v14362_v25  ;;  %8165 = vmatpush1.bf16.msra.mxu0 %v14440_v3 }
0x124a   : > { %8166 = vmatprep.subr.bf16.mxu0 %v14443_v17 }
0x124d   : > { %8167 = vmatpush1.bf16.msra.mxu0 %v14448_v26 }
0x124e   : > { %8168 = vmatprep.subr.bf16.mxu0 %v14451_v20 }
0x1250   : > { %8112 = vmatmul.mubr.bf16.gmra.mrb[240].mxu0 %v14311_v28 }
0x1251   : > { %8121 = vmatprep.mubr.bf16.mxu0 %v14360_v45  ;;  %8169 = vmatpush1.bf16.msra.mxu0 %v14454_v24 }
0x1252   : > { %8170 = vmatprep.subr.bf16.mxu0 %v14457_v11 }
0x1255   : > { %8171 = vmatpush1.bf16.msra.mxu0 %v14462_v36 }
0x1256   : > { %8172 = vmatprep.subr.bf16.mxu0 %v14465_v16 }
0x1258   : > { %8122 = vmatmul.mubr.bf16.gmra.mrb[244].mxu0 %v14309_v14 }
0x1259   : > { %8131 = vmatprep.mubr.bf16.mxu0 %v14366_v48  ;;  %8173 = vmatpush1.bf16.msra.mxu0 %v14468_v31 }
0x125a   : > { %8174 = vmatprep.subr.bf16.mxu0 %v14471_v44 }
0x125d   : > { %8175 = vmatpush1.bf16.msra.mxu0 %v14476_v58 }
0x125e   : > { %8176 = vmatprep.subr.bf16.mxu0 %v14479_v0 }
0x1260   : > { %8132 = vmatmul.mubr.bf16.gmra.mrb[248].mxu0 %v14315_v51 }
0x1261   : > { %8141 = vmatprep.mubr.bf16.mxu0 %v14364_v22  ;;  %8177 = vmatpush1.bf16.msra.mxu0 %v14482_v46 }
0x1262   : > { %8178 = vmatprep.subr.bf16.mxu0 %v14485_v62 }
0x1265   : > { %8179 = vmatpush1.bf16.msra.mxu0 %v14490_v23 }
0x1266   : > { %8180 = vmatprep.subr.bf16.mxu0 %v14493_v63 }
0x1268   : > { %8142 = vmatmul.mubr.bf16.gmra.mrb[252].mxu0 %v14313_v50 }
0x1269   : > { %8181 = vmatpush1.bf16.msra.mxu0 %v14496_v61  ;;  %8184 = vmatprep.mubr.bf16.mxu0 %v14259_v59 }
0x126a   : > { %8182 = vmatprep.subr.bf16.mxu0 %v14499_v60 }
0x126d   : > { %8183 = vmatpush1.bf16.msra.mxu0 %v14504_v27 }
0x1270   : > { %8185 = vmatmul.mubr.bf16.vlgmr.msra.gmra.mrb[224].mxu0 %v14207_v19 }
0x1271   : > { %8194 = vmatprep.mubr.bf16.mxu0 %v14257_v43 }
0x1278   : > { %8195 = vmatmul.mubr.bf16.gmra.mrb[228].mxu0 %v14205_v47 }
0x1279   : > { %8204 = vmatprep.mubr.bf16.mxu0 %v14263_v15 }
0x1280   : > { %8205 = vmatmul.mubr.bf16.gmra.mrb[232].mxu0 %v14211_v34 }
0x1281   : > { %8214 = vmatprep.mubr.bf16.mxu0 %v14261_v33 }
0x1283   : > { %v10183_v2 = vpop.f32.mrb[208].mxu0 }
0x1284   : > { %v6738_v7 = vpop.f32.mrb[209].mxu0 }
0x1285   : > { %v10184_v39 = vpop.f32.mrb[210].mxu0 }
0x1286   : > { %v14514_v10 = vpack.c.bf16 %v10184_v39, %v10183_v2  ;;  %v6741_v13 = vpop.f32.mrb[211].mxu0 }
0x1287   : > { %v14516_v5 = vpack.c.bf16 %v6741_v13, %v6738_v7 }
0x1288   : > { %16372 = vst [vmem:[#allocation53_spill] sm:$0xff] %v14514_v10  ;;  %8215 = vmatmul.mubr.bf16.gmra.mrb[236].mxu0 %v14209_v38 }
0x1289   : > { %16373 = vst [vmem:[#allocation46_spill] sm:$0xff] %v14516_v5 }
0x128b   : > { %v10187_v1 = vpop.f32.mrb[212].mxu0 }
0x128c   : > { %v6754_v32 = vpop.f32.mrb[213].mxu0 }
0x128d   : > { %v10188_v27 = vpop.f32.mrb[214].mxu0 }
0x128e   : > { %v14519_v60 = vpack.c.bf16 %v10188_v27, %v10187_v1  ;;  %v6757_v61 = vpop.f32.mrb[215].mxu0 }
0x128f   : > { %v14521_v63 = vpack.c.bf16 %v6757_v61, %v6754_v32 }
0x1290   : > { %16374 = vst [vmem:[#allocation106_spill] sm:$0xff] %v14519_v60 }
0x1291   : > { %16375 = vst [vmem:[#allocation108_spill] sm:$0xff] %v14521_v63 }
0x12c3   : > { %v10207_v23 = vpop.f32.mrb[216].mxu0 }
0x12c4   : > { %v6811_v62 = vpop.f32.mrb[217].mxu0 }
0x12c5   : > { %6842 = vmax.xlane.f32.xlu0 %v6811_v62  ;;  %v10208_v46 = vpop.f32.mrb[218].mxu0 }
0x12c6   : > { %v6814_v0 = vpop.f32.mrb[219].mxu0 }
0x12c7   : > { %6844 = vmax.xlane.f32.xlu1 %v6814_v0 }
0x12c9   : > { %6846 = vmax.xlane.f32.xlu0 %v10207_v23 }
0x12cb   : > { %6848 = vmax.xlane.f32.xlu1 %v10208_v46  ;;  %v10211_v2 = vpop.f32.mrb[220].mxu0 }
0x12cc   : > { %v6827_v7 = vpop.f32.mrb[221].mxu0 }
0x12cd   : > { %6850 = vmax.xlane.f32.xlu0 %v6827_v7  ;;  %v10212_v39 = vpop.f32.mrb[222].mxu0 }
0x12ce   : > { %v6830_v13 = vpop.f32.mrb[223].mxu0 }
0x12cf   : > { %6852 = vmax.xlane.f32.xlu1 %v6830_v13 }
0x12d1   : > { %6854 = vmax.xlane.f32.xlu0 %v10211_v2 }
0x12d3   : > { %6856 = vmax.xlane.f32.xlu1 %v10212_v39 }
0x1333   : > { %v14523_v27 = vpop.f32.mrb[248].mxu0 }
0x1334   : > { %16376 = vst [vmem:[#allocation37_spill] sm:$0xff] %v14523_v27  ;;  %v14525_v61 = vpop.f32.mrb[249].mxu0 }
0x1335   : > { %16377 = vst [vmem:[#allocation52_spill] sm:$0xff] %v14525_v61  ;;  %v14527_v1 = vpop.f32.mrb[250].mxu0 }
0x1336   : > { %16378 = vst [vmem:[#allocation110_spill] sm:$0xff] %v14527_v1  ;;  %v14529_v32 = vpop.f32.mrb[251].mxu0 }
0x1337   : > { %16379 = vst [vmem:[#allocation113_spill] sm:$0xff] %v14529_v32 }
0x133b   : > { %v14531_v60 = vpop.f32.mrb[252].mxu0 }
0x133c   : > { %16380 = vst [vmem:[#allocation116_spill] sm:$0xff] %v14531_v60  ;;  %v14533_v63 = vpop.f32.mrb[253].mxu0 }
0x133d   : > { %16381 = vst [vmem:[#allocation119_spill] sm:$0xff] %v14533_v63  ;;  %v14535_v10 = vpop.f32.mrb[254].mxu0 }
0x133e   : > { %16382 = vst [vmem:[#allocation122_spill] sm:$0xff] %v14535_v10  ;;  %v14537_v5 = vpop.f32.mrb[255].mxu0 }
0x133f   : > { %16383 = vst [vmem:[#allocation23_spill] sm:$0xff] %v14537_v5 }
0x1343   : > { %v14539_v58 = vpop.f32.mrb[224].mxu0 }
0x1344   : > { %16384 = vst [vmem:[#allocation24_spill] sm:$0xff] %v14539_v58  ;;  %v14541_v44 = vpop.f32.mrb[225].mxu0 }
0x1345   : > { %16385 = vst [vmem:[#allocation59_spill] sm:$0xff] %v14541_v44  ;;  %v14543_v31 = vpop.f32.mrb[226].mxu0 }
0x1346   : > { %16386 = vst [vmem:[#allocation55_spill] sm:$0xff] %v14543_v31  ;;  %v14545_v27 = vpop.f32.mrb[227].mxu0 }
0x1347   : > { %16387 = vst [vmem:[#allocation26_spill] sm:$0xff] %v14545_v27 }
0x134b   : > { %v14547_v61 = vpop.f32.mrb[228].mxu0 }
0x134c   : > { %16388 = vst [vmem:[#allocation29_spill] sm:$0xff] %v14547_v61  ;;  %v14549_v1 = vpop.f32.mrb[229].mxu0 }
0x134d   : > { %16389 = vst [vmem:[#allocation33_spill] sm:$0xff] %v14549_v1  ;;  %v14551_v32 = vpop.f32.mrb[230].mxu0 }
0x134e   : > { %16390 = vst [vmem:[#allocation39_spill] sm:$0xff] %v14551_v32  ;;  %v14553_v60 = vpop.f32.mrb[231].mxu0 }
0x134f   : > { %16391 = vst [vmem:[#allocation45_spill] sm:$0xff] %v14553_v60 }
0x1352   : > { %v6843_v63 = vpop.xlane.xlu0 %6842 }
0x1353   : > { %v6858_v10 = vsub.f32 %v6811_v62, %v6843_v63  ;;  %v14555_v16 = vpop.f32.mrb[232].mxu0 }
0x1354   : > { %16392 = vst [vmem:[#allocation56_spill] sm:$0xff] %v14555_v16  ;;  %v6845_v5 = vpop.xlane.xlu1 %6844  ;;  %v14557_v58 = vpop.f32.mrb[233].mxu0 }
0x1355   : > { %16393 = vst [vmem:[#allocation105_spill] sm:$0xff] %v14557_v58  ;;  %v6866_v44 = vmul.f32 1.442695, %v6858_v10  ;;  %v6859_v36 = vsub.f32 %v6814_v0, %v6845_v5  ;;  %v14559_v31 = vpop.f32.mrb[234].mxu0 }
0x1356   : > { %16394 = vst [vmem:[#allocation64_spill] sm:$0xff] %v14559_v31  ;;  %v6847_v27 = vpop.xlane.xlu0 %6846  ;;  %v14561_v11 = vpop.f32.mrb[235].mxu0 }
0x1357   : > { %16395 = vst [vmem:[#allocation61_spill] sm:$0xff] %v14561_v11  ;;  %11733 = vpow2.f32 %v6866_v44  ;;  %v6868_v1 = vmul.f32 1.442695, %v6859_v36  ;;  %v6860_v61 = vsub.f32 %v10207_v23, %v6847_v27 }
0x1358   : > { %v6849_v32 = vpop.xlane.xlu1 %6848 }
0x1359   : > { %11735 = vpow2.f32 %v6868_v1  ;;  %v6870_v60 = vmul.f32 1.442695, %v6860_v61  ;;  %v6861_v24 = vsub.f32 %v10208_v46, %v6849_v32 }
0x135a   : > { %v6851_v62 = vpop.xlane.xlu0 %6850 }
0x135b   : > { %11737 = vpow2.f32 %v6870_v60  ;;  %v6872_v63 = vmul.f32 1.442695, %v6861_v24  ;;  %v6862_v16 = vsub.f32 %v6827_v7, %v6851_v62  ;;  %v14563_v20 = vpop.f32.mrb[236].mxu0 }
0x135c   : > { %16396 = vst [vmem:[#allocation68_spill] sm:$0xff] %v14563_v20  ;;  %v6853_v10 = vpop.xlane.xlu1 %6852  ;;  %v14565_v0 = vpop.f32.mrb[237].mxu0 }
0x135d   : > { %16397 = vst [vmem:[#allocation66_spill] sm:$0xff] %v14565_v0  ;;  %11739 = vpow2.f32 %v6872_v63  ;;  %v6874_v5 = vmul.f32 1.442695, %v6862_v16  ;;  %v6863_v31 = vsub.f32 %v6830_v13, %v6853_v10  ;;  %v14567_v11 = vpop.f32.mrb[238].mxu0  ;;  %v11415_v63 = vld [vmem:[#allocation11 + $0x4] ss:$16 sps:$4 sm:$0xff]  }
0x135e   : > { %16398 = vst [vmem:[#allocation107_spill] sm:$0xff] %v14567_v11  ;;  %v6855_v36 = vpop.xlane.xlu0 %6854  ;;  %v14569_v44 = vpop.f32.mrb[239].mxu0  ;;  %7813 = vmatprep.subr.bf16.mxu1 %v11415_v63 }
0x135f   : > { %16399 = vst [vmem:[#allocation109_spill] sm:$0xff] %v14569_v44  ;;  %11741 = vpow2.f32 %v6874_v5  ;;  %v6876_v23 = vmul.f32 1.442695, %v6863_v31  ;;  %v6864_v46 = vsub.f32 %v10211_v2, %v6855_v36 }
0x1360   : > { %v6857_v27 = vpop.xlane.xlu1 %6856 }
0x1361   : > { %v11734_v60 = vpop.eup %11733  ;;  %11743 = vpow2.f32 %v6876_v23  ;;  %v6878_v24 = vmul.f32 1.442695, %v6864_v46  ;;  %v6865_v7 = vsub.f32 %v10212_v39, %v6857_v27 }
0x1362   : > { %6882 = vadd.xlane.f32.xlu0 %v11734_v60 }
0x1363   : > { %v11736_v61 = vpop.eup %11735  ;;  %11745 = vpow2.f32 %v6878_v24  ;;  %v6880_v1 = vmul.f32 1.442695, %v6865_v7 }
0x1364   : > { %6884 = vadd.xlane.f32.xlu1 %v11736_v61 }
0x1365   : > { %v11738_v16 = vpop.eup %11737  ;;  %11747 = vpow2.f32 %v6880_v1 }
0x1366   : > { %6886 = vadd.xlane.f32.xlu0 %v11738_v16 }
0x1367   : > { %v11740_v13 = vpop.eup %11739 }
0x1368   : > { %6888 = vadd.xlane.f32.xlu1 %v11740_v13 }
0x1369   : > { %v11742_v32 = vpop.eup %11741 }
0x136a   : > { %6890 = vadd.xlane.f32.xlu0 %v11742_v32 }
0x136b   : > { %v11744_v62 = vpop.eup %11743 }
0x136c   : > { %6892 = vadd.xlane.f32.xlu1 %v11744_v62 }
0x136d   : > { %v11746_v31 = vpop.eup %11745 }
0x136e   : > { %6894 = vadd.xlane.f32.xlu0 %v11746_v31 }
0x136f   : > { %v11748_v2 = vpop.eup %11747 }
0x1370   : > { %6896 = vadd.xlane.f32.xlu1 %v11748_v2 }
0x13ef   : > { %v6883_v39 = vpop.xlane.xlu0 %6882 }
0x13f0   : > { %11749 = vrcp.f32 %v6883_v39 }
0x13f1   : > { %v6885_v10 = vpop.xlane.xlu1 %6884 }
0x13f2   : > { %11751 = vrcp.f32 %v6885_v10 }
0x13f3   : > { %v6887_v5 = vpop.xlane.xlu0 %6886 }
0x13f4   : > { %11753 = vrcp.f32 %v6887_v5 }
0x13f5   : > { %v6889_v36 = vpop.xlane.xlu1 %6888 }
0x13f6   : > { %11755 = vrcp.f32 %v6889_v36  ;;  %v11413_v36 = vld [vmem:[#allocation11] ss:$16 sps:$4 sm:$0xff]  }
0x13f7   : > { %v6891_v23 = vpop.xlane.xlu0 %6890 }
0x13f8   : > { %11757 = vrcp.f32 %v6891_v23  ;;  %v11418_v23 = vld [vmem:[#allocation11 + $0x24] ss:$16 sps:$4 sm:$0xff]  }
0x13f9   : > { %v6893_v46 = vpop.xlane.xlu1 %6892 }
0x13fa   : > { %v11750_v27 = vpop.eup %11749  ;;  %11759 = vrcp.f32 %v6893_v46 }
0x13fb   : > { %v6895_v24 = vpop.xlane.xlu0 %6894  ;;  %v6906_v44 = vmul.f32 %v11750_v27, %v11734_v60 }
0x13fc   : > { %v11752_v7 = vpop.eup %11751  ;;  %11761 = vrcp.f32 %v6895_v24  ;;  %v11416_v24 = vld [vmem:[#allocation11 + $0x20] ss:$16 sps:$4 sm:$0xff]  }
0x13fd   : > { %v6897_v1 = vpop.xlane.xlu1 %6896  ;;  %v6907_v11 = vmul.f32 %v11752_v7, %v11736_v61  ;;  %v11421_v61 = vld [vmem:[#allocation11 + $0x44] ss:$16 sps:$4 sm:$0xff]  }
0x13fe   : > { %v11754_v63 = vpop.eup %11753  ;;  %11763 = vrcp.f32 %v6897_v1  ;;  %v11439_v7 = vld [vmem:[#allocation11 + $0x104] ss:$16 sps:$4 sm:$0xff]  }
0x13ff   : > { %v6914_v39 = vpack.c.bf16 %v6907_v11, %v6906_v44  ;;  %v6908_v10 = vmul.f32 %v11754_v63, %v11738_v16  ;;  %v11442_v1 = vld [vmem:[#allocation11 + $0x124] ss:$16 sps:$4 sm:$0xff]   ;;  %v11440_v63 = vld [vmem:[#allocation11 + $0x120] ss:$16 sps:$4 sm:$0xff]  }
0x1400   : > { %v11756_v0 = vpop.eup %11755 }
0x1401   : > { %v6909_v20 = vmul.f32 %v11756_v0, %v11740_v13  ;;  %10229 = vmatprep.mubr.bf16.mxu1 %v6914_v39  ;;  %v11419_v0 = vld [vmem:[#allocation11 + $0x40] ss:$16 sps:$4 sm:$0xff]   ;;  %v11445_v39 = vld [vmem:[#allocation11 + $0x144] ss:$16 sps:$4 sm:$0xff]  }
0x1402   : > { %v11758_v5 = vpop.eup %11757  ;;  %v11425_v13 = vld [vmem:[#allocation11 + $0x80] ss:$16 sps:$4 sm:$0xff]  }
0x1403   : > { %v6915_v58 = vpack.c.bf16 %v6909_v20, %v6908_v10  ;;  %v6910_v46 = vmul.f32 %v11758_v5, %v11742_v32  ;;  %v11424_v20 = vld [vmem:[#allocation11 + $0x64] ss:$16 sps:$4 sm:$0xff]   ;;  %v11428_v32 = vld [vmem:[#allocation11 + $0xa0] ss:$16 sps:$4 sm:$0xff]  }
0x1404   : > { %v11760_v26 = vpop.eup %11759  ;;  %v11443_v10 = vld [vmem:[#allocation11 + $0x140] ss:$16 sps:$4 sm:$0xff]   ;;  %v11448_v5 = vld [vmem:[#allocation11 + $0x164] ss:$16 sps:$4 sm:$0xff]  }
0x1405   : > { %10230 = vmatmul.mubr.bf16.vlgmr.msra.gmra.mrb[216].mxu1 %v6915_v58  ;;  %v6911_v17 = vmul.f32 %v11760_v26, %v11744_v62  ;;  %v11422_v26 = vld [vmem:[#allocation11 + $0x60] ss:$16 sps:$4 sm:$0xff]   ;;  %v11427_v58 = vld [vmem:[#allocation11 + $0x84] ss:$16 sps:$4 sm:$0xff]  }
0x1406   : > { %v11762_v3 = vpop.eup %11761  ;;  %7814 = vmatpush1.bf16.msra.mxu1 %v11413_v36  ;;  %v11431_v62 = vld [vmem:[#allocation11 + $0xc0] ss:$16 sps:$4 sm:$0xff]  }
0x1407   : > { %7815 = vmatprep.subr.bf16.mxu1 %v11418_v23  ;;  %v6916_v60 = vpack.c.bf16 %v6911_v17, %v6910_v46  ;;  %v6912_v11 = vmul.f32 %v11762_v3, %v11746_v31  ;;  %v11430_v17 = vld [vmem:[#allocation11 + $0xa4] ss:$16 sps:$4 sm:$0xff]   ;;  %v11446_v36 = vld [vmem:[#allocation11 + $0x160] ss:$16 sps:$4 sm:$0xff]  }
0x1408   : > { %v11764_v27 = vpop.eup %11763  ;;  %v11433_v3 = vld [vmem:[#allocation11 + $0xc4] ss:$16 sps:$4 sm:$0xff]   ;;  %v11449_v46 = vld [vmem:[#allocation11 + $0x180] ss:$16 sps:$4 sm:$0xff]  }
0x1409   : > { %10233 = vmatprep.mubr.bf16.mxu1 %v6916_v60  ;;  %v6913_v44 = vmul.f32 %v11764_v27, %v11748_v2  ;;  %v11436_v31 = vld [vmem:[#allocation11 + $0xe4] ss:$16 sps:$4 sm:$0xff]   ;;  %v11434_v2 = vld [vmem:[#allocation11 + $0xe0] ss:$16 sps:$4 sm:$0xff]  }
0x140a   : > { %7816 = vmatpush1.bf16.msra.mxu1 %v11416_v24  ;;  %v11451_v23 = vld [vmem:[#allocation11 + $0x184] ss:$16 sps:$4 sm:$0xff]   ;;  %v11452_v60 = vld [vmem:[#allocation11 + $0x1a0] ss:$16 sps:$4 sm:$0xff]  }
0x140b   : > { %7817 = vmatprep.subr.bf16.mxu1 %v11421_v61  ;;  %v6917_v16 = vpack.c.bf16 %v6913_v44, %v6912_v11  ;;  %v11454_v24 = vld [vmem:[#allocation11 + $0x1a4] ss:$16 sps:$4 sm:$0xff]   ;;  %v11455_v27 = vld [vmem:[#allocation11 + $0x1c0] ss:$16 sps:$4 sm:$0xff]  }
0x140c   : > { %v11457_v61 = vld [vmem:[#allocation11 + $0x1c4] ss:$16 sps:$4 sm:$0xff]   ;;  %v11458_v44 = vld [vmem:[#allocation11 + $0x1e0] ss:$16 sps:$4 sm:$0xff]  }
0x140d   : > { %10234 = vmatmul.mubr.bf16.gmra.mrb[220].mxu1 %v6917_v16  ;;  %v11460_v11 = vld [vmem:[#allocation11 + $0x1e4] ss:$16 sps:$4 sm:$0xff]   ;;  %v11461_v16 = vld [vmem:[#allocation11 + $0x200] ss:$16 sps:$4 sm:$0xff]  }
0x140e   : > { %7818 = vmatpush1.bf16.msra.mxu1 %v11419_v0  ;;  %7845 = vmatprep.mubr.bf16.mxu1 %v14155_v52  ;;  %v11437_v52 = vld [vmem:[#allocation11 + $0x100] ss:$16 sps:$4 sm:$0xff]   ;;  %v11463_v0 = vld [vmem:[#allocation11 + $0x204] ss:$16 sps:$4 sm:$0xff]  }
0x140f   : > { %7819 = vmatprep.subr.bf16.mxu1 %v11424_v20  ;;  %v11466_v20 = vld [vmem:[#allocation11 + $0x224] ss:$16 sps:$4 sm:$0xff]  }
0x1412   : > { %7820 = vmatpush1.bf16.msra.mxu1 %v11422_v26  ;;  %v11464_v26 = vld [vmem:[#allocation11 + $0x220] ss:$16 sps:$4 sm:$0xff]  }
0x1413   : > { %7821 = vmatprep.subr.bf16.mxu1 %v11427_v58  ;;  %v11469_v58 = vld [vmem:[#allocation11 + $0x244] ss:$16 sps:$4 sm:$0xff]  }
0x1416   : > { %7822 = vmatpush1.bf16.msra.mxu1 %v11425_v13  ;;  %v11467_v13 = vld [vmem:[#allocation11 + $0x240] ss:$16 sps:$4 sm:$0xff]  }
0x1417   : > { %7823 = vmatprep.subr.bf16.mxu1 %v11430_v17  ;;  %v11472_v17 = vld [vmem:[#allocation11 + $0x264] ss:$16 sps:$4 sm:$0xff]  }
0x141a   : > { %7824 = vmatpush1.bf16.msra.mxu1 %v11428_v32  ;;  %v11470_v32 = vld [vmem:[#allocation11 + $0x260] ss:$16 sps:$4 sm:$0xff]  }
0x141b   : > { %7825 = vmatprep.subr.bf16.mxu1 %v11433_v3  ;;  %v11475_v3 = vld [vmem:[#allocation11 + $0x284] ss:$16 sps:$4 sm:$0xff]  }
0x141e   : > { %7826 = vmatpush1.bf16.msra.mxu1 %v11431_v62  ;;  %v11476_v62 = vld [vmem:[#allocation11 + $0x2a0] ss:$16 sps:$4 sm:$0xff]  }
0x141f   : > { %7827 = vmatprep.subr.bf16.mxu1 %v11436_v31  ;;  %v11481_v31 = vld [vmem:[#allocation11 + $0x2c4] ss:$16 sps:$4 sm:$0xff]  }
0x1422   : > { %7828 = vmatpush1.bf16.msra.mxu1 %v11434_v2  ;;  %v11482_v2 = vld [vmem:[#allocation11 + $0x2e0] ss:$16 sps:$4 sm:$0xff]  }
0x1423   : > { %7829 = vmatprep.subr.bf16.mxu1 %v11439_v7  ;;  %v11487_v7 = vld [vmem:[#allocation11 + $0x304] ss:$16 sps:$4 sm:$0xff]  }
0x1426   : > { %7830 = vmatpush1.bf16.msra.mxu1 %v11437_v52  ;;  %v11488_v52 = vld [vmem:[#allocation11 + $0x320] ss:$16 sps:$4 sm:$0xff]  }
0x1427   : > { %7831 = vmatprep.subr.bf16.mxu1 %v11442_v1  ;;  %v11493_v1 = vld [vmem:[#allocation11 + $0x344] ss:$16 sps:$4 sm:$0xff]  }
0x142a   : > { %7832 = vmatpush1.bf16.msra.mxu1 %v11440_v63  ;;  %v11494_v63 = vld [vmem:[#allocation11 + $0x360] ss:$16 sps:$4 sm:$0xff]  }
0x142b   : > { %7833 = vmatprep.subr.bf16.mxu1 %v11445_v39  ;;  %v11499_v39 = vld [vmem:[#allocation11 + $0x384] ss:$16 sps:$4 sm:$0xff]  }
0x142e   : > { %7834 = vmatpush1.bf16.msra.mxu1 %v11443_v10  ;;  %v11500_v10 = vld [vmem:[#allocation11 + $0x3a0] ss:$16 sps:$4 sm:$0xff]  }
0x142f   : > { %7835 = vmatprep.subr.bf16.mxu1 %v11448_v5  ;;  %v11505_v5 = vld [vmem:[#allocation11 + $0x3c4] ss:$16 sps:$4 sm:$0xff]  }
0x1432   : > { %7836 = vmatpush1.bf16.msra.mxu1 %v11446_v36  ;;  %v11506_v36 = vld [vmem:[#allocation11 + $0x3e0] ss:$16 sps:$4 sm:$0xff]  }
0x1433   : > { %7837 = vmatprep.subr.bf16.mxu1 %v11451_v23 }
0x1436   : > { %7838 = vmatpush1.bf16.msra.mxu1 %v11449_v46  ;;  %v16419_v46 = vld [vmem:[#allocation46_spill] sm:$0xff] }
0x1437   : > { %7839 = vmatprep.subr.bf16.mxu1 %v11454_v24 }
0x143a   : > { %7840 = vmatpush1.bf16.msra.mxu1 %v11452_v60 }
0x143b   : > { %7841 = vmatprep.subr.bf16.mxu1 %v11457_v61 }
0x143e   : > { %7842 = vmatpush1.bf16.msra.mxu1 %v11455_v27 }
0x143f   : > { %7843 = vmatprep.subr.bf16.mxu1 %v11460_v11 }
0x1442   : > { %7844 = vmatpush1.bf16.msra.mxu1 %v11458_v44 }
0x1443   : > { %7926 = vmatprep.subr.bf16.mxu1 %v11463_v0  ;;  %v16420_v0 = vld [vmem:[#allocation53_spill] sm:$0xff] }
0x1445   : > { %7846 = vmatmul.mubr.bf16.vlgmr.msra.gmra.mrb[224].mxu1 %v14147_v37  ;;  %v11473_v37 = vld [vmem:[#allocation11 + $0x280] ss:$16 sps:$4 sm:$0xff]  }
0x1446   : > { %7855 = vmatprep.mubr.bf16.mxu1 %v14153_v54  ;;  %7927 = vmatpush1.bf16.msra.mxu1 %v11461_v16  ;;  %v11478_v54 = vld [vmem:[#allocation11 + $0x2a4] ss:$16 sps:$4 sm:$0xff]  }
0x1447   : > { %7928 = vmatprep.subr.bf16.mxu1 %v11466_v20  ;;  %v16421_v16 = vld [vmem:[#allocation108_spill] sm:$0xff]  ;;  %v16422_v20 = vld [vmem:[#allocation106_spill] sm:$0xff] }
0x144a   : > { %7929 = vmatpush1.bf16.msra.mxu1 %v11464_v26  ;;  %v7151_v26 = vld [vmem:[%s15733_s7] sm:$0xf] }
0x144b   : > { %7930 = vmatprep.subr.bf16.mxu1 %v11469_v58  ;;  %v16423_v58 = vld [vmem:[#allocation30_spill] sm:$0xff] }
0x144d   : > { %7856 = vmatmul.mubr.bf16.gmra.mrb[228].mxu1 %v14145_v41  ;;  %v11479_v41 = vld [vmem:[#allocation11 + $0x2c0] ss:$16 sps:$4 sm:$0xff]  }
0x144e   : > { %7865 = vmatprep.mubr.bf16.mxu1 %v14159_v56  ;;  %7931 = vmatpush1.bf16.msra.mxu1 %v11467_v13  ;;  %v11484_v56 = vld [vmem:[#allocation11 + $0x2e4] ss:$16 sps:$4 sm:$0xff]   ;;  %v14639_v13 = vrot.slane %v7151_v26, %v16423_v58 }
0x144f   : > { %7932 = vmatprep.subr.bf16.mxu1 %v11472_v17  ;;  %v16424_v17 = vld [vmem:[#allocation31_spill] sm:$0xff] }
0x1452   : > { %7933 = vmatpush1.bf16.msra.mxu1 %v11470_v32  ;;  %v14642_v32 = vrot.slane %v7151_v26, %v16424_v17 }
0x1453   : > { %7934 = vmatprep.subr.bf16.mxu1 %v11475_v3  ;;  %v16425_v3 = vld [vmem:[#allocation63_spill] sm:$0xff] }
0x1455   : > { %7866 = vmatmul.mubr.bf16.gmra.mrb[232].mxu1 %v14151_v53  ;;  %v11485_v53 = vld [vmem:[#allocation11 + $0x300] ss:$16 sps:$4 sm:$0xff]  }
0x1456   : > { %7875 = vmatprep.mubr.bf16.mxu1 %v14157_v30  ;;  %7935 = vmatpush1.bf16.msra.mxu1 %v11473_v37  ;;  %v11490_v30 = vld [vmem:[#allocation11 + $0x324] ss:$16 sps:$4 sm:$0xff]   ;;  %v14645_v37 = vrot.slane %v7151_v26, %v16425_v3 }
0x1457   : > { %7936 = vmatprep.subr.bf16.mxu1 %v11478_v54  ;;  %v11808_v3 = vld [vmem:[%s12378_s2 + $0xd0] sm:$0xff] }
0x145a   : > { %7937 = vmatpush1.bf16.msra.mxu1 %v11476_v62 }
0x145b   : > { %7938 = vmatprep.subr.bf16.mxu1 %v11481_v31 }
0x145d   : > { %7876 = vmatmul.mubr.bf16.gmra.mrb[236].mxu1 %v14149_v29  ;;  %v11491_v29 = vld [vmem:[#allocation11 + $0x340] ss:$16 sps:$4 sm:$0xff]  }
0x145e   : > { %7885 = vmatprep.mubr.bf16.mxu1 %v14362_v25  ;;  %7939 = vmatpush1.bf16.msra.mxu1 %v11479_v41  ;;  %v11496_v25 = vld [vmem:[#allocation11 + $0x364] ss:$16 sps:$4 sm:$0xff]   ;;  %v16426_v41 = vld [vmem:[#allocation35_spill] sm:$0xff] }
0x145f   : > { %7940 = vmatprep.subr.bf16.mxu1 %v11484_v56  ;;  %v14649_v56 = vrot.slane %v7151_v26, %v16426_v41 }
0x1462   : > { %7941 = vmatpush1.bf16.msra.mxu1 %v11482_v2  ;;  %v16427_v2 = vld [vmem:[#allocation24_spill] sm:$0xff] }
0x1463   : > { %7942 = vmatprep.subr.bf16.mxu1 %v11487_v7  ;;  %v10621_v7 = vadd.f32 %v16427_v2, %v14645_v37 }
0x1465   : > { %7886 = vmatmul.mubr.bf16.gmra.mrb[240].mxu1 %v14311_v28  ;;  %v11497_v28 = vld [vmem:[#allocation11 + $0x380] ss:$16 sps:$4 sm:$0xff]  }
0x1466   : > { %7895 = vmatprep.mubr.bf16.mxu1 %v14360_v45  ;;  %7943 = vmatpush1.bf16.msra.mxu1 %v11485_v53  ;;  %v11502_v45 = vld [vmem:[#allocation11 + $0x3a4] ss:$16 sps:$4 sm:$0xff]  }
0x1467   : > { %7944 = vmatprep.subr.bf16.mxu1 %v11490_v30 }
0x146a   : > { %7945 = vmatpush1.bf16.msra.mxu1 %v11488_v52  ;;  %v11771_v52 = vld [vmem:[%s12378_s2] sm:$0xff] }
0x146b   : > { %7946 = vmatprep.subr.bf16.mxu1 %v11493_v1 }
0x146d   : > { %7896 = vmatmul.mubr.bf16.gmra.mrb[244].mxu1 %v14309_v14  ;;  %v11503_v14 = vld [vmem:[#allocation11 + $0x3c0] ss:$16 sps:$4 sm:$0xff]  }
0x146e   : > { %7905 = vmatprep.mubr.bf16.mxu1 %v14366_v48  ;;  %7947 = vmatpush1.bf16.msra.mxu1 %v11491_v29  ;;  %v11508_v48 = vld [vmem:[#allocation11 + $0x3e4] ss:$16 sps:$4 sm:$0xff]  }
0x146f   : > { %7948 = vmatprep.subr.bf16.mxu1 %v11496_v25 }
0x1472   : > { %7949 = vmatpush1.bf16.msra.mxu1 %v11494_v63  ;;  %v16428_v63 = vld [vmem:[#allocation59_spill] sm:$0xff] }
0x1473   : > { %7950 = vmatprep.subr.bf16.mxu1 %v11499_v39  ;;  %v10622_v39 = vadd.f32 %v16428_v63, %v14649_v56 }
0x1475   : > { %7906 = vmatmul.mubr.bf16.gmra.mrb[248].mxu1 %v14315_v51  ;;  %v16408_v51 = vld [vmem:[#allocation41_spill] sm:$0xff] }
0x1476   : > { %7915 = vmatprep.mubr.bf16.mxu1 %v14364_v22  ;;  %7951 = vmatpush1.bf16.msra.mxu1 %v11497_v28  ;;  %v16409_v22 = vld [vmem:[#allocation34_spill] sm:$0xff]  ;;  %v16429_v28 = vld [vmem:[#allocation55_spill] sm:$0xff] }
0x1477   : > { %7952 = vmatprep.subr.bf16.mxu1 %v11502_v45  ;;  %v10623_v45 = vadd.f32 %v16429_v28, %v14645_v37 }
0x147a   : > { %7953 = vmatpush1.bf16.msra.mxu1 %v11500_v10  ;;  %v11772_v10 = vld [vmem:[%s12378_s2 + $0x8] sm:$0xff] }
0x147b   : > { %7954 = vmatprep.subr.bf16.mxu1 %v11505_v5 }
0x147d   : > { %7916 = vmatmul.mubr.bf16.gmra.mrb[252].mxu1 %v14313_v50  ;;  %v16407_v50 = vld [vmem:[#allocation81_spill] sm:$0xff] }
0x147e   : > { %7955 = vmatpush1.bf16.msra.mxu1 %v11503_v14  ;;  %7958 = vmatprep.mubr.bf16.mxu1 %v14259_v59  ;;  %v16403_v59 = vld [vmem:[#allocation121_spill] sm:$0xff] }
0x147f   : > { %7956 = vmatprep.subr.bf16.mxu1 %v11508_v48  ;;  %v16430_v48 = vld [vmem:[#allocation26_spill] sm:$0xff] }
0x1482   : > { %7957 = vmatpush1.bf16.msra.mxu1 %v11506_v36  ;;  %v10624_v36 = vadd.f32 %v16430_v48, %v14649_v56 }
0x1483   : > { %10237 = vmatprep.subr.bf16.mxu1 %v14396_v8  ;;  %v16411_v8 = vld [vmem:[#allocation83_spill] sm:$0xff] }
0x1485   : > { %7959 = vmatmul.mubr.bf16.vlgmr.msra.gmra.mrb[224].mxu1 %v14207_v19  ;;  %v16401_v19 = vld [vmem:[#allocation115_spill] sm:$0xff] }
0x1486   : > { %7968 = vmatprep.mubr.bf16.mxu1 %v14257_v43  ;;  %10253 = vmatpush1.bf16.msra.mxu1 %v14398_v4  ;;  %v16402_v43 = vld [vmem:[#allocation118_spill] sm:$0xff]  ;;  %v16412_v4 = vld [vmem:[#allocation84_spill] sm:$0xff] }
0x1487   : > { %10238 = vmatprep.subr.bf16.mxu1 %v14401_v35  ;;  %v16413_v35 = vld [vmem:[#allocation85_spill] sm:$0xff] }
0x148a   : > { %10254 = vmatpush1.bf16.msra.mxu1 %v14406_v12  ;;  %v16414_v12 = vld [vmem:[#allocation86_spill] sm:$0xff] }
0x148b   : > { %10239 = vmatprep.subr.bf16.mxu1 %v14409_v55  ;;  %v16415_v55 = vld [vmem:[#allocation87_spill] sm:$0xff] }
0x148d   : > { %7969 = vmatmul.mubr.bf16.gmra.mrb[228].mxu1 %v14205_v47  ;;  %v16400_v47 = vld [vmem:[#allocation112_spill] sm:$0xff] }
0x148e   : > { %7978 = vmatprep.mubr.bf16.mxu1 %v14263_v15  ;;  %10255 = vmatpush1.bf16.msra.mxu1 %v14412_v49  ;;  %v16406_v15 = vld [vmem:[#allocation80_spill] sm:$0xff] }
0x148f   : > { %10240 = vmatprep.subr.bf16.mxu1 %v14415_v21  ;;  %v16416_v49 = vld [vmem:[#allocation104_spill] sm:$0xff]  ;;  %v16417_v21 = vld [vmem:[#allocation47_spill] sm:$0xff] }
0x1492   : > { %10256 = vmatpush1.bf16.msra.mxu1 %v14420_v40  ;;  %v16418_v40 = vld [vmem:[#allocation40_spill] sm:$0xff] }
0x1493   : > { %10241 = vmatprep.subr.bf16.mxu1 %v14423_v18 }
0x1495   : > { %7979 = vmatmul.mubr.bf16.gmra.mrb[232].mxu1 %v14211_v34  ;;  %v16404_v34 = vld [vmem:[#allocation124_spill] sm:$0xff] }
0x1496   : > { %7988 = vmatprep.mubr.bf16.mxu1 %v14261_v33  ;;  %10257 = vmatpush1.bf16.msra.mxu1 %v14426_v42  ;;  %v16405_v33 = vld [vmem:[#allocation22_spill] sm:$0xff] }
0x1497   : > { %10242 = vmatprep.subr.bf16.mxu1 %v14429_v9 }
0x149a   : > { %10258 = vmatpush1.bf16.msra.mxu1 %v14434_v6 }
0x149b   : > { %10243 = vmatprep.subr.bf16.mxu1 %v14437_v57 }
0x149d   : > { %7989 = vmatmul.mubr.bf16.gmra.mrb[236].mxu1 %v14209_v38  ;;  %v16410_v38 = vld [vmem:[#allocation82_spill] sm:$0xff] }
0x149e   : > { %10259 = vmatpush1.bf16.msra.mxu1 %v16400_v47  ;;  %v11773_v47 = vld [vmem:[%s12378_s2 + $0x20] sm:$0xff] }
0x149f   : > { %10244 = vmatprep.subr.bf16.mxu1 %v16401_v19 }
0x14a2   : > { %10260 = vmatpush1.bf16.msra.mxu1 %v16402_v43  ;;  %v11774_v43 = vld [vmem:[%s12378_s2 + $0x10] sm:$0xff] }
0x14a3   : > { %10245 = vmatprep.subr.bf16.mxu1 %v16403_v59  ;;  %v14672_v59 = vadd.f32 %v11774_v43, %v10621_v7 }
0x14a6   : > { %10261 = vmatpush1.bf16.msra.mxu1 %v16404_v34 }
0x14a7   : > { %10246 = vmatprep.subr.bf16.mxu1 %v16405_v33  ;;  %v11775_v33 = vld [vmem:[%s12378_s2 + $0x28] sm:$0xff] }
0x14aa   : > { %10262 = vmatpush1.bf16.msra.mxu1 %v16406_v15 }
0x14ab   : > { %10247 = vmatprep.subr.bf16.mxu1 %v16407_v50  ;;  %v11776_v50 = vld [vmem:[%s12378_s2 + $0x18] sm:$0xff] }
0x14ae   : > { %10263 = vmatpush1.bf16.msra.mxu1 %v16408_v51  ;;  %v14680_v51 = vadd.f32 %v11776_v50, %v10622_v39  ;;  %v16434_v39 = vld [vmem:[#allocation45_spill] sm:$0xff] }
0x14af   : > { %10248 = vmatprep.subr.bf16.mxu1 %v16409_v22  ;;  %v11777_v22 = vld [vmem:[%s12378_s2 + $0x30] sm:$0xff]  ;;  %v10628_v28 = vadd.f32 %v16434_v39, %v14649_v56 }
0x14b2   : > { %10264 = vmatpush1.bf16.msra.mxu1 %v16410_v38  ;;  %v14683_v38 = vadd.f32 %v11777_v22, %v10623_v45 }
0x14b3   : > { %10249 = vmatprep.subr.bf16.mxu1 %v16411_v8 }
0x14b6   : > { %10265 = vmatpush1.bf16.msra.mxu1 %v16412_v4 }
0x14b7   : > { %10250 = vmatprep.subr.bf16.mxu1 %v16413_v35 }
0x14ba   : > { %10266 = vmatpush1.bf16.msra.mxu1 %v16414_v12  ;;  %v11778_v12 = vld [vmem:[%s12378_s2 + $0x38] sm:$0xff] }
0x14bb   : > { %10251 = vmatprep.subr.bf16.mxu1 %v16415_v55  ;;  %v14689_v55 = vadd.f32 %v11778_v12, %v10624_v36  ;;  %v11787_v12 = vld [vmem:[%s12378_s2 + $0x78] sm:$0xff] }
0x14be   : > { %10267 = vmatpush1.bf16.msra.mxu1 %v16416_v49 }
0x14bf   : > { %10252 = vmatprep.subr.bf16.mxu1 %v16417_v21 }
0x14c2   : > { %10268 = vmatpush1.bf16.msra.mxu1 %v16418_v40  ;;  %v16431_v40 = vld [vmem:[#allocation29_spill] sm:$0xff] }
0x14d8   : > { %v10231_v18 = vpop.f32.mrb[216].mxu1 }
0x14d9   : > { %v6952_v42 = vpop.f32.mrb[217].mxu1 }
0x14da   : > { %v10232_v9 = vpop.f32.mrb[218].mxu1 }
0x14db   : > { %v6984_v6 = vpack.c.bf16 %v10232_v9, %v10231_v18  ;;  %v6955_v57 = vpop.f32.mrb[219].mxu1  ;;  %v10625_v18 = vadd.f32 %v16431_v40, %v14645_v37 }
0x14dc   : > { %v6983_v23 = vpack.c.bf16 %v6955_v57, %v6952_v42 }
0x14de   : > { %7998 = vmatprep.mubr.bf16.mxu1 %v6983_v23  ;;  %8224 = vmatprep.mubr.bf16.mxu0 %v6983_v23  ;;  %v16432_v23 = vld [vmem:[#allocation33_spill] sm:$0xff] }
0x14df   : > { %7999 = vmatmul.mubr.bf16.gmra.mrb[240].mxu1 %v16419_v46  ;;  %8225 = vmatmul.mubr.bf16.gmra.mrb[240].mxu0 %v16419_v46  ;;  %v10626_v46 = vadd.f32 %v16432_v23, %v14649_v56 }
0x14e0   : > { %v10235_v24 = vpop.f32.mrb[220].mxu1  ;;  %8008 = vmatprep.mubr.bf16.mxu1 %v6984_v6  ;;  %8234 = vmatprep.mubr.bf16.mxu0 %v6984_v6 }
0x14e1   : > { %v6968_v60 = vpop.f32.mrb[221].mxu1 }
0x14e2   : > { %v10236_v61 = vpop.f32.mrb[222].mxu1 }
0x14e3   : > { %v6986_v27 = vpack.c.bf16 %v10236_v61, %v10235_v24  ;;  %v6971_v11 = vpop.f32.mrb[223].mxu1  ;;  %v11779_v24 = vld [vmem:[%s12378_s2 + $0x40] sm:$0xff] }
0x14e4   : > { %v6985_v44 = vpack.c.bf16 %v6971_v11, %v6968_v60  ;;  %v16433_v11 = vld [vmem:[#allocation39_spill] sm:$0xff] }
0x14e7   : > { %8009 = vmatmul.mubr.bf16.gmra.mrb[244].mxu1 %v16420_v0  ;;  %8235 = vmatmul.mubr.bf16.gmra.mrb[244].mxu0 %v16420_v0  ;;  %v11780_v0 = vld [vmem:[%s12378_s2 + $0x48] sm:$0xff] }
0x14e8   : > { %8018 = vmatprep.mubr.bf16.mxu1 %v6985_v44 }
0x14ef   : > { %8019 = vmatmul.mubr.bf16.gmra.mrb[248].mxu1 %v16421_v16 }
0x14f0   : > { %8028 = vmatprep.mubr.bf16.mxu1 %v6986_v27 }
0x14f7   : > { %8029 = vmatmul.mubr.bf16.gmra.mrb[252].mxu1 %v16422_v20 }
0x14f8   : > { %8244 = vmatprep.mubr.bf16.mxu1 %v6985_v44  ;;  %v10627_v44 = vadd.f32 %v16433_v11, %v14645_v37 }
0x14ff   : > { %8245 = vmatmul.mubr.bf16.vlgmr.msra.gmra.mrb[0].mxu1 %v16421_v16 }
0x1500   : > { %8254 = vmatprep.mubr.bf16.mxu1 %v6986_v27 }
0x1507   : > { %8255 = vmatmul.mubr.bf16.gmra.mrb[4].mxu1 %v16422_v20 }
0x1558   : > { %v7960_v54 = vpop.f32.mrb[224].mxu1 }
0x1559   : > { %v10589_v62 = vadd.f32 %v7960_v54, %v14639_v13  ;;  %v7962_v31 = vpop.f32.mrb[225].mxu1  ;;  %v11781_v54 = vld [vmem:[%s12378_s2 + $0x60] sm:$0xff] }
0x155a   : > { %v10590_v53 = vadd.f32 %v7962_v31, %v14642_v32  ;;  %v7964_v30 = vpop.f32.mrb[226].mxu1  ;;  %v11782_v31 = vld [vmem:[%s12378_s2 + $0x50] sm:$0xff] }
0x155b   : > { %v14655_v1 = vadd.f32 %v11771_v52, %v10589_v62  ;;  %v10591_v29 = vadd.f32 %v7964_v30, %v14639_v13  ;;  %v7966_v25 = vpop.f32.mrb[227].mxu1  ;;  %v14714_v2 = vadd.f32 %v11782_v31, %v10625_v18  ;;  %v11784_v52 = vld [vmem:[%s12378_s2 + $0x58] sm:$0xff]  ;;  %v11788_v18 = vld [vmem:[%s12378_s2 + $0x88] sm:$0xff]  ;;  %v16437_v31 = vld [vmem:[#allocation64_spill] sm:$0xff] }
0x155c   : > { %v14663_v5 = vadd.f32 %v11772_v10, %v10590_v53  ;;  %v10592_v14 = vadd.f32 %v7966_v25, %v14642_v32  ;;  %v11783_v53 = vld [vmem:[%s12378_s2 + $0x68] sm:$0xff]  ;;  %v11785_v25 = vld [vmem:[%s12378_s2 + $0x70] sm:$0xff] }
0x155d   : > { %v14669_v19 = vadd.f32 %v11773_v47, %v10591_v29  ;;  %v14722_v29 = vadd.f32 %v11784_v52, %v10626_v46  ;;  %v14725_v63 = vadd.f32 %v11785_v25, %v10627_v44  ;;  %v16435_v47 = vld [vmem:[#allocation56_spill] sm:$0xff]  ;;  %v11790_v46 = vld [vmem:[%s12378_s2 + $0x98] sm:$0xff] }
0x155e   : > { %v8329_v34 = vadd.f32 %v14663_v5, %v14655_v1  ;;  %v14677_v15 = vadd.f32 %v11775_v33, %v10592_v14  ;;  %v10629_v43 = vadd.f32 %v16435_v47, %v14645_v37  ;;  %v11791_v25 = vld [vmem:[%s12378_s2 + $0xa0] sm:$0xff] }
0x1560   : > { %v8334_v8 = vadd.f32 %v14677_v15, %v14669_v19  ;;  %v7970_v4 = vpop.f32.mrb[228].mxu1  ;;  %v8330_v35 = vadd.f32 %v8329_v34, %v14672_v59 }
0x1561   : > { %v10593_v49 = vadd.f32 %v7970_v4, %v14639_v13  ;;  %v7972_v21 = vpop.f32.mrb[229].mxu1 }
0x1562   : > { %v10594_v42 = vadd.f32 %v7972_v21, %v14642_v32  ;;  %v7974_v9 = vpop.f32.mrb[230].mxu1  ;;  %v8331_v6 = vadd.f32 %v8330_v35, %v14680_v51  ;;  %v8335_v57 = vadd.f32 %v8334_v8, %v14683_v38  ;;  %v11786_v8 = vld [vmem:[%s12378_s2 + $0x80] sm:$0xff]  ;;  %v16436_v21 = vld [vmem:[#allocation105_spill] sm:$0xff] }
0x1563   : > { %v14700_v60 = vadd.f32 %v11779_v24, %v10593_v49  ;;  %v10595_v61 = vadd.f32 %v7974_v9, %v14639_v13  ;;  %v7976_v27 = vpop.f32.mrb[231].mxu1  ;;  %v14742_v49 = vadd.f32 %v11787_v12, %v10628_v28  ;;  %v10630_v40 = vadd.f32 %v16436_v21, %v14649_v56  ;;  %v11789_v9 = vld [vmem:[%s12378_s2 + $0x90] sm:$0xff]  ;;  %v11792_v28 = vld [vmem:[%s12378_s2 + $0xa8] sm:$0xff] }
0x1564   : > { %v14706_v16 = vadd.f32 %v11780_v0, %v10594_v42  ;;  %v10596_v20 = vadd.f32 %v7976_v27, %v14642_v32  ;;  %8332 = vadd.xlane.f32.xlu0 %v8331_v6  ;;  %v8336_v26 = vadd.f32 %v8335_v57, %v14689_v55  ;;  %v14750_v6 = vadd.f32 %v11789_v9, %v10629_v43  ;;  %v11795_v9 = vld [vmem:[%s12378_s2 + $0xc0] sm:$0xff] }
0x1565   : > { %v14711_v62 = vadd.f32 %v11781_v54, %v10595_v61  ;;  %v14756_v24 = vadd.f32 %v11790_v46, %v10630_v40 }
0x1566   : > { %v8339_v7 = vadd.f32 %v14706_v16, %v14700_v60  ;;  %v14719_v30 = vadd.f32 %v11783_v53, %v10596_v20  ;;  %8337 = vadd.xlane.f32.xlu1 %v8336_v26  ;;  %v16438_v53 = vld [vmem:[#allocation61_spill] sm:$0xff] }
0x1567   : > { %v10632_v52 = vadd.f32 %v16438_v53, %v14649_v56  ;;  %v11798_v53 = vld [vmem:[%s12378_s2 + $0xc8] sm:$0xff] }
0x1568   : > { %v8344_v45 = vadd.f32 %v14719_v30, %v14711_v62  ;;  %v7980_v10 = vpop.f32.mrb[232].mxu1  ;;  %v8340_v14 = vadd.f32 %v8339_v7, %v14714_v2  ;;  %v10631_v7 = vadd.f32 %v16437_v31, %v14645_v37 }
0x1569   : > { %v10597_v48 = vadd.f32 %v7980_v10, %v14639_v13  ;;  %v7982_v36 = vpop.f32.mrb[233].mxu1 }
0x156a   : > { %v10598_v34 = vadd.f32 %v7982_v36, %v14642_v32  ;;  %v7984_v33 = vpop.f32.mrb[234].mxu1  ;;  %v8341_v50 = vadd.f32 %v8340_v14, %v14722_v29  ;;  %v8345_v22 = vadd.f32 %v8344_v45, %v14725_v63 }
0x156b   : > { %v14739_v4 = vadd.f32 %v11786_v8, %v10597_v48  ;;  %v7986_v35 = vpop.f32.mrb[235].mxu1  ;;  %v10599_v26 = vadd.f32 %v7984_v33, %v14639_v13  ;;  %v11793_v33 = vld [vmem:[%s12378_s2 + $0xb0] sm:$0xff] }
0x156c   : > { %v14747_v42 = vadd.f32 %v11788_v18, %v10598_v34  ;;  %8342 = vadd.xlane.f32.xlu0 %v8341_v50  ;;  %v8346_v23 = vadd.f32 %v8345_v22, %v14742_v49  ;;  %v10600_v54 = vadd.f32 %v7986_v35, %v14642_v32  ;;  %v14776_v50 = vadd.f32 %v11793_v33, %v10631_v7  ;;  %v11794_v22 = vld [vmem:[%s12378_s2 + $0xb8] sm:$0xff] }
0x156d   : > { %v14767_v39 = vadd.f32 %v11791_v25, %v10599_v26  ;;  %v14779_v8 = vadd.f32 %v11794_v22, %v10632_v52 }
0x156e   : > { %v8349_v57 = vadd.f32 %v14747_v42, %v14739_v4  ;;  %v14770_v45 = vadd.f32 %v11792_v28, %v10600_v54 }
0x1570   : > { %v7990_v61 = vpop.f32.mrb[236].mxu1  ;;  %8347 = vadd.xlane.f32.xlu0 %v8346_v23  ;;  %v8350_v27 = vadd.f32 %v8349_v57, %v14750_v6  ;;  %v8354_v18 = vadd.f32 %v14770_v45, %v14767_v39  ;;  %v11796_v23 = vld [vmem:[%s12378_s2 + $0x100] sm:$0xff] }
0x1571   : > { %v7992_v11 = vpop.f32.mrb[237].mxu1  ;;  %v10601_v10 = vadd.f32 %v7990_v61, %v14639_v13 }
0x1572   : > { %v7994_v44 = vpop.f32.mrb[238].mxu1  ;;  %v8351_v0 = vadd.f32 %v8350_v27, %v14756_v24  ;;  %v10602_v36 = vadd.f32 %v7992_v11, %v14642_v32 }
0x1573   : > { %v7996_v20 = vpop.f32.mrb[239].mxu1  ;;  %v14786_v57 = vadd.f32 %v11795_v9, %v10601_v10  ;;  %v10603_v25 = vadd.f32 %v7994_v44, %v14639_v13  ;;  %v11799_v10 = vld [vmem:[%s12378_s2 + $0x120] sm:$0xff]  ;;  %v16441_v44 = vld [vmem:[#allocation66_spill] sm:$0xff]  ;;  %v8355_v9 = vadd.f32 %v8354_v18, %v14776_v50 }
0x1574   : > { %8352 = vadd.xlane.f32.xlu0 %v8351_v0  ;;  %v11797_v0 = vld [vmem:[%s12378_s2 + $0x108] sm:$0xff]  ;;  %v14799_v52 = vadd.f32 %v11798_v53, %v10602_v36  ;;  %v10604_v28 = vadd.f32 %v7996_v20, %v14642_v32  ;;  %v10634_v20 = vadd.f32 %v16441_v44, %v14649_v56 }
0x1575   : > { %v11801_v36 = vld [vmem:[%s12378_s2 + $0x128] sm:$0xff] }
0x15b2   : > { %v8000_v14 = vpop.f32.mrb[240].mxu1  ;;  %v8226_v48 = vpop.f32.mrb[240].mxu0 }
0x15b3   : > { %v10605_v47 = vadd.f32 %v8000_v14, %v14639_v13  ;;  %v8002_v43 = vpop.f32.mrb[241].mxu1  ;;  %v8228_v34 = vpop.f32.mrb[241].mxu0  ;;  %v10637_v35 = vadd.f32 %v8226_v48, %v14645_v37  ;;  %v16439_v48 = vld [vmem:[#allocation68_spill] sm:$0xff] }
0x15b4   : > { %v10606_v12 = vadd.f32 %v8002_v43, %v14642_v32  ;;  %v8004_v21 = vpop.f32.mrb[242].mxu1  ;;  %v8230_v40 = vpop.f32.mrb[242].mxu0  ;;  %v10638_v54 = vadd.f32 %v8228_v34, %v14649_v56  ;;  %v11800_v43 = vld [vmem:[%s12378_s2 + $0x110] sm:$0xff] }
0x15b5   : > { %v14789_v46 = vadd.f32 %v11796_v23, %v10605_v47  ;;  %v10607_v61 = vadd.f32 %v8004_v21, %v14639_v13  ;;  %v8006_v27 = vpop.f32.mrb[243].mxu1  ;;  %v8232_v11 = vpop.f32.mrb[243].mxu0  ;;  %v10639_v31 = vadd.f32 %v8230_v40, %v14645_v37  ;;  %v10633_v47 = vadd.f32 %v16439_v48, %v14645_v37 }
0x15b6   : > { %v14793_v26 = vadd.f32 %v11797_v0, %v10606_v12  ;;  %v10608_v7 = vadd.f32 %v8006_v27, %v14642_v32  ;;  %v14809_v34 = vadd.f32 %v11800_v43, %v10637_v35  ;;  %v16442_v12 = vld [vmem:[#allocation107_spill] sm:$0xff]  ;;  %v10640_v40 = vadd.f32 %v8232_v11, %v14649_v56  ;;  %v11804_v11 = vld [vmem:[%s12378_s2 + $0xe0] sm:$0xff] }
0x15b7   : > { %v14804_v14 = vadd.f32 %v11799_v10, %v10607_v61  ;;  %v10635_v21 = vadd.f32 %v16442_v12, %v14645_v37  ;;  %v11802_v35 = vld [vmem:[%s12378_s2 + $0x118] sm:$0xff]  ;;  %v11803_v61 = vld [vmem:[%s12378_s2 + $0x130] sm:$0xff]  ;;  %v8359_v48 = vadd.f32 %v14799_v52, %v14786_v57  ;;  %v14834_v18 = vadd.f32 %v11804_v11, %v10603_v25 }
0x15b8   : > { %16440 = vst [vmem:[#allocation72_spill] sm:$0xff] %v14809_v34  ;;  %v8369_v33 = vadd.f32 %v14793_v26, %v14789_v46  ;;  %v14814_v22 = vadd.f32 %v11801_v36, %v10608_v7  ;;  %v14823_v23 = vadd.f32 %v11802_v35, %v10638_v54  ;;  %v14826_v27 = vadd.f32 %v11803_v61, %v10639_v31  ;;  %v11805_v54 = vld [vmem:[%s12378_s2 + $0xe8] sm:$0xff]  ;;  %v11806_v11 = vld [vmem:[%s12378_s2 + $0x138] sm:$0xff] }
0x15b9   : > { %v14837_v43 = vadd.f32 %v11805_v54, %v10604_v28  ;;  %v14845_v28 = vadd.f32 %v11806_v11, %v10640_v40  ;;  %v11807_v54 = vld [vmem:[%s12378_s2 + $0x140] sm:$0xff] }
0x15ba   : > { %16443 = vst [vmem:[#allocation70_spill] sm:$0xff] %v14823_v23  ;;  %16444 = vst [vmem:[#allocation111_spill] sm:$0xff] %v14826_v27  ;;  %v8374_v0 = vadd.f32 %v14814_v22, %v14804_v14  ;;  %v8010_v7 = vpop.f32.mrb[244].mxu1  ;;  %v8236_v53 = vpop.f32.mrb[244].mxu0  ;;  %v8370_v10 = vadd.f32 %v8369_v33, %v14809_v34  ;;  %v14853_v34 = vadd.f32 %v11808_v3, %v10633_v47 }
0x15bb   : > { %v10609_v31 = vadd.f32 %v8010_v7, %v14639_v13  ;;  %v8012_v36 = vpop.f32.mrb[245].mxu1  ;;  %v8238_v44 = vpop.f32.mrb[245].mxu0  ;;  %v10641_v12 = vadd.f32 %v8236_v53, %v14645_v37  ;;  %16445 = vst [vmem:[#allocation114_spill] sm:$0xff] %v14845_v28  ;;  %v8356_v47 = vadd.f32 %v8355_v9, %v14779_v8 }
0x15bc   : > { %v10610_v33 = vadd.f32 %v8012_v36, %v14642_v32  ;;  %v8014_v35 = vpop.f32.mrb[246].mxu1  ;;  %v8240_v61 = vpop.f32.mrb[246].mxu0  ;;  %v8371_v17 = vadd.f32 %v8370_v10, %v14823_v23  ;;  %v8375_v25 = vadd.f32 %v8374_v0, %v14826_v27  ;;  %v10642_v58 = vadd.f32 %v8238_v44, %v14649_v56  ;;  %v11809_v10 = vld [vmem:[%s12378_s2 + $0x148] sm:$0xff]  ;;  %v11813_v23 = vld [vmem:[%s12378_s2 + $0xd8] sm:$0xff] }
0x15bd   : > { %v14848_v7 = vadd.f32 %v11807_v54, %v10609_v31  ;;  %v10611_v53 = vadd.f32 %v8014_v35, %v14639_v13  ;;  %v8016_v41 = vpop.f32.mrb[247].mxu1  ;;  %v8242_v36 = vpop.f32.mrb[247].mxu0  ;;  %v10643_v40 = vadd.f32 %v8240_v61, %v14645_v37  ;;  %v8364_v44 = vadd.f32 %v14837_v43, %v14834_v18  ;;  %v11810_v35 = vld [vmem:[%s12378_s2 + $0x160] sm:$0xff] }
0x15be   : > { %v14856_v0 = vadd.f32 %v11809_v10, %v10610_v33  ;;  %v10612_v31 = vadd.f32 %v8016_v41, %v14642_v32  ;;  %8372 = vadd.xlane.f32.xlu0 %v8371_v17  ;;  %v8376_v3 = vadd.f32 %v8375_v25, %v14845_v28  ;;  %v11811_v33 = vld [vmem:[%s12378_s2 + $0x150] sm:$0xff]  ;;  %v11812_v41 = vld [vmem:[%s12378_s2 + $0x168] sm:$0xff]  ;;  %v8360_v10 = vadd.f32 %v8359_v48, %v14853_v34  ;;  %v11815_v28 = vld [vmem:[%s12378_s2 + $0x158] sm:$0xff] }
0x15bf   : > { %v14863_v11 = vadd.f32 %v11810_v35, %v10611_v53  ;;  %v14868_v54 = vadd.f32 %v11811_v33, %v10641_v12  ;;  %v14877_v27 = vadd.f32 %v11813_v23, %v10634_v20  ;;  %v11814_v53 = vld [vmem:[%s12378_s2 + $0xf0] sm:$0xff]  ;;  %v16450_v25 = vld [vmem:[#allocation109_spill] sm:$0xff]  ;;  %v14885_v12 = vadd.f32 %v11815_v28, %v10642_v58 }
0x15c0   : > { %16446 = vst [vmem:[#allocation117_spill] sm:$0xff] %v14856_v0  ;;  %v8379_v61 = vadd.f32 %v14856_v0, %v14848_v7  ;;  %v14873_v17 = vadd.f32 %v11812_v41, %v10612_v31  ;;  %v14880_v35 = vadd.f32 %v11814_v53, %v10635_v21  ;;  %v10636_v9 = vadd.f32 %v16450_v25, %v14649_v56  ;;  %v11816_v33 = vld [vmem:[%s12378_s2 + $0x170] sm:$0xff] }
0x15c1   : > { %16447 = vst [vmem:[#allocation120_spill] sm:$0xff] %v14863_v11  ;;  %16448 = vst [vmem:[#allocation123_spill] sm:$0xff] %v14868_v54  ;;  %8377 = vadd.xlane.f32.xlu1 %v8376_v3  ;;  %v14888_v31 = vadd.f32 %v11816_v33, %v10643_v40  ;;  %v10644_v20 = vadd.f32 %v8242_v36, %v14649_v56  ;;  %v8361_v28 = vadd.f32 %v8360_v10, %v14877_v27  ;;  %v11817_v33 = vld [vmem:[%s12378_s2 + $0xf8] sm:$0xff] }
0x15c2   : > { %16449 = vst [vmem:[#allocation88_spill] sm:$0xff] %v14873_v17  ;;  %16451 = vst [vmem:[#allocation25_spill] sm:$0xff] %v14885_v12  ;;  %v8384_v48 = vadd.f32 %v14873_v17, %v14863_v11  ;;  %v8020_v23 = vpop.f32.mrb[248].mxu1  ;;  %8357 = vadd.xlane.f32.xlu0 %v8356_v47  ;;  %v8380_v21 = vadd.f32 %v8379_v61, %v14868_v54  ;;  %v8365_v40 = vadd.f32 %v8364_v44, %v14880_v35  ;;  %v11818_v17 = vld [vmem:[%s12378_s2 + $0x178] sm:$0xff] }
0x15c3   : > { %16452 = vst [vmem:[#allocation60_spill] sm:$0xff] %v14888_v31  ;;  %v8022_v41 = vpop.f32.mrb[249].mxu1  ;;  %v14899_v0 = vadd.f32 %v11817_v33, %v10636_v9  ;;  %v14902_v36 = vadd.f32 %v11818_v17, %v10644_v20  ;;  %v10613_v9 = vadd.f32 %v8020_v23, %v14639_v13 }
0x15c4   : > { %v8024_v53 = vpop.f32.mrb[250].mxu1  ;;  %v8381_v58 = vadd.f32 %v8380_v21, %v14885_v12  ;;  %v8385_v3 = vadd.f32 %v8384_v48, %v14888_v31  ;;  %v10614_v17 = vadd.f32 %v8022_v41, %v14642_v32  ;;  %v11822_v31 = vld [vmem:[%s12378_s2 + $0x1a8] sm:$0xff] }
0x15c5   : > { %v8026_v25 = vpop.f32.mrb[251].mxu1  ;;  %16453 = vst [vmem:[#allocation57_spill] sm:$0xff] %v14899_v0  ;;  %16454 = vst [vmem:[#allocation28_spill] sm:$0xff] %v14902_v36  ;;  %v8366_v61 = vadd.f32 %v8365_v40, %v14899_v0  ;;  %v10615_v21 = vadd.f32 %v8024_v53, %v14639_v13  ;;  %v11819_v40 = vld [vmem:[%s12378_s2 + $0x180] sm:$0xff] }
0x15c6   : > { %8382 = vadd.xlane.f32.xlu1 %v8381_v58  ;;  %8362 = vadd.xlane.f32.xlu0 %v8361_v28  ;;  %v8386_v47 = vadd.f32 %v8385_v3, %v14902_v36  ;;  %v10616_v58 = vadd.f32 %v8026_v25, %v14642_v32  ;;  %v16455_v28 = vld [vmem:[#allocation37_spill] sm:$0xff]  ;;  %v14913_v33 = vadd.f32 %v11819_v40, %v10613_v9  ;;  %v16458_v0 = vld [vmem:[#allocation52_spill] sm:$0xff] }
0x15c7   : > { %v8134_v3 = vadd.f32 %v16455_v28, %v14645_v37  ;;  %v8136_v23 = vadd.f32 %v16458_v0, %v14649_v56  ;;  %v11821_v36 = vld [vmem:[%s12378_s2 + $0x1a0] sm:$0xff]  ;;  %v16460_v28 = vld [vmem:[#allocation110_spill] sm:$0xff] }
0x15c8   : > { %16456 = vst [vmem:[#allocation32_spill] sm:$0xff] %v14913_v33  ;;  %v14921_v41 = vadd.f32 %v11821_v36, %v10615_v21  ;;  %v14924_v53 = vadd.f32 %v11822_v31, %v10616_v58  ;;  %v8138_v12 = vadd.f32 %v16460_v28, %v14645_v37  ;;  %v11823_v21 = vld [vmem:[%s12378_s2 + $0x190] sm:$0xff] }
0x15ca   : > { %v8030_v10 = vpop.f32.mrb[252].mxu1  ;;  %8387 = vadd.xlane.f32.xlu1 %v8386_v47  ;;  %8367 = vadd.xlane.f32.xlu0 %v8366_v61  ;;  %v11820_v47 = vld [vmem:[%s12378_s2 + $0x188] sm:$0xff]  ;;  %16459 = vst [vmem:[#allocation44_spill] sm:$0xff] %v14924_v53  ;;  %v8394_v28 = vadd.f32 %v14924_v53, %v14921_v41 }
0x15cb   : > { %v8032_v44 = vpop.f32.mrb[253].mxu1  ;;  %v14916_v61 = vadd.f32 %v11820_v47, %v10614_v17  ;;  %v16461_v17 = vld [vmem:[#allocation113_spill] sm:$0xff]  ;;  %v10617_v54 = vadd.f32 %v8030_v10, %v14639_v13  ;;  %v11824_v10 = vld [vmem:[%s12378_s2 + $0x198] sm:$0xff] }
0x15cc   : > { %v8034_v48 = vpop.f32.mrb[254].mxu1  ;;  %v8140_v47 = vadd.f32 %v16461_v17, %v14649_v56  ;;  %v10618_v31 = vadd.f32 %v8032_v44, %v14642_v32 }
0x15cd   : > { %v8036_v20 = vpop.f32.mrb[255].mxu1  ;;  %16457 = vst [vmem:[#allocation38_spill] sm:$0xff] %v14916_v61  ;;  %v8389_v36 = vadd.f32 %v14916_v61, %v14913_v33  ;;  %v11825_v33 = vld [vmem:[%s12378_s2 + $0x1b0] sm:$0xff] }
0x15ce   : > { %v10620_v61 = vadd.f32 %v8036_v20, %v14642_v32 }
0x15d2   : > { %v8246_v25 = vpop.f32.mrb[0].mxu1 }
0x15d3   : > { %v8247_v9 = vadd.f32 %v8246_v25, %v8134_v3  ;;  %v8248_v40 = vpop.f32.mrb[1].mxu1 }
0x15d4   : > { %v8249_v0 = vadd.f32 %v8248_v40, %v8136_v23  ;;  %v8250_v11 = vpop.f32.mrb[2].mxu1  ;;  %v10619_v40 = vadd.f32 %v8034_v48, %v14639_v13  ;;  %v11828_v48 = vld [vmem:[%s12378_s2 + $0x1b8] sm:$0xff] }
0x15d5   : > { %v14935_v58 = vadd.f32 %v11823_v21, %v8247_v9  ;;  %v8251_v3 = vadd.f32 %v8250_v11, %v8138_v12  ;;  %v8252_v25 = vpop.f32.mrb[3].mxu1  ;;  %v16464_v11 = vld [vmem:[#allocation116_spill] sm:$0xff] }
0x15d6   : > { %v14940_v17 = vadd.f32 %v11824_v10, %v8249_v0  ;;  %v8253_v23 = vadd.f32 %v8252_v25, %v8140_v47  ;;  %v8144_v12 = vadd.f32 %v16464_v11, %v14645_v37  ;;  %v11826_v21 = vld [vmem:[%s12378_s2 + $0x1c0] sm:$0xff]  ;;  %v11827_v0 = vld [vmem:[%s12378_s2 + $0x1c8] sm:$0xff] }
0x15d7   : > { %v8390_v44 = vadd.f32 %v8389_v36, %v14935_v58  ;;  %v14946_v9 = vadd.f32 %v11825_v33, %v8251_v3  ;;  %v14951_v53 = vadd.f32 %v11826_v21, %v10617_v54  ;;  %v14954_v10 = vadd.f32 %v11827_v0, %v10618_v31  ;;  %v16468_v33 = vld [vmem:[#allocation119_spill] sm:$0xff]  ;;  %v16469_v3 = vld [vmem:[#allocation122_spill] sm:$0xff]  ;;  %v11829_v54 = vld [vmem:[%s12378_s2 + $0x1e0] sm:$0xff] }
0x15d8   : > { %16462 = vst [vmem:[#allocation51_spill] sm:$0xff] %v14940_v17  ;;  %v14958_v32 = vadd.f32 %v11828_v48, %v8253_v23  ;;  %v8146_v47 = vadd.f32 %v16468_v33, %v14649_v56  ;;  %v8148_v25 = vadd.f32 %v16469_v3, %v14645_v37  ;;  %v14966_v11 = vadd.f32 %v11829_v54, %v10619_v40  ;;  %v11830_v31 = vld [vmem:[%s12378_s2 + $0x1e8] sm:$0xff]  ;;  %v11831_v3 = vld [vmem:[%s12378_s2 + $0x1d0] sm:$0xff] }
0x15d9   : > { %16463 = vst [vmem:[#allocation58_spill] sm:$0xff] %v14946_v9  ;;  %16465 = vst [vmem:[#allocation125_spill] sm:$0xff] %v14951_v53  ;;  %v8395_v13 = vadd.f32 %v8394_v28, %v14946_v9  ;;  %v8391_v20 = vadd.f32 %v8390_v44, %v14940_v17  ;;  %v14969_v21 = vadd.f32 %v11830_v31, %v10620_v61  ;;  %v16472_v44 = vld [vmem:[#allocation23_spill] sm:$0xff]  ;;  %v11833_v31 = vld [vmem:[%s12378_s2 + $0x1f0] sm:$0xff] }
0x15da   : > { %16466 = vst [vmem:[#allocation65_spill] sm:$0xff] %v14954_v10  ;;  %16467 = vst [vmem:[#allocation62_spill] sm:$0xff] %v14958_v32  ;;  %v8256_v36 = vpop.f32.mrb[4].mxu1  ;;  %v8150_v0 = vadd.f32 %v16472_v44, %v14649_v56  ;;  %v8399_v37 = vadd.f32 %v14954_v10, %v14951_v53  ;;  %v11834_v44 = vld [vmem:[%s12378_s2 + $0x1f8] sm:$0xff] }
0x15db   : > { %16470 = vst [vmem:[#allocation69_spill] sm:$0xff] %v14966_v11  ;;  %16471 = vst [vmem:[#allocation67_spill] sm:$0xff] %v14969_v21  ;;  %v8257_v28 = vadd.f32 %v8256_v36, %v8144_v12  ;;  %v8258_v23 = vpop.f32.mrb[5].mxu1  ;;  %8392 = vadd.xlane.f32.xlu1 %v8391_v20  ;;  %v8396_v61 = vadd.f32 %v8395_v13, %v14958_v32  ;;  %v11832_v12 = vld [vmem:[%s12378_s2 + $0x1d8] sm:$0xff]  ;;  %v8404_v56 = vadd.f32 %v14969_v21, %v14966_v11 }
0x15dc   : > { %v8259_v48 = vadd.f32 %v8258_v23, %v8146_v47  ;;  %v8260_v33 = vpop.f32.mrb[6].mxu1 }
0x15dd   : > { %v14976_v9 = vadd.f32 %v11831_v3, %v8257_v28  ;;  %v8261_v40 = vadd.f32 %v8260_v33, %v8148_v25  ;;  %v8262_v54 = vpop.f32.mrb[7].mxu1 }
0x15de   : > { %v14980_v36 = vadd.f32 %v11832_v12, %v8259_v48  ;;  %v8263_v20 = vadd.f32 %v8262_v54, %v8150_v0 }
0x15df   : > { %16473 = vst [vmem:[#allocation127_spill] sm:$0xff] %v14976_v9  ;;  %v8400_v47 = vadd.f32 %v8399_v37, %v14976_v9  ;;  %v14986_v23 = vadd.f32 %v11833_v31, %v8261_v40  ;;  %8397 = vadd.xlane.f32.xlu1 %v8396_v61 }
0x15e0   : > { %16474 = vst [vmem:[#allocation129_spill] sm:$0xff] %v14980_v36  ;;  %v14990_v25 = vadd.f32 %v11834_v44, %v8263_v20 }
0x15e1   : > { %16475 = vst [vmem:[#allocation73_spill] sm:$0xff] %v14986_v23  ;;  %v8405_v28 = vadd.f32 %v8404_v56, %v14986_v23  ;;  %v8401_v13 = vadd.f32 %v8400_v47, %v14980_v36 }
0x15e2   : > { %16476 = vst [vmem:[#allocation71_spill] sm:$0xff] %v14990_v25 }
0x15e3   : > { %8402 = vadd.xlane.f32.xlu1 %v8401_v13  ;;  %v8406_v48 = vadd.f32 %v8405_v28, %v14990_v25 }
0x15e7   : > { %8407 = vadd.xlane.f32.xlu1 %v8406_v48 }
0x15f1   : > { %v8333_v0 = vpop.xlane.xlu0 %8332 }
0x15f3   : > { %v8338_v37 = vpop.xlane.xlu1 %8337 }
0x15f4   : > { %v8409_v40 = vadd.f32 %v8338_v37, %v8333_v0 }
0x15f9   : > { %v8343_v33 = vpop.xlane.xlu0 %8342 }
0x15fa   : > { %v8410_v31 = vadd.f32 %v8409_v40, %v8343_v33 }
0x15fd   : > { %v8348_v3 = vpop.xlane.xlu0 %8347 }
0x15fe   : > { %v8411_v9 = vadd.f32 %v8410_v31, %v8348_v3 }
0x1601   : > { %v8353_v54 = vpop.xlane.xlu0 %8352 }
0x1602   : > { %v8412_v56 = vadd.f32 %v8411_v9, %v8353_v54 }
0x164b   : > { %v8373_v12 = vpop.xlane.xlu0 %8372 }
0x164e   : > { %v8378_v13 = vpop.xlane.xlu1 %8377 }
0x164f   : > { %v8358_v61 = vpop.xlane.xlu0 %8357  ;;  %v8422_v33 = vadd.f32 %v8378_v13, %v8373_v12 }
0x1650   : > { %v8413_v20 = vadd.f32 %v8412_v56, %v8358_v61 }
0x1653   : > { %v8363_v23 = vpop.xlane.xlu0 %8362  ;;  %v8383_v48 = vpop.xlane.xlu1 %8382 }
0x1654   : > { %v8414_v44 = vadd.f32 %v8413_v20, %v8363_v23  ;;  %v8423_v9 = vadd.f32 %v8422_v33, %v8383_v48 }
0x1657   : > { %v8368_v32 = vpop.xlane.xlu0 %8367  ;;  %v8388_v17 = vpop.xlane.xlu1 %8387 }
0x1658   : > { %v8415_v47 = vadd.f32 %v8414_v44, %v8368_v32 }
0x165a   : > { %v8416_v36 = vrot.slane %v8415_v47, 4 }
0x165c   : > { %v8417_v28 = vadd.f32 %v8416_v36, %v8415_v47 }
0x165e   : > { %v8418_v25 = vrot.slane %v8417_v28, 2 }
0x1660   : > { %v8419_v21 = vadd.f32 %v8418_v25, %v8417_v28 }
0x1662   : > { %v8420_v11 = vrot.slane %v8419_v21, 1 }
0x1664   : > { %v8421_v10 = vadd.f32 %v8420_v11, %v8419_v21  ;;  %v8424_v21 = vadd.f32 %v8423_v9, %v8388_v17 }
0x1666   : > { %v14994_v0 = vmul.f32 3.0517578e-05, %v8421_v10 }
0x1668   : > { %v8393_v53 = vpop.xlane.xlu1 %8392  ;;  %v14998_v23 = vsub.f32 %v14669_v19, %v14994_v0  ;;  %v15002_v32 = vsub.f32 %v14677_v15, %v14994_v0  ;;  %v15006_v36 = vsub.f32 %v14655_v1, %v14994_v0  ;;  %v15010_v11 = vsub.f32 %v14663_v5, %v14994_v0 }
0x1669   : > { %v15014_v10 = vsub.f32 %v14700_v60, %v14994_v0  ;;  %v15018_v19 = vsub.f32 %v14706_v16, %v14994_v0  ;;  %v15022_v15 = vsub.f32 %v14672_v59, %v14994_v0  ;;  %v15026_v1 = vsub.f32 %v14683_v38, %v14994_v0 }
0x166a   : > { %v15030_v5 = vsub.f32 %v14711_v62, %v14994_v0  ;;  %v15034_v60 = vsub.f32 %v14719_v30, %v14994_v0  ;;  %v8505_v16 = vmul.f32 %v14998_v23, %v14998_v23  ;;  %v8506_v59 = vmul.f32 %v15002_v32, %v15002_v32 }
0x166b   : > { %v8501_v17 = vmul.f32 %v15006_v36, %v15006_v36  ;;  %v8502_v38 = vmul.f32 %v15010_v11, %v15010_v11  ;;  %v8509_v62 = vmul.f32 %v15014_v10, %v15014_v10  ;;  %v8510_v54 = vmul.f32 %v15018_v19, %v15018_v19 }
0x166c   : > { %v8398_v3 = vpop.xlane.xlu1 %8397  ;;  %v15050_v30 = vsub.f32 %v14689_v55, %v14994_v0  ;;  %v8425_v37 = vadd.f32 %v8424_v21, %v8393_v53  ;;  %v15054_v12 = vsub.f32 %v14680_v51, %v14994_v0  ;;  %v15058_v40 = vsub.f32 %v14714_v2, %v14994_v0 }
0x166d   : > { %v15062_v31 = vsub.f32 %v14739_v4, %v14994_v0  ;;  %v15066_v61 = vsub.f32 %v14747_v42, %v14994_v0  ;;  %v8503_v55 = vmul.f32 %v15022_v15, %v15022_v15  ;;  %v8507_v53 = vmul.f32 %v15026_v1, %v15026_v1 }
0x166e   : > { %v8426_v51 = vadd.f32 %v8425_v37, %v8398_v3  ;;  %v8570_v56 = vadd.f32 %v8506_v59, %v8505_v16  ;;  %v8513_v2 = vmul.f32 %v15030_v5, %v15030_v5  ;;  %v8514_v20 = vmul.f32 %v15034_v60, %v15034_v60 }
0x166f   : > { %v8565_v4 = vadd.f32 %v8502_v38, %v8501_v17  ;;  %v8575_v47 = vadd.f32 %v8510_v54, %v8509_v62  ;;  %v15078_v42 = vsub.f32 %v14722_v29, %v14994_v0  ;;  %v8508_v28 = vmul.f32 %v15050_v30, %v15050_v30 }
0x1670   : > { %v8403_v25 = vpop.xlane.xlu1 %8402  ;;  %v8571_v48 = vadd.f32 %v8570_v56, %v8507_v53  ;;  %v15084_v33 = vsub.f32 %v14725_v63, %v14994_v0  ;;  %v8511_v3 = vmul.f32 %v15058_v40, %v15058_v40  ;;  %v8504_v9 = vmul.f32 %v15054_v12, %v15054_v12 }
0x1671   : > { %v8427_v13 = vadd.f32 %v8426_v51, %v8403_v25  ;;  %v8566_v21 = vadd.f32 %v8565_v4, %v8503_v55  ;;  %v8517_v29 = vmul.f32 %v15062_v31, %v15062_v31  ;;  %v8518_v59 = vmul.f32 %v15066_v61, %v15066_v61 }
0x1672   : > { %v8572_v16 = vadd.f32 %v8571_v48, %v8508_v28  ;;  %v8576_v38 = vadd.f32 %v8575_v47, %v8511_v3  ;;  %v8580_v62 = vadd.f32 %v8514_v20, %v8513_v2  ;;  %v15096_v54 = vsub.f32 %v14742_v49, %v14994_v0 }
0x1673   : > { %v8567_v17 = vadd.f32 %v8566_v21, %v8504_v9  ;;  %v15100_v37 = vsub.f32 %v14750_v6, %v14994_v0  ;;  %v8515_v55 = vmul.f32 %v15084_v33, %v15084_v33  ;;  %v8512_v53 = vmul.f32 %v15078_v42, %v15078_v42 }
0x1674   : > { %v8408_v44 = vpop.xlane.xlu1 %8407  ;;  %8573 = vadd.xlane.f32.xlu1 %v8572_v16  ;;  %v8585_v20 = vadd.f32 %v8518_v59, %v8517_v29  ;;  %v15108_v49 = vsub.f32 %v14756_v24, %v14994_v0  ;;  %v15118_v24 = vsub.f32 %v14767_v39, %v14994_v0  ;;  %v15122_v29 = vsub.f32 %v14770_v45, %v14994_v0 }
0x1675   : > { %v8428_v25 = vadd.f32 %v8427_v13, %v8408_v44  ;;  %8568 = vadd.xlane.f32.xlu0 %v8567_v17  ;;  %v8577_v56 = vadd.f32 %v8576_v38, %v8512_v53  ;;  %v8581_v2 = vadd.f32 %v8580_v62, %v8515_v55  ;;  %v8519_v6 = vmul.f32 %v15100_v37, %v15100_v37 }
0x1676   : > { %v8516_v44 = vmul.f32 %v15096_v54, %v15096_v54  ;;  %v8520_v3 = vmul.f32 %v15108_v49, %v15108_v49  ;;  %v15126_v16 = vsub.f32 %v14776_v50, %v14994_v0  ;;  %v15132_v59 = vsub.f32 %v14786_v57, %v14994_v0 }
0x1677   : > { %v8429_v63 = vrot.slane %v8428_v25, 4  ;;  %v8586_v28 = vadd.f32 %v8585_v20, %v8519_v6  ;;  %v15136_v17 = vsub.f32 %v14799_v52, %v14994_v0  ;;  %v15140_v39 = vsub.f32 %v14853_v34, %v14994_v0  ;;  %v16491_v6 = vld [vmem:[#allocation120_spill] sm:$0xff] }
0x1678   : > { %v8582_v13 = vadd.f32 %v8581_v2, %v8516_v44  ;;  %v15144_v45 = vsub.f32 %v14834_v18, %v14994_v0  ;;  %v15148_v50 = vsub.f32 %v14837_v43, %v14994_v0  ;;  %v8521_v57 = vmul.f32 %v15118_v24, %v15118_v24  ;;  %v16487_v2 = vld [vmem:[#allocation72_spill] sm:$0xff] }
0x1679   : > { %v8430_v51 = vadd.f32 %v8429_v63, %v8428_v25  ;;  %8578 = vadd.xlane.f32.xlu0 %v8577_v56  ;;  %v8587_v9 = vadd.f32 %v8586_v28, %v8520_v3  ;;  %v8522_v38 = vmul.f32 %v15122_v29, %v15122_v29  ;;  %v15156_v52 = vsub.f32 %v14779_v8, %v14994_v0 }
0x167a   : > { %16477 = vst [vmem:[#allocation89_spill] sm:$0xff] %v15144_v45  ;;  %16478 = vst [vmem:[#allocation90_spill] sm:$0xff] %v15148_v50  ;;  %v15160_v34 = vsub.f32 %v14877_v27, %v14994_v0  ;;  %v15164_v18 = vsub.f32 %v14880_v35, %v14994_v0  ;;  %v8523_v43 = vmul.f32 %v15126_v16, %v15126_v16 }
0x167b   : > { %v8431_v4 = vrot.slane %v8430_v51, 2  ;;  %v8525_v35 = vmul.f32 %v15132_v59, %v15132_v59  ;;  %v8526_v55 = vmul.f32 %v15136_v17, %v15136_v17  ;;  %v8590_v56 = vadd.f32 %v8522_v38, %v8521_v57  ;;  %v16495_v57 = vld [vmem:[#allocation123_spill] sm:$0xff] }
0x167c   : > { %16479 = vst [vmem:[#allocation27_spill] sm:$0xff] %v15164_v18 }
0x167d   : > { %v8432_v47 = vadd.f32 %v8431_v4, %v8430_v51  ;;  %8583 = vadd.xlane.f32.xlu0 %v8582_v13  ;;  %v8530_v51 = vmul.f32 %v15148_v50, %v15148_v50 }
0x167f   : > { %v8433_v48 = vrot.slane %v8432_v47, 1 }
0x1681   : > { %v8434_v21 = vadd.f32 %v8433_v48, %v8432_v47  ;;  %8588 = vadd.xlane.f32.xlu0 %v8587_v9  ;;  %v16493_v47 = vld [vmem:[#allocation88_spill] sm:$0xff] }
0x1683   : > { %v15128_v25 = vmul.f32 3.0517578e-05, %v8434_v21  ;;  %v8531_v21 = vmul.f32 %v15164_v18, %v15164_v18  ;;  %v16501_v18 = vld [vmem:[#allocation38_spill] sm:$0xff] }
0x1685   : > { %v15170_v62 = vsub.f32 %v14789_v46, %v15128_v25  ;;  %v15174_v63 = vsub.f32 %v14793_v26, %v15128_v25  ;;  %v15178_v8 = vsub.f32 %v14804_v14, %v15128_v25  ;;  %v15182_v27 = vsub.f32 %v14814_v22, %v15128_v25  ;;  %v16485_v26 = vld [vmem:[#allocation117_spill] sm:$0xff] }
0x1686   : > { %v15190_v46 = vsub.f32 %v14848_v7, %v15128_v25  ;;  %v15194_v53 = vsub.f32 %v16485_v26, %v15128_v25  ;;  %v8527_v14 = vmul.f32 %v15140_v39, %v15140_v39  ;;  %v8529_v22 = vmul.f32 %v15144_v45, %v15144_v45  ;;  %v16489_v7 = vld [vmem:[#allocation111_spill] sm:$0xff] }
0x1687   : > { %16480 = vst [vmem:[#allocation36_spill] sm:$0xff] %v15170_v62  ;;  %16481 = vst [vmem:[#allocation92_spill] sm:$0xff] %v15174_v63  ;;  %v15204_v20 = vsub.f32 %v16487_v2, %v15128_v25  ;;  %v15208_v4 = vsub.f32 %v16489_v7, %v15128_v25  ;;  %v15212_v44 = vsub.f32 %v16491_v6, %v15128_v25  ;;  %v16497_v7 = vld [vmem:[#allocation70_spill] sm:$0xff] }
0x1688   : > { %16482 = vst [vmem:[#allocation94_spill] sm:$0xff] %v15178_v8  ;;  %16483 = vst [vmem:[#allocation96_spill] sm:$0xff] %v15182_v27  ;;  %v15216_v13 = vsub.f32 %v16493_v47, %v15128_v25  ;;  %v8533_v28 = vmul.f32 %v15170_v62, %v15170_v62  ;;  %v8534_v48 = vmul.f32 %v15174_v63, %v15174_v63  ;;  %v16498_v47 = vld [vmem:[#allocation114_spill] sm:$0xff]  ;;  %v16500_v62 = vld [vmem:[#allocation32_spill] sm:$0xff] }
0x1689   : > { %16484 = vst [vmem:[#allocation98_spill] sm:$0xff] %v15190_v46  ;;  %16486 = vst [vmem:[#allocation100_spill] sm:$0xff] %v15194_v53  ;;  %v8537_v3 = vmul.f32 %v15178_v8, %v15178_v8  ;;  %v8538_v9 = vmul.f32 %v15182_v27, %v15182_v27  ;;  %v15230_v38 = vsub.f32 %v16495_v57, %v15128_v25 }
0x168a   : > { %16488 = vst [vmem:[#allocation102_spill] sm:$0xff] %v15204_v20  ;;  %16490 = vst [vmem:[#allocation126_spill] sm:$0xff] %v15208_v4  ;;  %v8541_v26 = vmul.f32 %v15190_v46, %v15190_v46  ;;  %v8542_v2 = vmul.f32 %v15194_v53, %v15194_v53  ;;  %v15238_v6 = vsub.f32 %v16497_v7, %v15128_v25 }
0x168b   : > { %16492 = vst [vmem:[#allocation48_spill] sm:$0xff] %v15212_v44  ;;  %16494 = vst [vmem:[#allocation42_spill] sm:$0xff] %v15216_v13  ;;  %v15242_v27 = vsub.f32 %v16498_v47, %v15128_v25  ;;  %v8591_v8 = vadd.f32 %v8590_v56, %v8523_v43  ;;  %v8595_v63 = vadd.f32 %v8526_v55, %v8525_v35 }
0x168c   : > { %16496 = vst [vmem:[#allocation75_spill] sm:$0xff] %v15230_v38  ;;  %v15246_v57 = vsub.f32 %v16500_v62, %v15128_v25  ;;  %v15250_v46 = vsub.f32 %v16501_v18, %v15128_v25  ;;  %v8535_v53 = vmul.f32 %v15204_v20, %v15204_v20  ;;  %v8539_v7 = vmul.f32 %v15208_v4, %v15208_v4  ;;  %v16503_v62 = vld [vmem:[#allocation25_spill] sm:$0xff]  ;;  %v16504_v18 = vld [vmem:[#allocation60_spill] sm:$0xff] }
0x168d   : > { %16499 = vst [vmem:[#allocation50_spill] sm:$0xff] %v15242_v27  ;;  %v8545_v47 = vmul.f32 %v15212_v44, %v15212_v44  ;;  %v8546_v43 = vmul.f32 %v15216_v13, %v15216_v13  ;;  %v8610_v35 = vadd.f32 %v8538_v9, %v8537_v3  ;;  %v8605_v55 = vadd.f32 %v8534_v48, %v8533_v28  ;;  %v16505_v9 = vld [vmem:[#allocation44_spill] sm:$0xff] }
0x168e   : > { %16502 = vst [vmem:[#allocation128_spill] sm:$0xff] %v15250_v46  ;;  %v15262_v56 = vsub.f32 %v16503_v62, %v15128_v25  ;;  %v15266_v50 = vsub.f32 %v16504_v18, %v15128_v25  ;;  %v8543_v20 = vmul.f32 %v15230_v38, %v15230_v38  ;;  %v8615_v4 = vadd.f32 %v8542_v2, %v8541_v26 }
0x168f   : > { %v8540_v44 = vmul.f32 %v15242_v27, %v15242_v27  ;;  %v8611_v45 = vadd.f32 %v8610_v35, %v8539_v7  ;;  %v8536_v3 = vmul.f32 %v15238_v6, %v15238_v6  ;;  %v8606_v28 = vadd.f32 %v8605_v55, %v8535_v53  ;;  %v16507_v53 = vld [vmem:[#allocation28_spill] sm:$0xff] }
0x1690   : > { %v15276_v48 = vsub.f32 %v14921_v41, %v15128_v25  ;;  %v15280_v62 = vsub.f32 %v16505_v9, %v15128_v25  ;;  %v8549_v18 = vmul.f32 %v15246_v57, %v15246_v57  ;;  %v8550_v26 = vmul.f32 %v15250_v46, %v15250_v46 }
0x1691   : > { %v8612_v2 = vadd.f32 %v8611_v45, %v8540_v44  ;;  %v8607_v7 = vadd.f32 %v8606_v28, %v8536_v3  ;;  %v8616_v35 = vadd.f32 %v8615_v4, %v8543_v20  ;;  %v8620_v13 = vadd.f32 %v8546_v43, %v8545_v47  ;;  %v16508_v20 = vld [vmem:[#allocation125_spill] sm:$0xff] }
0x1692   : > { %16506 = vst [vmem:[#allocation130_spill] sm:$0xff] %v15280_v62  ;;  %v15288_v55 = vsub.f32 %v16507_v53, %v15128_v25  ;;  %v8524_v41 = vmul.f32 %v15156_v52, %v15156_v52  ;;  %v8596_v38 = vadd.f32 %v8595_v63, %v8527_v14  ;;  %v8600_v9 = vadd.f32 %v8530_v51, %v8529_v22  ;;  %v16510_v44 = vld [vmem:[#allocation65_spill] sm:$0xff] }
0x1693   : > { %v15294_v27 = vsub.f32 %v14935_v58, %v15128_v25  ;;  %v8547_v46 = vmul.f32 %v15266_v50, %v15266_v50  ;;  %8613 = vadd.xlane.f32.xlu1 %v8612_v2  ;;  %8608 = vadd.xlane.f32.xlu0 %v8607_v7  ;;  %v8544_v45 = vmul.f32 %v15262_v56, %v15262_v56  ;;  %v16512_v3 = vld [vmem:[#allocation57_spill] sm:$0xff]  ;;  %v16513_v2 = vld [vmem:[#allocation51_spill] sm:$0xff] }
0x1694   : > { %v15302_v4 = vsub.f32 %v16508_v20, %v15128_v25  ;;  %v15306_v63 = vsub.f32 %v16510_v44, %v15128_v25  ;;  %v8553_v58 = vmul.f32 %v15276_v48, %v15276_v48  ;;  %v8592_v14 = vadd.f32 %v8591_v8, %v8524_v41  ;;  %v16514_v8 = vld [vmem:[#allocation58_spill] sm:$0xff] }
0x1695   : > { %v8554_v22 = vmul.f32 %v15280_v62, %v15280_v62  ;;  %v8617_v51 = vadd.f32 %v8616_v35, %v8544_v45  ;;  %v8621_v47 = vadd.f32 %v8620_v13, %v8547_v46  ;;  %v8625_v43 = vadd.f32 %v8550_v26, %v8549_v18  ;;  %v16516_v13 = vld [vmem:[#allocation69_spill] sm:$0xff]  ;;  %v16518_v26 = vld [vmem:[#allocation67_spill] sm:$0xff] }
0x1696   : > { %16509 = vst [vmem:[#allocation20_spill] sm:$0xff] %v15302_v4  ;;  %16511 = vst [vmem:[#allocation77_spill] sm:$0xff] %v15306_v63  ;;  %v15314_v28 = vsub.f32 %v16512_v3, %v14994_v0  ;;  %v15318_v7 = vsub.f32 %v16513_v2, %v15128_v25  ;;  %v8528_v53 = vmul.f32 %v15160_v34, %v15160_v34  ;;  %v16520_v3 = vld [vmem:[#allocation62_spill] sm:$0xff] }
0x1697   : > { %v8601_v20 = vadd.f32 %v8600_v9, %v8531_v21  ;;  %v15324_v41 = vsub.f32 %v16514_v8, %v15128_v25  ;;  %v8551_v46 = vmul.f32 %v15294_v27, %v15294_v27  ;;  %8618 = vadd.xlane.f32.xlu1 %v8617_v51  ;;  %8593 = vadd.xlane.f32.xlu0 %v8592_v14 }
0x1698   : > { %v8548_v0 = vmul.f32 %v15288_v55, %v15288_v55  ;;  %v15332_v18 = vsub.f32 %v16516_v13, %v15128_v25  ;;  %v15336_v35 = vsub.f32 %v16518_v26, %v15128_v25  ;;  %v8557_v21 = vmul.f32 %v15302_v4, %v15302_v4  ;;  %v16522_v13 = vld [vmem:[#allocation127_spill] sm:$0xff] }
0x1699   : > { %16515 = vst [vmem:[#allocation91_spill] sm:$0xff] %v15324_v41  ;;  %v8597_v9 = vadd.f32 %v8596_v38, %v8528_v53  ;;  %v8558_v45 = vmul.f32 %v15306_v63, %v15306_v63  ;;  %v8626_v14 = vadd.f32 %v8625_v43, %v8551_v46  ;;  %v8630_v51 = vadd.f32 %v8554_v22, %v8553_v58 }
0x169a   : > { %16517 = vst [vmem:[#allocation43_spill] sm:$0xff] %v15332_v18  ;;  %16519 = vst [vmem:[#allocation21_spill] sm:$0xff] %v15336_v35  ;;  %v8622_v44 = vadd.f32 %v8621_v47, %v8548_v0  ;;  %v15344_v2 = vsub.f32 %v16520_v3, %v15128_v25  ;;  %v8532_v8 = vmul.f32 %v15314_v28, %v15314_v28  ;;  %v16524_v3 = vld [vmem:[#allocation129_spill] sm:$0xff] }
0x169b   : > { %v15350_v26 = vsub.f32 %v16522_v13, %v15128_v25  ;;  %v8555_v38 = vmul.f32 %v15324_v41, %v15324_v41  ;;  %8598 = vadd.xlane.f32.xlu0 %v8597_v9  ;;  %v8552_v47 = vmul.f32 %v15318_v7, %v15318_v7  ;;  %v8561_v58 = vmul.f32 %v15332_v18, %v15332_v18 }
0x169c   : > { %16521 = vst [vmem:[#allocation93_spill] sm:$0xff] %v15344_v2  ;;  %8623 = vadd.xlane.f32.xlu1 %v8622_v44  ;;  %v8602_v22 = vadd.f32 %v8601_v20, %v8532_v8  ;;  %v8562_v43 = vmul.f32 %v15336_v35, %v15336_v35  ;;  %v8635_v0 = vadd.f32 %v8558_v45, %v8557_v21  ;;  %v16526_v44 = vld [vmem:[#allocation73_spill] sm:$0xff]  ;;  %v16528_v21 = vld [vmem:[#allocation71_spill] sm:$0xff] }
0x169d   : > { %16523 = vst [vmem:[#allocation95_spill] sm:$0xff] %v15350_v26  ;;  %v8627_v53 = vadd.f32 %v8626_v14, %v8552_v47  ;;  %v8631_v46 = vadd.f32 %v8630_v51, %v8555_v38  ;;  %v15362_v13 = vsub.f32 %v16524_v3, %v15128_v25  ;;  %v15366_v9 = vsub.f32 %v16526_v44, %v15128_v25 }
0x169e   : > { %v8559_v63 = vmul.f32 %v15350_v26, %v15350_v26  ;;  %v8556_v20 = vmul.f32 %v15344_v2, %v15344_v2  ;;  %v8640_v51 = vadd.f32 %v8562_v43, %v8561_v58  ;;  %v15374_v45 = vsub.f32 %v16528_v21, %v15128_v25 }
0x169f   : > { %16525 = vst [vmem:[#allocation97_spill] sm:$0xff] %v15362_v13  ;;  %16527 = vst [vmem:[#allocation99_spill] sm:$0xff] %v15366_v9  ;;  %8603 = vadd.xlane.f32.xlu0 %v8602_v22  ;;  %v8563_v38 = vmul.f32 %v15366_v9, %v15366_v9  ;;  %v8560_v47 = vmul.f32 %v15362_v13, %v15362_v13 }
0x16a0   : > { %8628 = vadd.xlane.f32.xlu1 %v8627_v53  ;;  %v8632_v8 = vadd.f32 %v8631_v46, %v8556_v20  ;;  %v8636_v14 = vadd.f32 %v8635_v0, %v8559_v63  ;;  %16529 = vst [vmem:[#allocation101_spill] sm:$0xff] %v15374_v45  ;;  %v8564_v22 = vmul.f32 %v15374_v45, %v15374_v45 }
0x16a1   : > { %v8641_v53 = vadd.f32 %v8640_v51, %v8563_v38 }
0x16a2   : > { %v8637_v3 = vadd.f32 %v8636_v14, %v8560_v47 }
0x16a3   : > { %v8642_v46 = vadd.f32 %v8641_v53, %v8564_v22 }
0x16a4   : > { %8633 = vadd.xlane.f32.xlu1 %v8632_v8 }
0x16a8   : > { %8638 = vadd.xlane.f32.xlu1 %v8637_v3 }
0x16ac   : > { %8643 = vadd.xlane.f32.xlu1 %v8642_v46 }
0x1701   : > { %v8574_v25 = vpop.xlane.xlu1 %8573 }
0x1702   : > { %v8569_v63 = vpop.xlane.xlu0 %8568 }
0x1703   : > { %v8645_v21 = vadd.f32 %v8574_v25, %v8569_v63 }
0x1706   : > { %v8579_v58 = vpop.xlane.xlu0 %8578 }
0x1707   : > { %v8646_v8 = vadd.f32 %v8645_v21, %v8579_v58 }
0x170a   : > { %v8584_v43 = vpop.xlane.xlu0 %8583 }
0x170b   : > { %v8647_v18 = vadd.f32 %v8646_v8, %v8584_v43 }
0x170e   : > { %v8589_v0 = vpop.xlane.xlu0 %8588 }
0x170f   : > { %v8648_v14 = vadd.f32 %v8647_v18, %v8589_v0 }
0x1720   : > { %v8614_v44 = vpop.xlane.xlu1 %8613  ;;  %v8609_v20 = vpop.xlane.xlu0 %8608 }
0x1721   : > { %v8658_v22 = vadd.f32 %v8614_v44, %v8609_v20 }
0x1724   : > { %v8619_v9 = vpop.xlane.xlu1 %8618  ;;  %v8594_v35 = vpop.xlane.xlu0 %8593 }
0x1725   : > { %v8649_v47 = vadd.f32 %v8648_v14, %v8594_v35  ;;  %v8659_v13 = vadd.f32 %v8658_v22, %v8619_v9 }
0x1728   : > { %v8599_v38 = vpop.xlane.xlu0 %8598 }
0x1729   : > { %v8624_v51 = vpop.xlane.xlu1 %8623  ;;  %v8650_v3 = vadd.f32 %v8649_v47, %v8599_v38 }
0x172a   : > { %v8660_v2 = vadd.f32 %v8659_v13, %v8624_v51  ;;  %v16532_v51 = vld [vmem:[#allocation35_spill] sm:$0xff] }
0x172c   : > { %v8604_v53 = vpop.xlane.xlu0 %8603 }
0x172d   : > { %v8629_v45 = vpop.xlane.xlu1 %8628  ;;  %v8651_v46 = vadd.f32 %v8650_v3, %v8604_v53 }
0x172e   : > { %v8661_v62 = vadd.f32 %v8660_v2, %v8629_v45  ;;  %v8741_v2 = vld [vmem:[%s15734_s8] sm:$0xf] }
0x172f   : > { %v8652_v26 = vrot.slane %v8651_v46, 4  ;;  %v15395_v53 = vrot.slane %v8741_v2, %v16532_v51 }
0x1731   : > { %v8634_v4 = vpop.xlane.xlu1 %8633  ;;  %v8653_v41 = vadd.f32 %v8652_v26, %v8651_v46  ;;  %v16533_v46 = vld [vmem:[#allocation30_spill] sm:$0xff] }
0x1732   : > { %v8662_v21 = vadd.f32 %v8661_v62, %v8634_v4  ;;  %v8827_v62 = vld [vmem:[%s16530_s21] sm:$0xf] }
0x1733   : > { %v8654_v63 = vrot.slane %v8653_v41, 2  ;;  %v15398_v22 = vrot.slane %v8827_v62, %v16532_v51 }
0x1735   : > { %v8639_v58 = vpop.xlane.xlu1 %8638  ;;  %v8655_v25 = vadd.f32 %v8654_v63, %v8653_v41  ;;  %v16531_v41 = vld [vmem:[#allocation63_spill] sm:$0xff]  ;;  %v15401_v63 = vrot.slane %v8741_v2, %v16533_v46 }
0x1736   : > { %v8663_v18 = vadd.f32 %v8662_v21, %v8639_v58  ;;  %v15389_v26 = vrot.slane %v8741_v2, %v16531_v41  ;;  %v15392_v45 = vrot.slane %v8827_v62, %v16531_v41  ;;  %v16534_v21 = vld [vmem:[#allocation31_spill] sm:$0xff] }
0x1737   : > { %v8656_v43 = vrot.slane %v8655_v25, 1  ;;  %v16537_v41 = vld [vmem:[#allocation27_spill] sm:$0xff] }
0x1739   : > { %v8644_v0 = vpop.xlane.xlu1 %8643  ;;  %v8657_v8 = vadd.f32 %v8656_v43, %v8655_v25  ;;  %v15404_v25 = vrot.slane %v8827_v62, %v16533_v46  ;;  %v15407_v43 = vrot.slane %v8741_v2, %v16534_v21 }
0x173a   : > { %v8664_v35 = vadd.f32 %v8663_v18, %v8644_v0  ;;  %v15410_v18 = vrot.slane %v8827_v62, %v16534_v21  ;;  %v16535_v62 = vld [vmem:[#allocation89_spill] sm:$0xff] }
0x173b   : > { %v8671_v14 = vmul.f32 3.0517578e-05, %v8657_v8 }
0x173c   : > { %v8665_v38 = vrot.slane %v8664_v35, 4 }
0x173d   : > { %v8673_v47 = vadd.f32 1e-12, %v8671_v14 }
0x173e   : > { %v8666_v44 = vadd.f32 %v8665_v38, %v8664_v35 }
0x173f   : > { %11765 = vrsqrt.f32 %v8673_v47 }
0x1740   : > { %v8667_v9 = vrot.slane %v8666_v44, 2 }
0x1742   : > { %v8668_v20 = vadd.f32 %v8667_v9, %v8666_v44 }
0x1744   : > { %v8669_v3 = vrot.slane %v8668_v20, 1 }
0x1746   : > { %v8670_v4 = vadd.f32 %v8669_v3, %v8668_v20 }
0x1748   : > { %v8672_v13 = vmul.f32 3.0517578e-05, %v8670_v4  ;;  %v16536_v4 = vld [vmem:[#allocation90_spill] sm:$0xff] }
0x1749   : > { %v11766_v58 = vpop.eup %11765 }
0x174a   : > { %v15412_v0 = vadd.f32 1e-12, %v8672_v13  ;;  %v8677_v8 = vmul.f32 %v11766_v58, %v15006_v36  ;;  %v8678_v35 = vmul.f32 %v11766_v58, %v15010_v11  ;;  %v8679_v14 = vmul.f32 %v11766_v58, %v15022_v15 }
0x174b   : > { %v8680_v38 = vmul.f32 %v11766_v58, %v15054_v12  ;;  %v8681_v47 = vmul.f32 %v11766_v58, %v14998_v23  ;;  %v8682_v44 = vmul.f32 %v11766_v58, %v15002_v32  ;;  %v8683_v9 = vmul.f32 %v11766_v58, %v15026_v1 }
0x174c   : > { %v8684_v20 = vmul.f32 %v11766_v58, %v15050_v30  ;;  %v8685_v3 = vmul.f32 %v11766_v58, %v15014_v10  ;;  %v8686_v2 = vmul.f32 %v11766_v58, %v15018_v19  ;;  %v8687_v36 = vmul.f32 %v11766_v58, %v15058_v40 }
0x174d   : > { %v8688_v11 = vmul.f32 %v11766_v58, %v15078_v42  ;;  %v8689_v15 = vmul.f32 %v11766_v58, %v15030_v5  ;;  %v8690_v12 = vmul.f32 %v11766_v58, %v15034_v60  ;;  %v8691_v23 = vmul.f32 %v11766_v58, %v15084_v33 }
0x174e   : > { %v8692_v32 = vmul.f32 %v11766_v58, %v15096_v54  ;;  %v8693_v1 = vmul.f32 %v11766_v58, %v15062_v31  ;;  %v8694_v30 = vmul.f32 %v11766_v58, %v15066_v61  ;;  %v8695_v10 = vmul.f32 %v11766_v58, %v15100_v37 }
0x174f   : > { %v8696_v19 = vmul.f32 %v11766_v58, %v15108_v49  ;;  %v8697_v40 = vmul.f32 %v11766_v58, %v15118_v24  ;;  %v8698_v42 = vmul.f32 %v11766_v58, %v15122_v29  ;;  %v8699_v5 = vmul.f32 %v11766_v58, %v15126_v16 }
0x1750   : > { %v8700_v60 = vmul.f32 %v11766_v58, %v15156_v52  ;;  %v8701_v33 = vmul.f32 %v11766_v58, %v15132_v59  ;;  %v8702_v54 = vmul.f32 %v11766_v58, %v15136_v17  ;;  %v8703_v31 = vmul.f32 %v11766_v58, %v15140_v39 }
0x1751   : > { %v8704_v61 = vmul.f32 %v11766_v58, %v15160_v34  ;;  %v8705_v37 = vmul.f32 %v11766_v58, %v16535_v62  ;;  %v8706_v49 = vmul.f32 %v11766_v58, %v16536_v4  ;;  %v8707_v24 = vmul.f32 %v11766_v58, %v16537_v41 }
0x1752   : > { %v8708_v29 = vmul.f32 %v11766_v58, %v15314_v28  ;;  %v8763_v16 = vmul.f32 %v15401_v63, %v8677_v8  ;;  %v8764_v52 = vmul.f32 %v15407_v43, %v8678_v35  ;;  %v8765_v59 = vmul.f32 %v15389_v26, %v8679_v14 }
0x1753   : > { %v8766_v17 = vmul.f32 %v15395_v53, %v8680_v38  ;;  %v8767_v39 = vmul.f32 %v15401_v63, %v8681_v47  ;;  %v8768_v34 = vmul.f32 %v15407_v43, %v8682_v44  ;;  %v8769_v13 = vmul.f32 %v15389_v26, %v8683_v9 }
0x1754   : > { %v8770_v51 = vmul.f32 %v15395_v53, %v8684_v20  ;;  %v8771_v46 = vmul.f32 %v15401_v63, %v8685_v3  ;;  %v8772_v28 = vmul.f32 %v15407_v43, %v8686_v2  ;;  %v8773_v58 = vmul.f32 %v15389_v26, %v8687_v36 }
0x1755   : > { %v8774_v21 = vmul.f32 %v15395_v53, %v8688_v11  ;;  %v8775_v8 = vmul.f32 %v15401_v63, %v8689_v15  ;;  %v8776_v35 = vmul.f32 %v15407_v43, %v8690_v12  ;;  %v8777_v14 = vmul.f32 %v15389_v26, %v8691_v23 }
0x1756   : > { %v8778_v38 = vmul.f32 %v15395_v53, %v8692_v32  ;;  %v8779_v47 = vmul.f32 %v15401_v63, %v8693_v1  ;;  %v8780_v44 = vmul.f32 %v15407_v43, %v8694_v30  ;;  %v8781_v9 = vmul.f32 %v15389_v26, %v8695_v10 }
0x1757   : > { %v8782_v20 = vmul.f32 %v15395_v53, %v8696_v19  ;;  %v8783_v3 = vmul.f32 %v15401_v63, %v8697_v40  ;;  %v8784_v2 = vmul.f32 %v15407_v43, %v8698_v42  ;;  %v8785_v36 = vmul.f32 %v15389_v26, %v8699_v5 }
0x1758   : > { %v8786_v11 = vmul.f32 %v15395_v53, %v8700_v60  ;;  %v8787_v15 = vmul.f32 %v15401_v63, %v8701_v33  ;;  %v8788_v12 = vmul.f32 %v15407_v43, %v8702_v54  ;;  %v8789_v23 = vmul.f32 %v15389_v26, %v8703_v31 }
0x1759   : > { %v8790_v32 = vmul.f32 %v15395_v53, %v8704_v61  ;;  %v8791_v1 = vmul.f32 %v15401_v63, %v8705_v37  ;;  %v8792_v30 = vmul.f32 %v15407_v43, %v8706_v49  ;;  %v8793_v10 = vmul.f32 %v15389_v26, %v8707_v24 }
0x175a   : > { %v8794_v19 = vmul.f32 %v15395_v53, %v8708_v29  ;;  %v8849_v40 = vadd.f32 %v15404_v25, %v8763_v16  ;;  %v8850_v42 = vadd.f32 %v15410_v18, %v8764_v52  ;;  %v8851_v5 = vadd.f32 %v15392_v45, %v8765_v59 }
0x175b   : > { %v8852_v60 = vadd.f32 %v15398_v22, %v8766_v17  ;;  %v8853_v33 = vadd.f32 %v15404_v25, %v8767_v39  ;;  %v8854_v54 = vadd.f32 %v15410_v18, %v8768_v34  ;;  %v8855_v31 = vadd.f32 %v15392_v45, %v8769_v13 }
0x175c   : > { %v8856_v61 = vadd.f32 %v15398_v22, %v8770_v51  ;;  %v8857_v62 = vadd.f32 %v15404_v25, %v8771_v46  ;;  %v8858_v37 = vadd.f32 %v15410_v18, %v8772_v28  ;;  %v8859_v4 = vadd.f32 %v15392_v45, %v8773_v58  ;;  %8913 = vst [vmem:[%s15492_s20] sm:$0xff] %v8849_v40  ;;  %v16545_v40 = vld [vmem:[#allocation98_spill] sm:$0xff] }
0x175d   : > { %v8860_v49 = vadd.f32 %v15398_v22, %v8774_v21  ;;  %8914 = vst [vmem:[%s15492_s20 + $0x8] sm:$0xff] %v8850_v42  ;;  %8915 = vst [vmem:[%s15492_s20 + $0x10] sm:$0xff] %v8851_v5  ;;  %v8861_v41 = vadd.f32 %v15404_v25, %v8775_v8  ;;  %v8862_v24 = vadd.f32 %v15410_v18, %v8776_v35  ;;  %11767 = vrsqrt.f32 %v15412_v0  ;;  %v16542_v0 = vld [vmem:[#allocation96_spill] sm:$0xff] }
0x175e   : > { %8916 = vst [vmem:[%s15492_s20 + $0x18] sm:$0xff] %v8852_v60  ;;  %v8863_v29 = vadd.f32 %v15392_v45, %v8777_v14  ;;  %v8864_v16 = vadd.f32 %v15398_v22, %v8778_v38  ;;  %8917 = vst [vmem:[%s15492_s20 + $0x20] sm:$0xff] %v8853_v33  ;;  %v8865_v52 = vadd.f32 %v15404_v25, %v8779_v47  ;;  %v16546_v5 = vld [vmem:[#allocation100_spill] sm:$0xff]  ;;  %v16547_v33 = vld [vmem:[#allocation75_spill] sm:$0xff] }
0x175f   : > { %8918 = vst [vmem:[%s15492_s20 + $0x28] sm:$0xff] %v8854_v54  ;;  %8919 = vst [vmem:[%s15492_s20 + $0x30] sm:$0xff] %v8855_v31  ;;  %v8866_v59 = vadd.f32 %v15410_v18, %v8780_v44  ;;  %v8867_v17 = vadd.f32 %v15392_v45, %v8781_v9  ;;  %v8868_v39 = vadd.f32 %v15398_v22, %v8782_v20  ;;  %v16538_v9 = vld [vmem:[#allocation36_spill] sm:$0xff] }
0x1760   : > { %8920 = vst [vmem:[%s15492_s20 + $0x38] sm:$0xff] %v8856_v61  ;;  %8921 = vst [vmem:[%s15492_s20 + $0x40] sm:$0xff] %v8857_v62  ;;  %v8869_v34 = vadd.f32 %v15404_v25, %v8783_v3  ;;  %v8870_v13 = vadd.f32 %v15410_v18, %v8784_v2  ;;  %v8871_v51 = vadd.f32 %v15392_v45, %v8785_v36  ;;  %v16539_v3 = vld [vmem:[#allocation92_spill] sm:$0xff]  ;;  %v16540_v36 = vld [vmem:[#allocation102_spill] sm:$0xff] }
0x1761   : > { %8922 = vst [vmem:[%s15492_s20 + $0x48] sm:$0xff] %v8858_v37  ;;  %8923 = vst [vmem:[%s15492_s20 + $0x50] sm:$0xff] %v8859_v4  ;;  %v8872_v46 = vadd.f32 %v15398_v22, %v8786_v11  ;;  %v8873_v28 = vadd.f32 %v15404_v25, %v8787_v15  ;;  %v8874_v58 = vadd.f32 %v15410_v18, %v8788_v12  ;;  %v16541_v12 = vld [vmem:[#allocation94_spill] sm:$0xff]  ;;  %v16548_v61 = vld [vmem:[#allocation48_spill] sm:$0xff] }
0x1762   : > { %8924 = vst [vmem:[%s15492_s20 + $0x58] sm:$0xff] %v8860_v49  ;;  %8925 = vst [vmem:[%s15492_s20 + $0x60] sm:$0xff] %v8861_v41  ;;  %v8875_v21 = vadd.f32 %v15392_v45, %v8789_v23  ;;  %v8876_v8 = vadd.f32 %v15398_v22, %v8790_v32  ;;  %v8877_v35 = vadd.f32 %v15404_v25, %v8791_v1  ;;  %v16543_v1 = vld [vmem:[#allocation126_spill] sm:$0xff] }
0x1763   : > { %8926 = vst [vmem:[%s15492_s20 + $0x68] sm:$0xff] %v8862_v24  ;;  %8927 = vst [vmem:[%s15492_s20 + $0x70] sm:$0xff] %v8863_v29  ;;  %v8878_v14 = vadd.f32 %v15410_v18, %v8792_v30  ;;  %v8879_v38 = vadd.f32 %v15392_v45, %v8793_v10  ;;  %v8880_v47 = vadd.f32 %v15398_v22, %v8794_v19  ;;  %v16544_v10 = vld [vmem:[#allocation50_spill] sm:$0xff]  ;;  %v16550_v24 = vld [vmem:[#allocation128_spill] sm:$0xff] }
0x1764   : > { %8928 = vst [vmem:[%s15492_s20 + $0x78] sm:$0xff] %v8864_v16  ;;  %8929 = vst [vmem:[%s15492_s20 + $0x80] sm:$0xff] %v8865_v52  ;;  %v16549_v37 = vld [vmem:[#allocation42_spill] sm:$0xff] }
0x1765   : > { %8930 = vst [vmem:[%s15492_s20 + $0x88] sm:$0xff] %v8866_v59  ;;  %8931 = vst [vmem:[%s15492_s20 + $0x90] sm:$0xff] %v8867_v17  ;;  %v16551_v17 = vld [vmem:[#allocation130_spill] sm:$0xff] }
0x1766   : > { %8932 = vst [vmem:[%s15492_s20 + $0x98] sm:$0xff] %v8868_v39  ;;  %8933 = vst [vmem:[%s15492_s20 + $0xa0] sm:$0xff] %v8869_v34  ;;  %v16552_v39 = vld [vmem:[#allocation91_spill] sm:$0xff] }
0x1767   : > { %8934 = vst [vmem:[%s15492_s20 + $0xa8] sm:$0xff] %v8870_v13  ;;  %8935 = vst [vmem:[%s15492_s20 + $0xb0] sm:$0xff] %v8871_v51  ;;  %v11768_v44 = vpop.eup %11767  ;;  %v16553_v13 = vld [vmem:[#allocation93_spill] sm:$0xff] }
0x1768   : > { %8936 = vst [vmem:[%s15492_s20 + $0xb8] sm:$0xff] %v8872_v46  ;;  %8937 = vst [vmem:[%s15492_s20 + $0xc0] sm:$0xff] %v8873_v28  ;;  %v8709_v20 = vmul.f32 %v11768_v44, %v16538_v9  ;;  %v8710_v2 = vmul.f32 %v11768_v44, %v16539_v3  ;;  %v8711_v11 = vmul.f32 %v11768_v44, %v16540_v36  ;;  %v16554_v46 = vld [vmem:[#allocation20_spill] sm:$0xff]  ;;  %v16555_v28 = vld [vmem:[#allocation77_spill] sm:$0xff] }
0x1769   : > { %8938 = vst [vmem:[%s15492_s20 + $0xc8] sm:$0xff] %v8874_v58  ;;  %8939 = vst [vmem:[%s15492_s20 + $0xd0] sm:$0xff] %v8875_v21  ;;  %v8712_v15 = vmul.f32 %v11768_v44, %v15238_v6  ;;  %v8713_v23 = vmul.f32 %v11768_v44, %v16541_v12  ;;  %v8714_v32 = vmul.f32 %v11768_v44, %v16542_v0  ;;  %v16556_v58 = vld [vmem:[#allocation95_spill] sm:$0xff]  ;;  %v16557_v21 = vld [vmem:[#allocation97_spill] sm:$0xff] }
0x176a   : > { %8940 = vst [vmem:[%s15492_s20 + $0xd8] sm:$0xff] %v8876_v8  ;;  %8941 = vst [vmem:[%s15492_s20 + $0xe0] sm:$0xff] %v8877_v35  ;;  %v8715_v30 = vmul.f32 %v11768_v44, %v16543_v1  ;;  %v8716_v19 = vmul.f32 %v11768_v44, %v16544_v10  ;;  %v8717_v42 = vmul.f32 %v11768_v44, %v16545_v40  ;;  %v16558_v35 = vld [vmem:[#allocation43_spill] sm:$0xff] }
0x176b   : > { %8942 = vst [vmem:[%s15492_s20 + $0xe8] sm:$0xff] %v8878_v14  ;;  %8943 = vst [vmem:[%s15492_s20 + $0xf0] sm:$0xff] %v8879_v38  ;;  %v8718_v60 = vmul.f32 %v11768_v44, %v16546_v5  ;;  %v8719_v54 = vmul.f32 %v11768_v44, %v16547_v33  ;;  %v8720_v31 = vmul.f32 %v11768_v44, %v15262_v56  ;;  %v16559_v14 = vld [vmem:[#allocation21_spill] sm:$0xff]  ;;  %v16560_v38 = vld [vmem:[#allocation99_spill] sm:$0xff] }
0x176c   : > { %8944 = vst [vmem:[%s15492_s20 + $0xf8] sm:$0xff] %v8880_v47  ;;  %v8721_v62 = vmul.f32 %v11768_v44, %v16548_v61  ;;  %v8722_v6 = vmul.f32 %v11768_v44, %v16549_v37  ;;  %v8723_v4 = vmul.f32 %v11768_v44, %v15266_v50  ;;  %v8724_v49 = vmul.f32 %v11768_v44, %v15288_v55  ;;  %v16561_v47 = vld [vmem:[#allocation101_spill] sm:$0xff] }
0x176d   : > { %v8725_v41 = vmul.f32 %v11768_v44, %v15246_v57  ;;  %v8726_v29 = vmul.f32 %v11768_v44, %v16550_v24  ;;  %v8727_v16 = vmul.f32 %v11768_v44, %v15294_v27  ;;  %v8728_v52 = vmul.f32 %v11768_v44, %v15318_v7 }
0x176e   : > { %v8729_v59 = vmul.f32 %v11768_v44, %v15276_v48  ;;  %v8730_v56 = vmul.f32 %v11768_v44, %v16551_v17  ;;  %v8731_v34 = vmul.f32 %v11768_v44, %v16552_v39  ;;  %v8732_v51 = vmul.f32 %v11768_v44, %v16553_v13 }
0x176f   : > { %v8733_v50 = vmul.f32 %v11768_v44, %v16554_v46  ;;  %v8734_v55 = vmul.f32 %v11768_v44, %v16555_v28  ;;  %v8735_v57 = vmul.f32 %v11768_v44, %v16556_v58  ;;  %v8736_v8 = vmul.f32 %v11768_v44, %v16557_v21 }
0x1770   : > { %v8737_v27 = vmul.f32 %v11768_v44, %v16558_v35  ;;  %v8738_v7 = vmul.f32 %v11768_v44, %v16559_v14  ;;  %v8739_v48 = vmul.f32 %v11768_v44, %v16560_v38  ;;  %v8740_v9 = vmul.f32 %v11768_v44, %v16561_v47 }
0x1771   : > { %v8795_v3 = vmul.f32 %v15401_v63, %v8709_v20  ;;  %v8796_v36 = vmul.f32 %v15407_v43, %v8710_v2  ;;  %v8797_v12 = vmul.f32 %v15389_v26, %v8711_v11  ;;  %v8798_v0 = vmul.f32 %v15395_v53, %v8712_v15 }
0x1772   : > { %v8799_v1 = vmul.f32 %v15401_v63, %v8713_v23  ;;  %v8800_v10 = vmul.f32 %v15407_v43, %v8714_v32  ;;  %v8801_v40 = vmul.f32 %v15389_v26, %v8715_v30  ;;  %v8802_v5 = vmul.f32 %v15395_v53, %v8716_v19 }
0x1773   : > { %v8803_v33 = vmul.f32 %v15401_v63, %v8717_v42  ;;  %v8804_v44 = vmul.f32 %v15407_v43, %v8718_v60  ;;  %v8805_v20 = vmul.f32 %v15389_v26, %v8719_v54  ;;  %v8806_v2 = vmul.f32 %v15395_v53, %v8720_v31 }
0x1774   : > { %v8807_v11 = vmul.f32 %v15401_v63, %v8721_v62  ;;  %v8808_v15 = vmul.f32 %v15407_v43, %v8722_v6  ;;  %v8809_v23 = vmul.f32 %v15389_v26, %v8723_v4  ;;  %v8810_v32 = vmul.f32 %v15395_v53, %v8724_v49 }
0x1775   : > { %v8811_v30 = vmul.f32 %v15401_v63, %v8725_v41  ;;  %v8812_v19 = vmul.f32 %v15407_v43, %v8726_v29  ;;  %v8813_v42 = vmul.f32 %v15389_v26, %v8727_v16  ;;  %v8814_v60 = vmul.f32 %v15395_v53, %v8728_v52 }
0x1776   : > { %v8815_v54 = vmul.f32 %v15401_v63, %v8729_v59  ;;  %v8816_v31 = vmul.f32 %v15407_v43, %v8730_v56  ;;  %v8817_v61 = vmul.f32 %v15389_v26, %v8731_v34  ;;  %v8818_v62 = vmul.f32 %v15395_v53, %v8732_v51 }
0x1777   : > { %v8819_v37 = vmul.f32 %v15401_v63, %v8733_v50  ;;  %v8820_v6 = vmul.f32 %v15407_v43, %v8734_v55  ;;  %v8821_v4 = vmul.f32 %v15389_v26, %v8735_v57  ;;  %v8822_v49 = vmul.f32 %v15395_v53, %v8736_v8 }
0x1778   : > { %v8823_v41 = vmul.f32 %v15401_v63, %v8737_v27  ;;  %v8824_v24 = vmul.f32 %v15407_v43, %v8738_v7  ;;  %v8825_v29 = vmul.f32 %v15389_v26, %v8739_v48  ;;  %v8826_v16 = vmul.f32 %v15395_v53, %v8740_v9 }
0x1779   : > { %v8881_v52 = vadd.f32 %v15404_v25, %v8795_v3  ;;  %v8882_v59 = vadd.f32 %v15410_v18, %v8796_v36  ;;  %v8883_v17 = vadd.f32 %v15392_v45, %v8797_v12  ;;  %v8884_v56 = vadd.f32 %v15398_v22, %v8798_v0 }
0x177a   : > { %v8885_v63 = vadd.f32 %v15404_v25, %v8799_v1  ;;  %v8886_v43 = vadd.f32 %v15410_v18, %v8800_v10  ;;  %v8887_v26 = vadd.f32 %v15392_v45, %v8801_v40  ;;  %v8888_v53 = vadd.f32 %v15398_v22, %v8802_v5 }
0x177b   : > { %v8889_v39 = vadd.f32 %v15404_v25, %v8803_v33  ;;  %v8890_v34 = vadd.f32 %v15410_v18, %v8804_v44  ;;  %v8891_v13 = vadd.f32 %v15392_v45, %v8805_v20  ;;  %v8892_v51 = vadd.f32 %v15398_v22, %v8806_v2  ;;  %8945 = vst [vmem:[%s15492_s20 + $0x100] sm:$0xff] %v8881_v52 }
0x177c   : > { %8946 = vst [vmem:[%s15492_s20 + $0x108] sm:$0xff] %v8882_v59  ;;  %8947 = vst [vmem:[%s15492_s20 + $0x110] sm:$0xff] %v8883_v17  ;;  %v8893_v46 = vadd.f32 %v15404_v25, %v8807_v11  ;;  %v8894_v50 = vadd.f32 %v15410_v18, %v8808_v15  ;;  %v8895_v28 = vadd.f32 %v15392_v45, %v8809_v23 }
0x177d   : > { %8948 = vst [vmem:[%s15492_s20 + $0x118] sm:$0xff] %v8884_v56  ;;  %v8896_v55 = vadd.f32 %v15398_v22, %v8810_v32  ;;  %8949 = vst [vmem:[%s15492_s20 + $0x120] sm:$0xff] %v8885_v63  ;;  %v8897_v58 = vadd.f32 %v15404_v25, %v8811_v30  ;;  %v8898_v57 = vadd.f32 %v15410_v18, %v8812_v19 }
0x177e   : > { %8950 = vst [vmem:[%s15492_s20 + $0x128] sm:$0xff] %v8886_v43  ;;  %8951 = vst [vmem:[%s15492_s20 + $0x130] sm:$0xff] %v8887_v26  ;;  %v8899_v21 = vadd.f32 %v15392_v45, %v8813_v42  ;;  %v8900_v8 = vadd.f32 %v15398_v22, %v8814_v60  ;;  %v8901_v35 = vadd.f32 %v15404_v25, %v8815_v54 }
0x177f   : > { %8952 = vst [vmem:[%s15492_s20 + $0x138] sm:$0xff] %v8888_v53  ;;  %8953 = vst [vmem:[%s15492_s20 + $0x140] sm:$0xff] %v8889_v39  ;;  %v8902_v27 = vadd.f32 %v15410_v18, %v8816_v31  ;;  %v8903_v14 = vadd.f32 %v15392_v45, %v8817_v61  ;;  %v8904_v7 = vadd.f32 %v15398_v22, %v8818_v62 }
0x1780   : > { %8954 = vst [vmem:[%s15492_s20 + $0x148] sm:$0xff] %v8890_v34  ;;  %8955 = vst [vmem:[%s15492_s20 + $0x150] sm:$0xff] %v8891_v13  ;;  %v8905_v38 = vadd.f32 %v15404_v25, %v8819_v37  ;;  %v8906_v48 = vadd.f32 %v15410_v18, %v8820_v6  ;;  %v8907_v47 = vadd.f32 %v15392_v45, %v8821_v4 }
0x1781   : > { %8956 = vst [vmem:[%s15492_s20 + $0x158] sm:$0xff] %v8892_v51  ;;  %8957 = vst [vmem:[%s15492_s20 + $0x160] sm:$0xff] %v8893_v46  ;;  %v8908_v9 = vadd.f32 %v15398_v22, %v8822_v49  ;;  %v8909_v3 = vadd.f32 %v15404_v25, %v8823_v41  ;;  %v8910_v36 = vadd.f32 %v15410_v18, %v8824_v24 }
0x1782   : > { %8958 = vst [vmem:[%s15492_s20 + $0x168] sm:$0xff] %v8894_v50  ;;  %8959 = vst [vmem:[%s15492_s20 + $0x170] sm:$0xff] %v8895_v28  ;;  %v8911_v12 = vadd.f32 %v15392_v45, %v8825_v29  ;;  %v8912_v0 = vadd.f32 %v15398_v22, %v8826_v16 }
0x1783   : > { %8960 = vst [vmem:[%s15492_s20 + $0x178] sm:$0xff] %v8896_v55  ;;  %8961 = vst [vmem:[%s15492_s20 + $0x180] sm:$0xff] %v8897_v58 }
0x1784   : > { %8962 = vst [vmem:[%s15492_s20 + $0x188] sm:$0xff] %v8898_v57  ;;  %8963 = vst [vmem:[%s15492_s20 + $0x190] sm:$0xff] %v8899_v21 }
0x1785   : > { %8964 = vst [vmem:[%s15492_s20 + $0x198] sm:$0xff] %v8900_v8  ;;  %8965 = vst [vmem:[%s15492_s20 + $0x1a0] sm:$0xff] %v8901_v35 }
0x1786   : > { %8966 = vst [vmem:[%s15492_s20 + $0x1a8] sm:$0xff] %v8902_v27  ;;  %8967 = vst [vmem:[%s15492_s20 + $0x1b0] sm:$0xff] %v8903_v14 }
0x1787   : > { %8968 = vst [vmem:[%s15492_s20 + $0x1b8] sm:$0xff] %v8904_v7  ;;  %8969 = vst [vmem:[%s15492_s20 + $0x1c0] sm:$0xff] %v8905_v38 }
0x1788   : > { %8970 = vst [vmem:[%s15492_s20 + $0x1c8] sm:$0xff] %v8906_v48  ;;  %8971 = vst [vmem:[%s15492_s20 + $0x1d0] sm:$0xff] %v8907_v47 }
0x1789   : > { %8972 = vst [vmem:[%s15492_s20 + $0x1d8] sm:$0xff] %v8908_v9  ;;  %8973 = vst [vmem:[%s15492_s20 + $0x1e0] sm:$0xff] %v8909_v3 }
0x178a   : > { %8974 = vst [vmem:[%s15492_s20 + $0x1e8] sm:$0xff] %v8910_v36  ;;  %8975 = vst [vmem:[%s15492_s20 + $0x1f0] sm:$0xff] %v8911_v12 }
0x178b   : > { %8976 = vst [vmem:[%s15492_s20 + $0x1f8] sm:$0xff] %v8912_v0 }
0x178c   : > { %11992 = shalt.err (!%p11989_p3)
}
0x178d   : > { %s11993_s24 = scalar_lea.hbm %s15664_s23, 8192  ;;  %s11997_s30 = scalar_lea.hbm %s16562_s11, 16384 }
0x178e   : > { %p11994_p9 = scmp.ne.s32.totalorder %s15664_s23, %s11993_s24  ;;  %p11998_p7 = scmp.lt.u32.totalorder %s15664_s23, %s16562_s11 }
0x178f   : > { %p11999_p12 = scmp.lt.u32.totalorder %s11997_s30, %s11993_s24  ;;  %p12001_p2 = scmp.lt.u32.totalorder %s11993_s24, %s15664_s23 }
0x1790   : > { %p11995_p13 = pnand %p11994_p9, %p12277_p5 }
0x1791   : > { %p12000_p1 = por %p11999_p12, %p11998_p7 }
0x1792   : > { %p11996_p11 = pneg %p11995_p13 }
0x1793   : > { %p12002_p4 = por %p12001_p2, %p12000_p1 }
0x1795   : > { %p12003_p0 = pnand %p12002_p4, %p11996_p11 }
0x1797   : > { %12006 = shalt.err (!%p12003_p0)
}
0x1798   : > { %s12069_s21 = smov 512   ;;  %s12070_s20 = smov 32  }
0x1799   : > { %11053 = dma.vmem_to_hbm [thread:$0]  (%p12277_p5), %s15666_s10, 8192, %s15664_s23, %s8978_s26, %s12069_s21, %s12069_s21, %s12070_s20  }
0x179a PF: > { %s16563_s22 = sld [smem:[#allocation18_spill]]  ;;  %s16564_s17 = sld [smem:[#allocation19_spill]] }
0x179b   : > { %p16566_p6 = scmp.ge.s32.totalorder %s12057_s16, 2 }
0x17a0   : > { %s9007_s19 = sand.u32 1, %s16563_s22   ;;  %p16565_p8 = scmp.ne.s32.totalorder %s16564_s17, 0 }
0x17a1   : > { %s9008_s28 = scalar_lea.sflag [#allocation5], %s9007_s19 }
0x17a2   : > { %p11073_p10 = pnand %p16566_p6, %p16565_p8 }
0x17a4   : > { %12040 = dma.done.wait (!%p11073_p10), %s9008_s28, 8192  }
0x17a5   : > { %12042 = vsyncadd (!%p11073_p10), %s9008_s28, 4294959104  ;;  %s16567_s12 = smov %s12273_s13  ;;  %p27_p3 = scmp.ge.s32.totalorder %s12242_s18, 4  }
0x17a6   : > { %s16568_s13 = smov %s12049_s14  ;;  %s16569_s14 = smov %s12053_s15 }
0x17a7   : > { %s16570_s15 = smov %s16567_s12  ;;  %s16571_s16 = smov %s12242_s18 }
0x17a8   :  { %29 = sbr.rel (!%p27_p3) target bundleno = 15 (0xf), region = 130 }
0x17af   :  { %9013 = vsyncpa [#allocation4], 1 }
0x17b0   :  { %9015 = vsyncpa [#allocation4 + $0x1], 1 }
0x17b1   :  { %9016 = vsyncpa [#allocation7], 1 }
0x17b2   :  { %9018 = vsyncpa [#allocation7 + $0x1], 1 }
0x17b3   :  { %9019 = vsyncpa [#allocation10], 1 }
0x17b4   :  { %9020 = vsyncpa [#allocation5], 1 }
0x17b5   :  { %9022 = vsyncpa [#allocation5 + $0x1], 1 }

</bundles_post_ra>
